<compile_context>
chip_gen: v7x
topology: tpu7x:2x2x1
jax: 0.10.0
libtpu: 0.0.40
codegen_flags: <defaults>
</compile_context>

<pallas_src>
import functools
import math

import jax
import jax.numpy as jnp
from jax.experimental import pallas as pl
from jax.experimental.pallas import tpu as pltpu


MXU_DTYPE = jnp.bfloat16      # bf16 MXU operands, f32 accumulation
HEAD_PAD = 128                # per-head lane band (keeps every attention operand lane-dense)


def _default_vmem_limit():
    # Per-generation VMEM budget: ~half of physical capacity, capped.
    try:
        cap = pltpu.get_tpu_info().vmem_capacity_bytes
        return int(min(cap // 2, 100 * 1024 * 1024))
    except Exception:
        return 32 * 1024 * 1024


VMEM_LIMIT = _default_vmem_limit()
_TN_CAP = 1024 if VMEM_LIMIT >= (64 << 20) else 512   # bigger tiles on 128 MiB parts


# ------------------------------- helpers ----------------------------------

def _round_up(x, m):
    return ((x + m - 1) // m) * m


def _pad2(a, rows, cols):
    r, c = a.shape
    if r == rows and c == cols:
        return a
    return jnp.pad(a, ((0, rows - r), (0, cols - c)))


def _pick_tile(n, cap):
    """Largest multiple of 128 <= cap that divides n (n is a multiple of 128)."""
    assert n % 128 == 0
    best, t = 128, 128
    while t <= min(cap, n):
        if n % t == 0:
            best = t
        t += 128
    return best


# --------------------------- fused linear kernel ---------------------------
# y = [LN(x)] @ W + b  [+ ReLU] [+ residual]
# Tiled (M, N, K) grid, f32 VMEM accumulator; when LN is fused (tk == K) the
# normalized tile is cached in VMEM scratch so it is computed once per row tile.

def _linear_kernel(*refs, relu, has_ln, has_res, true_k):
    it = iter(refs)
    x_ref = next(it)
    w_ref = next(it)
    b_ref = next(it)
    if has_ln:
        g_ref = next(it)
        beta_ref = next(it)
    if has_res:
        res_ref = next(it)
    o_ref = next(it)
    acc_ref = next(it)
    xn_ref = next(it) if has_ln else None

    j = pl.program_id(1)
    k = pl.program_id(2)

    @pl.when(k == 0)
    def _init():
        acc_ref[...] = jnp.zeros_like(acc_ref)

    if has_ln:
        # tk == full K when LN is fused -> single k step.  Normalize once per row tile
        # (j == 0) and cache; padded feature columns end up exactly 0 because gamma/beta
        # are zero-padded.  Variance uses the two-pass (x - mu)^2 form, masked to true_k.
        @pl.when(j == 0)
        def _ln():
            xf = x_ref[...].astype(jnp.float32)
            inv = 1.0 / true_k
            mu = jnp.sum(xf, axis=-1, keepdims=True) * inv
            xc = xf - mu
            col = jax.lax.broadcasted_iota(jnp.int32, xc.shape, 1)
            var = jnp.sum(jnp.where(col < true_k, xc * xc, 0.0),
                          axis=-1, keepdims=True) * inv
            xn_ref[...] = xc * jax.lax.rsqrt(var + 1e-5) * g_ref[...] + beta_ref[...]

        lhs = xn_ref[...].astype(MXU_DTYPE)
    else:
        lhs = x_ref[...]

    acc_ref[...] += jnp.dot(lhs, w_ref[...], preferred_element_type=jnp.float32)

    @pl.when(k == pl.num_programs(2) - 1)
    def _finalize():
        y = acc_ref[...] + b_ref[...]
        if relu:
            y = jnp.maximum(y, 0.0)
        if has_res:
            y = y + res_ref[...].astype(jnp.float32)
        o_ref[...] = y.astype(o_ref.dtype)


def linear(x, w, b, *, relu=False, ln=None, ln_dim=None, residual=None,
           out_dtype=jnp.bfloat16):
    """y = [LN(x)] @ w + b [+relu] [+residual].

    x:(M,K) bf16 lane-padded, w:(K,N) bf16 pre-padded, b:(1,N) f32 pre-padded."""
    M, K = x.shape
    Kw, N = w.shape
    assert Kw == K and K % 128 == 0 and N % 128 == 0
    tm = min(256, _round_up(M, 8))
    Mp = _round_up(M, tm)
    tn = _pick_tile(N, _TN_CAP)
    tk = K if ln is not None else _pick_tile(K, _TN_CAP)

    xin = x if Mp == M else jnp.pad(x, ((0, Mp - M), (0, 0)))
    inputs = [xin, w, b]
    in_specs = [
        pl.BlockSpec((tm, tk), lambda i, j, k: (i, k)),
        pl.BlockSpec((tk, tn), lambda i, j, k: (k, j)),
        pl.BlockSpec((1, tn), lambda i, j, k: (0, j)),
    ]
    if ln is not None:
        assert ln_dim is not None
        g, beta = ln
        inputs += [g, beta]
        in_specs += [pl.BlockSpec((1, K), lambda i, j, k: (0, 0)),
                     pl.BlockSpec((1, K), lambda i, j, k: (0, 0))]
    if residual is not None:
        rin = residual if Mp == M else jnp.pad(residual, ((0, Mp - M), (0, 0)))
        inputs.append(rin)
        in_specs.append(pl.BlockSpec((tm, tn), lambda i, j, k: (i, j)))

    scratch = [pltpu.VMEM((tm, tn), jnp.float32)]
    if ln is not None:
        scratch.append(pltpu.VMEM((tm, K), jnp.float32))

    # With the LN scratch cache keyed on j == 0, the N axis must not be split across
    # cores -> mark it "arbitrary" in that case (rows stay "parallel").
    dims = (("parallel", "arbitrary", "arbitrary") if ln is not None
            else ("parallel", "parallel", "arbitrary"))

    out = pl.pallas_call(
        functools.partial(_linear_kernel, relu=relu, has_ln=ln is not None,
                          has_res=residual is not None,
                          true_k=(ln_dim if ln is not None else K)),
        out_shape=jax.ShapeDtypeStruct((Mp, N), out_dtype),
        grid=(Mp // tm, N // tn, K // tk),
        in_specs=in_specs,
        out_specs=pl.BlockSpec((tm, tn), lambda i, j, k: (i, j)),
        scratch_shapes=scratch,
        compiler_params=pltpu.CompilerParams(
            dimension_semantics=dims, vmem_limit_bytes=VMEM_LIMIT),
    )(*inputs)
    return out if Mp == M else out[:M]


# ------------------------- fused 2-layer MLP kernel -------------------------
# y = relu([LN(x)] @ W1 + b1) @ W2 + b2  [+ x]   (hidden stays in VMEM)

def _mlp2_kernel(*refs, has_ln, has_res, true_k):
    it = iter(refs)
    x_ref = next(it)
    w1_ref = next(it)
    b1_ref = next(it)
    w2_ref = next(it)
    b2_ref = next(it)
    if has_ln:
        g_ref = next(it)
        beta_ref = next(it)
    o_ref = next(it)

    x = x_ref[...]
    if has_ln:
        xf = x.astype(jnp.float32)
        inv = 1.0 / true_k
        mu = jnp.sum(xf, axis=-1, keepdims=True) * inv
        xc = xf - mu
        col = jax.lax.broadcasted_iota(jnp.int32, xc.shape, 1)
        var = jnp.sum(jnp.where(col < true_k, xc * xc, 0.0),
                      axis=-1, keepdims=True) * inv
        xn = (xc * jax.lax.rsqrt(var + 1e-5) * g_ref[...] + beta_ref[...]).astype(MXU_DTYPE)
    else:
        xn = x
    h = jnp.dot(xn, w1_ref[...], preferred_element_type=jnp.float32) + b1_ref[...]
    h = jnp.maximum(h, 0.0)
    y = jnp.dot(h.astype(MXU_DTYPE), w2_ref[...], preferred_element_type=jnp.float32) + b2_ref[...]
    if has_res:
        y = y + x.astype(jnp.float32)
    o_ref[...] = y.astype(o_ref.dtype)


def fused_mlp(x, w1, b1, w2, b2, *, ln=None, ln_dim=None, residual=False,
              out_dtype=jnp.bfloat16):
    M, K = x.shape
    K1, Hp = w1.shape
    H2, N = w2.shape
    assert K1 == K and H2 == Hp
    if residual:
        assert K == N

    # v7x safeguard: if both resident weights would not comfortably fit the VMEM budget,
    # fall back to two K/N-tiled linear launches instead of keeping them whole.
    if (w1.size + w2.size) * 2 > VMEM_LIMIT // 4:
        h = linear(x, w1, b1, relu=True, ln=ln, ln_dim=ln_dim)
        return linear(h, w2, b2, residual=x if residual else None, out_dtype=out_dtype)

    tm = min(256, _round_up(M, 8))
    Mp = _round_up(M, tm)
    xin = x if Mp == M else jnp.pad(x, ((0, Mp - M), (0, 0)))

    inputs = [xin, w1, b1, w2, b2]
    in_specs = [
        pl.BlockSpec((tm, K), lambda i: (i, 0)),
        pl.BlockSpec((K, Hp), lambda i: (0, 0)),
        pl.BlockSpec((1, Hp), lambda i: (0, 0)),
        pl.BlockSpec((Hp, N), lambda i: (0, 0)),
        pl.BlockSpec((1, N), lambda i: (0, 0)),
    ]
    if ln is not None:
        assert ln_dim is not None
        g, beta = ln
        inputs += [g, beta]
        in_specs += [pl.BlockSpec((1, K), lambda i: (0, 0)),
                     pl.BlockSpec((1, K), lambda i: (0, 0))]

    out = pl.pallas_call(
        functools.partial(_mlp2_kernel, has_ln=ln is not None, has_res=residual,
                          true_k=(ln_dim if ln is not None else K)),
        out_shape=jax.ShapeDtypeStruct((Mp, N), out_dtype),
        grid=(Mp // tm,),
        in_specs=in_specs,
        out_specs=pl.BlockSpec((tm, N), lambda i: (i, 0)),
        compiler_params=pltpu.CompilerParams(
            dimension_semantics=("parallel",),
            vmem_limit_bytes=VMEM_LIMIT),
    )(*inputs)
    return out if Mp == M else out[:M]


# ----------------------------- attention kernel -----------------------------
# Head-banded layout: head h of a projection lives in lane band [h*128, h*128+dh) (rest
# zero).  Grid = (batch, head); the BlockSpec index_map pulls the band directly from the
# packed projection output, so there is no in-kernel head slicing and no concatenation.
# Zero-padded lanes contribute nothing to the QK^T contraction or the PV product.

def _attn_kernel(q_ref, k_ref, v_ref, o_ref, *, causal, scale):
    q = q_ref[0]                                    # (Tq, 128) bf16
    k = k_ref[0]                                    # (Tk, 128) bf16
    v = v_ref[0]                                    # (Tk, 128) bf16
    s = jax.lax.dot_general(q, k, (((1,), (1,)), ((), ())),
                            preferred_element_type=jnp.float32) * scale
    if causal:
        tq, tk = s.shape
        row = jax.lax.broadcasted_iota(jnp.int32, (tq, tk), 0)
        col = jax.lax.broadcasted_iota(jnp.int32, (tq, tk), 1)
        s = jnp.where(col <= row, s, -1e30)
    s = s - jnp.max(s, axis=-1, keepdims=True)
    p = jnp.exp(s)
    p = p / jnp.sum(p, axis=-1, keepdims=True)
    o_ref[0] = jnp.dot(p.astype(MXU_DTYPE), v,
                       preferred_element_type=jnp.float32).astype(o_ref.dtype)


def attention(q_arr, kv_arr, *, num_heads, causal, dh_true, k_band, v_band):
    """q_arr:(B,Tq,>=H*128), kv_arr:(B,Tk,...).  Head h uses q band h, k band k_band+h,
    v band v_band+h (128-lane bands).  Returns (B, Tq, H*128) bf16, head-banded."""
    B, Tq, _ = q_arr.shape
    Tk = kv_arr.shape[1]
    scale = 1.0 / math.sqrt(dh_true)
    return pl.pallas_call(
        functools.partial(_attn_kernel, causal=causal, scale=scale),
        out_shape=jax.ShapeDtypeStruct((B, Tq, num_heads * HEAD_PAD), jnp.bfloat16),
        grid=(B, num_heads),
        in_specs=[
            pl.BlockSpec((1, Tq, HEAD_PAD), lambda b, h: (b, 0, h)),
            pl.BlockSpec((1, Tk, HEAD_PAD), lambda b, h: (b, 0, k_band + h)),
            pl.BlockSpec((1, Tk, HEAD_PAD), lambda b, h: (b, 0, v_band + h)),
        ],
        out_specs=pl.BlockSpec((1, Tq, HEAD_PAD), lambda b, h: (b, 0, h)),
        compiler_params=pltpu.CompilerParams(
            dimension_semantics=("parallel", "parallel"),
            vmem_limit_bytes=VMEM_LIMIT),
    )(q_arr, kv_arr, kv_arr)


# --------------------------- composed sub-modules --------------------------

def mha_self(p, x2d, B, T, num_heads, d_true, causal, ln):
    """Pre-LN self-attention sub-layer: x + Wo @ attn(LN(x))   (2-D, lane-padded)."""
    H = num_heads
    qkv = linear(x2d, p["w_qkv"], p["b_qkv"], ln=ln, ln_dim=d_true)   # (B*T, 3*H*128)
    qkv3 = qkv.reshape(B, T, 3 * H * HEAD_PAD)
    o = attention(qkv3, qkv3, num_heads=H, causal=causal, dh_true=d_true // H,
                  k_band=H, v_band=2 * H)
    return linear(o.reshape(B * T, H * HEAD_PAD), p["wo"], p["bo"], residual=x2d)


def mha_cross(p, x2d, kv_all3, blk_idx, B, Tq, num_heads, d_true, ln_q):
    """Cross-attention: queries from LN(x); K/V taken from the pre-computed stacked
    projection of the encoder memory (encoder final LN already applied there, once)."""
    H = num_heads
    q3 = linear(x2d, p["wq"], p["bq"], ln=ln_q, ln_dim=d_true).reshape(B, Tq, H * HEAD_PAD)
    o = attention(q3, kv_all3, num_heads=H, causal=False, dh_true=d_true // H,
                  k_band=blk_idx * 2 * H, v_band=blk_idx * 2 * H + H)
    return linear(o.reshape(B * Tq, H * HEAD_PAD), p["wo"], p["bo"], residual=x2d)


def vit_encoder(p, src, cfg):
    """ViTEncoder (is_conv=False): linear patch embedding + pos emb + pre-LN blocks.
    Returns PRE-final-LN activations; final LN is fused into the decoder K/V projection."""
    B, C, Himg, Wimg = src.shape
    ps = cfg["patch_size"]
    nh, nw = Himg // ps, Wimg // ps
    n_patches = nh * nw
    D = cfg["d_model"]
    H = cfg["num_heads"]
    DP = _round_up(D, 128)
    patch_dim = C * ps * ps
    patch_pad = _round_up(patch_dim, 128)

    # patchify (glue): (B, C, H, W) -> (B*n_patches, C*ps*ps), padded once to lane width.
    x = (src.reshape(B, C, nh, ps, nw, ps)
            .transpose(0, 2, 4, 1, 3, 5)
            .reshape(B * n_patches, patch_dim))
    xp = jnp.pad(x, ((0, 0), (0, patch_pad - patch_dim))).astype(jnp.bfloat16)
    pos2d = jnp.broadcast_to(p["pos"], (B, n_patches, DP)).reshape(B * n_patches, DP)

    x2d = linear(xp, p["patch_w"], p["patch_b"], residual=pos2d)
    for blk in p["blocks"]:
        x2d = mha_self(blk["attn"], x2d, B, n_patches, H, D, False,
                       (blk["ln1_g"], blk["ln1_b"]))
        x2d = fused_mlp(x2d, blk["ffn"]["w1"], blk["ffn"]["b1"],
                        blk["ffn"]["w2"], blk["ffn"]["b2"],
                        ln=(blk["ln2_g"], blk["ln2_b"]), ln_dim=D, residual=True)
    return x2d, (p["ln_g"], p["ln_b"]), n_patches


def decoder(p, tgt, mem2d, enc_ln, n_patches, cfg):
    """Decoder: token emb + learned pos emb + masked self-attn / cross-attn blocks.
    Returns PRE-final-LN activations; final LN is fused into the MLP head."""
    B, T = tgt.shape
    D = cfg["d_model"]
    H = cfg["num_heads"]
    DP = _round_up(D, 128)

    x = p["tok_emb"][tgt] + p["pos"][:, :T, :]          # embedding gather (glue), bf16
    x2d = x.reshape(B * T, DP)

    # All decoder blocks' cross-attn K/V projections in ONE launch: the encoder final LN
    # is applied exactly once, and the memory is read from HBM once instead of n_blocks x.
    kv_all = linear(mem2d, p["w_kv_all"], p["b_kv_all"], ln=enc_ln, ln_dim=D)
    kv_all3 = kv_all.reshape(B, n_patches, -1)

    for i, blk in enumerate(p["blocks"]):
        x2d = mha_self(blk["self_attn"], x2d, B, T, H, D, True,
                       (blk["ln1_g"], blk["ln1_b"]))
        x2d = mha_cross(blk["cross_attn"], x2d, kv_all3, i, B, T, H, D,
                        (blk["ln2_g"], blk["ln2_b"]))
        x2d = fused_mlp(x2d, blk["ffn"]["w1"], blk["ffn"]["b1"],
                        blk["ffn"]["w2"], blk["ffn"]["b2"],
                        ln=(blk["ln3_g"], blk["ln3_b"]), ln_dim=D, residual=True)
    return x2d, (p["ln_g"], p["ln_b"])


def transformer_forward(params, src, tgt, cfg):
    mem2d, enc_ln, n_patches = vit_encoder(params["enc"], src, cfg)
    B, T = tgt.shape
    dec2d, dec_ln = decoder(params["dec"], tgt, mem2d, enc_ln, n_patches, cfg)
    # MLP head: (decoder final LN) -> Linear(d, hidden) -> ReLU -> Linear(hidden, vocab)
    out = fused_mlp(dec2d, params["mlp"]["w1"], params["mlp"]["b1"],
                    params["mlp"]["w2"], params["mlp"]["b2"],
                    ln=dec_ln, ln_dim=cfg["d_model"], residual=False,
                    out_dtype=jnp.float32)
    V = cfg["vocab_size"]
    return out[:, :V].reshape(B, T, V)          # single un-pad at the very end


# ------------------------------ initialization -----------------------------
# Weights are created in their final padded / packed / bf16 layouts so the forward pass
# never pads or casts a parameter.

def _dense(key, fan_in, fan_out):
    w = jax.random.normal(key, (fan_in, fan_out), jnp.float32) * 0.02
    b = jnp.zeros((fan_out,), jnp.float32)
    return w, b


def _pad_w(w, rows, cols):
    return _pad2(w, rows, cols).astype(jnp.bfloat16)


def _pad_b(b, cols):
    return _pad2(b.reshape(1, -1), 1, cols)     # f32


def _head_cols(w, num_heads, dh, rows_pad):
    """(K, num_heads*dh) -> (rows_pad, num_heads*128) bf16; head h in lane band h."""
    K = w.shape[0]
    out = jnp.zeros((rows_pad, num_heads, HEAD_PAD), jnp.float32)
    out = out.at[:K, :, :dh].set(w.reshape(K, num_heads, dh))
    return out.reshape(rows_pad, num_heads * HEAD_PAD).astype(jnp.bfloat16)


def _head_cols_bias(b, num_heads, dh):
    out = jnp.zeros((num_heads, HEAD_PAD), jnp.float32).at[:, :dh].set(
        b.reshape(num_heads, dh))
    return out.reshape(1, num_heads * HEAD_PAD)


def _head_rows(w, num_heads, dh, cols_pad):
    """(num_heads*dh, N) -> (num_heads*128, cols_pad) bf16; head h in sublane band h."""
    N = w.shape[1]
    out = jnp.zeros((num_heads, HEAD_PAD, cols_pad), jnp.float32)
    out = out.at[:, :dh, :N].set(w.reshape(num_heads, dh, N))
    return out.reshape(num_heads * HEAD_PAD, cols_pad).astype(jnp.bfloat16)


def _init_attn_self(key, d, num_heads, dp):
    dh = d // num_heads
    k1, k2, k3, k4 = jax.random.split(key, 4)
    wq, bq = _dense(k1, d, d)
    wk, bk = _dense(k2, d, d)
    wv, bv = _dense(k3, d, d)
    wo, bo = _dense(k4, d, d)
    w_qkv = jnp.concatenate([_head_cols(wq, num_heads, dh, dp),
                             _head_cols(wk, num_heads, dh, dp),
                             _head_cols(wv, num_heads, dh, dp)], axis=1)
    b_qkv = jnp.concatenate([_head_cols_bias(bq, num_heads, dh),
                             _head_cols_bias(bk, num_heads, dh),
                             _head_cols_bias(bv, num_heads, dh)], axis=1)
    return dict(w_qkv=w_qkv, b_qkv=b_qkv,
                wo=_head_rows(wo, num_heads, dh, dp), bo=_pad_b(bo, dp))


def _init_attn_cross(key, d, num_heads, dp):
    dh = d // num_heads
    k1, k2, k3, k4 = jax.random.split(key, 4)
    wq, bq = _dense(k1, d, d)
    wk, bk = _dense(k2, d, d)
    wv, bv = _dense(k3, d, d)
    wo, bo = _dense(k4, d, d)
    w_kv = jnp.concatenate([_head_cols(wk, num_heads, dh, dp),
                            _head_cols(wv, num_heads, dh, dp)], axis=1)
    b_kv = jnp.concatenate([_head_cols_bias(bk, num_heads, dh),
                            _head_cols_bias(bv, num_heads, dh)], axis=1)
    blk = dict(wq=_head_cols(wq, num_heads, dh, dp),
               bq=_head_cols_bias(bq, num_heads, dh),
               wo=_head_rows(wo, num_heads, dh, dp), bo=_pad_b(bo, dp))
    return blk, w_kv, b_kv


def _init_ffn(key, d, mul, dp):
    k1, k2 = jax.random.split(key)
    hd = mul * d
    hp = _round_up(hd, 128)
    w1, b1 = _dense(k1, d, hd)
    w2, b2 = _dense(k2, hd, d)
    return dict(w1=_pad_w(w1, dp, hp), b1=_pad_b(b1, hp),
                w2=_pad_w(w2, hp, dp), b2=_pad_b(b2, dp))


def _ln(d, dp):
    g = jnp.zeros((1, dp), jnp.float32).at[0, :d].set(1.0)   # zero-padded gamma
    b = jnp.zeros((1, dp), jnp.float32)
    return g, b


def init_params(key, cfg):
    d = cfg["d_model"]
    H = cfg["num_heads"]
    mul = cfg["mul"]
    ps = cfg["patch_size"]
    dp = _round_up(d, 128)
    n_patches = (cfg["img_size"] // ps) ** 2
    patch_dim = cfg["in_channels"] * ps * ps
    patch_pad = _round_up(patch_dim, 128)

    keys = iter(jax.random.split(key, 64))

    # ---- encoder ----
    pw, pb = _dense(next(keys), patch_dim, d)
    enc_blocks = []
    for _ in range(cfg["n_blocks"]):
        g1, b1 = _ln(d, dp)
        g2, b2 = _ln(d, dp)
        enc_blocks.append(dict(
            attn=_init_attn_self(next(keys), d, H, dp),
            ffn=_init_ffn(next(keys), d, mul, dp),
            ln1_g=g1, ln1_b=b1, ln2_g=g2, ln2_b=b2,
        ))
    eg, eb = _ln(d, dp)
    pos_e = jax.random.normal(next(keys), (1, n_patches, d), jnp.float32) * 0.02
    enc = dict(
        patch_w=_pad_w(pw, patch_pad, dp), patch_b=_pad_b(pb, dp),
        pos=jnp.pad(pos_e, ((0, 0), (0, 0), (0, dp - d))).astype(jnp.bfloat16),
        blocks=enc_blocks, ln_g=eg, ln_b=eb,
    )

    # ---- decoder ----
    dec_blocks, kv_ws, kv_bs = [], [], []
    for _ in range(cfg["n_blocks"]):
        g1, b1 = _ln(d, dp)
        g2, b2 = _ln(d, dp)
        g3, b3 = _ln(d, dp)
        cross, w_kv, b_kv = _init_attn_cross(next(keys), d, H, dp)
        kv_ws.append(w_kv)
        kv_bs.append(b_kv)
        dec_blocks.append(dict(
            self_attn=_init_attn_self(next(keys), d, H, dp),
            cross_attn=cross,
            ffn=_init_ffn(next(keys), d, mul, dp),
            ln1_g=g1, ln1_b=b1, ln2_g=g2, ln2_b=b2, ln3_g=g3, ln3_b=b3,
        ))
    dg, db = _ln(d, dp)
    tok = jax.random.normal(next(keys), (cfg["vocab_size"], d), jnp.float32) * 0.02
    pos_d = jax.random.normal(next(keys), (1, cfg["max_length"], d), jnp.float32) * 0.02
    dec = dict(
        tok_emb=jnp.pad(tok, ((0, 0), (0, dp - d))).astype(jnp.bfloat16),
        pos=jnp.pad(pos_d, ((0, 0), (0, 0), (0, dp - d))).astype(jnp.bfloat16),
        w_kv_all=jnp.concatenate(kv_ws, axis=1),          # (dp, n_blocks*2*H*128) bf16
        b_kv_all=jnp.concatenate(kv_bs, axis=1),          # (1,  n_blocks*2*H*128) f32
        blocks=dec_blocks, ln_g=dg, ln_b=db,
    )

    # ---- MLP head ----
    hs = cfg["hidden_size"]
    hp = _round_up(hs, 128)
    vp = _round_up(cfg["vocab_size"], 128)
    w1, b1 = _dense(next(keys), d, hs)
    w2, b2 = _dense(next(keys), hs, cfg["vocab_size"])
    mlp = dict(w1=_pad_w(w1, dp, hp), b1=_pad_b(b1, hp),
               w2=_pad_w(w2, hp, vp), b2=_pad_b(b2, vp))

    return dict(enc=enc, dec=dec, mlp=mlp)


# ----------------------------------- main -----------------------------------

if __name__ == "__main__":
    cfg = dict(
        d_model=32, num_heads=4, n_blocks=2, vocab_size=64, max_length=8,
        hidden_size=64, mul=4, patch_size=4, img_size=16, in_channels=3, batch=2,
    )

    key = jax.random.PRNGKey(0)
    pkey, skey, tkey = jax.random.split(key, 3)

    params = init_params(pkey, cfg)
    src = jax.random.normal(
        skey, (cfg["batch"], cfg["in_channels"], cfg["img_size"], cfg["img_size"]),
        jnp.float32)                                           # NCHW image
    tgt = jax.random.randint(
        tkey, (cfg["batch"], cfg["max_length"]), 0, cfg["vocab_size"], jnp.int32)

    fwd = jax.jit(lambda p, s, t: transformer_forward(p, s, t, cfg))
    out = fwd(params, src, tgt)
    out = jax.block_until_ready(out)
    assert out.shape == (cfg["batch"], cfg["max_length"], cfg["vocab_size"])
    assert out.dtype == jnp.float32
    assert bool(jnp.all(jnp.isfinite(out)))
    print("KERNEL_OK")
</pallas_src>

<mosaic_0001>
module attributes {stable_mosaic.version = 11 : i64} {
  func.func @_attn_kernel(%arg0: i32, %arg1: i32, %arg2: memref<1x16x128xbf16, #tpu.memory_space<vmem>>, %arg3: memref<1x16x128xbf16, #tpu.memory_space<vmem>>, %arg4: memref<1x16x128xbf16, #tpu.memory_space<vmem>>, %arg5: memref<1x16x128xbf16, #tpu.memory_space<vmem>>) attributes {dimension_semantics = [#tpu.dimension_semantics<parallel>, #tpu.dimension_semantics<parallel>], iteration_bounds = array<i64: 2, 4>, scalar_prefetch = 0 : i64, scratch_operands = 0 : i64, tpu.core_type = #tpu.core_type<tc>, window_params = [{transform_indices = @transform_0, window_bounds = array<i64: 1, 16, 128>}, {transform_indices = @transform_1, window_bounds = array<i64: 1, 16, 128>}, {transform_indices = @transform_2, window_bounds = array<i64: 1, 16, 128>}, {transform_indices = @transform_3, window_bounds = array<i64: 1, 16, 128>}]} {
    %c0 = arith.constant 0 : index
    %c0_0 = arith.constant 0 : index
    %c0_1 = arith.constant 0 : index
    %0 = vector.load %arg2[%c0, %c0_0, %c0_1] : memref<1x16x128xbf16, #tpu.memory_space<vmem>>, vector<1x16x128xbf16>
    %1 = vector.shape_cast %0 : vector<1x16x128xbf16> to vector<16x128xbf16>
    %c0_2 = arith.constant 0 : index
    %c0_3 = arith.constant 0 : index
    %c0_4 = arith.constant 0 : index
    %2 = vector.load %arg3[%c0_2, %c0_3, %c0_4] : memref<1x16x128xbf16, #tpu.memory_space<vmem>>, vector<1x16x128xbf16>
    %3 = vector.shape_cast %2 : vector<1x16x128xbf16> to vector<16x128xbf16>
    %c0_5 = arith.constant 0 : index
    %c0_6 = arith.constant 0 : index
    %c0_7 = arith.constant 0 : index
    %4 = vector.load %arg4[%c0_5, %c0_6, %c0_7] : memref<1x16x128xbf16, #tpu.memory_space<vmem>>, vector<1x16x128xbf16>
    %5 = vector.shape_cast %4 : vector<1x16x128xbf16> to vector<16x128xbf16>
    %cst = arith.constant dense<0.000000e+00> : vector<16x16xf32>
    %6 = tpu.matmul %1, %3, %cst {dimension_numbers = #tpu.dot_dimension_numbers<[1], [1], [0], [0], [0, 0, 1, 0], [], []>} : vector<16x128xbf16>, vector<16x128xbf16>, vector<16x16xf32> -> vector<16x16xf32>
    %cst_8 = arith.constant 0.353553385 : f32
    %7 = vector.broadcast %cst_8 : f32 to vector<16x16xf32>
    %8 = arith.mulf %6, %7 : vector<16x16xf32>
    %cst_9 = arith.constant dense<0xFF800000> : vector<16xf32>
    %9 = vector.multi_reduction <maximumf>, %8, %cst_9 [1] : vector<16x16xf32> to vector<16xf32>
    %10 = vector.shape_cast %9 : vector<16xf32> to vector<16x1xf32>
    %11 = vector.broadcast %10 : vector<16x1xf32> to vector<16x16xf32>
    %12 = arith.subf %8, %11 : vector<16x16xf32>
    %13 = math.exp %12 : vector<16x16xf32>
    %cst_10 = arith.constant dense<0.000000e+00> : vector<16xf32>
    %14 = vector.multi_reduction <add>, %13, %cst_10 [1] : vector<16x16xf32> to vector<16xf32>
    %15 = vector.shape_cast %14 : vector<16xf32> to vector<16x1xf32>
    %16 = vector.broadcast %15 : vector<16x1xf32> to vector<16x16xf32>
    %17 = arith.divf %13, %16 : vector<16x16xf32>
    %18 = arith.truncf %17 : vector<16x16xf32> to vector<16x16xbf16>
    %cst_11 = arith.constant dense<0.000000e+00> : vector<16x128xf32>
    %19 = tpu.matmul %18, %5, %cst_11 {dimension_numbers = #tpu.dot_dimension_numbers<[1], [0], [0], [1], [0, 0, 1, 1], [], []>} : vector<16x16xbf16>, vector<16x128xbf16>, vector<16x128xf32> -> vector<16x128xf32>
    %20 = arith.truncf %19 : vector<16x128xf32> to vector<16x128xbf16>
    %c0_12 = arith.constant 0 : index
    %c0_13 = arith.constant 0 : index
    %c0_14 = arith.constant 0 : index
    %21 = vector.load %arg5[%c0_12, %c0_13, %c0_14] : memref<1x16x128xbf16, #tpu.memory_space<vmem>>, vector<1x16x128xbf16>
    %22 = vector.shape_cast %21 : vector<1x16x128xbf16> to vector<16x128xbf16>
    %23 = vector.shape_cast %20 : vector<16x128xbf16> to vector<1x16x128xbf16>
    tpu.vector_store %arg5[%c0_12, %c0_13, %c0_14], %23 {strides = array<i32>} : memref<1x16x128xbf16, #tpu.memory_space<vmem>>, vector<1x16x128xbf16>,
    return
  }
  func.func @transform_0(%arg0: i32, %arg1: i32) -> (i32, i32, i32) {
    %c0_i32 = arith.constant 0 : i32
    %c0_i32_0 = arith.constant 0 : i32
    return %arg0, %c0_i32, %arg1 : i32, i32, i32
  }
  func.func @transform_1(%arg0: i32, %arg1: i32) -> (i32, i32, i32) {
    %c4_i32 = arith.constant 4 : i32
    %0 = arith.addi %c4_i32, %arg1 : i32
    %c0_i32 = arith.constant 0 : i32
    %c0_i32_0 = arith.constant 0 : i32
    return %arg0, %c0_i32, %0 : i32, i32, i32
  }
  func.func @transform_2(%arg0: i32, %arg1: i32) -> (i32, i32, i32) {
    %c8_i32 = arith.constant 8 : i32
    %0 = arith.addi %c8_i32, %arg1 : i32
    %c0_i32 = arith.constant 0 : i32
    %c0_i32_0 = arith.constant 0 : i32
    return %arg0, %c0_i32, %0 : i32, i32, i32
  }
  func.func @transform_3(%arg0: i32, %arg1: i32) -> (i32, i32, i32) {
    %c0_i32 = arith.constant 0 : i32
    %c0_i32_0 = arith.constant 0 : i32
    return %arg0, %c0_i32, %arg1 : i32, i32, i32
  }
}

module attributes {stable_mosaic.version = 11 : i64} {
  func.func @_linear_kernel(%arg0: i32, %arg1: i32, %arg2: i32, %arg3: memref<32x128xbf16, #tpu.memory_space<vmem>>, %arg4: memref<128x128xbf16, #tpu.memory_space<vmem>>, %arg5: memref<1x128xf32, #tpu.memory_space<vmem>>, %arg6: memref<32x128xbf16, #tpu.memory_space<vmem>>, %arg7: memref<32x128xbf16, #tpu.memory_space<vmem>>, %arg8: memref<32x128xf32, #tpu.memory_space<vmem>>) attributes {dimension_semantics = [#tpu.dimension_semantics<parallel>, #tpu.dimension_semantics<parallel>, #tpu.dimension_semantics<arbitrary>], iteration_bounds = array<i64: 1, 1, 1>, scalar_prefetch = 0 : i64, scratch_operands = 1 : i64, tpu.core_type = #tpu.core_type<tc>, window_params = [{transform_indices = @transform_0, window_bounds = array<i64: 32, 128>}, {transform_indices = @transform_1, window_bounds = array<i64: 128, 128>}, {transform_indices = @transform_2, window_bounds = array<i64: 1, 128>}, {transform_indices = @transform_3, window_bounds = array<i64: 32, 128>}, {transform_indices = @transform_4, window_bounds = array<i64: 32, 128>}]} {
    %c0_i32 = arith.constant 0 : i32
    %0 = arith.cmpi eq, %arg2, %c0_i32 : i32
    %1 = arith.extui %0 : i1 to i32
    %c0_i32_0 = arith.constant 0 : i32
    %2 = arith.cmpi ne, %1, %c0_i32_0 : i32
    scf.if %2 {
      %cst_10 = arith.constant 0.000000e+00 : f32
      %12 = vector.broadcast %cst_10 : f32 to vector<32x128xf32>
      %c0_11 = arith.constant 0 : index
      %c0_12 = arith.constant 0 : index
      %13 = vector.load %arg8[%c0_11, %c0_12] : memref<32x128xf32, #tpu.memory_space<vmem>>, vector<32x128xf32>
      tpu.vector_store %arg8[%c0_11, %c0_12], %12 {strides = array<i32>} : memref<32x128xf32, #tpu.memory_space<vmem>>, vector<32x128xf32>,
    } else {
    }
    %c0 = arith.constant 0 : index
    %c0_1 = arith.constant 0 : index
    %3 = vector.load %arg3[%c0, %c0_1] : memref<32x128xbf16, #tpu.memory_space<vmem>>, vector<32x128xbf16>
    %c0_2 = arith.constant 0 : index
    %c0_3 = arith.constant 0 : index
    %4 = vector.load %arg8[%c0_2, %c0_3] : memref<32x128xf32, #tpu.memory_space<vmem>>, vector<32x128xf32>
    %c0_4 = arith.constant 0 : index
    %c0_5 = arith.constant 0 : index
    %5 = vector.load %arg4[%c0_4, %c0_5] : memref<128x128xbf16, #tpu.memory_space<vmem>>, vector<128x128xbf16>
    %cst = arith.constant dense<0.000000e+00> : vector<32x128xf32>
    %6 = tpu.matmul %3, %5, %cst {dimension_numbers = #tpu.dot_dimension_numbers<[1], [0], [0], [1], [0, 0, 1, 1], [], []>} : vector<32x128xbf16>, vector<128x128xbf16>, vector<32x128xf32> -> vector<32x128xf32>
    %7 = arith.addf %4, %6 : vector<32x128xf32>
    %c0_6 = arith.constant 0 : index
    %c0_7 = arith.constant 0 : index
    %8 = vector.load %arg8[%c0_6, %c0_7] : memref<32x128xf32, #tpu.memory_space<vmem>>, vector<32x128xf32>
    tpu.vector_store %arg8[%c0_6, %c0_7], %7 {strides = array<i32>} : memref<32x128xf32, #tpu.memory_space<vmem>>, vector<32x128xf32>,
    %c0_i32_8 = arith.constant 0 : i32
    %9 = arith.cmpi eq, %arg2, %c0_i32_8 : i32
    %10 = arith.extui %9 : i1 to i32
    %c0_i32_9 = arith.constant 0 : i32
    %11 = arith.cmpi ne, %10, %c0_i32_9 : i32
    scf.if %11 {
      %c0_10 = arith.constant 0 : index
      %c0_11 = arith.constant 0 : index
      %12 = vector.load %arg8[%c0_10, %c0_11] : memref<32x128xf32, #tpu.memory_space<vmem>>, vector<32x128xf32>
      %c0_12 = arith.constant 0 : index
      %c0_13 = arith.constant 0 : index
      %13 = vector.load %arg5[%c0_12, %c0_13] : memref<1x128xf32, #tpu.memory_space<vmem>>, vector<1x128xf32>
      %14 = vector.broadcast %13 : vector<1x128xf32> to vector<32x128xf32>
      %15 = arith.addf %12, %14 : vector<32x128xf32>
      %c0_14 = arith.constant 0 : index
      %c0_15 = arith.constant 0 : index
      %16 = vector.load %arg6[%c0_14, %c0_15] : memref<32x128xbf16, #tpu.memory_space<vmem>>, vector<32x128xbf16>
      %17 = arith.extf %16 : vector<32x128xbf16> to vector<32x128xf32>
      %18 = arith.addf %15, %17 : vector<32x128xf32>
      %19 = arith.truncf %18 : vector<32x128xf32> to vector<32x128xbf16>
      %c0_16 = arith.constant 0 : index
      %c0_17 = arith.constant 0 : index
      %20 = vector.load %arg7[%c0_16, %c0_17] : memref<32x128xbf16, #tpu.memory_space<vmem>>, vector<32x128xbf16>
      tpu.vector_store %arg7[%c0_16, %c0_17], %19 {strides = array<i32>} : memref<32x128xbf16, #tpu.memory_space<vmem>>, vector<32x128xbf16>,
    } else {
    }
    return
  }
  func.func @transform_0(%arg0: i32, %arg1: i32, %arg2: i32) -> (i32, i32) {
    %c0_i32 = arith.constant 0 : i32
    return %arg0, %arg2 : i32, i32
  }
  func.func @transform_1(%arg0: i32, %arg1: i32, %arg2: i32) -> (i32, i32) {
    %c0_i32 = arith.constant 0 : i32
    return %arg2, %arg1 : i32, i32
  }
  func.func @transform_2(%arg0: i32, %arg1: i32, %arg2: i32) -> (i32, i32) {
    %c0_i32 = arith.constant 0 : i32
    %c0_i32_0 = arith.constant 0 : i32
    return %c0_i32, %arg1 : i32, i32
  }
  func.func @transform_3(%arg0: i32, %arg1: i32, %arg2: i32) -> (i32, i32) {
    %c0_i32 = arith.constant 0 : i32
    return %arg0, %arg1 : i32, i32
  }
  func.func @transform_4(%arg0: i32, %arg1: i32, %arg2: i32) -> (i32, i32) {
    %c0_i32 = arith.constant 0 : i32
    return %arg0, %arg1 : i32, i32
  }
}

module attributes {stable_mosaic.version = 11 : i64} {
  func.func @_linear_kernel(%arg0: i32, %arg1: i32, %arg2: i32, %arg3: memref<32x512xbf16, #tpu.memory_space<vmem>>, %arg4: memref<512x128xbf16, #tpu.memory_space<vmem>>, %arg5: memref<1x128xf32, #tpu.memory_space<vmem>>, %arg6: memref<32x128xbf16, #tpu.memory_space<vmem>>, %arg7: memref<32x128xbf16, #tpu.memory_space<vmem>>, %arg8: memref<32x128xf32, #tpu.memory_space<vmem>>) attributes {dimension_semantics = [#tpu.dimension_semantics<parallel>, #tpu.dimension_semantics<parallel>, #tpu.dimension_semantics<arbitrary>], iteration_bounds = array<i64: 1, 1, 1>, scalar_prefetch = 0 : i64, scratch_operands = 1 : i64, tpu.core_type = #tpu.core_type<tc>, window_params = [{transform_indices = @transform_0, window_bounds = array<i64: 32, 512>}, {transform_indices = @transform_1, window_bounds = array<i64: 512, 128>}, {transform_indices = @transform_2, window_bounds = array<i64: 1, 128>}, {transform_indices = @transform_3, window_bounds = array<i64: 32, 128>}, {transform_indices = @transform_4, window_bounds = array<i64: 32, 128>}]} {
    %c0_i32 = arith.constant 0 : i32
    %0 = arith.cmpi eq, %arg2, %c0_i32 : i32
    %1 = arith.extui %0 : i1 to i32
    %c0_i32_0 = arith.constant 0 : i32
    %2 = arith.cmpi ne, %1, %c0_i32_0 : i32
    scf.if %2 {
      %cst_10 = arith.constant 0.000000e+00 : f32
      %12 = vector.broadcast %cst_10 : f32 to vector<32x128xf32>
      %c0_11 = arith.constant 0 : index
      %c0_12 = arith.constant 0 : index
      %13 = vector.load %arg8[%c0_11, %c0_12] : memref<32x128xf32, #tpu.memory_space<vmem>>, vector<32x128xf32>
      tpu.vector_store %arg8[%c0_11, %c0_12], %12 {strides = array<i32>} : memref<32x128xf32, #tpu.memory_space<vmem>>, vector<32x128xf32>,
    } else {
    }
    %c0 = arith.constant 0 : index
    %c0_1 = arith.constant 0 : index
    %3 = vector.load %arg3[%c0, %c0_1] : memref<32x512xbf16, #tpu.memory_space<vmem>>, vector<32x512xbf16>
    %c0_2 = arith.constant 0 : index
    %c0_3 = arith.constant 0 : index
    %4 = vector.load %arg8[%c0_2, %c0_3] : memref<32x128xf32, #tpu.memory_space<vmem>>, vector<32x128xf32>
    %c0_4 = arith.constant 0 : index
    %c0_5 = arith.constant 0 : index
    %5 = vector.load %arg4[%c0_4, %c0_5] : memref<512x128xbf16, #tpu.memory_space<vmem>>, vector<512x128xbf16>
    %cst = arith.constant dense<0.000000e+00> : vector<32x128xf32>
    %6 = tpu.matmul %3, %5, %cst {dimension_numbers = #tpu.dot_dimension_numbers<[1], [0], [0], [1], [0, 0, 1, 1], [], []>} : vector<32x512xbf16>, vector<512x128xbf16>, vector<32x128xf32> -> vector<32x128xf32>
    %7 = arith.addf %4, %6 : vector<32x128xf32>
    %c0_6 = arith.constant 0 : index
    %c0_7 = arith.constant 0 : index
    %8 = vector.load %arg8[%c0_6, %c0_7] : memref<32x128xf32, #tpu.memory_space<vmem>>, vector<32x128xf32>
    tpu.vector_store %arg8[%c0_6, %c0_7], %7 {strides = array<i32>} : memref<32x128xf32, #tpu.memory_space<vmem>>, vector<32x128xf32>,
    %c0_i32_8 = arith.constant 0 : i32
    %9 = arith.cmpi eq, %arg2, %c0_i32_8 : i32
    %10 = arith.extui %9 : i1 to i32
    %c0_i32_9 = arith.constant 0 : i32
    %11 = arith.cmpi ne, %10, %c0_i32_9 : i32
    scf.if %11 {
      %c0_10 = arith.constant 0 : index
      %c0_11 = arith.constant 0 : index
      %12 = vector.load %arg8[%c0_10, %c0_11] : memref<32x128xf32, #tpu.memory_space<vmem>>, vector<32x128xf32>
      %c0_12 = arith.constant 0 : index
      %c0_13 = arith.constant 0 : index
      %13 = vector.load %arg5[%c0_12, %c0_13] : memref<1x128xf32, #tpu.memory_space<vmem>>, vector<1x128xf32>
      %14 = vector.broadcast %13 : vector<1x128xf32> to vector<32x128xf32>
      %15 = arith.addf %12, %14 : vector<32x128xf32>
      %c0_14 = arith.constant 0 : index
      %c0_15 = arith.constant 0 : index
      %16 = vector.load %arg6[%c0_14, %c0_15] : memref<32x128xbf16, #tpu.memory_space<vmem>>, vector<32x128xbf16>
      %17 = arith.extf %16 : vector<32x128xbf16> to vector<32x128xf32>
      %18 = arith.addf %15, %17 : vector<32x128xf32>
      %19 = arith.truncf %18 : vector<32x128xf32> to vector<32x128xbf16>
      %c0_16 = arith.constant 0 : index
      %c0_17 = arith.constant 0 : index
      %20 = vector.load %arg7[%c0_16, %c0_17] : memref<32x128xbf16, #tpu.memory_space<vmem>>, vector<32x128xbf16>
      tpu.vector_store %arg7[%c0_16, %c0_17], %19 {strides = array<i32>} : memref<32x128xbf16, #tpu.memory_space<vmem>>, vector<32x128xbf16>,
    } else {
    }
    return
  }
  func.func @transform_0(%arg0: i32, %arg1: i32, %arg2: i32) -> (i32, i32) {
    %c0_i32 = arith.constant 0 : i32
    return %arg0, %arg2 : i32, i32
  }
  func.func @transform_1(%arg0: i32, %arg1: i32, %arg2: i32) -> (i32, i32) {
    %c0_i32 = arith.constant 0 : i32
    return %arg2, %arg1 : i32, i32
  }
  func.func @transform_2(%arg0: i32, %arg1: i32, %arg2: i32) -> (i32, i32) {
    %c0_i32 = arith.constant 0 : i32
    %c0_i32_0 = arith.constant 0 : i32
    return %c0_i32, %arg1 : i32, i32
  }
  func.func @transform_3(%arg0: i32, %arg1: i32, %arg2: i32) -> (i32, i32) {
    %c0_i32 = arith.constant 0 : i32
    return %arg0, %arg1 : i32, i32
  }
  func.func @transform_4(%arg0: i32, %arg1: i32, %arg2: i32) -> (i32, i32) {
    %c0_i32 = arith.constant 0 : i32
    return %arg0, %arg1 : i32, i32
  }
}

module attributes {stable_mosaic.version = 11 : i64} {
  func.func @_linear_kernel(%arg0: i32, %arg1: i32, %arg2: i32, %arg3: memref<32x128xbf16, #tpu.memory_space<vmem>>, %arg4: memref<128x512xbf16, #tpu.memory_space<vmem>>, %arg5: memref<1x512xf32, #tpu.memory_space<vmem>>, %arg6: memref<1x128xf32, #tpu.memory_space<vmem>>, %arg7: memref<1x128xf32, #tpu.memory_space<vmem>>, %arg8: memref<32x512xbf16, #tpu.memory_space<vmem>>, %arg9: memref<32x512xf32, #tpu.memory_space<vmem>>, %arg10: memref<32x128xf32, #tpu.memory_space<vmem>>) attributes {dimension_semantics = [#tpu.dimension_semantics<parallel>, #tpu.dimension_semantics<arbitrary>, #tpu.dimension_semantics<arbitrary>], iteration_bounds = array<i64: 1, 3, 1>, scalar_prefetch = 0 : i64, scratch_operands = 2 : i64, tpu.core_type = #tpu.core_type<tc>, window_params = [{transform_indices = @transform_0, window_bounds = array<i64: 32, 128>}, {transform_indices = @transform_1, window_bounds = array<i64: 128, 512>}, {transform_indices = @transform_2, window_bounds = array<i64: 1, 512>}, {pipeline_mode = #tpu.pipeline_mode<synchronous>, transform_indices = @transform_3, window_bounds = array<i64: 1, 128>}, {pipeline_mode = #tpu.pipeline_mode<synchronous>, transform_indices = @transform_4, window_bounds = array<i64: 1, 128>}, {transform_indices = @transform_5, window_bounds = array<i64: 32, 512>}]} {
    %c0_i32 = arith.constant 0 : i32
    %0 = arith.cmpi eq, %arg2, %c0_i32 : i32
    %1 = arith.extui %0 : i1 to i32
    %c0_i32_0 = arith.constant 0 : i32
    %2 = arith.cmpi ne, %1, %c0_i32_0 : i32
    scf.if %2 {
      %cst_12 = arith.constant 0.000000e+00 : f32
      %16 = vector.broadcast %cst_12 : f32 to vector<32x512xf32>
      %c0_13 = arith.constant 0 : index
      %c0_14 = arith.constant 0 : index
      %17 = vector.load %arg9[%c0_13, %c0_14] : memref<32x512xf32, #tpu.memory_space<vmem>>, vector<32x512xf32>
      tpu.vector_store %arg9[%c0_13, %c0_14], %16 {strides = array<i32>} : memref<32x512xf32, #tpu.memory_space<vmem>>, vector<32x512xf32>,
    } else {
    }
    %c0_i32_1 = arith.constant 0 : i32
    %3 = arith.cmpi eq, %arg1, %c0_i32_1 : i32
    %4 = arith.extui %3 : i1 to i32
    %c0_i32_2 = arith.constant 0 : i32
    %5 = arith.cmpi ne, %4, %c0_i32_2 : i32
    scf.if %5 {
      %c0_12 = arith.constant 0 : index
      %c0_13 = arith.constant 0 : index
      %16 = vector.load %arg3[%c0_12, %c0_13] : memref<32x128xbf16, #tpu.memory_space<vmem>>, vector<32x128xbf16>
      %17 = arith.extf %16 : vector<32x128xbf16> to vector<32x128xf32>
      %cst_14 = arith.constant dense<0.000000e+00> : vector<32xf32>
      %18 = vector.multi_reduction <add>, %17, %cst_14 [1] : vector<32x128xf32> to vector<32xf32>
      %19 = vector.shape_cast %18 : vector<32xf32> to vector<32x1xf32>
      %cst_15 = arith.constant 3.125000e-02 : f32
      %20 = vector.broadcast %cst_15 : f32 to vector<32x1xf32>
      %21 = arith.mulf %19, %20 : vector<32x1xf32>
      %22 = vector.broadcast %21 : vector<32x1xf32> to vector<32x128xf32>
      %23 = arith.subf %17, %22 : vector<32x128xf32>
      %24 = tpu.iota {dimensions = array<i32: 1>} : vector<32x128xi32>
      %c32_i32 = arith.constant 32 : i32
      %25 = vector.broadcast %c32_i32 : i32 to vector<32x128xi32>
      %26 = arith.cmpi slt, %24, %25 : vector<32x128xi32>
      %27 = arith.mulf %23, %23 : vector<32x128xf32>
      %cst_16 = arith.constant 0.000000e+00 : f32
      %28 = vector.broadcast %cst_16 : f32 to vector<32x128xf32>
      %29 = arith.select %26, %27, %28 : vector<32x128xi1>, vector<32x128xf32>
      %cst_17 = arith.constant dense<0.000000e+00> : vector<32xf32>
      %30 = vector.multi_reduction <add>, %29, %cst_17 [1] : vector<32x128xf32> to vector<32xf32>
      %31 = vector.shape_cast %30 : vector<32xf32> to vector<32x1xf32>
      %cst_18 = arith.constant 3.125000e-02 : f32
      %32 = vector.broadcast %cst_18 : f32 to vector<32x1xf32>
      %33 = arith.mulf %31, %32 : vector<32x1xf32>
      %cst_19 = arith.constant 9.99999974E-6 : f32
      %34 = vector.broadcast %cst_19 : f32 to vector<32x1xf32>
      %35 = arith.addf %33, %34 : vector<32x1xf32>
      %36 = math.rsqrt %35 : vector<32x1xf32>
      %37 = vector.broadcast %36 : vector<32x1xf32> to vector<32x128xf32>
      %38 = arith.mulf %23, %37 : vector<32x128xf32>
      %c0_20 = arith.constant 0 : index
      %c0_21 = arith.constant 0 : index
      %39 = vector.load %arg6[%c0_20, %c0_21] : memref<1x128xf32, #tpu.memory_space<vmem>>, vector<1x128xf32>
      %40 = vector.broadcast %39 : vector<1x128xf32> to vector<32x128xf32>
      %41 = arith.mulf %38, %40 : vector<32x128xf32>
      %c0_22 = arith.constant 0 : index
      %c0_23 = arith.constant 0 : index
      %42 = vector.load %arg7[%c0_22, %c0_23] : memref<1x128xf32, #tpu.memory_space<vmem>>, vector<1x128xf32>
      %43 = vector.broadcast %42 : vector<1x128xf32> to vector<32x128xf32>
      %44 = arith.addf %41, %43 : vector<32x128xf32>
      %c0_24 = arith.constant 0 : index
      %c0_25 = arith.constant 0 : index
      %45 = vector.load %arg10[%c0_24, %c0_25] : memref<32x128xf32, #tpu.memory_space<vmem>>, vector<32x128xf32>
      tpu.vector_store %arg10[%c0_24, %c0_25], %44 {strides = array<i32>} : memref<32x128xf32, #tpu.memory_space<vmem>>, vector<32x128xf32>,
    } else {
    }
    %c0 = arith.constant 0 : index
    %c0_3 = arith.constant 0 : index
    %6 = vector.load %arg10[%c0, %c0_3] : memref<32x128xf32, #tpu.memory_space<vmem>>, vector<32x128xf32>
    %7 = arith.truncf %6 : vector<32x128xf32> to vector<32x128xbf16>
    %c0_4 = arith.constant 0 : index
    %c0_5 = arith.constant 0 : index
    %8 = vector.load %arg9[%c0_4, %c0_5] : memref<32x512xf32, #tpu.memory_space<vmem>>, vector<32x512xf32>
    %c0_6 = arith.constant 0 : index
    %c0_7 = arith.constant 0 : index
    %9 = vector.load %arg4[%c0_6, %c0_7] : memref<128x512xbf16, #tpu.memory_space<vmem>>, vector<128x512xbf16>
    %cst = arith.constant dense<0.000000e+00> : vector<32x512xf32>
    %10 = tpu.matmul %7, %9, %cst {dimension_numbers = #tpu.dot_dimension_numbers<[1], [0], [0], [1], [0, 0, 1, 1], [], []>} : vector<32x128xbf16>, vector<128x512xbf16>, vector<32x512xf32> -> vector<32x512xf32>
    %11 = arith.addf %8, %10 : vector<32x512xf32>
    %c0_8 = arith.constant 0 : index
    %c0_9 = arith.constant 0 : index
    %12 = vector.load %arg9[%c0_8, %c0_9] : memref<32x512xf32, #tpu.memory_space<vmem>>, vector<32x512xf32>
    tpu.vector_store %arg9[%c0_8, %c0_9], %11 {strides = array<i32>} : memref<32x512xf32, #tpu.memory_space<vmem>>, vector<32x512xf32>,
    %c0_i32_10 = arith.constant 0 : i32
    %13 = arith.cmpi eq, %arg2, %c0_i32_10 : i32
    %14 = arith.extui %13 : i1 to i32
    %c0_i32_11 = arith.constant 0 : i32
    %15 = arith.cmpi ne, %14, %c0_i32_11 : i32
    scf.if %15 {
      %c0_12 = arith.constant 0 : index
      %c0_13 = arith.constant 0 : index
      %16 = vector.load %arg9[%c0_12, %c0_13] : memref<32x512xf32, #tpu.memory_space<vmem>>, vector<32x512xf32>
      %c0_14 = arith.constant 0 : index
      %c0_15 = arith.constant 0 : index
      %17 = vector.load %arg5[%c0_14, %c0_15] : memref<1x512xf32, #tpu.memory_space<vmem>>, vector<1x512xf32>
      %18 = vector.broadcast %17 : vector<1x512xf32> to vector<32x512xf32>
      %19 = arith.addf %16, %18 : vector<32x512xf32>
      %20 = arith.truncf %19 : vector<32x512xf32> to vector<32x512xbf16>
      %c0_16 = arith.constant 0 : index
      %c0_17 = arith.constant 0 : index
      %21 = vector.load %arg8[%c0_16, %c0_17] : memref<32x512xbf16, #tpu.memory_space<vmem>>, vector<32x512xbf16>
      tpu.vector_store %arg8[%c0_16, %c0_17], %20 {strides = array<i32>} : memref<32x512xbf16, #tpu.memory_space<vmem>>, vector<32x512xbf16>,
    } else {
    }
    return
  }
  func.func @transform_0(%arg0: i32, %arg1: i32, %arg2: i32) -> (i32, i32) {
    %c0_i32 = arith.constant 0 : i32
    return %arg0, %arg2 : i32, i32
  }
  func.func @transform_1(%arg0: i32, %arg1: i32, %arg2: i32) -> (i32, i32) {
    %c0_i32 = arith.constant 0 : i32
    return %arg2, %arg1 : i32, i32
  }
  func.func @transform_2(%arg0: i32, %arg1: i32, %arg2: i32) -> (i32, i32) {
    %c0_i32 = arith.constant 0 : i32
    %c0_i32_0 = arith.constant 0 : i32
    return %c0_i32, %arg1 : i32, i32
  }
  func.func @transform_3(%arg0: i32, %arg1: i32, %arg2: i32) -> (i32, i32) {
    %c0_i32 = arith.constant 0 : i32
    %c0_i32_0 = arith.constant 0 : i32
    %c0_i32_1 = arith.constant 0 : i32
    return %c0_i32, %c0_i32_0 : i32, i32
  }
  func.func @transform_4(%arg0: i32, %arg1: i32, %arg2: i32) -> (i32, i32) {
    %c0_i32 = arith.constant 0 : i32
    %c0_i32_0 = arith.constant 0 : i32
    %c0_i32_1 = arith.constant 0 : i32
    return %c0_i32, %c0_i32_0 : i32, i32
  }
  func.func @transform_5(%arg0: i32, %arg1: i32, %arg2: i32) -> (i32, i32) {
    %c0_i32 = arith.constant 0 : i32
    return %arg0, %arg1 : i32, i32
  }
}

module attributes {stable_mosaic.version = 11 : i64} {
  func.func @_mlp2_kernel(%arg0: i32, %arg1: memref<32x128xbf16, #tpu.memory_space<vmem>>, %arg2: memref<128x128xbf16, #tpu.memory_space<vmem>>, %arg3: memref<1x128xf32, #tpu.memory_space<vmem>>, %arg4: memref<128x128xbf16, #tpu.memory_space<vmem>>, %arg5: memref<1x128xf32, #tpu.memory_space<vmem>>, %arg6: memref<1x128xf32, #tpu.memory_space<vmem>>, %arg7: memref<1x128xf32, #tpu.memory_space<vmem>>, %arg8: memref<32x128xbf16, #tpu.memory_space<vmem>>) attributes {dimension_semantics = [#tpu.dimension_semantics<parallel>], iteration_bounds = array<i64: 1>, scalar_prefetch = 0 : i64, scratch_operands = 0 : i64, tpu.core_type = #tpu.core_type<tc>, window_params = [{transform_indices = @transform_0, window_bounds = array<i64: 32, 128>}, {pipeline_mode = #tpu.pipeline_mode<synchronous>, transform_indices = @transform_1, window_bounds = array<i64: 128, 128>}, {pipeline_mode = #tpu.pipeline_mode<synchronous>, transform_indices = @transform_2, window_bounds = array<i64: 1, 128>}, {pipeline_mode = #tpu.pipeline_mode<synchronous>, transform_indices = @transform_3, window_bounds = array<i64: 128, 128>}, {pipeline_mode = #tpu.pipeline_mode<synchronous>, transform_indices = @transform_4, window_bounds = array<i64: 1, 128>}, {pipeline_mode = #tpu.pipeline_mode<synchronous>, transform_indices = @transform_5, window_bounds = array<i64: 1, 128>}, {pipeline_mode = #tpu.pipeline_mode<synchronous>, transform_indices = @transform_6, window_bounds = array<i64: 1, 128>}, {transform_indices = @transform_7, window_bounds = array<i64: 32, 128>}]} {
    %c0 = arith.constant 0 : index
    %c0_0 = arith.constant 0 : index
    %0 = vector.load %arg1[%c0, %c0_0] : memref<32x128xbf16, #tpu.memory_space<vmem>>, vector<32x128xbf16>
    %1 = arith.extf %0 : vector<32x128xbf16> to vector<32x128xf32>
    %cst = arith.constant dense<0.000000e+00> : vector<32xf32>
    %2 = vector.multi_reduction <add>, %1, %cst [1] : vector<32x128xf32> to vector<32xf32>
    %3 = vector.shape_cast %2 : vector<32xf32> to vector<32x1xf32>
    %cst_1 = arith.constant 3.125000e-02 : f32
    %4 = vector.broadcast %cst_1 : f32 to vector<32x1xf32>
    %5 = arith.mulf %3, %4 : vector<32x1xf32>
    %6 = vector.broadcast %5 : vector<32x1xf32> to vector<32x128xf32>
    %7 = arith.subf %1, %6 : vector<32x128xf32>
    %8 = tpu.iota {dimensions = array<i32: 1>} : vector<32x128xi32>
    %c32_i32 = arith.constant 32 : i32
    %9 = vector.broadcast %c32_i32 : i32 to vector<32x128xi32>
    %10 = arith.cmpi slt, %8, %9 : vector<32x128xi32>
    %11 = arith.mulf %7, %7 : vector<32x128xf32>
    %cst_2 = arith.constant 0.000000e+00 : f32
    %12 = vector.broadcast %cst_2 : f32 to vector<32x128xf32>
    %13 = arith.select %10, %11, %12 : vector<32x128xi1>, vector<32x128xf32>
    %cst_3 = arith.constant dense<0.000000e+00> : vector<32xf32>
    %14 = vector.multi_reduction <add>, %13, %cst_3 [1] : vector<32x128xf32> to vector<32xf32>
    %15 = vector.shape_cast %14 : vector<32xf32> to vector<32x1xf32>
    %cst_4 = arith.constant 3.125000e-02 : f32
    %16 = vector.broadcast %cst_4 : f32 to vector<32x1xf32>
    %17 = arith.mulf %15, %16 : vector<32x1xf32>
    %cst_5 = arith.constant 9.99999974E-6 : f32
    %18 = vector.broadcast %cst_5 : f32 to vector<32x1xf32>
    %19 = arith.addf %17, %18 : vector<32x1xf32>
    %20 = math.rsqrt %19 : vector<32x1xf32>
    %21 = vector.broadcast %20 : vector<32x1xf32> to vector<32x128xf32>
    %22 = arith.mulf %7, %21 : vector<32x128xf32>
    %c0_6 = arith.constant 0 : index
    %c0_7 = arith.constant 0 : index
    %23 = vector.load %arg6[%c0_6, %c0_7] : memref<1x128xf32, #tpu.memory_space<vmem>>, vector<1x128xf32>
    %24 = vector.broadcast %23 : vector<1x128xf32> to vector<32x128xf32>
    %25 = arith.mulf %22, %24 : vector<32x128xf32>
    %c0_8 = arith.constant 0 : index
    %c0_9 = arith.constant 0 : index
    %26 = vector.load %arg7[%c0_8, %c0_9] : memref<1x128xf32, #tpu.memory_space<vmem>>, vector<1x128xf32>
    %27 = vector.broadcast %26 : vector<1x128xf32> to vector<32x128xf32>
    %28 = arith.addf %25, %27 : vector<32x128xf32>
    %29 = arith.truncf %28 : vector<32x128xf32> to vector<32x128xbf16>
    %c0_10 = arith.constant 0 : index
    %c0_11 = arith.constant 0 : index
    %30 = vector.load %arg2[%c0_10, %c0_11] : memref<128x128xbf16, #tpu.memory_space<vmem>>, vector<128x128xbf16>
    %cst_12 = arith.constant dense<0.000000e+00> : vector<32x128xf32>
    %31 = tpu.matmul %29, %30, %cst_12 {dimension_numbers = #tpu.dot_dimension_numbers<[1], [0], [0], [1], [0, 0, 1, 1], [], []>} : vector<32x128xbf16>, vector<128x128xbf16>, vector<32x128xf32> -> vector<32x128xf32>
    %c0_13 = arith.constant 0 : index
    %c0_14 = arith.constant 0 : index
    %32 = vector.load %arg3[%c0_13, %c0_14] : memref<1x128xf32, #tpu.memory_space<vmem>>, vector<1x128xf32>
    %33 = vector.broadcast %32 : vector<1x128xf32> to vector<32x128xf32>
    %34 = arith.addf %31, %33 : vector<32x128xf32>
    %cst_15 = arith.constant 0.000000e+00 : f32
    %35 = vector.broadcast %cst_15 : f32 to vector<32x128xf32>
    %36 = arith.maximumf %34, %35 : vector<32x128xf32>
    %37 = arith.truncf %36 : vector<32x128xf32> to vector<32x128xbf16>
    %c0_16 = arith.constant 0 : index
    %c0_17 = arith.constant 0 : index
    %38 = vector.load %arg4[%c0_16, %c0_17] : memref<128x128xbf16, #tpu.memory_space<vmem>>, vector<128x128xbf16>
    %cst_18 = arith.constant dense<0.000000e+00> : vector<32x128xf32>
    %39 = tpu.matmul %37, %38, %cst_18 {dimension_numbers = #tpu.dot_dimension_numbers<[1], [0], [0], [1], [0, 0, 1, 1], [], []>} : vector<32x128xbf16>, vector<128x128xbf16>, vector<32x128xf32> -> vector<32x128xf32>
    %c0_19 = arith.constant 0 : index
    %c0_20 = arith.constant 0 : index
    %40 = vector.load %arg5[%c0_19, %c0_20] : memref<1x128xf32, #tpu.memory_space<vmem>>, vector<1x128xf32>
    %41 = vector.broadcast %40 : vector<1x128xf32> to vector<32x128xf32>
    %42 = arith.addf %39, %41 : vector<32x128xf32>
    %43 = arith.extf %0 : vector<32x128xbf16> to vector<32x128xf32>
    %44 = arith.addf %42, %43 : vector<32x128xf32>
    %45 = arith.truncf %44 : vector<32x128xf32> to vector<32x128xbf16>
    %c0_21 = arith.constant 0 : index
    %c0_22 = arith.constant 0 : index
    %46 = vector.load %arg8[%c0_21, %c0_22] : memref<32x128xbf16, #tpu.memory_space<vmem>>, vector<32x128xbf16>
    tpu.vector_store %arg8[%c0_21, %c0_22], %45 {strides = array<i32>} : memref<32x128xbf16, #tpu.memory_space<vmem>>, vector<32x128xbf16>,
    return
  }
  func.func @transform_0(%arg0: i32) -> (i32, i32) {
    %c0_i32 = arith.constant 0 : i32
    %c0_i32_0 = arith.constant 0 : i32
    return %arg0, %c0_i32 : i32, i32
  }
  func.func @transform_1(%arg0: i32) -> (i32, i32) {
    %c0_i32 = arith.constant 0 : i32
    %c0_i32_0 = arith.constant 0 : i32
    %c0_i32_1 = arith.constant 0 : i32
    return %c0_i32, %c0_i32_0 : i32, i32
  }
  func.func @transform_2(%arg0: i32) -> (i32, i32) {
    %c0_i32 = arith.constant 0 : i32
    %c0_i32_0 = arith.constant 0 : i32
    %c0_i32_1 = arith.constant 0 : i32
    return %c0_i32, %c0_i32_0 : i32, i32
  }
  func.func @transform_3(%arg0: i32) -> (i32, i32) {
    %c0_i32 = arith.constant 0 : i32
    %c0_i32_0 = arith.constant 0 : i32
    %c0_i32_1 = arith.constant 0 : i32
    return %c0_i32, %c0_i32_0 : i32, i32
  }
  func.func @transform_4(%arg0: i32) -> (i32, i32) {
    %c0_i32 = arith.constant 0 : i32
    %c0_i32_0 = arith.constant 0 : i32
    %c0_i32_1 = arith.constant 0 : i32
    return %c0_i32, %c0_i32_0 : i32, i32
  }
  func.func @transform_5(%arg0: i32) -> (i32, i32) {
    %c0_i32 = arith.constant 0 : i32
    %c0_i32_0 = arith.constant 0 : i32
    %c0_i32_1 = arith.constant 0 : i32
    return %c0_i32, %c0_i32_0 : i32, i32
  }
  func.func @transform_6(%arg0: i32) -> (i32, i32) {
    %c0_i32 = arith.constant 0 : i32
    %c0_i32_0 = arith.constant 0 : i32
    %c0_i32_1 = arith.constant 0 : i32
    return %c0_i32, %c0_i32_0 : i32, i32
  }
  func.func @transform_7(%arg0: i32) -> (i32, i32) {
    %c0_i32 = arith.constant 0 : i32
    %c0_i32_0 = arith.constant 0 : i32
    return %arg0, %c0_i32 : i32, i32
  }
}

module attributes {stable_mosaic.version = 11 : i64} {
  func.func @_linear_kernel(%arg0: i32, %arg1: i32, %arg2: i32, %arg3: memref<32x128xbf16, #tpu.memory_space<vmem>>, %arg4: memref<128x512xbf16, #tpu.memory_space<vmem>>, %arg5: memref<1x512xf32, #tpu.memory_space<vmem>>, %arg6: memref<1x128xf32, #tpu.memory_space<vmem>>, %arg7: memref<1x128xf32, #tpu.memory_space<vmem>>, %arg8: memref<32x512xbf16, #tpu.memory_space<vmem>>, %arg9: memref<32x512xf32, #tpu.memory_space<vmem>>, %arg10: memref<32x128xf32, #tpu.memory_space<vmem>>) attributes {dimension_semantics = [#tpu.dimension_semantics<parallel>, #tpu.dimension_semantics<arbitrary>, #tpu.dimension_semantics<arbitrary>], iteration_bounds = array<i64: 1, 4, 1>, scalar_prefetch = 0 : i64, scratch_operands = 2 : i64, tpu.core_type = #tpu.core_type<tc>, window_params = [{transform_indices = @transform_0, window_bounds = array<i64: 32, 128>}, {transform_indices = @transform_1, window_bounds = array<i64: 128, 512>}, {transform_indices = @transform_2, window_bounds = array<i64: 1, 512>}, {pipeline_mode = #tpu.pipeline_mode<synchronous>, transform_indices = @transform_3, window_bounds = array<i64: 1, 128>}, {pipeline_mode = #tpu.pipeline_mode<synchronous>, transform_indices = @transform_4, window_bounds = array<i64: 1, 128>}, {transform_indices = @transform_5, window_bounds = array<i64: 32, 512>}]} {
    %c0_i32 = arith.constant 0 : i32
    %0 = arith.cmpi eq, %arg2, %c0_i32 : i32
    %1 = arith.extui %0 : i1 to i32
    %c0_i32_0 = arith.constant 0 : i32
    %2 = arith.cmpi ne, %1, %c0_i32_0 : i32
    scf.if %2 {
      %cst_12 = arith.constant 0.000000e+00 : f32
      %16 = vector.broadcast %cst_12 : f32 to vector<32x512xf32>
      %c0_13 = arith.constant 0 : index
      %c0_14 = arith.constant 0 : index
      %17 = vector.load %arg9[%c0_13, %c0_14] : memref<32x512xf32, #tpu.memory_space<vmem>>, vector<32x512xf32>
      tpu.vector_store %arg9[%c0_13, %c0_14], %16 {strides = array<i32>} : memref<32x512xf32, #tpu.memory_space<vmem>>, vector<32x512xf32>,
    } else {
    }
    %c0_i32_1 = arith.constant 0 : i32
    %3 = arith.cmpi eq, %arg1, %c0_i32_1 : i32
    %4 = arith.extui %3 : i1 to i32
    %c0_i32_2 = arith.constant 0 : i32
    %5 = arith.cmpi ne, %4, %c0_i32_2 : i32
    scf.if %5 {
      %c0_12 = arith.constant 0 : index
      %c0_13 = arith.constant 0 : index
      %16 = vector.load %arg3[%c0_12, %c0_13] : memref<32x128xbf16, #tpu.memory_space<vmem>>, vector<32x128xbf16>
      %17 = arith.extf %16 : vector<32x128xbf16> to vector<32x128xf32>
      %cst_14 = arith.constant dense<0.000000e+00> : vector<32xf32>
      %18 = vector.multi_reduction <add>, %17, %cst_14 [1] : vector<32x128xf32> to vector<32xf32>
      %19 = vector.shape_cast %18 : vector<32xf32> to vector<32x1xf32>
      %cst_15 = arith.constant 3.125000e-02 : f32
      %20 = vector.broadcast %cst_15 : f32 to vector<32x1xf32>
      %21 = arith.mulf %19, %20 : vector<32x1xf32>
      %22 = vector.broadcast %21 : vector<32x1xf32> to vector<32x128xf32>
      %23 = arith.subf %17, %22 : vector<32x128xf32>
      %24 = tpu.iota {dimensions = array<i32: 1>} : vector<32x128xi32>
      %c32_i32 = arith.constant 32 : i32
      %25 = vector.broadcast %c32_i32 : i32 to vector<32x128xi32>
      %26 = arith.cmpi slt, %24, %25 : vector<32x128xi32>
      %27 = arith.mulf %23, %23 : vector<32x128xf32>
      %cst_16 = arith.constant 0.000000e+00 : f32
      %28 = vector.broadcast %cst_16 : f32 to vector<32x128xf32>
      %29 = arith.select %26, %27, %28 : vector<32x128xi1>, vector<32x128xf32>
      %cst_17 = arith.constant dense<0.000000e+00> : vector<32xf32>
      %30 = vector.multi_reduction <add>, %29, %cst_17 [1] : vector<32x128xf32> to vector<32xf32>
      %31 = vector.shape_cast %30 : vector<32xf32> to vector<32x1xf32>
      %cst_18 = arith.constant 3.125000e-02 : f32
      %32 = vector.broadcast %cst_18 : f32 to vector<32x1xf32>
      %33 = arith.mulf %31, %32 : vector<32x1xf32>
      %cst_19 = arith.constant 9.99999974E-6 : f32
      %34 = vector.broadcast %cst_19 : f32 to vector<32x1xf32>
      %35 = arith.addf %33, %34 : vector<32x1xf32>
      %36 = math.rsqrt %35 : vector<32x1xf32>
      %37 = vector.broadcast %36 : vector<32x1xf32> to vector<32x128xf32>
      %38 = arith.mulf %23, %37 : vector<32x128xf32>
      %c0_20 = arith.constant 0 : index
      %c0_21 = arith.constant 0 : index
      %39 = vector.load %arg6[%c0_20, %c0_21] : memref<1x128xf32, #tpu.memory_space<vmem>>, vector<1x128xf32>
      %40 = vector.broadcast %39 : vector<1x128xf32> to vector<32x128xf32>
      %41 = arith.mulf %38, %40 : vector<32x128xf32>
      %c0_22 = arith.constant 0 : index
      %c0_23 = arith.constant 0 : index
      %42 = vector.load %arg7[%c0_22, %c0_23] : memref<1x128xf32, #tpu.memory_space<vmem>>, vector<1x128xf32>
      %43 = vector.broadcast %42 : vector<1x128xf32> to vector<32x128xf32>
      %44 = arith.addf %41, %43 : vector<32x128xf32>
      %c0_24 = arith.constant 0 : index
      %c0_25 = arith.constant 0 : index
      %45 = vector.load %arg10[%c0_24, %c0_25] : memref<32x128xf32, #tpu.memory_space<vmem>>, vector<32x128xf32>
      tpu.vector_store %arg10[%c0_24, %c0_25], %44 {strides = array<i32>} : memref<32x128xf32, #tpu.memory_space<vmem>>, vector<32x128xf32>,
    } else {
    }
    %c0 = arith.constant 0 : index
    %c0_3 = arith.constant 0 : index
    %6 = vector.load %arg10[%c0, %c0_3] : memref<32x128xf32, #tpu.memory_space<vmem>>, vector<32x128xf32>
    %7 = arith.truncf %6 : vector<32x128xf32> to vector<32x128xbf16>
    %c0_4 = arith.constant 0 : index
    %c0_5 = arith.constant 0 : index
    %8 = vector.load %arg9[%c0_4, %c0_5] : memref<32x512xf32, #tpu.memory_space<vmem>>, vector<32x512xf32>
    %c0_6 = arith.constant 0 : index
    %c0_7 = arith.constant 0 : index
    %9 = vector.load %arg4[%c0_6, %c0_7] : memref<128x512xbf16, #tpu.memory_space<vmem>>, vector<128x512xbf16>
    %cst = arith.constant dense<0.000000e+00> : vector<32x512xf32>
    %10 = tpu.matmul %7, %9, %cst {dimension_numbers = #tpu.dot_dimension_numbers<[1], [0], [0], [1], [0, 0, 1, 1], [], []>} : vector<32x128xbf16>, vector<128x512xbf16>, vector<32x512xf32> -> vector<32x512xf32>
    %11 = arith.addf %8, %10 : vector<32x512xf32>
    %c0_8 = arith.constant 0 : index
    %c0_9 = arith.constant 0 : index
    %12 = vector.load %arg9[%c0_8, %c0_9] : memref<32x512xf32, #tpu.memory_space<vmem>>, vector<32x512xf32>
    tpu.vector_store %arg9[%c0_8, %c0_9], %11 {strides = array<i32>} : memref<32x512xf32, #tpu.memory_space<vmem>>, vector<32x512xf32>,
    %c0_i32_10 = arith.constant 0 : i32
    %13 = arith.cmpi eq, %arg2, %c0_i32_10 : i32
    %14 = arith.extui %13 : i1 to i32
    %c0_i32_11 = arith.constant 0 : i32
    %15 = arith.cmpi ne, %14, %c0_i32_11 : i32
    scf.if %15 {
      %c0_12 = arith.constant 0 : index
      %c0_13 = arith.constant 0 : index
      %16 = vector.load %arg9[%c0_12, %c0_13] : memref<32x512xf32, #tpu.memory_space<vmem>>, vector<32x512xf32>
      %c0_14 = arith.constant 0 : index
      %c0_15 = arith.constant 0 : index
      %17 = vector.load %arg5[%c0_14, %c0_15] : memref<1x512xf32, #tpu.memory_space<vmem>>, vector<1x512xf32>
      %18 = vector.broadcast %17 : vector<1x512xf32> to vector<32x512xf32>
      %19 = arith.addf %16, %18 : vector<32x512xf32>
      %20 = arith.truncf %19 : vector<32x512xf32> to vector<32x512xbf16>
      %c0_16 = arith.constant 0 : index
      %c0_17 = arith.constant 0 : index
      %21 = vector.load %arg8[%c0_16, %c0_17] : memref<32x512xbf16, #tpu.memory_space<vmem>>, vector<32x512xbf16>
      tpu.vector_store %arg8[%c0_16, %c0_17], %20 {strides = array<i32>} : memref<32x512xbf16, #tpu.memory_space<vmem>>, vector<32x512xbf16>,
    } else {
    }
    return
  }
  func.func @transform_0(%arg0: i32, %arg1: i32, %arg2: i32) -> (i32, i32) {
    %c0_i32 = arith.constant 0 : i32
    return %arg0, %arg2 : i32, i32
  }
  func.func @transform_1(%arg0: i32, %arg1: i32, %arg2: i32) -> (i32, i32) {
    %c0_i32 = arith.constant 0 : i32
    return %arg2, %arg1 : i32, i32
  }
  func.func @transform_2(%arg0: i32, %arg1: i32, %arg2: i32) -> (i32, i32) {
    %c0_i32 = arith.constant 0 : i32
    %c0_i32_0 = arith.constant 0 : i32
    return %c0_i32, %arg1 : i32, i32
  }
  func.func @transform_3(%arg0: i32, %arg1: i32, %arg2: i32) -> (i32, i32) {
    %c0_i32 = arith.constant 0 : i32
    %c0_i32_0 = arith.constant 0 : i32
    %c0_i32_1 = arith.constant 0 : i32
    return %c0_i32, %c0_i32_0 : i32, i32
  }
  func.func @transform_4(%arg0: i32, %arg1: i32, %arg2: i32) -> (i32, i32) {
    %c0_i32 = arith.constant 0 : i32
    %c0_i32_0 = arith.constant 0 : i32
    %c0_i32_1 = arith.constant 0 : i32
    return %c0_i32, %c0_i32_0 : i32, i32
  }
  func.func @transform_5(%arg0: i32, %arg1: i32, %arg2: i32) -> (i32, i32) {
    %c0_i32 = arith.constant 0 : i32
    return %arg0, %arg1 : i32, i32
  }
}

module attributes {stable_mosaic.version = 11 : i64} {
  func.func @_linear_kernel(%arg0: i32, %arg1: i32, %arg2: i32, %arg3: memref<16x128xbf16, #tpu.memory_space<vmem>>, %arg4: memref<128x512xbf16, #tpu.memory_space<vmem>>, %arg5: memref<1x512xf32, #tpu.memory_space<vmem>>, %arg6: memref<1x128xf32, #tpu.memory_space<vmem>>, %arg7: memref<1x128xf32, #tpu.memory_space<vmem>>, %arg8: memref<16x512xbf16, #tpu.memory_space<vmem>>, %arg9: memref<16x512xf32, #tpu.memory_space<vmem>>, %arg10: memref<16x128xf32, #tpu.memory_space<vmem>>) attributes {dimension_semantics = [#tpu.dimension_semantics<parallel>, #tpu.dimension_semantics<arbitrary>, #tpu.dimension_semantics<arbitrary>], iteration_bounds = array<i64: 1, 3, 1>, scalar_prefetch = 0 : i64, scratch_operands = 2 : i64, tpu.core_type = #tpu.core_type<tc>, window_params = [{transform_indices = @transform_0, window_bounds = array<i64: 16, 128>}, {transform_indices = @transform_1, window_bounds = array<i64: 128, 512>}, {transform_indices = @transform_2, window_bounds = array<i64: 1, 512>}, {pipeline_mode = #tpu.pipeline_mode<synchronous>, transform_indices = @transform_3, window_bounds = array<i64: 1, 128>}, {pipeline_mode = #tpu.pipeline_mode<synchronous>, transform_indices = @transform_4, window_bounds = array<i64: 1, 128>}, {transform_indices = @transform_5, window_bounds = array<i64: 16, 512>}]} {
    %c0_i32 = arith.constant 0 : i32
    %0 = arith.cmpi eq, %arg2, %c0_i32 : i32
    %1 = arith.extui %0 : i1 to i32
    %c0_i32_0 = arith.constant 0 : i32
    %2 = arith.cmpi ne, %1, %c0_i32_0 : i32
    scf.if %2 {
      %cst_12 = arith.constant 0.000000e+00 : f32
      %16 = vector.broadcast %cst_12 : f32 to vector<16x512xf32>
      %c0_13 = arith.constant 0 : index
      %c0_14 = arith.constant 0 : index
      %17 = vector.load %arg9[%c0_13, %c0_14] : memref<16x512xf32, #tpu.memory_space<vmem>>, vector<16x512xf32>
      tpu.vector_store %arg9[%c0_13, %c0_14], %16 {strides = array<i32>} : memref<16x512xf32, #tpu.memory_space<vmem>>, vector<16x512xf32>,
    } else {
    }
    %c0_i32_1 = arith.constant 0 : i32
    %3 = arith.cmpi eq, %arg1, %c0_i32_1 : i32
    %4 = arith.extui %3 : i1 to i32
    %c0_i32_2 = arith.constant 0 : i32
    %5 = arith.cmpi ne, %4, %c0_i32_2 : i32
    scf.if %5 {
      %c0_12 = arith.constant 0 : index
      %c0_13 = arith.constant 0 : index
      %16 = vector.load %arg3[%c0_12, %c0_13] : memref<16x128xbf16, #tpu.memory_space<vmem>>, vector<16x128xbf16>
      %17 = arith.extf %16 : vector<16x128xbf16> to vector<16x128xf32>
      %cst_14 = arith.constant dense<0.000000e+00> : vector<16xf32>
      %18 = vector.multi_reduction <add>, %17, %cst_14 [1] : vector<16x128xf32> to vector<16xf32>
      %19 = vector.shape_cast %18 : vector<16xf32> to vector<16x1xf32>
      %cst_15 = arith.constant 3.125000e-02 : f32
      %20 = vector.broadcast %cst_15 : f32 to vector<16x1xf32>
      %21 = arith.mulf %19, %20 : vector<16x1xf32>
      %22 = vector.broadcast %21 : vector<16x1xf32> to vector<16x128xf32>
      %23 = arith.subf %17, %22 : vector<16x128xf32>
      %24 = tpu.iota {dimensions = array<i32: 1>} : vector<16x128xi32>
      %c32_i32 = arith.constant 32 : i32
      %25 = vector.broadcast %c32_i32 : i32 to vector<16x128xi32>
      %26 = arith.cmpi slt, %24, %25 : vector<16x128xi32>
      %27 = arith.mulf %23, %23 : vector<16x128xf32>
      %cst_16 = arith.constant 0.000000e+00 : f32
      %28 = vector.broadcast %cst_16 : f32 to vector<16x128xf32>
      %29 = arith.select %26, %27, %28 : vector<16x128xi1>, vector<16x128xf32>
      %cst_17 = arith.constant dense<0.000000e+00> : vector<16xf32>
      %30 = vector.multi_reduction <add>, %29, %cst_17 [1] : vector<16x128xf32> to vector<16xf32>
      %31 = vector.shape_cast %30 : vector<16xf32> to vector<16x1xf32>
      %cst_18 = arith.constant 3.125000e-02 : f32
      %32 = vector.broadcast %cst_18 : f32 to vector<16x1xf32>
      %33 = arith.mulf %31, %32 : vector<16x1xf32>
      %cst_19 = arith.constant 9.99999974E-6 : f32
      %34 = vector.broadcast %cst_19 : f32 to vector<16x1xf32>
      %35 = arith.addf %33, %34 : vector<16x1xf32>
      %36 = math.rsqrt %35 : vector<16x1xf32>
      %37 = vector.broadcast %36 : vector<16x1xf32> to vector<16x128xf32>
      %38 = arith.mulf %23, %37 : vector<16x128xf32>
      %c0_20 = arith.constant 0 : index
      %c0_21 = arith.constant 0 : index
      %39 = vector.load %arg6[%c0_20, %c0_21] : memref<1x128xf32, #tpu.memory_space<vmem>>, vector<1x128xf32>
      %40 = vector.broadcast %39 : vector<1x128xf32> to vector<16x128xf32>
      %41 = arith.mulf %38, %40 : vector<16x128xf32>
      %c0_22 = arith.constant 0 : index
      %c0_23 = arith.constant 0 : index
      %42 = vector.load %arg7[%c0_22, %c0_23] : memref<1x128xf32, #tpu.memory_space<vmem>>, vector<1x128xf32>
      %43 = vector.broadcast %42 : vector<1x128xf32> to vector<16x128xf32>
      %44 = arith.addf %41, %43 : vector<16x128xf32>
      %c0_24 = arith.constant 0 : index
      %c0_25 = arith.constant 0 : index
      %45 = vector.load %arg10[%c0_24, %c0_25] : memref<16x128xf32, #tpu.memory_space<vmem>>, vector<16x128xf32>
      tpu.vector_store %arg10[%c0_24, %c0_25], %44 {strides = array<i32>} : memref<16x128xf32, #tpu.memory_space<vmem>>, vector<16x128xf32>,
    } else {
    }
    %c0 = arith.constant 0 : index
    %c0_3 = arith.constant 0 : index
    %6 = vector.load %arg10[%c0, %c0_3] : memref<16x128xf32, #tpu.memory_space<vmem>>, vector<16x128xf32>
    %7 = arith.truncf %6 : vector<16x128xf32> to vector<16x128xbf16>
    %c0_4 = arith.constant 0 : index
    %c0_5 = arith.constant 0 : index
    %8 = vector.load %arg9[%c0_4, %c0_5] : memref<16x512xf32, #tpu.memory_space<vmem>>, vector<16x512xf32>
    %c0_6 = arith.constant 0 : index
    %c0_7 = arith.constant 0 : index
    %9 = vector.load %arg4[%c0_6, %c0_7] : memref<128x512xbf16, #tpu.memory_space<vmem>>, vector<128x512xbf16>
    %cst = arith.constant dense<0.000000e+00> : vector<16x512xf32>
    %10 = tpu.matmul %7, %9, %cst {dimension_numbers = #tpu.dot_dimension_numbers<[1], [0], [0], [1], [0, 0, 1, 1], [], []>} : vector<16x128xbf16>, vector<128x512xbf16>, vector<16x512xf32> -> vector<16x512xf32>
    %11 = arith.addf %8, %10 : vector<16x512xf32>
    %c0_8 = arith.constant 0 : index
    %c0_9 = arith.constant 0 : index
    %12 = vector.load %arg9[%c0_8, %c0_9] : memref<16x512xf32, #tpu.memory_space<vmem>>, vector<16x512xf32>
    tpu.vector_store %arg9[%c0_8, %c0_9], %11 {strides = array<i32>} : memref<16x512xf32, #tpu.memory_space<vmem>>, vector<16x512xf32>,
    %c0_i32_10 = arith.constant 0 : i32
    %13 = arith.cmpi eq, %arg2, %c0_i32_10 : i32
    %14 = arith.extui %13 : i1 to i32
    %c0_i32_11 = arith.constant 0 : i32
    %15 = arith.cmpi ne, %14, %c0_i32_11 : i32
    scf.if %15 {
      %c0_12 = arith.constant 0 : index
      %c0_13 = arith.constant 0 : index
      %16 = vector.load %arg9[%c0_12, %c0_13] : memref<16x512xf32, #tpu.memory_space<vmem>>, vector<16x512xf32>
      %c0_14 = arith.constant 0 : index
      %c0_15 = arith.constant 0 : index
      %17 = vector.load %arg5[%c0_14, %c0_15] : memref<1x512xf32, #tpu.memory_space<vmem>>, vector<1x512xf32>
      %18 = vector.broadcast %17 : vector<1x512xf32> to vector<16x512xf32>
      %19 = arith.addf %16, %18 : vector<16x512xf32>
      %20 = arith.truncf %19 : vector<16x512xf32> to vector<16x512xbf16>
      %c0_16 = arith.constant 0 : index
      %c0_17 = arith.constant 0 : index
      %21 = vector.load %arg8[%c0_16, %c0_17] : memref<16x512xbf16, #tpu.memory_space<vmem>>, vector<16x512xbf16>
      tpu.vector_store %arg8[%c0_16, %c0_17], %20 {strides = array<i32>} : memref<16x512xbf16, #tpu.memory_space<vmem>>, vector<16x512xbf16>,
    } else {
    }
    return
  }
  func.func @transform_0(%arg0: i32, %arg1: i32, %arg2: i32) -> (i32, i32) {
    %c0_i32 = arith.constant 0 : i32
    return %arg0, %arg2 : i32, i32
  }
  func.func @transform_1(%arg0: i32, %arg1: i32, %arg2: i32) -> (i32, i32) {
    %c0_i32 = arith.constant 0 : i32
    return %arg2, %arg1 : i32, i32
  }
  func.func @transform_2(%arg0: i32, %arg1: i32, %arg2: i32) -> (i32, i32) {
    %c0_i32 = arith.constant 0 : i32
    %c0_i32_0 = arith.constant 0 : i32
    return %c0_i32, %arg1 : i32, i32
  }
  func.func @transform_3(%arg0: i32, %arg1: i32, %arg2: i32) -> (i32, i32) {
    %c0_i32 = arith.constant 0 : i32
    %c0_i32_0 = arith.constant 0 : i32
    %c0_i32_1 = arith.constant 0 : i32
    return %c0_i32, %c0_i32_0 : i32, i32
  }
  func.func @transform_4(%arg0: i32, %arg1: i32, %arg2: i32) -> (i32, i32) {
    %c0_i32 = arith.constant 0 : i32
    %c0_i32_0 = arith.constant 0 : i32
    %c0_i32_1 = arith.constant 0 : i32
    return %c0_i32, %c0_i32_0 : i32, i32
  }
  func.func @transform_5(%arg0: i32, %arg1: i32, %arg2: i32) -> (i32, i32) {
    %c0_i32 = arith.constant 0 : i32
    return %arg0, %arg1 : i32, i32
  }
}

module attributes {stable_mosaic.version = 11 : i64} {
  func.func @_attn_kernel(%arg0: i32, %arg1: i32, %arg2: memref<1x8x128xbf16, #tpu.memory_space<vmem>>, %arg3: memref<1x8x128xbf16, #tpu.memory_space<vmem>>, %arg4: memref<1x8x128xbf16, #tpu.memory_space<vmem>>, %arg5: memref<1x8x128xbf16, #tpu.memory_space<vmem>>) attributes {dimension_semantics = [#tpu.dimension_semantics<parallel>, #tpu.dimension_semantics<parallel>], iteration_bounds = array<i64: 2, 4>, scalar_prefetch = 0 : i64, scratch_operands = 0 : i64, tpu.core_type = #tpu.core_type<tc>, window_params = [{transform_indices = @transform_0, window_bounds = array<i64: 1, 8, 128>}, {transform_indices = @transform_1, window_bounds = array<i64: 1, 8, 128>}, {transform_indices = @transform_2, window_bounds = array<i64: 1, 8, 128>}, {transform_indices = @transform_3, window_bounds = array<i64: 1, 8, 128>}]} {
    %c0 = arith.constant 0 : index
    %c0_0 = arith.constant 0 : index
    %c0_1 = arith.constant 0 : index
    %0 = vector.load %arg2[%c0, %c0_0, %c0_1] : memref<1x8x128xbf16, #tpu.memory_space<vmem>>, vector<1x8x128xbf16>
    %1 = vector.shape_cast %0 : vector<1x8x128xbf16> to vector<8x128xbf16>
    %c0_2 = arith.constant 0 : index
    %c0_3 = arith.constant 0 : index
    %c0_4 = arith.constant 0 : index
    %2 = vector.load %arg3[%c0_2, %c0_3, %c0_4] : memref<1x8x128xbf16, #tpu.memory_space<vmem>>, vector<1x8x128xbf16>
    %3 = vector.shape_cast %2 : vector<1x8x128xbf16> to vector<8x128xbf16>
    %c0_5 = arith.constant 0 : index
    %c0_6 = arith.constant 0 : index
    %c0_7 = arith.constant 0 : index
    %4 = vector.load %arg4[%c0_5, %c0_6, %c0_7] : memref<1x8x128xbf16, #tpu.memory_space<vmem>>, vector<1x8x128xbf16>
    %5 = vector.shape_cast %4 : vector<1x8x128xbf16> to vector<8x128xbf16>
    %cst = arith.constant dense<0.000000e+00> : vector<8x8xf32>
    %6 = tpu.matmul %1, %3, %cst {dimension_numbers = #tpu.dot_dimension_numbers<[1], [1], [0], [0], [0, 0, 1, 0], [], []>} : vector<8x128xbf16>, vector<8x128xbf16>, vector<8x8xf32> -> vector<8x8xf32>
    %cst_8 = arith.constant 0.353553385 : f32
    %7 = vector.broadcast %cst_8 : f32 to vector<8x8xf32>
    %8 = arith.mulf %6, %7 : vector<8x8xf32>
    %9 = tpu.iota {dimensions = array<i32: 0>} : vector<8x8xi32>
    %10 = tpu.iota {dimensions = array<i32: 1>} : vector<8x8xi32>
    %11 = arith.cmpi sle, %10, %9 : vector<8x8xi32>
    %cst_9 = arith.constant -1.000000e+30 : f32
    %12 = vector.broadcast %cst_9 : f32 to vector<8x8xf32>
    %13 = arith.select %11, %8, %12 : vector<8x8xi1>, vector<8x8xf32>
    %cst_10 = arith.constant dense<0xFF800000> : vector<8xf32>
    %14 = vector.multi_reduction <maximumf>, %13, %cst_10 [1] : vector<8x8xf32> to vector<8xf32>
    %15 = vector.shape_cast %14 : vector<8xf32> to vector<8x1xf32>
    %16 = vector.broadcast %15 : vector<8x1xf32> to vector<8x8xf32>
    %17 = arith.subf %13, %16 : vector<8x8xf32>
    %18 = math.exp %17 : vector<8x8xf32>
    %cst_11 = arith.constant dense<0.000000e+00> : vector<8xf32>
    %19 = vector.multi_reduction <add>, %18, %cst_11 [1] : vector<8x8xf32> to vector<8xf32>
    %20 = vector.shape_cast %19 : vector<8xf32> to vector<8x1xf32>
    %21 = vector.broadcast %20 : vector<8x1xf32> to vector<8x8xf32>
    %22 = arith.divf %18, %21 : vector<8x8xf32>
    %23 = arith.truncf %22 : vector<8x8xf32> to vector<8x8xbf16>
    %cst_12 = arith.constant dense<0.000000e+00> : vector<8x128xf32>
    %24 = tpu.matmul %23, %5, %cst_12 {dimension_numbers = #tpu.dot_dimension_numbers<[1], [0], [0], [1], [0, 0, 1, 1], [], []>} : vector<8x8xbf16>, vector<8x128xbf16>, vector<8x128xf32> -> vector<8x128xf32>
    %25 = arith.truncf %24 : vector<8x128xf32> to vector<8x128xbf16>
    %c0_13 = arith.constant 0 : index
    %c0_14 = arith.constant 0 : index
    %c0_15 = arith.constant 0 : index
    %26 = vector.load %arg5[%c0_13, %c0_14, %c0_15] : memref<1x8x128xbf16, #tpu.memory_space<vmem>>, vector<1x8x128xbf16>
    %27 = vector.shape_cast %26 : vector<1x8x128xbf16> to vector<8x128xbf16>
    %28 = vector.shape_cast %25 : vector<8x128xbf16> to vector<1x8x128xbf16>
    tpu.vector_store %arg5[%c0_13, %c0_14, %c0_15], %28 {strides = array<i32>} : memref<1x8x128xbf16, #tpu.memory_space<vmem>>, vector<1x8x128xbf16>,
    return
  }
  func.func @transform_0(%arg0: i32, %arg1: i32) -> (i32, i32, i32) {
    %c0_i32 = arith.constant 0 : i32
    %c0_i32_0 = arith.constant 0 : i32
    return %arg0, %c0_i32, %arg1 : i32, i32, i32
  }
  func.func @transform_1(%arg0: i32, %arg1: i32) -> (i32, i32, i32) {
    %c4_i32 = arith.constant 4 : i32
    %0 = arith.addi %c4_i32, %arg1 : i32
    %c0_i32 = arith.constant 0 : i32
    %c0_i32_0 = arith.constant 0 : i32
    return %arg0, %c0_i32, %0 : i32, i32, i32
  }
  func.func @transform_2(%arg0: i32, %arg1: i32) -> (i32, i32, i32) {
    %c8_i32 = arith.constant 8 : i32
    %0 = arith.addi %c8_i32, %arg1 : i32
    %c0_i32 = arith.constant 0 : i32
    %c0_i32_0 = arith.constant 0 : i32
    return %arg0, %c0_i32, %0 : i32, i32, i32
  }
  func.func @transform_3(%arg0: i32, %arg1: i32) -> (i32, i32, i32) {
    %c0_i32 = arith.constant 0 : i32
    %c0_i32_0 = arith.constant 0 : i32
    return %arg0, %c0_i32, %arg1 : i32, i32, i32
  }
}

module attributes {stable_mosaic.version = 11 : i64} {
  func.func @_linear_kernel(%arg0: i32, %arg1: i32, %arg2: i32, %arg3: memref<16x512xbf16, #tpu.memory_space<vmem>>, %arg4: memref<512x128xbf16, #tpu.memory_space<vmem>>, %arg5: memref<1x128xf32, #tpu.memory_space<vmem>>, %arg6: memref<16x128xbf16, #tpu.memory_space<vmem>>, %arg7: memref<16x128xbf16, #tpu.memory_space<vmem>>, %arg8: memref<16x128xf32, #tpu.memory_space<vmem>>) attributes {dimension_semantics = [#tpu.dimension_semantics<parallel>, #tpu.dimension_semantics<parallel>, #tpu.dimension_semantics<arbitrary>], iteration_bounds = array<i64: 1, 1, 1>, scalar_prefetch = 0 : i64, scratch_operands = 1 : i64, tpu.core_type = #tpu.core_type<tc>, window_params = [{transform_indices = @transform_0, window_bounds = array<i64: 16, 512>}, {transform_indices = @transform_1, window_bounds = array<i64: 512, 128>}, {transform_indices = @transform_2, window_bounds = array<i64: 1, 128>}, {transform_indices = @transform_3, window_bounds = array<i64: 16, 128>}, {transform_indices = @transform_4, window_bounds = array<i64: 16, 128>}]} {
    %c0_i32 = arith.constant 0 : i32
    %0 = arith.cmpi eq, %arg2, %c0_i32 : i32
    %1 = arith.extui %0 : i1 to i32
    %c0_i32_0 = arith.constant 0 : i32
    %2 = arith.cmpi ne, %1, %c0_i32_0 : i32
    scf.if %2 {
      %cst_10 = arith.constant 0.000000e+00 : f32
      %12 = vector.broadcast %cst_10 : f32 to vector<16x128xf32>
      %c0_11 = arith.constant 0 : index
      %c0_12 = arith.constant 0 : index
      %13 = vector.load %arg8[%c0_11, %c0_12] : memref<16x128xf32, #tpu.memory_space<vmem>>, vector<16x128xf32>
      tpu.vector_store %arg8[%c0_11, %c0_12], %12 {strides = array<i32>} : memref<16x128xf32, #tpu.memory_space<vmem>>, vector<16x128xf32>,
    } else {
    }
    %c0 = arith.constant 0 : index
    %c0_1 = arith.constant 0 : index
    %3 = vector.load %arg3[%c0, %c0_1] : memref<16x512xbf16, #tpu.memory_space<vmem>>, vector<16x512xbf16>
    %c0_2 = arith.constant 0 : index
    %c0_3 = arith.constant 0 : index
    %4 = vector.load %arg8[%c0_2, %c0_3] : memref<16x128xf32, #tpu.memory_space<vmem>>, vector<16x128xf32>
    %c0_4 = arith.constant 0 : index
    %c0_5 = arith.constant 0 : index
    %5 = vector.load %arg4[%c0_4, %c0_5] : memref<512x128xbf16, #tpu.memory_space<vmem>>, vector<512x128xbf16>
    %cst = arith.constant dense<0.000000e+00> : vector<16x128xf32>
    %6 = tpu.matmul %3, %5, %cst {dimension_numbers = #tpu.dot_dimension_numbers<[1], [0], [0], [1], [0, 0, 1, 1], [], []>} : vector<16x512xbf16>, vector<512x128xbf16>, vector<16x128xf32> -> vector<16x128xf32>
    %7 = arith.addf %4, %6 : vector<16x128xf32>
    %c0_6 = arith.constant 0 : index
    %c0_7 = arith.constant 0 : index
    %8 = vector.load %arg8[%c0_6, %c0_7] : memref<16x128xf32, #tpu.memory_space<vmem>>, vector<16x128xf32>
    tpu.vector_store %arg8[%c0_6, %c0_7], %7 {strides = array<i32>} : memref<16x128xf32, #tpu.memory_space<vmem>>, vector<16x128xf32>,
    %c0_i32_8 = arith.constant 0 : i32
    %9 = arith.cmpi eq, %arg2, %c0_i32_8 : i32
    %10 = arith.extui %9 : i1 to i32
    %c0_i32_9 = arith.constant 0 : i32
    %11 = arith.cmpi ne, %10, %c0_i32_9 : i32
    scf.if %11 {
      %c0_10 = arith.constant 0 : index
      %c0_11 = arith.constant 0 : index
      %12 = vector.load %arg8[%c0_10, %c0_11] : memref<16x128xf32, #tpu.memory_space<vmem>>, vector<16x128xf32>
      %c0_12 = arith.constant 0 : index
      %c0_13 = arith.constant 0 : index
      %13 = vector.load %arg5[%c0_12, %c0_13] : memref<1x128xf32, #tpu.memory_space<vmem>>, vector<1x128xf32>
      %14 = vector.broadcast %13 : vector<1x128xf32> to vector<16x128xf32>
      %15 = arith.addf %12, %14 : vector<16x128xf32>
      %c0_14 = arith.constant 0 : index
      %c0_15 = arith.constant 0 : index
      %16 = vector.load %arg6[%c0_14, %c0_15] : memref<16x128xbf16, #tpu.memory_space<vmem>>, vector<16x128xbf16>
      %17 = arith.extf %16 : vector<16x128xbf16> to vector<16x128xf32>
      %18 = arith.addf %15, %17 : vector<16x128xf32>
      %19 = arith.truncf %18 : vector<16x128xf32> to vector<16x128xbf16>
      %c0_16 = arith.constant 0 : index
      %c0_17 = arith.constant 0 : index
      %20 = vector.load %arg7[%c0_16, %c0_17] : memref<16x128xbf16, #tpu.memory_space<vmem>>, vector<16x128xbf16>
      tpu.vector_store %arg7[%c0_16, %c0_17], %19 {strides = array<i32>} : memref<16x128xbf16, #tpu.memory_space<vmem>>, vector<16x128xbf16>,
    } else {
    }
    return
  }
  func.func @transform_0(%arg0: i32, %arg1: i32, %arg2: i32) -> (i32, i32) {
    %c0_i32 = arith.constant 0 : i32
    return %arg0, %arg2 : i32, i32
  }
  func.func @transform_1(%arg0: i32, %arg1: i32, %arg2: i32) -> (i32, i32) {
    %c0_i32 = arith.constant 0 : i32
    return %arg2, %arg1 : i32, i32
  }
  func.func @transform_2(%arg0: i32, %arg1: i32, %arg2: i32) -> (i32, i32) {
    %c0_i32 = arith.constant 0 : i32
    %c0_i32_0 = arith.constant 0 : i32
    return %c0_i32, %arg1 : i32, i32
  }
  func.func @transform_3(%arg0: i32, %arg1: i32, %arg2: i32) -> (i32, i32) {
    %c0_i32 = arith.constant 0 : i32
    return %arg0, %arg1 : i32, i32
  }
  func.func @transform_4(%arg0: i32, %arg1: i32, %arg2: i32) -> (i32, i32) {
    %c0_i32 = arith.constant 0 : i32
    return %arg0, %arg1 : i32, i32
  }
}

module attributes {stable_mosaic.version = 11 : i64} {
  func.func @_mlp2_kernel(%arg0: i32, %arg1: memref<16x128xbf16, #tpu.memory_space<vmem>>, %arg2: memref<128x128xbf16, #tpu.memory_space<vmem>>, %arg3: memref<1x128xf32, #tpu.memory_space<vmem>>, %arg4: memref<128x128xbf16, #tpu.memory_space<vmem>>, %arg5: memref<1x128xf32, #tpu.memory_space<vmem>>, %arg6: memref<1x128xf32, #tpu.memory_space<vmem>>, %arg7: memref<1x128xf32, #tpu.memory_space<vmem>>, %arg8: memref<16x128xbf16, #tpu.memory_space<vmem>>) attributes {dimension_semantics = [#tpu.dimension_semantics<parallel>], iteration_bounds = array<i64: 1>, scalar_prefetch = 0 : i64, scratch_operands = 0 : i64, tpu.core_type = #tpu.core_type<tc>, window_params = [{transform_indices = @transform_0, window_bounds = array<i64: 16, 128>}, {pipeline_mode = #tpu.pipeline_mode<synchronous>, transform_indices = @transform_1, window_bounds = array<i64: 128, 128>}, {pipeline_mode = #tpu.pipeline_mode<synchronous>, transform_indices = @transform_2, window_bounds = array<i64: 1, 128>}, {pipeline_mode = #tpu.pipeline_mode<synchronous>, transform_indices = @transform_3, window_bounds = array<i64: 128, 128>}, {pipeline_mode = #tpu.pipeline_mode<synchronous>, transform_indices = @transform_4, window_bounds = array<i64: 1, 128>}, {pipeline_mode = #tpu.pipeline_mode<synchronous>, transform_indices = @transform_5, window_bounds = array<i64: 1, 128>}, {pipeline_mode = #tpu.pipeline_mode<synchronous>, transform_indices = @transform_6, window_bounds = array<i64: 1, 128>}, {transform_indices = @transform_7, window_bounds = array<i64: 16, 128>}]} {
    %c0 = arith.constant 0 : index
    %c0_0 = arith.constant 0 : index
    %0 = vector.load %arg1[%c0, %c0_0] : memref<16x128xbf16, #tpu.memory_space<vmem>>, vector<16x128xbf16>
    %1 = arith.extf %0 : vector<16x128xbf16> to vector<16x128xf32>
    %cst = arith.constant dense<0.000000e+00> : vector<16xf32>
    %2 = vector.multi_reduction <add>, %1, %cst [1] : vector<16x128xf32> to vector<16xf32>
    %3 = vector.shape_cast %2 : vector<16xf32> to vector<16x1xf32>
    %cst_1 = arith.constant 3.125000e-02 : f32
    %4 = vector.broadcast %cst_1 : f32 to vector<16x1xf32>
    %5 = arith.mulf %3, %4 : vector<16x1xf32>
    %6 = vector.broadcast %5 : vector<16x1xf32> to vector<16x128xf32>
    %7 = arith.subf %1, %6 : vector<16x128xf32>
    %8 = tpu.iota {dimensions = array<i32: 1>} : vector<16x128xi32>
    %c32_i32 = arith.constant 32 : i32
    %9 = vector.broadcast %c32_i32 : i32 to vector<16x128xi32>
    %10 = arith.cmpi slt, %8, %9 : vector<16x128xi32>
    %11 = arith.mulf %7, %7 : vector<16x128xf32>
    %cst_2 = arith.constant 0.000000e+00 : f32
    %12 = vector.broadcast %cst_2 : f32 to vector<16x128xf32>
    %13 = arith.select %10, %11, %12 : vector<16x128xi1>, vector<16x128xf32>
    %cst_3 = arith.constant dense<0.000000e+00> : vector<16xf32>
    %14 = vector.multi_reduction <add>, %13, %cst_3 [1] : vector<16x128xf32> to vector<16xf32>
    %15 = vector.shape_cast %14 : vector<16xf32> to vector<16x1xf32>
    %cst_4 = arith.constant 3.125000e-02 : f32
    %16 = vector.broadcast %cst_4 : f32 to vector<16x1xf32>
    %17 = arith.mulf %15, %16 : vector<16x1xf32>
    %cst_5 = arith.constant 9.99999974E-6 : f32
    %18 = vector.broadcast %cst_5 : f32 to vector<16x1xf32>
    %19 = arith.addf %17, %18 : vector<16x1xf32>
    %20 = math.rsqrt %19 : vector<16x1xf32>
    %21 = vector.broadcast %20 : vector<16x1xf32> to vector<16x128xf32>
    %22 = arith.mulf %7, %21 : vector<16x128xf32>
    %c0_6 = arith.constant 0 : index
    %c0_7 = arith.constant 0 : index
    %23 = vector.load %arg6[%c0_6, %c0_7] : memref<1x128xf32, #tpu.memory_space<vmem>>, vector<1x128xf32>
    %24 = vector.broadcast %23 : vector<1x128xf32> to vector<16x128xf32>
    %25 = arith.mulf %22, %24 : vector<16x128xf32>
    %c0_8 = arith.constant 0 : index
    %c0_9 = arith.constant 0 : index
    %26 = vector.load %arg7[%c0_8, %c0_9] : memref<1x128xf32, #tpu.memory_space<vmem>>, vector<1x128xf32>
    %27 = vector.broadcast %26 : vector<1x128xf32> to vector<16x128xf32>
    %28 = arith.addf %25, %27 : vector<16x128xf32>
    %29 = arith.truncf %28 : vector<16x128xf32> to vector<16x128xbf16>
    %c0_10 = arith.constant 0 : index
    %c0_11 = arith.constant 0 : index
    %30 = vector.load %arg2[%c0_10, %c0_11] : memref<128x128xbf16, #tpu.memory_space<vmem>>, vector<128x128xbf16>
    %cst_12 = arith.constant dense<0.000000e+00> : vector<16x128xf32>
    %31 = tpu.matmul %29, %30, %cst_12 {dimension_numbers = #tpu.dot_dimension_numbers<[1], [0], [0], [1], [0, 0, 1, 1], [], []>} : vector<16x128xbf16>, vector<128x128xbf16>, vector<16x128xf32> -> vector<16x128xf32>
    %c0_13 = arith.constant 0 : index
    %c0_14 = arith.constant 0 : index
    %32 = vector.load %arg3[%c0_13, %c0_14] : memref<1x128xf32, #tpu.memory_space<vmem>>, vector<1x128xf32>
    %33 = vector.broadcast %32 : vector<1x128xf32> to vector<16x128xf32>
    %34 = arith.addf %31, %33 : vector<16x128xf32>
    %cst_15 = arith.constant 0.000000e+00 : f32
    %35 = vector.broadcast %cst_15 : f32 to vector<16x128xf32>
    %36 = arith.maximumf %34, %35 : vector<16x128xf32>
    %37 = arith.truncf %36 : vector<16x128xf32> to vector<16x128xbf16>
    %c0_16 = arith.constant 0 : index
    %c0_17 = arith.constant 0 : index
    %38 = vector.load %arg4[%c0_16, %c0_17] : memref<128x128xbf16, #tpu.memory_space<vmem>>, vector<128x128xbf16>
    %cst_18 = arith.constant dense<0.000000e+00> : vector<16x128xf32>
    %39 = tpu.matmul %37, %38, %cst_18 {dimension_numbers = #tpu.dot_dimension_numbers<[1], [0], [0], [1], [0, 0, 1, 1], [], []>} : vector<16x128xbf16>, vector<128x128xbf16>, vector<16x128xf32> -> vector<16x128xf32>
    %c0_19 = arith.constant 0 : index
    %c0_20 = arith.constant 0 : index
    %40 = vector.load %arg5[%c0_19, %c0_20] : memref<1x128xf32, #tpu.memory_space<vmem>>, vector<1x128xf32>
    %41 = vector.broadcast %40 : vector<1x128xf32> to vector<16x128xf32>
    %42 = arith.addf %39, %41 : vector<16x128xf32>
    %43 = arith.extf %0 : vector<16x128xbf16> to vector<16x128xf32>
    %44 = arith.addf %42, %43 : vector<16x128xf32>
    %45 = arith.truncf %44 : vector<16x128xf32> to vector<16x128xbf16>
    %c0_21 = arith.constant 0 : index
    %c0_22 = arith.constant 0 : index
    %46 = vector.load %arg8[%c0_21, %c0_22] : memref<16x128xbf16, #tpu.memory_space<vmem>>, vector<16x128xbf16>
    tpu.vector_store %arg8[%c0_21, %c0_22], %45 {strides = array<i32>} : memref<16x128xbf16, #tpu.memory_space<vmem>>, vector<16x128xbf16>,
    return
  }
  func.func @transform_0(%arg0: i32) -> (i32, i32) {
    %c0_i32 = arith.constant 0 : i32
    %c0_i32_0 = arith.constant 0 : i32
    return %arg0, %c0_i32 : i32, i32
  }
  func.func @transform_1(%arg0: i32) -> (i32, i32) {
    %c0_i32 = arith.constant 0 : i32
    %c0_i32_0 = arith.constant 0 : i32
    %c0_i32_1 = arith.constant 0 : i32
    return %c0_i32, %c0_i32_0 : i32, i32
  }
  func.func @transform_2(%arg0: i32) -> (i32, i32) {
    %c0_i32 = arith.constant 0 : i32
    %c0_i32_0 = arith.constant 0 : i32
    %c0_i32_1 = arith.constant 0 : i32
    return %c0_i32, %c0_i32_0 : i32, i32
  }
  func.func @transform_3(%arg0: i32) -> (i32, i32) {
    %c0_i32 = arith.constant 0 : i32
    %c0_i32_0 = arith.constant 0 : i32
    %c0_i32_1 = arith.constant 0 : i32
    return %c0_i32, %c0_i32_0 : i32, i32
  }
  func.func @transform_4(%arg0: i32) -> (i32, i32) {
    %c0_i32 = arith.constant 0 : i32
    %c0_i32_0 = arith.constant 0 : i32
    %c0_i32_1 = arith.constant 0 : i32
    return %c0_i32, %c0_i32_0 : i32, i32
  }
  func.func @transform_5(%arg0: i32) -> (i32, i32) {
    %c0_i32 = arith.constant 0 : i32
    %c0_i32_0 = arith.constant 0 : i32
    %c0_i32_1 = arith.constant 0 : i32
    return %c0_i32, %c0_i32_0 : i32, i32
  }
  func.func @transform_6(%arg0: i32) -> (i32, i32) {
    %c0_i32 = arith.constant 0 : i32
    %c0_i32_0 = arith.constant 0 : i32
    %c0_i32_1 = arith.constant 0 : i32
    return %c0_i32, %c0_i32_0 : i32, i32
  }
  func.func @transform_7(%arg0: i32) -> (i32, i32) {
    %c0_i32 = arith.constant 0 : i32
    %c0_i32_0 = arith.constant 0 : i32
    return %arg0, %c0_i32 : i32, i32
  }
}

module attributes {stable_mosaic.version = 11 : i64} {
  func.func @_attn_kernel(%arg0: i32, %arg1: i32, %arg2: memref<1x8x128xbf16, #tpu.memory_space<vmem>>, %arg3: memref<1x16x128xbf16, #tpu.memory_space<vmem>>, %arg4: memref<1x16x128xbf16, #tpu.memory_space<vmem>>, %arg5: memref<1x8x128xbf16, #tpu.memory_space<vmem>>) attributes {dimension_semantics = [#tpu.dimension_semantics<parallel>, #tpu.dimension_semantics<parallel>], iteration_bounds = array<i64: 2, 4>, scalar_prefetch = 0 : i64, scratch_operands = 0 : i64, tpu.core_type = #tpu.core_type<tc>, window_params = [{transform_indices = @transform_0, window_bounds = array<i64: 1, 8, 128>}, {transform_indices = @transform_1, window_bounds = array<i64: 1, 16, 128>}, {transform_indices = @transform_2, window_bounds = array<i64: 1, 16, 128>}, {transform_indices = @transform_3, window_bounds = array<i64: 1, 8, 128>}]} {
    %c0 = arith.constant 0 : index
    %c0_0 = arith.constant 0 : index
    %c0_1 = arith.constant 0 : index
    %0 = vector.load %arg2[%c0, %c0_0, %c0_1] : memref<1x8x128xbf16, #tpu.memory_space<vmem>>, vector<1x8x128xbf16>
    %1 = vector.shape_cast %0 : vector<1x8x128xbf16> to vector<8x128xbf16>
    %c0_2 = arith.constant 0 : index
    %c0_3 = arith.constant 0 : index
    %c0_4 = arith.constant 0 : index
    %2 = vector.load %arg3[%c0_2, %c0_3, %c0_4] : memref<1x16x128xbf16, #tpu.memory_space<vmem>>, vector<1x16x128xbf16>
    %3 = vector.shape_cast %2 : vector<1x16x128xbf16> to vector<16x128xbf16>
    %c0_5 = arith.constant 0 : index
    %c0_6 = arith.constant 0 : index
    %c0_7 = arith.constant 0 : index
    %4 = vector.load %arg4[%c0_5, %c0_6, %c0_7] : memref<1x16x128xbf16, #tpu.memory_space<vmem>>, vector<1x16x128xbf16>
    %5 = vector.shape_cast %4 : vector<1x16x128xbf16> to vector<16x128xbf16>
    %cst = arith.constant dense<0.000000e+00> : vector<8x16xf32>
    %6 = tpu.matmul %1, %3, %cst {dimension_numbers = #tpu.dot_dimension_numbers<[1], [1], [0], [0], [0, 0, 1, 0], [], []>} : vector<8x128xbf16>, vector<16x128xbf16>, vector<8x16xf32> -> vector<8x16xf32>
    %cst_8 = arith.constant 0.353553385 : f32
    %7 = vector.broadcast %cst_8 : f32 to vector<8x16xf32>
    %8 = arith.mulf %6, %7 : vector<8x16xf32>
    %cst_9 = arith.constant dense<0xFF800000> : vector<8xf32>
    %9 = vector.multi_reduction <maximumf>, %8, %cst_9 [1] : vector<8x16xf32> to vector<8xf32>
    %10 = vector.shape_cast %9 : vector<8xf32> to vector<8x1xf32>
    %11 = vector.broadcast %10 : vector<8x1xf32> to vector<8x16xf32>
    %12 = arith.subf %8, %11 : vector<8x16xf32>
    %13 = math.exp %12 : vector<8x16xf32>
    %cst_10 = arith.constant dense<0.000000e+00> : vector<8xf32>
    %14 = vector.multi_reduction <add>, %13, %cst_10 [1] : vector<8x16xf32> to vector<8xf32>
    %15 = vector.shape_cast %14 : vector<8xf32> to vector<8x1xf32>
    %16 = vector.broadcast %15 : vector<8x1xf32> to vector<8x16xf32>
    %17 = arith.divf %13, %16 : vector<8x16xf32>
    %18 = arith.truncf %17 : vector<8x16xf32> to vector<8x16xbf16>
    %cst_11 = arith.constant dense<0.000000e+00> : vector<8x128xf32>
    %19 = tpu.matmul %18, %5, %cst_11 {dimension_numbers = #tpu.dot_dimension_numbers<[1], [0], [0], [1], [0, 0, 1, 1], [], []>} : vector<8x16xbf16>, vector<16x128xbf16>, vector<8x128xf32> -> vector<8x128xf32>
    %20 = arith.truncf %19 : vector<8x128xf32> to vector<8x128xbf16>
    %c0_12 = arith.constant 0 : index
    %c0_13 = arith.constant 0 : index
    %c0_14 = arith.constant 0 : index
    %21 = vector.load %arg5[%c0_12, %c0_13, %c0_14] : memref<1x8x128xbf16, #tpu.memory_space<vmem>>, vector<1x8x128xbf16>
    %22 = vector.shape_cast %21 : vector<1x8x128xbf16> to vector<8x128xbf16>
    %23 = vector.shape_cast %20 : vector<8x128xbf16> to vector<1x8x128xbf16>
    tpu.vector_store %arg5[%c0_12, %c0_13, %c0_14], %23 {strides = array<i32>} : memref<1x8x128xbf16, #tpu.memory_space<vmem>>, vector<1x8x128xbf16>,
    return
  }
  func.func @transform_0(%arg0: i32, %arg1: i32) -> (i32, i32, i32) {
    %c0_i32 = arith.constant 0 : i32
    %c0_i32_0 = arith.constant 0 : i32
    return %arg0, %c0_i32, %arg1 : i32, i32, i32
  }
  func.func @transform_1(%arg0: i32, %arg1: i32) -> (i32, i32, i32) {
    %c0_i32 = arith.constant 0 : i32
    %0 = arith.addi %c0_i32, %arg1 : i32
    %c0_i32_0 = arith.constant 0 : i32
    %c0_i32_1 = arith.constant 0 : i32
    return %arg0, %c0_i32_0, %0 : i32, i32, i32
  }
  func.func @transform_2(%arg0: i32, %arg1: i32) -> (i32, i32, i32) {
    %c4_i32 = arith.constant 4 : i32
    %0 = arith.addi %c4_i32, %arg1 : i32
    %c0_i32 = arith.constant 0 : i32
    %c0_i32_0 = arith.constant 0 : i32
    return %arg0, %c0_i32, %0 : i32, i32, i32
  }
  func.func @transform_3(%arg0: i32, %arg1: i32) -> (i32, i32, i32) {
    %c0_i32 = arith.constant 0 : i32
    %c0_i32_0 = arith.constant 0 : i32
    return %arg0, %c0_i32, %arg1 : i32, i32, i32
  }
}

module attributes {stable_mosaic.version = 11 : i64} {
  func.func @_linear_kernel(%arg0: i32, %arg1: i32, %arg2: i32, %arg3: memref<16x128xbf16, #tpu.memory_space<vmem>>, %arg4: memref<128x512xbf16, #tpu.memory_space<vmem>>, %arg5: memref<1x512xf32, #tpu.memory_space<vmem>>, %arg6: memref<1x128xf32, #tpu.memory_space<vmem>>, %arg7: memref<1x128xf32, #tpu.memory_space<vmem>>, %arg8: memref<16x512xbf16, #tpu.memory_space<vmem>>, %arg9: memref<16x512xf32, #tpu.memory_space<vmem>>, %arg10: memref<16x128xf32, #tpu.memory_space<vmem>>) attributes {dimension_semantics = [#tpu.dimension_semantics<parallel>, #tpu.dimension_semantics<arbitrary>, #tpu.dimension_semantics<arbitrary>], iteration_bounds = array<i64: 1, 1, 1>, scalar_prefetch = 0 : i64, scratch_operands = 2 : i64, tpu.core_type = #tpu.core_type<tc>, window_params = [{transform_indices = @transform_0, window_bounds = array<i64: 16, 128>}, {transform_indices = @transform_1, window_bounds = array<i64: 128, 512>}, {transform_indices = @transform_2, window_bounds = array<i64: 1, 512>}, {pipeline_mode = #tpu.pipeline_mode<synchronous>, transform_indices = @transform_3, window_bounds = array<i64: 1, 128>}, {pipeline_mode = #tpu.pipeline_mode<synchronous>, transform_indices = @transform_4, window_bounds = array<i64: 1, 128>}, {transform_indices = @transform_5, window_bounds = array<i64: 16, 512>}]} {
    %c0_i32 = arith.constant 0 : i32
    %0 = arith.cmpi eq, %arg2, %c0_i32 : i32
    %1 = arith.extui %0 : i1 to i32
    %c0_i32_0 = arith.constant 0 : i32
    %2 = arith.cmpi ne, %1, %c0_i32_0 : i32
    scf.if %2 {
      %cst_12 = arith.constant 0.000000e+00 : f32
      %16 = vector.broadcast %cst_12 : f32 to vector<16x512xf32>
      %c0_13 = arith.constant 0 : index
      %c0_14 = arith.constant 0 : index
      %17 = vector.load %arg9[%c0_13, %c0_14] : memref<16x512xf32, #tpu.memory_space<vmem>>, vector<16x512xf32>
      tpu.vector_store %arg9[%c0_13, %c0_14], %16 {strides = array<i32>} : memref<16x512xf32, #tpu.memory_space<vmem>>, vector<16x512xf32>,
    } else {
    }
    %c0_i32_1 = arith.constant 0 : i32
    %3 = arith.cmpi eq, %arg1, %c0_i32_1 : i32
    %4 = arith.extui %3 : i1 to i32
    %c0_i32_2 = arith.constant 0 : i32
    %5 = arith.cmpi ne, %4, %c0_i32_2 : i32
    scf.if %5 {
      %c0_12 = arith.constant 0 : index
      %c0_13 = arith.constant 0 : index
      %16 = vector.load %arg3[%c0_12, %c0_13] : memref<16x128xbf16, #tpu.memory_space<vmem>>, vector<16x128xbf16>
      %17 = arith.extf %16 : vector<16x128xbf16> to vector<16x128xf32>
      %cst_14 = arith.constant dense<0.000000e+00> : vector<16xf32>
      %18 = vector.multi_reduction <add>, %17, %cst_14 [1] : vector<16x128xf32> to vector<16xf32>
      %19 = vector.shape_cast %18 : vector<16xf32> to vector<16x1xf32>
      %cst_15 = arith.constant 3.125000e-02 : f32
      %20 = vector.broadcast %cst_15 : f32 to vector<16x1xf32>
      %21 = arith.mulf %19, %20 : vector<16x1xf32>
      %22 = vector.broadcast %21 : vector<16x1xf32> to vector<16x128xf32>
      %23 = arith.subf %17, %22 : vector<16x128xf32>
      %24 = tpu.iota {dimensions = array<i32: 1>} : vector<16x128xi32>
      %c32_i32 = arith.constant 32 : i32
      %25 = vector.broadcast %c32_i32 : i32 to vector<16x128xi32>
      %26 = arith.cmpi slt, %24, %25 : vector<16x128xi32>
      %27 = arith.mulf %23, %23 : vector<16x128xf32>
      %cst_16 = arith.constant 0.000000e+00 : f32
      %28 = vector.broadcast %cst_16 : f32 to vector<16x128xf32>
      %29 = arith.select %26, %27, %28 : vector<16x128xi1>, vector<16x128xf32>
      %cst_17 = arith.constant dense<0.000000e+00> : vector<16xf32>
      %30 = vector.multi_reduction <add>, %29, %cst_17 [1] : vector<16x128xf32> to vector<16xf32>
      %31 = vector.shape_cast %30 : vector<16xf32> to vector<16x1xf32>
      %cst_18 = arith.constant 3.125000e-02 : f32
      %32 = vector.broadcast %cst_18 : f32 to vector<16x1xf32>
      %33 = arith.mulf %31, %32 : vector<16x1xf32>
      %cst_19 = arith.constant 9.99999974E-6 : f32
      %34 = vector.broadcast %cst_19 : f32 to vector<16x1xf32>
      %35 = arith.addf %33, %34 : vector<16x1xf32>
      %36 = math.rsqrt %35 : vector<16x1xf32>
      %37 = vector.broadcast %36 : vector<16x1xf32> to vector<16x128xf32>
      %38 = arith.mulf %23, %37 : vector<16x128xf32>
      %c0_20 = arith.constant 0 : index
      %c0_21 = arith.constant 0 : index
      %39 = vector.load %arg6[%c0_20, %c0_21] : memref<1x128xf32, #tpu.memory_space<vmem>>, vector<1x128xf32>
      %40 = vector.broadcast %39 : vector<1x128xf32> to vector<16x128xf32>
      %41 = arith.mulf %38, %40 : vector<16x128xf32>
      %c0_22 = arith.constant 0 : index
      %c0_23 = arith.constant 0 : index
      %42 = vector.load %arg7[%c0_22, %c0_23] : memref<1x128xf32, #tpu.memory_space<vmem>>, vector<1x128xf32>
      %43 = vector.broadcast %42 : vector<1x128xf32> to vector<16x128xf32>
      %44 = arith.addf %41, %43 : vector<16x128xf32>
      %c0_24 = arith.constant 0 : index
      %c0_25 = arith.constant 0 : index
      %45 = vector.load %arg10[%c0_24, %c0_25] : memref<16x128xf32, #tpu.memory_space<vmem>>, vector<16x128xf32>
      tpu.vector_store %arg10[%c0_24, %c0_25], %44 {strides = array<i32>} : memref<16x128xf32, #tpu.memory_space<vmem>>, vector<16x128xf32>,
    } else {
    }
    %c0 = arith.constant 0 : index
    %c0_3 = arith.constant 0 : index
    %6 = vector.load %arg10[%c0, %c0_3] : memref<16x128xf32, #tpu.memory_space<vmem>>, vector<16x128xf32>
    %7 = arith.truncf %6 : vector<16x128xf32> to vector<16x128xbf16>
    %c0_4 = arith.constant 0 : index
    %c0_5 = arith.constant 0 : index
    %8 = vector.load %arg9[%c0_4, %c0_5] : memref<16x512xf32, #tpu.memory_space<vmem>>, vector<16x512xf32>
    %c0_6 = arith.constant 0 : index
    %c0_7 = arith.constant 0 : index
    %9 = vector.load %arg4[%c0_6, %c0_7] : memref<128x512xbf16, #tpu.memory_space<vmem>>, vector<128x512xbf16>
    %cst = arith.constant dense<0.000000e+00> : vector<16x512xf32>
    %10 = tpu.matmul %7, %9, %cst {dimension_numbers = #tpu.dot_dimension_numbers<[1], [0], [0], [1], [0, 0, 1, 1], [], []>} : vector<16x128xbf16>, vector<128x512xbf16>, vector<16x512xf32> -> vector<16x512xf32>
    %11 = arith.addf %8, %10 : vector<16x512xf32>
    %c0_8 = arith.constant 0 : index
    %c0_9 = arith.constant 0 : index
    %12 = vector.load %arg9[%c0_8, %c0_9] : memref<16x512xf32, #tpu.memory_space<vmem>>, vector<16x512xf32>
    tpu.vector_store %arg9[%c0_8, %c0_9], %11 {strides = array<i32>} : memref<16x512xf32, #tpu.memory_space<vmem>>, vector<16x512xf32>,
    %c0_i32_10 = arith.constant 0 : i32
    %13 = arith.cmpi eq, %arg2, %c0_i32_10 : i32
    %14 = arith.extui %13 : i1 to i32
    %c0_i32_11 = arith.constant 0 : i32
    %15 = arith.cmpi ne, %14, %c0_i32_11 : i32
    scf.if %15 {
      %c0_12 = arith.constant 0 : index
      %c0_13 = arith.constant 0 : index
      %16 = vector.load %arg9[%c0_12, %c0_13] : memref<16x512xf32, #tpu.memory_space<vmem>>, vector<16x512xf32>
      %c0_14 = arith.constant 0 : index
      %c0_15 = arith.constant 0 : index
      %17 = vector.load %arg5[%c0_14, %c0_15] : memref<1x512xf32, #tpu.memory_space<vmem>>, vector<1x512xf32>
      %18 = vector.broadcast %17 : vector<1x512xf32> to vector<16x512xf32>
      %19 = arith.addf %16, %18 : vector<16x512xf32>
      %20 = arith.truncf %19 : vector<16x512xf32> to vector<16x512xbf16>
      %c0_16 = arith.constant 0 : index
      %c0_17 = arith.constant 0 : index
      %21 = vector.load %arg8[%c0_16, %c0_17] : memref<16x512xbf16, #tpu.memory_space<vmem>>, vector<16x512xbf16>
      tpu.vector_store %arg8[%c0_16, %c0_17], %20 {strides = array<i32>} : memref<16x512xbf16, #tpu.memory_space<vmem>>, vector<16x512xbf16>,
    } else {
    }
    return
  }
  func.func @transform_0(%arg0: i32, %arg1: i32, %arg2: i32) -> (i32, i32) {
    %c0_i32 = arith.constant 0 : i32
    return %arg0, %arg2 : i32, i32
  }
  func.func @transform_1(%arg0: i32, %arg1: i32, %arg2: i32) -> (i32, i32) {
    %c0_i32 = arith.constant 0 : i32
    return %arg2, %arg1 : i32, i32
  }
  func.func @transform_2(%arg0: i32, %arg1: i32, %arg2: i32) -> (i32, i32) {
    %c0_i32 = arith.constant 0 : i32
    %c0_i32_0 = arith.constant 0 : i32
    return %c0_i32, %arg1 : i32, i32
  }
  func.func @transform_3(%arg0: i32, %arg1: i32, %arg2: i32) -> (i32, i32) {
    %c0_i32 = arith.constant 0 : i32
    %c0_i32_0 = arith.constant 0 : i32
    %c0_i32_1 = arith.constant 0 : i32
    return %c0_i32, %c0_i32_0 : i32, i32
  }
  func.func @transform_4(%arg0: i32, %arg1: i32, %arg2: i32) -> (i32, i32) {
    %c0_i32 = arith.constant 0 : i32
    %c0_i32_0 = arith.constant 0 : i32
    %c0_i32_1 = arith.constant 0 : i32
    return %c0_i32, %c0_i32_0 : i32, i32
  }
  func.func @transform_5(%arg0: i32, %arg1: i32, %arg2: i32) -> (i32, i32) {
    %c0_i32 = arith.constant 0 : i32
    return %arg0, %arg1 : i32, i32
  }
}

module attributes {stable_mosaic.version = 11 : i64} {
  func.func @_attn_kernel(%arg0: i32, %arg1: i32, %arg2: memref<1x8x128xbf16, #tpu.memory_space<vmem>>, %arg3: memref<1x16x128xbf16, #tpu.memory_space<vmem>>, %arg4: memref<1x16x128xbf16, #tpu.memory_space<vmem>>, %arg5: memref<1x8x128xbf16, #tpu.memory_space<vmem>>) attributes {dimension_semantics = [#tpu.dimension_semantics<parallel>, #tpu.dimension_semantics<parallel>], iteration_bounds = array<i64: 2, 4>, scalar_prefetch = 0 : i64, scratch_operands = 0 : i64, tpu.core_type = #tpu.core_type<tc>, window_params = [{transform_indices = @transform_0, window_bounds = array<i64: 1, 8, 128>}, {transform_indices = @transform_1, window_bounds = array<i64: 1, 16, 128>}, {transform_indices = @transform_2, window_bounds = array<i64: 1, 16, 128>}, {transform_indices = @transform_3, window_bounds = array<i64: 1, 8, 128>}]} {
    %c0 = arith.constant 0 : index
    %c0_0 = arith.constant 0 : index
    %c0_1 = arith.constant 0 : index
    %0 = vector.load %arg2[%c0, %c0_0, %c0_1] : memref<1x8x128xbf16, #tpu.memory_space<vmem>>, vector<1x8x128xbf16>
    %1 = vector.shape_cast %0 : vector<1x8x128xbf16> to vector<8x128xbf16>
    %c0_2 = arith.constant 0 : index
    %c0_3 = arith.constant 0 : index
    %c0_4 = arith.constant 0 : index
    %2 = vector.load %arg3[%c0_2, %c0_3, %c0_4] : memref<1x16x128xbf16, #tpu.memory_space<vmem>>, vector<1x16x128xbf16>
    %3 = vector.shape_cast %2 : vector<1x16x128xbf16> to vector<16x128xbf16>
    %c0_5 = arith.constant 0 : index
    %c0_6 = arith.constant 0 : index
    %c0_7 = arith.constant 0 : index
    %4 = vector.load %arg4[%c0_5, %c0_6, %c0_7] : memref<1x16x128xbf16, #tpu.memory_space<vmem>>, vector<1x16x128xbf16>
    %5 = vector.shape_cast %4 : vector<1x16x128xbf16> to vector<16x128xbf16>
    %cst = arith.constant dense<0.000000e+00> : vector<8x16xf32>
    %6 = tpu.matmul %1, %3, %cst {dimension_numbers = #tpu.dot_dimension_numbers<[1], [1], [0], [0], [0, 0, 1, 0], [], []>} : vector<8x128xbf16>, vector<16x128xbf16>, vector<8x16xf32> -> vector<8x16xf32>
    %cst_8 = arith.constant 0.353553385 : f32
    %7 = vector.broadcast %cst_8 : f32 to vector<8x16xf32>
    %8 = arith.mulf %6, %7 : vector<8x16xf32>
    %cst_9 = arith.constant dense<0xFF800000> : vector<8xf32>
    %9 = vector.multi_reduction <maximumf>, %8, %cst_9 [1] : vector<8x16xf32> to vector<8xf32>
    %10 = vector.shape_cast %9 : vector<8xf32> to vector<8x1xf32>
    %11 = vector.broadcast %10 : vector<8x1xf32> to vector<8x16xf32>
    %12 = arith.subf %8, %11 : vector<8x16xf32>
    %13 = math.exp %12 : vector<8x16xf32>
    %cst_10 = arith.constant dense<0.000000e+00> : vector<8xf32>
    %14 = vector.multi_reduction <add>, %13, %cst_10 [1] : vector<8x16xf32> to vector<8xf32>
    %15 = vector.shape_cast %14 : vector<8xf32> to vector<8x1xf32>
    %16 = vector.broadcast %15 : vector<8x1xf32> to vector<8x16xf32>
    %17 = arith.divf %13, %16 : vector<8x16xf32>
    %18 = arith.truncf %17 : vector<8x16xf32> to vector<8x16xbf16>
    %cst_11 = arith.constant dense<0.000000e+00> : vector<8x128xf32>
    %19 = tpu.matmul %18, %5, %cst_11 {dimension_numbers = #tpu.dot_dimension_numbers<[1], [0], [0], [1], [0, 0, 1, 1], [], []>} : vector<8x16xbf16>, vector<16x128xbf16>, vector<8x128xf32> -> vector<8x128xf32>
    %20 = arith.truncf %19 : vector<8x128xf32> to vector<8x128xbf16>
    %c0_12 = arith.constant 0 : index
    %c0_13 = arith.constant 0 : index
    %c0_14 = arith.constant 0 : index
    %21 = vector.load %arg5[%c0_12, %c0_13, %c0_14] : memref<1x8x128xbf16, #tpu.memory_space<vmem>>, vector<1x8x128xbf16>
    %22 = vector.shape_cast %21 : vector<1x8x128xbf16> to vector<8x128xbf16>
    %23 = vector.shape_cast %20 : vector<8x128xbf16> to vector<1x8x128xbf16>
    tpu.vector_store %arg5[%c0_12, %c0_13, %c0_14], %23 {strides = array<i32>} : memref<1x8x128xbf16, #tpu.memory_space<vmem>>, vector<1x8x128xbf16>,
    return
  }
  func.func @transform_0(%arg0: i32, %arg1: i32) -> (i32, i32, i32) {
    %c0_i32 = arith.constant 0 : i32
    %c0_i32_0 = arith.constant 0 : i32
    return %arg0, %c0_i32, %arg1 : i32, i32, i32
  }
  func.func @transform_1(%arg0: i32, %arg1: i32) -> (i32, i32, i32) {
    %c8_i32 = arith.constant 8 : i32
    %0 = arith.addi %c8_i32, %arg1 : i32
    %c0_i32 = arith.constant 0 : i32
    %c0_i32_0 = arith.constant 0 : i32
    return %arg0, %c0_i32, %0 : i32, i32, i32
  }
  func.func @transform_2(%arg0: i32, %arg1: i32) -> (i32, i32, i32) {
    %c12_i32 = arith.constant 12 : i32
    %0 = arith.addi %c12_i32, %arg1 : i32
    %c0_i32 = arith.constant 0 : i32
    %c0_i32_0 = arith.constant 0 : i32
    return %arg0, %c0_i32, %0 : i32, i32, i32
  }
  func.func @transform_3(%arg0: i32, %arg1: i32) -> (i32, i32, i32) {
    %c0_i32 = arith.constant 0 : i32
    %c0_i32_0 = arith.constant 0 : i32
    return %arg0, %c0_i32, %arg1 : i32, i32, i32
  }
}

module attributes {stable_mosaic.version = 11 : i64} {
  func.func @_mlp2_kernel(%arg0: i32, %arg1: memref<16x128xbf16, #tpu.memory_space<vmem>>, %arg2: memref<128x128xbf16, #tpu.memory_space<vmem>>, %arg3: memref<1x128xf32, #tpu.memory_space<vmem>>, %arg4: memref<128x128xbf16, #tpu.memory_space<vmem>>, %arg5: memref<1x128xf32, #tpu.memory_space<vmem>>, %arg6: memref<1x128xf32, #tpu.memory_space<vmem>>, %arg7: memref<1x128xf32, #tpu.memory_space<vmem>>, %arg8: memref<16x128xf32, #tpu.memory_space<vmem>>) attributes {dimension_semantics = [#tpu.dimension_semantics<parallel>], iteration_bounds = array<i64: 1>, scalar_prefetch = 0 : i64, scratch_operands = 0 : i64, tpu.core_type = #tpu.core_type<tc>, window_params = [{transform_indices = @transform_0, window_bounds = array<i64: 16, 128>}, {pipeline_mode = #tpu.pipeline_mode<synchronous>, transform_indices = @transform_1, window_bounds = array<i64: 128, 128>}, {pipeline_mode = #tpu.pipeline_mode<synchronous>, transform_indices = @transform_2, window_bounds = array<i64: 1, 128>}, {pipeline_mode = #tpu.pipeline_mode<synchronous>, transform_indices = @transform_3, window_bounds = array<i64: 128, 128>}, {pipeline_mode = #tpu.pipeline_mode<synchronous>, transform_indices = @transform_4, window_bounds = array<i64: 1, 128>}, {pipeline_mode = #tpu.pipeline_mode<synchronous>, transform_indices = @transform_5, window_bounds = array<i64: 1, 128>}, {pipeline_mode = #tpu.pipeline_mode<synchronous>, transform_indices = @transform_6, window_bounds = array<i64: 1, 128>}, {transform_indices = @transform_7, window_bounds = array<i64: 16, 128>}]} {
    %c0 = arith.constant 0 : index
    %c0_0 = arith.constant 0 : index
    %0 = vector.load %arg1[%c0, %c0_0] : memref<16x128xbf16, #tpu.memory_space<vmem>>, vector<16x128xbf16>
    %1 = arith.extf %0 : vector<16x128xbf16> to vector<16x128xf32>
    %cst = arith.constant dense<0.000000e+00> : vector<16xf32>
    %2 = vector.multi_reduction <add>, %1, %cst [1] : vector<16x128xf32> to vector<16xf32>
    %3 = vector.shape_cast %2 : vector<16xf32> to vector<16x1xf32>
    %cst_1 = arith.constant 3.125000e-02 : f32
    %4 = vector.broadcast %cst_1 : f32 to vector<16x1xf32>
    %5 = arith.mulf %3, %4 : vector<16x1xf32>
    %6 = vector.broadcast %5 : vector<16x1xf32> to vector<16x128xf32>
    %7 = arith.subf %1, %6 : vector<16x128xf32>
    %8 = tpu.iota {dimensions = array<i32: 1>} : vector<16x128xi32>
    %c32_i32 = arith.constant 32 : i32
    %9 = vector.broadcast %c32_i32 : i32 to vector<16x128xi32>
    %10 = arith.cmpi slt, %8, %9 : vector<16x128xi32>
    %11 = arith.mulf %7, %7 : vector<16x128xf32>
    %cst_2 = arith.constant 0.000000e+00 : f32
    %12 = vector.broadcast %cst_2 : f32 to vector<16x128xf32>
    %13 = arith.select %10, %11, %12 : vector<16x128xi1>, vector<16x128xf32>
    %cst_3 = arith.constant dense<0.000000e+00> : vector<16xf32>
    %14 = vector.multi_reduction <add>, %13, %cst_3 [1] : vector<16x128xf32> to vector<16xf32>
    %15 = vector.shape_cast %14 : vector<16xf32> to vector<16x1xf32>
    %cst_4 = arith.constant 3.125000e-02 : f32
    %16 = vector.broadcast %cst_4 : f32 to vector<16x1xf32>
    %17 = arith.mulf %15, %16 : vector<16x1xf32>
    %cst_5 = arith.constant 9.99999974E-6 : f32
    %18 = vector.broadcast %cst_5 : f32 to vector<16x1xf32>
    %19 = arith.addf %17, %18 : vector<16x1xf32>
    %20 = math.rsqrt %19 : vector<16x1xf32>
    %21 = vector.broadcast %20 : vector<16x1xf32> to vector<16x128xf32>
    %22 = arith.mulf %7, %21 : vector<16x128xf32>
    %c0_6 = arith.constant 0 : index
    %c0_7 = arith.constant 0 : index
    %23 = vector.load %arg6[%c0_6, %c0_7] : memref<1x128xf32, #tpu.memory_space<vmem>>, vector<1x128xf32>
    %24 = vector.broadcast %23 : vector<1x128xf32> to vector<16x128xf32>
    %25 = arith.mulf %22, %24 : vector<16x128xf32>
    %c0_8 = arith.constant 0 : index
    %c0_9 = arith.constant 0 : index
    %26 = vector.load %arg7[%c0_8, %c0_9] : memref<1x128xf32, #tpu.memory_space<vmem>>, vector<1x128xf32>
    %27 = vector.broadcast %26 : vector<1x128xf32> to vector<16x128xf32>
    %28 = arith.addf %25, %27 : vector<16x128xf32>
    %29 = arith.truncf %28 : vector<16x128xf32> to vector<16x128xbf16>
    %c0_10 = arith.constant 0 : index
    %c0_11 = arith.constant 0 : index
    %30 = vector.load %arg2[%c0_10, %c0_11] : memref<128x128xbf16, #tpu.memory_space<vmem>>, vector<128x128xbf16>
    %cst_12 = arith.constant dense<0.000000e+00> : vector<16x128xf32>
    %31 = tpu.matmul %29, %30, %cst_12 {dimension_numbers = #tpu.dot_dimension_numbers<[1], [0], [0], [1], [0, 0, 1, 1], [], []>} : vector<16x128xbf16>, vector<128x128xbf16>, vector<16x128xf32> -> vector<16x128xf32>
    %c0_13 = arith.constant 0 : index
    %c0_14 = arith.constant 0 : index
    %32 = vector.load %arg3[%c0_13, %c0_14] : memref<1x128xf32, #tpu.memory_space<vmem>>, vector<1x128xf32>
    %33 = vector.broadcast %32 : vector<1x128xf32> to vector<16x128xf32>
    %34 = arith.addf %31, %33 : vector<16x128xf32>
    %cst_15 = arith.constant 0.000000e+00 : f32
    %35 = vector.broadcast %cst_15 : f32 to vector<16x128xf32>
    %36 = arith.maximumf %34, %35 : vector<16x128xf32>
    %37 = arith.truncf %36 : vector<16x128xf32> to vector<16x128xbf16>
    %c0_16 = arith.constant 0 : index
    %c0_17 = arith.constant 0 : index
    %38 = vector.load %arg4[%c0_16, %c0_17] : memref<128x128xbf16, #tpu.memory_space<vmem>>, vector<128x128xbf16>
    %cst_18 = arith.constant dense<0.000000e+00> : vector<16x128xf32>
    %39 = tpu.matmul %37, %38, %cst_18 {dimension_numbers = #tpu.dot_dimension_numbers<[1], [0], [0], [1], [0, 0, 1, 1], [], []>} : vector<16x128xbf16>, vector<128x128xbf16>, vector<16x128xf32> -> vector<16x128xf32>
    %c0_19 = arith.constant 0 : index
    %c0_20 = arith.constant 0 : index
    %40 = vector.load %arg5[%c0_19, %c0_20] : memref<1x128xf32, #tpu.memory_space<vmem>>, vector<1x128xf32>
    %41 = vector.broadcast %40 : vector<1x128xf32> to vector<16x128xf32>
    %42 = arith.addf %39, %41 : vector<16x128xf32>
    %c0_21 = arith.constant 0 : index
    %c0_22 = arith.constant 0 : index
    %43 = vector.load %arg8[%c0_21, %c0_22] : memref<16x128xf32, #tpu.memory_space<vmem>>, vector<16x128xf32>
    tpu.vector_store %arg8[%c0_21, %c0_22], %42 {strides = array<i32>} : memref<16x128xf32, #tpu.memory_space<vmem>>, vector<16x128xf32>,
    return
  }
  func.func @transform_0(%arg0: i32) -> (i32, i32) {
    %c0_i32 = arith.constant 0 : i32
    %c0_i32_0 = arith.constant 0 : i32
    return %arg0, %c0_i32 : i32, i32
  }
  func.func @transform_1(%arg0: i32) -> (i32, i32) {
    %c0_i32 = arith.constant 0 : i32
    %c0_i32_0 = arith.constant 0 : i32
    %c0_i32_1 = arith.constant 0 : i32
    return %c0_i32, %c0_i32_0 : i32, i32
  }
  func.func @transform_2(%arg0: i32) -> (i32, i32) {
    %c0_i32 = arith.constant 0 : i32
    %c0_i32_0 = arith.constant 0 : i32
    %c0_i32_1 = arith.constant 0 : i32
    return %c0_i32, %c0_i32_0 : i32, i32
  }
  func.func @transform_3(%arg0: i32) -> (i32, i32) {
    %c0_i32 = arith.constant 0 : i32
    %c0_i32_0 = arith.constant 0 : i32
    %c0_i32_1 = arith.constant 0 : i32
    return %c0_i32, %c0_i32_0 : i32, i32
  }
  func.func @transform_4(%arg0: i32) -> (i32, i32) {
    %c0_i32 = arith.constant 0 : i32
    %c0_i32_0 = arith.constant 0 : i32
    %c0_i32_1 = arith.constant 0 : i32
    return %c0_i32, %c0_i32_0 : i32, i32
  }
  func.func @transform_5(%arg0: i32) -> (i32, i32) {
    %c0_i32 = arith.constant 0 : i32
    %c0_i32_0 = arith.constant 0 : i32
    %c0_i32_1 = arith.constant 0 : i32
    return %c0_i32, %c0_i32_0 : i32, i32
  }
  func.func @transform_6(%arg0: i32) -> (i32, i32) {
    %c0_i32 = arith.constant 0 : i32
    %c0_i32_0 = arith.constant 0 : i32
    %c0_i32_1 = arith.constant 0 : i32
    return %c0_i32, %c0_i32_0 : i32, i32
  }
  func.func @transform_7(%arg0: i32) -> (i32, i32) {
    %c0_i32 = arith.constant 0 : i32
    %c0_i32_0 = arith.constant 0 : i32
    return %arg0, %c0_i32 : i32, i32
  }
}

</mosaic_0001>

<bundles_post_ra>
// kernel: _lambda_.27
= control target key start
LH: loop header
LB: loop body
LE: loop exit
PB: predicated region body
PF: predicated region fallthrough
CT: control target
= control target key end

     0   :  { %s1152_s0 = inlined_call_operand.vmem [shape: bf16[2,16,1536], index: 0, kind: input, shape index: {}, may-alias: {0,1,2}]   ;;  %s1153_s1 = inlined_call_operand.vmem [shape: bf16[2,16,1536], index: 1, kind: input, shape index: {}, may-alias: {0,1,2}]   ;;  %s1154_s2 = inlined_call_operand.vmem [shape: bf16[2,16,1536], index: 2, kind: input, shape index: {}, may-alias: {0,1,2}]   ;;  %s1155_s3 = inlined_call_operand.vmem [shape: bf16[2,16,512], index: 3, kind: output, shape index: {}]  }
   0x1   :  { %1158 = sst [smem:[#allocation9_spill]] %s1155_s3 }
   0x2   :  { %s953_s12 = smov 0   ;;  %s955_s13 = smov 0  }
   0x3   :  { %s957_s14 = smov 0   ;;  %s959_s15 = smov 0  }
   0x4   :  { %s961_s16 = smov 0   ;;  %s963_s17 = smov 0  }
   0x5   :  { %s965_s18 = smov 0   ;;  %s967_s19 = smov 0  }
   0x6   :  { %s969_s20 = smov 0   ;;  %s971_s21 = smov 0  }
   0x7   :  { %s973_s22 = smov 0  }
   0x8 LB: > { %s22_s24 = sadd.s32 1, %s921_s20  ;;  %s25_s25 = sadd.s32 1, %s925_s21  ;;  %s929_s22 = sphi %s973_s22, %s13_s22   ;;  %s925_s21 = sphi %s971_s21, %s1180_s21   ;;  %s921_s20 = sphi %s969_s20, %s1179_s20   ;;  %s917_s19 = sphi %s967_s19, %s1178_s19   ;;  %s913_s18 = sphi %s965_s18, %s1177_s18   ;;  %s909_s17 = sphi %s963_s17, %s1176_s17   ;;  %s905_s16 = sphi %s961_s16, %s1175_s16   ;;  %s901_s15 = sphi %s959_s15, %s1174_s15   ;;  %s897_s14 = sphi %s957_s14, %s1173_s14   ;;  %s893_s13 = sphi %s955_s13, %s1172_s13   ;;  %s889_s12 = sphi %s953_s12, %s1171_s12  }
   0x9   : > { %p23_p0 = scmp.ge.s32.totalorder %s22_s24, 4  ;;  %s34_s26 = sadd.s32 1, %s909_s17 }
   0xa   : > { %p41_p1 = scmp.ne.s32.totalorder %s909_s17, %s905_s16  ;;  %p42_p2 = scmp.eq.s32.totalorder %s929_s22, 0 }
   0xb   : > { %s1182_s24 = smov (%p23_p0, %s22_s24), 0  ;;  %s1184_s25 = smov (!%p23_p0, %s25_s25), %s925_s21 }
   0xc   : > { %1159 = sst [smem:[#allocation6_spill]] %s1182_s24  ;;  %s30_s27 = ssub.s32 %s921_s20, %s1182_s24 }
   0xd   : > { %p27_p3 = scmp.ge.s32.totalorder %s1184_s25, 2  ;;  %s57_s28 = sadd.s32 4, %s921_s20 }
   0xe   : > { %p1026_p4 = por %p42_p2, %p41_p1  ;;  %s58_s30 = sadd.s32 4, %s1182_s24 }
   0xf   : > { %s1186_s25 = smov (%p27_p3, %s1184_s25), 0  ;;  %s60_s4 = ssub.s32 %s57_s28, %s58_s30 }
  0x10   : > { %1161 = sst [smem:[#allocation7_spill]] %s1186_s25  ;;  %s64_s5 = sadd.s32 1, %s901_s15 }
  0x11   : > { %s29_s6 = ssub.s32 %s925_s21, %s1186_s25  ;;  %p71_p5 = scmp.ne.s32.totalorder %s901_s15, %s897_s14 }
  0x12   : > { %s31_s7 = sor.u32 %s30_s27, %s29_s6  ;;  %s61_s8 = sor.u32 %s60_s4, %s29_s6 }
  0x13   : > { %p32_p6 = scmp.eq.s32.totalorder %s31_s7, 0  ;;  %p62_p7 = scmp.eq.s32.totalorder %s61_s8, 0 }
  0x14   : > { %p1040_p8 = por %p71_p5, %p42_p2  ;;  %s87_s10 = sadd.s32 8, %s921_s20 }
  0x15   : > { %s1046_s11 = scalar_select %p32_p6, %s909_s17, %s34_s26  }
  0x16   : > { %s1049_s28 = scalar_select %p62_p7, %s901_s15, %s64_s5  }
  0x17   : > { %1163 = sst [smem:[#allocation8_spill]] %s1046_s11  ;;  %s88_s30 = sadd.s32 8, %s1182_s24 }
  0x18   : > { %s94_s23 = sadd.s32 1, %s893_s13  ;;  %s90_s25 = ssub.s32 %s87_s10, %s88_s30 }
  0x19   : > { %p101_p9 = scmp.ne.s32.totalorder %s893_s13, %s889_s12  ;;  %s91_s27 = sor.u32 %s90_s25, %s29_s6 }
  0x1a   : > { %s1164_s3 = sadd.s32 4294967295, %s929_s22   ;;  %p92_p11 = scmp.eq.s32.totalorder %s91_s27, 0 }
  0x1b   : > { %p133_p10 = scmp.eq.s32.totalorder %s1164_s3, 7  ;;  %p1059_p12 = por %p101_p9, %p42_p2 }
  0x1c   : > { %s1071_s26 = scalar_select %p92_p11, %s893_s13, %s94_s23  }
  0x1d   : > { %p1066_p13 = por %p133_p10, %p41_p1  ;;  %p691_p0 = scmp.ge.s32.totalorder %s929_s22, 8 }
  0x1f   : > { %155 = sbr.rel (%p691_p0) target bundleno = 62 (0x3e), region = 16 }
  0x26   : > { %158 = sbr.rel (!%p1026_p4) target bundleno = 46 (0x2e), region = 20  ;;  %s160_s3 = sand.u32 (%p1026_p4), 1, %s909_s17  }
  0x27   : > { %s741_s25 = smul.u32 (%p1026_p4), 24, %s925_s21  ;;  %s692_s5 = sshll.u32 (%p1026_p4), %s160_s3, 3 }
  0x28   : > { %s162_s23 = scalar_lea.vmem (%p1026_p4), [#allocation2], %s692_s5 }
  0x29   : > { %s164_s6 = sadd.s32 (%p1026_p4), %s921_s20, %s741_s25 }
  0x2a   : > { %s693_s8 = sshll.u32 (%p1026_p4), %s164_s6, 2 }
  0x2b   : > { %s166_s27 = scalar_lea.vmem (%p1026_p4), %s1152_s0, %s693_s8 }
  0x2c   : > { %v182_v0 = vld [vmem:[%s166_s27] sm:$0xf] (%p1026_p4)  ;;  %v184_v1 = vld [vmem:[%s166_s27 + $0x30] sm:$0xf] (%p1026_p4) }
  0x2d   : > { %183 = vst [vmem:[%s162_s23] sm:$0xf] %v182_v0  ;;  %185 = vst [vmem:[%s162_s23 + $0x4] sm:$0xf] %v184_v1 }
  0x2e PF: > { %212 = sbr.rel (!%p1040_p8) target bundleno = 54 (0x36), region = 61  ;;  %s214_s29 = sand.u32 (%p1040_p8), 1, %s901_s15  }
  0x2f   : > { %s594_s3 = smul.u32 (%p1040_p8), 24, %s925_s21  ;;  %s694_s25 = sshll.u32 (%p1040_p8), %s214_s29, 3 }
  0x30   : > { %s216_s5 = scalar_lea.vmem (%p1040_p8), [#allocation3], %s694_s25 }
  0x31   : > { %s595_s6 = sadd.s32 (%p1040_p8), %s921_s20, %s594_s3 }
  0x32   : > { %s695_s24 = sshll.u32 (%p1040_p8), %s595_s6, 2 }
  0x33   : > { %s597_s8 = scalar_lea.vmem (%p1040_p8), %s1153_s1, %s695_s24 }
  0x34   : > { %v696_v2 = vld [vmem:[%s597_s8 + $0x10] sm:$0xf] (%p1040_p8)  ;;  %v697_v3 = vld [vmem:[%s597_s8 + $0x40] sm:$0xf] (%p1040_p8) }
  0x35   : > { %238 = vst [vmem:[%s216_s5] sm:$0xf] %v696_v2  ;;  %240 = vst [vmem:[%s216_s5 + $0x4] sm:$0xf] %v697_v3 }
  0x36 PF: > { %267 = sbr.rel (!%p1059_p12) target bundleno = 62 (0x3e), region = 102  ;;  %s269_s9 = sand.u32 (%p1059_p12), 1, %s893_s13  }
  0x37   : > { %s601_s30 = smul.u32 (%p1059_p12), 24, %s925_s21  ;;  %s698_s27 = sshll.u32 (%p1059_p12), %s269_s9, 3 }
  0x38   : > { %s271_s25 = scalar_lea.vmem (%p1059_p12), [#allocation4], %s698_s27 }
  0x39   : > { %s602_s23 = sadd.s32 (%p1059_p12), %s921_s20, %s601_s30 }
  0x3a   : > { %s699_s29 = sshll.u32 (%p1059_p12), %s602_s23, 2 }
  0x3b   : > { %s604_s24 = scalar_lea.vmem (%p1059_p12), %s1154_s2, %s699_s29 }
  0x3c   : > { %v700_v4 = vld [vmem:[%s604_s24 + $0x20] sm:$0xf] (%p1059_p12)  ;;  %v701_v5 = vld [vmem:[%s604_s24 + $0x50] sm:$0xf] (%p1059_p12) }
  0x3d   : > { %293 = vst [vmem:[%s271_s25] sm:$0xf] %v700_v4  ;;  %295 = vst [vmem:[%s271_s25 + $0x4] sm:$0xf] %v701_v5 }
  0x3e PF: > { %p702_p1 = scmp.ge.s32.totalorder %s929_s22, 1  ;;  %p321_p2 = scmp.lt.s32.totalorder %s929_s22, 9 }
  0x40   : > { %p322_p3 = pnand %p702_p1, %p321_p2 }
  0x41   : > { %s335_s4 = sand.u32 (!%p322_p3), 1, %s897_s14   ;;  %s328_s6 = sand.u32 (!%p322_p3), 1, %s905_s16   ;;  %v931_v6 = vmov (!%p322_p3), 0.0   ;;  %vm932_vm0 = vmmov (!%p322_p3), 0   ;;  %vm436_vm1 = vcmask (!%p322_p3), 130048  }
  0x42   : > { %325 = sbr.rel (%p322_p3) target bundleno = 835 (0x343), region = 143  ;;  %729 = vmatprep.subr.bf16.mxu0 (!%p322_p3), %v931_v6  ;;  %s704_s10 = sshll.u32 (!%p322_p3), %s335_s4, 3  ;;  %731 = vmatprep.mubr.msk.bf16.mxu0 (!%p322_p3), %vm932_vm0, %v931_v6 }
  0x43   : > { %s1102_s8 = sshll.u32 (!%p322_p3), %s328_s6, 3  ;;  %735 = vmatprep.subr.bf16.mxu1 (!%p322_p3), %v931_v6  ;;  %737 = vmatprep.mubr.msk.bf16.mxu1 (!%p322_p3), %vm932_vm0, %v931_v6  ;;  %s337_s5 = scalar_lea.vmem (!%p322_p3), [#allocation3], %s704_s10 }
  0x44   : > { %v832_v7 = vld [vmem:[%s337_s5] sm:$0xff] (!%p322_p3)   ;;  %s330_s9 = scalar_lea.vmem (!%p322_p3), [#allocation2], %s1102_s8  ;;  %s342_s14 = sand.u32 (!%p322_p3), 1, %s889_s12  }
  0x45   : > { %730 = vmatpush3.bf16.xpose.msra.mxu0 (!%p322_p3), %v832_v7  ;;  %v833_v8 = vld [vmem:[%s330_s9] sm:$0xff] (!%p322_p3)   ;;  %s705_s16 = sshll.u32 (!%p322_p3), %s342_s14, 3  ;;  %s371_s12 = scalar_lea.vmem (!%p322_p3), [#allocation5], %s1102_s8 }
  0x46   : > { %s344_s30 = scalar_lea.vmem (!%p322_p3), [#allocation4], %s705_s16 }
  0x47   : > { %v834_v27 = vld [vmem:[%s344_s30] sm:$0xff] (!%p322_p3)  }
  0x48   : > { %736 = vmatpush3.bf16.msra.mxu1 (!%p322_p3), %v834_v27 }
  0x49   : > { %s714_s27 = sshll.u32 (%p1066_p13), %s917_s19, 3  ;;  %s1167_s24 = sld [smem:[#allocation9_spill]] (%p1066_p13) }
  0x4a   : > { %s528_s23 = sadd.s32 (%p1066_p13), %s913_s18, %s714_s27 }
  0x4b   : > { %s715_s29 = sshll.u32 (%p1066_p13), %s528_s23, 2 }
  0x4c   : > { %732 = vmatmul.mubr.bf16.vlgmr.msra.gmra.mrb[0].mxu0 %v833_v8 }
  0x4f   : > { %s530_s25 = scalar_lea.vmem (%p1066_p13), %s1167_s24, %s715_s29 }
 0x11f   : > { %v427_v9 = vpop.f32.mrb[0].mxu0 }
 0x120   : > { %v434_v10 = vmul.f32 0.35355338, %v427_v9  ;;  %v733_v11 = vpop.f32.mrb[1].mxu0 }
 0x121   : > { %v430_v12 = vpop.f32.mrb[2].mxu0 }
 0x122   : > { %v435_v13 = vmul.f32 0.35355338, %v430_v12  ;;  %v734_v14 = vpop.f32.mrb[3].mxu0  ;;  %v437_v15 = vsel %vm436_vm1, %v434_v10, -inf }
 0x123   : > { %438 = vmax.xlane.f32.xlu0 %v437_v15 }
 0x124   : > { %v440_v16 = vsel %vm436_vm1, %v435_v13, -inf }
 0x127   : > { %441 = vmax.xlane.f32.xlu0 %v440_v16 }
 0x1b0   : > { %v439_v17 = vpop.xlane.xlu0 %438 }
 0x1b1   : > { %v443_v18 = vsub.f32 %v434_v10, %v439_v17 }
 0x1b3   : > { %v445_v19 = vmul.f32 1.442695, %v443_v18 }
 0x1b4   : > { %v442_v20 = vpop.xlane.xlu0 %441 }
 0x1b5   : > { %835 = vpow2.f32 %v445_v19  ;;  %v444_v21 = vsub.f32 %v435_v13, %v442_v20 }
 0x1b7   : > { %v447_v22 = vmul.f32 1.442695, %v444_v21 }
 0x1b9   : > { %837 = vpow2.f32 %v447_v22 }
 0x1bf   : > { %v836_v23 = vpop.eup %835 }
 0x1c0   : > { %v449_v24 = vsel %vm436_vm1, %v836_v23, 0.0 }
 0x1c1   : > { %450 = vadd.xlane.f32.xlu1 %v449_v24 }
 0x1c3   : > { %v838_v25 = vpop.eup %837 }
 0x1c4   : > { %v452_v26 = vsel %vm436_vm1, %v838_v25, 0.0 }
 0x1c5   : > { %453 = vadd.xlane.f32.xlu1 %v452_v26 }
 0x24e   : > { %v451_v28 = vpop.xlane.xlu1 %450 }
 0x24f   : > { %839 = vrcp.f32 %v451_v28 }
 0x252   : > { %v454_v29 = vpop.xlane.xlu1 %453 }
 0x253   : > { %841 = vrcp.f32 %v454_v29 }
 0x259   : > { %v840_v30 = vpop.eup %839 }
 0x25a   : > { %v456_v32 = vmul.f32 %v840_v30, %v836_v23 }
 0x25d   : > { %v842_v31 = vpop.eup %841 }
 0x25e   : > { %v458_v33 = vmul.f32 %v842_v31, %v838_v25 }
 0x260   : > { %v459_v34 = vpack.c.bf16 %v458_v33, %v456_v32 }
 0x262   : > { %738 = vmatmul.mubr.msk.bf16.vlgmr.msra.gmra.mrb[0].mxu1 %vm436_vm1, %v459_v34 }
 0x334   : > { %526 = sbr.rel (!%p1066_p13) target bundleno = 835 (0x343), region = 159 }
 0x335   : > { %v503_v35 = vpop.f32.mrb[0].mxu1 }
 0x336   : > { %v739_v36 = vpop.f32.mrb[1].mxu1 }
 0x337   : > { %v506_v37 = vpop.f32.mrb[2].mxu1 }
 0x338   : > { %v723_v38 = vpack.c.bf16 %v506_v37, %v503_v35  ;;  %v740_v39 = vpop.f32.mrb[3].mxu1 }
 0x33a   : > { %724 = vst [vmem:[%s371_s12] sm:$0xff] %v723_v38  }
 0x341   : > { %v546_v40 = vld [vmem:[%s371_s12] sm:$0xf]  ;;  %v548_v41 = vld [vmem:[%s371_s12 + $0x4] sm:$0xf] }
 0x342   : > { %547 = vst [vmem:[%s530_s25] sm:$0xf] %v546_v40  ;;  %549 = vst [vmem:[%s530_s25 + $0x10] sm:$0xf] %v548_v41 }
 0x343 PF: > { %s13_s22 = sadd.s32 1, %s929_s22   ;;  %s1168_s18 = sld [smem:[#allocation8_spill]] }
 0x344   : > { %p10_p4 = scmp.ge.s32.totalorder %s13_s22, 10   ;;  %s1169_s7 = sld [smem:[#allocation6_spill]] }
 0x345   : > { %s1170_s4 = sld [smem:[#allocation7_spill]]  ;;  %s1171_s12 = smov %s893_s13 }
 0x346   : > { %s1172_s13 = smov %s1071_s26  ;;  %s1173_s14 = smov %s901_s15 }
 0x347   : > { %s1174_s15 = smov %s1049_s28  ;;  %s1175_s16 = smov %s909_s17 }
 0x348   : > { %s1178_s19 = smov %s925_s21  ;;  %12 = sbr.rel (!%p10_p4) target bundleno = 8 (0x8), region = 247 }
 0x349   : > { %s1176_s17 = smov %s1168_s18  ;;  %s1177_s18 = smov %s921_s20 }
 0x34a   : > { %s1179_s20 = smov %s1169_s7 }
 0x34b   : > { %s1180_s21 = smov %s1170_s4 }

// kernel: _lambda_.25
= control target key start
LH: loop header
LB: loop body
LE: loop exit
PB: predicated region body
PF: predicated region fallthrough
CT: control target
= control target key end

     0   :  { %s370_s1 = inlined_call_operand.vmem [shape: bf16[128,128], index: 1, kind: input, shape index: {}]   ;;  %s371_s0 = inlined_call_operand.vmem [shape: bf16[32,128], index: 0, kind: input, shape index: {}]   ;;  %s372_s2 = inlined_call_operand.vmem [shape: f32[1,128], index: 2, kind: input, shape index: {}]   ;;  %s373_s3 = inlined_call_operand.vmem [shape: bf16[32,128], index: 3, kind: input, shape index: {}]   ;;  %s374_s4 = inlined_call_operand.vmem [shape: bf16[32,128], index: 4, kind: output, shape index: {}]  }
   0x1   :  { %v290_v0 = vld [vmem:[%s370_s1] sm:$0xff]   ;;  %v291_v1 = vld [vmem:[%s370_s1 + $0x8] sm:$0xff]   ;;  %v292_v2 = vld [vmem:[%s370_s1 + $0x10] sm:$0xff]  }
   0x2   :  { %270 = vmatprep.subr.bf16.mxu0 %v290_v0  ;;  %v293_v3 = vld [vmem:[%s370_s1 + $0x18] sm:$0xff]   ;;  %v298_v4 = vld [vmem:[%s371_s0] sm:$0xff]   ;;  %v295_v6 = vld [vmem:[%s370_s1 + $0x28] sm:$0xff]  }
   0x3   :  { %271 = vmatpush3.bf16.msra.mxu0 %v290_v0  ;;  %286 = vmatprep.mubr.bf16.mxu0 %v298_v4  ;;  %v294_v5 = vld [vmem:[%s370_s1 + $0x20] sm:$0xff]   ;;  %v296_v7 = vld [vmem:[%s370_s1 + $0x30] sm:$0xff]   ;;  %v297_v8 = vld [vmem:[%s370_s1 + $0x38] sm:$0xff]  }
   0x4   :  { %272 = vmatprep.subr.bf16.mxu0 %v291_v1  ;;  %v299_v9 = vld [vmem:[%s371_s0 + $0x8] sm:$0xff]   ;;  %v231_v10 = vld [vmem:[%s372_s2] ss:$0 sm:$0xff] }
   0x5   :  { %v258_v11 = vld [vmem:[%s373_s3 + $0x8] sm:$0xff]   ;;  %v241_v12 = vld [vmem:[%s373_s3] sm:$0xff]  }
   0x6   :  { %v246_v15 = vunpack.c.l.bf16 %v258_v11  ;;  %v247_v17 = vunpack.c.h.bf16 %v258_v11  ;;  %v242_v19 = vunpack.c.l.bf16 %v241_v12  ;;  %v243_v21 = vunpack.c.h.bf16 %v241_v12 }
   0x7   :  { %273 = vmatpush3.bf16.msra.mxu0 %v291_v1 }
   0x8   :  { %274 = vmatprep.subr.bf16.mxu0 %v292_v2 }
   0xb   :  { %275 = vmatpush3.bf16.msra.mxu0 %v292_v2 }
   0xc   :  { %276 = vmatprep.subr.bf16.mxu0 %v293_v3 }
   0xf   :  { %277 = vmatpush3.bf16.msra.mxu0 %v293_v3 }
  0x10   :  { %278 = vmatprep.subr.bf16.mxu0 %v294_v5 }
  0x13   :  { %279 = vmatpush3.bf16.msra.mxu0 %v294_v5 }
  0x14   :  { %280 = vmatprep.subr.bf16.mxu0 %v295_v6 }
  0x17   :  { %281 = vmatpush3.bf16.msra.mxu0 %v295_v6 }
  0x18   :  { %282 = vmatprep.subr.bf16.mxu0 %v296_v7 }
  0x1b   :  { %283 = vmatpush3.bf16.msra.mxu0 %v296_v7 }
  0x1c   :  { %284 = vmatprep.subr.bf16.mxu0 %v297_v8 }
  0x1f   :  { %285 = vmatpush3.bf16.msra.mxu0 %v297_v8 }
  0x22   :  { %287 = vmatmul.mubr.bf16.vlgmr.msra.gmra.mrb[0].mxu0 %v299_v9 }
  0xf5   :  { %v288_v13 = vpop.f32.mrb[0].mxu0 }
  0xf6   :  { %v183_v14 = vadd.f32 %v288_v13, %v231_v10  ;;  %v144_v16 = vpop.f32.mrb[1].mxu0 }
  0xf7   :  { %v181_v18 = vadd.f32 %v231_v10, %v144_v16  ;;  %v289_v20 = vpop.f32.mrb[2].mxu0 }
  0xf8   :  { %v184_v22 = vadd.f32 %v289_v20, %v231_v10  ;;  %v147_v23 = vpop.f32.mrb[3].mxu0  ;;  %v195_v25 = vadd.f32 %v246_v15, %v183_v14 }
  0xf9   :  { %v182_v24 = vadd.f32 %v231_v10, %v147_v23  ;;  %v193_v27 = vadd.f32 %v242_v19, %v181_v18 }
  0xfa   :  { %v196_v26 = vadd.f32 %v247_v17, %v184_v22 }
  0xfb   :  { %v194_v28 = vadd.f32 %v243_v21, %v182_v24 }
  0xfc   :  { %v256_v29 = vpack.c.bf16 %v196_v26, %v195_v25 }
  0xfd   :  { %v251_v30 = vpack.c.bf16 %v194_v28, %v193_v27 }
  0xfe   :  { %259 = vst [vmem:[%s374_s4 + $0x8] sm:$0xff] %v256_v29  }
  0xff   :  { %252 = vst [vmem:[%s374_s4] sm:$0xff] %v251_v30  }

// kernel: _lambda_.28
= control target key start
LH: loop header
LB: loop body
LE: loop exit
PB: predicated region body
PF: predicated region fallthrough
CT: control target
= control target key end

     0   :  { %s823_s1 = inlined_call_operand.vmem [shape: bf16[512,128], index: 1, kind: input, shape index: {}]   ;;  %s824_s0 = inlined_call_operand.vmem [shape: bf16[32,512], index: 0, kind: input, shape index: {}]   ;;  %s825_s2 = inlined_call_operand.vmem [shape: f32[1,128], index: 2, kind: input, shape index: {}]   ;;  %s826_s3 = inlined_call_operand.vmem [shape: bf16[32,128], index: 3, kind: input, shape index: {}]   ;;  %s827_s4 = inlined_call_operand.vmem [shape: bf16[32,128], index: 4, kind: output, shape index: {}]  }
   0x1   :  { %v619_v0 = vld [vmem:[%s823_s1 + $0x40] sm:$0xff]   ;;  %v623_v4 = vld [vmem:[%s823_s1 + $0x48] sm:$0xff]   ;;  %v627_v8 = vld [vmem:[%s823_s1 + $0x50] sm:$0xff]  }
   0x2   :  { %v620_v1 = vld [vmem:[%s823_s1 + $0xc0] sm:$0xff]   ;;  %563 = vmatprep.subr.bf16.mxu0 %v619_v0  ;;  %v624_v5 = vld [vmem:[%s823_s1 + $0xc8] sm:$0xff]   ;;  %v628_v9 = vld [vmem:[%s823_s1 + $0xd0] sm:$0xff]  }
   0x3   :  { %v621_v2 = vld [vmem:[%s823_s1] sm:$0xff]   ;;  %591 = vmatprep.subr.bf16.mxu1 %v620_v1  ;;  %v625_v6 = vld [vmem:[%s823_s1 + $0x8] sm:$0xff]   ;;  %v629_v10 = vld [vmem:[%s823_s1 + $0x10] sm:$0xff]  }
   0x4   :  { %v622_v3 = vld [vmem:[%s823_s1 + $0x80] sm:$0xff]   ;;  %564 = vmatpush3.bf16.msra.mxu0 %v621_v2  ;;  %v626_v7 = vld [vmem:[%s823_s1 + $0x88] sm:$0xff]   ;;  %v630_v11 = vld [vmem:[%s823_s1 + $0x90] sm:$0xff]  }
   0x5   :  { %592 = vmatpush3.bf16.msra.mxu1 %v622_v3  ;;  %565 = vmatprep.subr.bf16.mxu0 %v623_v4  ;;  %v631_v12 = vld [vmem:[%s823_s1 + $0x58] sm:$0xff]   ;;  %v635_v16 = vld [vmem:[%s823_s1 + $0x60] sm:$0xff]   ;;  %v639_v20 = vld [vmem:[%s823_s1 + $0x68] sm:$0xff]  }
   0x6   :  { %593 = vmatprep.subr.bf16.mxu1 %v624_v5  ;;  %v632_v13 = vld [vmem:[%s823_s1 + $0xd8] sm:$0xff]   ;;  %v636_v17 = vld [vmem:[%s823_s1 + $0xe0] sm:$0xff]   ;;  %v640_v21 = vld [vmem:[%s823_s1 + $0xe8] sm:$0xff]  }
   0x7   :  { %v633_v14 = vld [vmem:[%s823_s1 + $0x18] sm:$0xff]   ;;  %v637_v18 = vld [vmem:[%s823_s1 + $0x20] sm:$0xff]   ;;  %v641_v22 = vld [vmem:[%s823_s1 + $0x28] sm:$0xff]  }
   0x8   :  { %566 = vmatpush3.bf16.msra.mxu0 %v625_v6  ;;  %v634_v15 = vld [vmem:[%s823_s1 + $0x98] sm:$0xff]   ;;  %v638_v19 = vld [vmem:[%s823_s1 + $0xa0] sm:$0xff]   ;;  %v642_v23 = vld [vmem:[%s823_s1 + $0xa8] sm:$0xff]  }
   0x9   :  { %594 = vmatpush3.bf16.msra.mxu1 %v626_v7  ;;  %567 = vmatprep.subr.bf16.mxu0 %v627_v8  ;;  %v643_v24 = vld [vmem:[%s823_s1 + $0x70] sm:$0xff]   ;;  %v647_v28 = vld [vmem:[%s823_s1 + $0x78] sm:$0xff]   ;;  %v534_v49 = vld [vmem:[%s825_s2] ss:$0 sm:$0xff] }
   0xa   :  { %595 = vmatprep.subr.bf16.mxu1 %v628_v9  ;;  %v644_v25 = vld [vmem:[%s823_s1 + $0xf0] sm:$0xff]   ;;  %v648_v29 = vld [vmem:[%s823_s1 + $0xf8] sm:$0xff]   ;;  %v544_v50 = vld [vmem:[%s826_s3] sm:$0xff]  }
   0xb   :  { %v645_v26 = vld [vmem:[%s823_s1 + $0x30] sm:$0xff]   ;;  %v649_v30 = vld [vmem:[%s823_s1 + $0x38] sm:$0xff]   ;;  %v545_v56 = vunpack.c.l.bf16 %v544_v50  ;;  %v546_v58 = vunpack.c.h.bf16 %v544_v50  ;;  %v561_v7 = vld [vmem:[%s826_s3 + $0x8] sm:$0xff]  }
   0xc   :  { %568 = vmatpush3.bf16.msra.mxu0 %v629_v10  ;;  %v646_v27 = vld [vmem:[%s823_s1 + $0xb0] sm:$0xff]   ;;  %v650_v31 = vld [vmem:[%s823_s1 + $0xb8] sm:$0xff]  }
   0xd   :  { %596 = vmatpush3.bf16.msra.mxu1 %v630_v11  ;;  %569 = vmatprep.subr.bf16.mxu0 %v631_v12  ;;  %v651_v32 = vld [vmem:[%s824_s0] ss:$16 sps:$4 sm:$0xff]   ;;  %v653_v33 = vld [vmem:[%s824_s0 + $0x4] ss:$16 sps:$4 sm:$0xff]   ;;  %v654_v34 = vld [vmem:[%s824_s0 + $0x8] ss:$16 sps:$4 sm:$0xff]  }
   0xe   :  { %597 = vmatprep.subr.bf16.mxu1 %v632_v13  ;;  %v656_v35 = vld [vmem:[%s824_s0 + $0xc] ss:$16 sps:$4 sm:$0xff]   ;;  %366 = vmatprep.mubr.bf16.mxu0 %v653_v33  ;;  %v657_v36 = vld [vmem:[%s824_s0 + $0x24] ss:$16 sps:$4 sm:$0xff]   ;;  %v661_v38 = vld [vmem:[%s824_s0 + $0x20] ss:$16 sps:$4 sm:$0xff]  }
   0xf   :  { %415 = vmatprep.mubr.bf16.mxu1 %v656_v35  ;;  %v659_v37 = vld [vmem:[%s824_s0 + $0x2c] ss:$16 sps:$4 sm:$0xff]   ;;  %v662_v39 = vld [vmem:[%s824_s0 + $0x28] ss:$16 sps:$4 sm:$0xff]  }
  0x10   :  { %570 = vmatpush3.bf16.msra.mxu0 %v633_v14  ;;  %v549_v14 = vunpack.c.l.bf16 %v561_v7 }
  0x11   :  { %598 = vmatpush3.bf16.msra.mxu1 %v634_v15  ;;  %571 = vmatprep.subr.bf16.mxu0 %v635_v16  ;;  %v550_v16 = vunpack.c.h.bf16 %v561_v7 }
  0x12   :  { %599 = vmatprep.subr.bf16.mxu1 %v636_v17 }
  0x14   :  { %572 = vmatpush3.bf16.msra.mxu0 %v637_v18 }
  0x15   :  { %600 = vmatpush3.bf16.msra.mxu1 %v638_v19  ;;  %573 = vmatprep.subr.bf16.mxu0 %v639_v20 }
  0x16   :  { %601 = vmatprep.subr.bf16.mxu1 %v640_v21 }
  0x18   :  { %574 = vmatpush3.bf16.msra.mxu0 %v641_v22 }
  0x19   :  { %602 = vmatpush3.bf16.msra.mxu1 %v642_v23  ;;  %575 = vmatprep.subr.bf16.mxu0 %v643_v24 }
  0x1a   :  { %603 = vmatprep.subr.bf16.mxu1 %v644_v25 }
  0x1c   :  { %576 = vmatpush3.bf16.msra.mxu0 %v645_v26 }
  0x1d   :  { %604 = vmatpush3.bf16.msra.mxu1 %v646_v27  ;;  %577 = vmatprep.subr.bf16.mxu0 %v647_v28 }
  0x1e   :  { %605 = vmatprep.subr.bf16.mxu1 %v648_v29 }
  0x20   :  { %578 = vmatpush3.bf16.msra.mxu0 %v649_v30 }
  0x21   :  { %606 = vmatpush3.bf16.msra.mxu1 %v650_v31 }
  0x23   :  { %367 = vmatmul.mubr.bf16.vlgmr.msra.gmra.mrb[0].mxu0 %v651_v32 }
  0x24   :  { %416 = vmatmul.mubr.bf16.vlgmr.msra.gmra.mrb[0].mxu1 %v654_v34  ;;  %374 = vmatprep.mubr.bf16.mxu0 %v657_v36 }
  0x25   :  { %423 = vmatprep.mubr.bf16.mxu1 %v659_v37 }
  0x2b   :  { %375 = vmatmul.mubr.bf16.gmra.mrb[4].mxu0 %v661_v38 }
  0x2c   :  { %424 = vmatmul.mubr.bf16.gmra.mrb[4].mxu1 %v662_v39 }
  0xf6   :  { %v579_v40 = vpop.f32.mrb[0].mxu0 }
  0xf7   :  { %v607_v41 = vpop.f32.mrb[0].mxu1  ;;  %v580_v42 = vpop.f32.mrb[1].mxu0 }
  0xf8   :  { %v581_v43 = vadd.f32 %v580_v42, %v579_v40  ;;  %v608_v44 = vpop.f32.mrb[1].mxu1  ;;  %v582_v45 = vpop.f32.mrb[2].mxu0 }
  0xf9   :  { %v609_v46 = vadd.f32 %v608_v44, %v607_v41  ;;  %v610_v47 = vpop.f32.mrb[2].mxu1  ;;  %v583_v48 = vpop.f32.mrb[3].mxu0 }
  0xfa   :  { %v584_v51 = vadd.f32 %v583_v48, %v582_v45  ;;  %v611_v52 = vpop.f32.mrb[3].mxu1 }
  0xfb   :  { %v418_v53 = vadd.f32 %v609_v46, %v581_v43  ;;  %v612_v54 = vadd.f32 %v611_v52, %v610_v47 }
  0xfd   :  { %v454_v55 = vadd.f32 %v534_v49, %v418_v53  ;;  %v421_v57 = vadd.f32 %v612_v54, %v584_v51 }
  0xfe   :  { %v585_v59 = vpop.f32.mrb[4].mxu0 }
  0xff   :  { %v455_v60 = vadd.f32 %v534_v49, %v421_v57  ;;  %v613_v61 = vpop.f32.mrb[4].mxu1  ;;  %v586_v62 = vpop.f32.mrb[5].mxu0  ;;  %v466_v2 = vadd.f32 %v545_v56, %v454_v55 }
 0x100   :  { %v587_v63 = vadd.f32 %v586_v62, %v585_v59  ;;  %v614_v0 = vpop.f32.mrb[5].mxu1  ;;  %v588_v1 = vpop.f32.mrb[6].mxu0 }
 0x101   :  { %v467_v3 = vadd.f32 %v546_v58, %v455_v60  ;;  %v615_v4 = vadd.f32 %v614_v0, %v613_v61  ;;  %v616_v5 = vpop.f32.mrb[6].mxu1  ;;  %v589_v6 = vpop.f32.mrb[7].mxu0 }
 0x102   :  { %v590_v8 = vadd.f32 %v589_v6, %v588_v1  ;;  %v617_v9 = vpop.f32.mrb[7].mxu1 }
 0x103   :  { %v554_v10 = vpack.c.bf16 %v467_v3, %v466_v2  ;;  %v426_v11 = vadd.f32 %v615_v4, %v587_v63  ;;  %v618_v12 = vadd.f32 %v617_v9, %v616_v5 }
 0x105   :  { %555 = vst [vmem:[%s827_s4] sm:$0xff] %v554_v10   ;;  %v456_v13 = vadd.f32 %v534_v49, %v426_v11  ;;  %v429_v15 = vadd.f32 %v618_v12, %v590_v8 }
 0x107   :  { %v457_v17 = vadd.f32 %v534_v49, %v429_v15  ;;  %v468_v18 = vadd.f32 %v549_v14, %v456_v13 }
 0x109   :  { %v469_v19 = vadd.f32 %v550_v16, %v457_v17 }
 0x10b   :  { %v559_v20 = vpack.c.bf16 %v469_v19, %v468_v18 }
 0x10d   :  { %562 = vst [vmem:[%s827_s4 + $0x8] sm:$0xff] %v559_v20  }

// kernel: _lambda_.26
= control target key start
LH: loop header
LB: loop body
LE: loop exit
PB: predicated region body
PF: predicated region fallthrough
CT: control target
= control target key end

     0   :  { %s1352_s18 = smov 0   ;;  %s1354_s19 = smov 0   ;;  %s1597_s0 = inlined_call_operand.vmem [shape: bf16[32,128], index: 0, kind: input, shape index: {}]   ;;  %s1598_s1 = inlined_call_operand.vmem [shape: bf16[128,1536], index: 1, kind: input, shape index: {}]   ;;  %s1599_s2 = inlined_call_operand.vmem [shape: f32[1,1536], index: 2, kind: input, shape index: {}]   ;;  %s1600_s3 = inlined_call_operand.vmem [shape: f32[1,128], index: 3, kind: input, shape index: {}]   ;;  %s1601_s4 = inlined_call_operand.vmem [shape: f32[1,128], index: 4, kind: input, shape index: {}]   ;;  %s1602_s5 = inlined_call_operand.vmem [shape: bf16[32,1536], index: 5, kind: output, shape index: {}]  }
   0x1   :  { %s1356_s20 = smov 0   ;;  %s1358_s21 = smov 0  }
   0x2   :  { %s1360_s22 = smov 0  }
   0x3 LB: > { %s30_s23 = sadd.s32 1, %s1314_s21  ;;  %s1103_s24 = sadd.s32 4294967295, %s1318_s22   ;;  %s1318_s22 = sphi %s1360_s22, %s15_s22   ;;  %s1314_s21 = sphi %s1358_s21, %s1607_s21   ;;  %s1310_s20 = sphi %s1356_s20, %s1606_s20   ;;  %s1306_s19 = sphi %s1354_s19, %s1605_s19   ;;  %s1302_s18 = sphi %s1352_s18, %s1604_s18  }
   0x4   : > { %p32_p0 = scmp.ge.s32.totalorder %s30_s23, 3  ;;  %p78_p1 = scmp.ne.s32.totalorder %s1306_s19, %s1302_s18 }
   0x5   : > { %p79_p2 = scmp.eq.s32.totalorder %s1318_s22, 0  ;;  %p178_p4 = scmp.eq.s32.totalorder %s1103_s24, 2 }
   0x6   : > { %s1609_s23 = smov (%p32_p0, %s30_s23), 0  ;;  %s71_s26 = sadd.s32 1, %s1306_s19 }
   0x7   : > { %p80_p3 = por %p79_p2, %p78_p1  ;;  %s67_s25 = ssub.s32 %s1314_s21, %s1609_s23 }
   0x8   : > { %p69_p5 = scmp.eq.s32.totalorder %s67_s25, 0  ;;  %p1387_p6 = por %p178_p4, %p78_p1 }
   0x9   : > { %p1107_p7 = scmp.ge.s32.totalorder %s1318_s22, 3 }
   0xa   : > { %s1392_s28 = scalar_select %p69_p5, %s1306_s19, %s71_s26  }
   0xb   : > { %218 = sbr.rel (%p1107_p7) target bundleno = 38 (0x26), region = 28 }
  0x12   : > { %221 = sbr.rel (!%p80_p3) target bundleno = 38 (0x26), region = 32  ;;  %s223_s29 = sand.u32 (%p80_p3), 1, %s1306_s19  }
  0x13   : > { %s1163_s30 = sshll.u32 (%p80_p3), %s1314_s21, 4  ;;  %s1108_s6 = sshll.u32 (%p80_p3), %s223_s29, 8 }
  0x14   : > { %s1400_s9 = scalar_lea.vmem (%p80_p3), %s1598_s1, %s1163_s30  ;;  %s1405_s10 = scalar_lea.vmem (%p80_p3), [#allocation4], %s1108_s6 }
  0x15   : > { %v244_v0 = vld [vmem:[%s1400_s9] sm:$0xff] (%p80_p3)  ;;  %v246_v1 = vld [vmem:[%s1400_s9 + $0x8] sm:$0xff] (%p80_p3)  ;;  %v248_v2 = vld [vmem:[%s1400_s9 + $0x30] sm:$0xff] (%p80_p3) }
  0x16   : > { %245 = vst [vmem:[%s1405_s10] sm:$0xff] (%p80_p3), %v244_v0  ;;  %247 = vst [vmem:[%s1405_s10 + $0x8] sm:$0xff] (%p80_p3), %v246_v1  ;;  %v250_v3 = vld [vmem:[%s1400_s9 + $0x38] sm:$0xff] (%p80_p3)  ;;  %v252_v4 = vld [vmem:[%s1400_s9 + $0x60] sm:$0xff] (%p80_p3) }
  0x17   : > { %249 = vst [vmem:[%s1405_s10 + $0x10] sm:$0xff] (%p80_p3), %v248_v2  ;;  %v254_v5 = vld [vmem:[%s1400_s9 + $0x68] sm:$0xff] (%p80_p3)  ;;  %251 = vst [vmem:[%s1405_s10 + $0x18] sm:$0xff] (%p80_p3), %v250_v3  ;;  %v256_v6 = vld [vmem:[%s1400_s9 + $0x90] sm:$0xff] (%p80_p3) }
  0x18   : > { %253 = vst [vmem:[%s1405_s10 + $0x20] sm:$0xff] (%p80_p3), %v252_v4  ;;  %255 = vst [vmem:[%s1405_s10 + $0x28] sm:$0xff] (%p80_p3), %v254_v5  ;;  %v258_v7 = vld [vmem:[%s1400_s9 + $0x98] sm:$0xff] (%p80_p3)  ;;  %v260_v8 = vld [vmem:[%s1400_s9 + $0xc0] sm:$0xff] (%p80_p3) }
  0x19   : > { %257 = vst [vmem:[%s1405_s10 + $0x30] sm:$0xff] %v256_v6  ;;  %259 = vst [vmem:[%s1405_s10 + $0x38] sm:$0xff] %v258_v7  ;;  %v262_v9 = vld [vmem:[%s1400_s9 + $0xc8] sm:$0xff]  ;;  %v264_v10 = vld [vmem:[%s1400_s9 + $0xf0] sm:$0xff] }
  0x1a   : > { %261 = vst [vmem:[%s1405_s10 + $0x40] sm:$0xff] %v260_v8  ;;  %v266_v11 = vld [vmem:[%s1400_s9 + $0xf8] sm:$0xff]  ;;  %263 = vst [vmem:[%s1405_s10 + $0x48] sm:$0xff] %v262_v9  ;;  %v268_v12 = vld [vmem:[%s1400_s9 + $0x120] sm:$0xff] }
  0x1b   : > { %265 = vst [vmem:[%s1405_s10 + $0x50] sm:$0xff] %v264_v10  ;;  %267 = vst [vmem:[%s1405_s10 + $0x58] sm:$0xff] %v266_v11  ;;  %v270_v13 = vld [vmem:[%s1400_s9 + $0x128] sm:$0xff]  ;;  %v272_v14 = vld [vmem:[%s1400_s9 + $0x150] sm:$0xff] }
  0x1c   : > { %269 = vst [vmem:[%s1405_s10 + $0x60] sm:$0xff] %v268_v12  ;;  %271 = vst [vmem:[%s1405_s10 + $0x68] sm:$0xff] %v270_v13  ;;  %v274_v15 = vld [vmem:[%s1400_s9 + $0x158] sm:$0xff]  ;;  %v276_v16 = vld [vmem:[%s1400_s9 + $0x180] sm:$0xff] }
  0x1d   : > { %273 = vst [vmem:[%s1405_s10 + $0x70] sm:$0xff] %v272_v14  ;;  %v278_v17 = vld [vmem:[%s1400_s9 + $0x188] sm:$0xff]  ;;  %275 = vst [vmem:[%s1405_s10 + $0x78] sm:$0xff] %v274_v15  ;;  %v280_v18 = vld [vmem:[%s1400_s9 + $0x1b0] sm:$0xff] }
  0x1e   : > { %277 = vst [vmem:[%s1405_s10 + $0x80] sm:$0xff] %v276_v16  ;;  %279 = vst [vmem:[%s1405_s10 + $0x88] sm:$0xff] %v278_v17  ;;  %v282_v19 = vld [vmem:[%s1400_s9 + $0x1b8] sm:$0xff]  ;;  %v284_v20 = vld [vmem:[%s1400_s9 + $0x1e0] sm:$0xff] }
  0x1f   : > { %281 = vst [vmem:[%s1405_s10 + $0x90] sm:$0xff] %v280_v18  ;;  %283 = vst [vmem:[%s1405_s10 + $0x98] sm:$0xff] %v282_v19  ;;  %v286_v21 = vld [vmem:[%s1400_s9 + $0x1e8] sm:$0xff]  ;;  %v288_v22 = vld [vmem:[%s1400_s9 + $0x210] sm:$0xff] }
  0x20   : > { %285 = vst [vmem:[%s1405_s10 + $0xa0] sm:$0xff] %v284_v20  ;;  %v290_v23 = vld [vmem:[%s1400_s9 + $0x218] sm:$0xff]  ;;  %287 = vst [vmem:[%s1405_s10 + $0xa8] sm:$0xff] %v286_v21  ;;  %v292_v24 = vld [vmem:[%s1400_s9 + $0x240] sm:$0xff] }
  0x21   : > { %289 = vst [vmem:[%s1405_s10 + $0xb0] sm:$0xff] %v288_v22  ;;  %291 = vst [vmem:[%s1405_s10 + $0xb8] sm:$0xff] %v290_v23  ;;  %v294_v25 = vld [vmem:[%s1400_s9 + $0x248] sm:$0xff]  ;;  %v296_v26 = vld [vmem:[%s1400_s9 + $0x270] sm:$0xff] }
  0x22   : > { %293 = vst [vmem:[%s1405_s10 + $0xc0] sm:$0xff] %v292_v24  ;;  %295 = vst [vmem:[%s1405_s10 + $0xc8] sm:$0xff] %v294_v25  ;;  %v298_v27 = vld [vmem:[%s1400_s9 + $0x278] sm:$0xff]  ;;  %v300_v28 = vld [vmem:[%s1400_s9 + $0x2a0] sm:$0xff] }
  0x23   : > { %297 = vst [vmem:[%s1405_s10 + $0xd0] sm:$0xff] %v296_v26  ;;  %v302_v29 = vld [vmem:[%s1400_s9 + $0x2a8] sm:$0xff]  ;;  %299 = vst [vmem:[%s1405_s10 + $0xd8] sm:$0xff] %v298_v27  ;;  %v304_v30 = vld [vmem:[%s1400_s9 + $0x2d0] sm:$0xff] }
  0x24   : > { %301 = vst [vmem:[%s1405_s10 + $0xe0] sm:$0xff] %v300_v28  ;;  %303 = vst [vmem:[%s1405_s10 + $0xe8] sm:$0xff] %v302_v29  ;;  %v306_v31 = vld [vmem:[%s1400_s9 + $0x2d8] sm:$0xff] }
  0x25   : > { %305 = vst [vmem:[%s1405_s10 + $0xf0] sm:$0xff] %v304_v30  ;;  %307 = vst [vmem:[%s1405_s10 + $0xf8] sm:$0xff] %v306_v31 }
  0x26 PF: > { %p1111_p8 = scmp.ge.s32.totalorder %s1318_s22, 1  ;;  %p320_p9 = scmp.lt.s32.totalorder %s1318_s22, 4 }
  0x28   : > { %p321_p10 = pnand %p1111_p8, %p320_p9 }
  0x29   : > { %s327_s11 = sand.u32 (!%p321_p10), 1, %s1302_s18   ;;  %s1114_s12 = sshll.u32 (!%p321_p10), %s1310_s20, 2  ;;  %v1320_v32 = vmov (!%p321_p10), 0.0  }
  0x2a   : > { %324 = sbr.rel (%p321_p10) target bundleno = 647 (0x287), region = 59  ;;  %s1112_s13 = sshll.u32 (!%p321_p10), %s327_s11, 8  ;;  %388 = vst [vmem:[#allocation2] sm:$0xff] (!%p321_p10), %v1320_v32  ;;  %389 = vst [vmem:[#allocation2 + $0x8] sm:$0xff] (!%p321_p10), %v1320_v32 }
  0x2b   : > { %s1113_s14 = sshll.u32 (!%p321_p10), %s327_s11, 6  ;;  %390 = vst [vmem:[#allocation2 + $0x10] sm:$0xff] (!%p321_p10), %v1320_v32  ;;  %391 = vst [vmem:[#allocation2 + $0x18] sm:$0xff] (!%p321_p10), %v1320_v32  ;;  %p377_p11 = scmp.lt.s32.totalorder (!%p321_p10), %s1114_s12, 11 }
  0x2c   : > { %392 = vst [vmem:[#allocation2 + $0x20] sm:$0xff] (!%p321_p10), %v1320_v32  ;;  %393 = vst [vmem:[#allocation2 + $0x28] sm:$0xff] (!%p321_p10), %v1320_v32  ;;  %s1478_s18 = scalar_lea.vmem (!%p321_p10), [#allocation4], %s1112_s13  ;;  %s1480_s24 = scalar_lea.vmem (!%p321_p10), [#allocation5], %s1113_s14 }
  0x2d   : > { %394 = vst [vmem:[#allocation2 + $0x30] sm:$0xff] (!%p321_p10), %v1320_v32  ;;  %395 = vst [vmem:[#allocation2 + $0x38] sm:$0xff] (!%p321_p10), %v1320_v32  ;;  %p1115_p12 = scmp.ne.s32.totalorder (!%p321_p10), %s1310_s20, 0 }
  0x2e   : > { %396 = vst [vmem:[#allocation2 + $0x40] sm:$0xff] (!%p321_p10), %v1320_v32  ;;  %397 = vst [vmem:[#allocation2 + $0x48] sm:$0xff] (!%p321_p10), %v1320_v32 }
  0x2f   : > { %398 = vst [vmem:[#allocation2 + $0x50] sm:$0xff] (!%p321_p10), %v1320_v32  ;;  %399 = vst [vmem:[#allocation2 + $0x58] sm:$0xff] (!%p321_p10), %v1320_v32 }
  0x30   : > { %400 = vst [vmem:[#allocation2 + $0x60] sm:$0xff] (!%p321_p10), %v1320_v32  ;;  %401 = vst [vmem:[#allocation2 + $0x68] sm:$0xff] (!%p321_p10), %v1320_v32 }
  0x31   : > { %402 = vst [vmem:[#allocation2 + $0x70] sm:$0xff] %v1320_v32  ;;  %403 = vst [vmem:[#allocation2 + $0x78] sm:$0xff] %v1320_v32  ;;  %s1611_s12 = smov (!%p377_p11, %s1114_s12), 11  ;;  %407 = sbr.rel (%p1115_p12) target bundleno = 374 (0x176), region = 71 }
  0x32   : > { %s379_s17 = scalar_lea.vmem %s1599_s2, %s1611_s12  ;;  %v1174_v33 = vld [vmem:[%s1597_s0] sm:$0xff] (!%p1115_p12)   ;;  %v1181_v34 = vld [vmem:[%s1597_s0 + $0x8] sm:$0xff] (!%p1115_p12)   ;;  %v432_v39 = vlaneseq (!%p1115_p12) }
  0x33   : > { %v1175_v35 = vunpack.c.l.bf16 (!%p1115_p12), %v1174_v33  ;;  %v1179_v36 = vunpack.c.l.bf16 (!%p1115_p12), %v1181_v34  ;;  %v1176_v37 = vunpack.c.h.bf16 (!%p1115_p12), %v1174_v33  ;;  %v1180_v38 = vunpack.c.h.bf16 (!%p1115_p12), %v1181_v34  ;;  %v1116_v10 = vld [vmem:[%s1600_s3] ss:$0 sm:$0xff] (!%p1115_p12) }
  0x34   : > { %v433_v42 = vand.u32 (!%p1115_p12), 127, %v432_v39  ;;  %v1117_v12 = vld [vmem:[%s1601_s4] ss:$0 sm:$0xff] (!%p1115_p12) }
  0x35   : > { %416 = vadd.xlane.f32.xlu0 (!%p1115_p12), %v1175_v35  ;;  %420 = vadd.xlane.f32.xlu1 (!%p1115_p12), %v1179_v36 }
  0x36   : > { %vm434_vm0 = vcmp.lt.s32.totalorder (!%p1115_p12), %v433_v42, 32 }
  0x39   : > { %418 = vadd.xlane.f32.xlu0 %v1176_v37  ;;  %422 = vadd.xlane.f32.xlu1 %v1180_v38 }
  0xc2   : > { %v417_v40 = vpop.xlane.xlu0 %416  ;;  %v421_v41 = vpop.xlane.xlu1 %420 }
  0xc3   : > { %v424_v43 = vmul.f32 0.03125, %v417_v40  ;;  %v426_v44 = vmul.f32 0.03125, %v421_v41 }
  0xc5   : > { %v428_v45 = vsub.f32 %v1175_v35, %v424_v43  ;;  %v430_v46 = vsub.f32 %v1179_v36, %v426_v44 }
  0xc6   : > { %v419_v47 = vpop.xlane.xlu0 %418  ;;  %v423_v48 = vpop.xlane.xlu1 %422 }
  0xc7   : > { %v425_v49 = vmul.f32 0.03125, %v419_v47  ;;  %v427_v50 = vmul.f32 0.03125, %v423_v48  ;;  %v435_v51 = vmul.f32 %v428_v45, %v428_v45  ;;  %v437_v52 = vmul.f32 %v430_v46, %v430_v46 }
  0xc9   : > { %v429_v53 = vsub.f32 %v1176_v37, %v425_v49  ;;  %v431_v54 = vsub.f32 %v1180_v38, %v427_v50  ;;  %v439_v55 = vsel %vm434_vm0, %v435_v51, 0.0  ;;  %v441_v56 = vsel %vm434_vm0, %v437_v52, 0.0 }
  0xca   : > { %443 = vadd.xlane.f32.xlu0 %v439_v55 }
  0xcb   : > { %v436_v57 = vmul.f32 %v429_v53, %v429_v53  ;;  %v438_v58 = vmul.f32 %v431_v54, %v431_v54 }
  0xcd   : > { %v440_v59 = vsel %vm434_vm0, %v436_v57, 0.0  ;;  %v442_v60 = vsel %vm434_vm0, %v438_v58, 0.0 }
  0xce   : > { %447 = vadd.xlane.f32.xlu0 %v441_v56  ;;  %445 = vadd.xlane.f32.xlu1 %v440_v59 }
  0xd2   : > { %449 = vadd.xlane.f32.xlu1 %v442_v60 }
 0x157   : > { %v444_v61 = vpop.xlane.xlu0 %443 }
 0x158   : > { %v451_v62 = vmul.f32 0.03125, %v444_v61 }
 0x15a   : > { %v455_v63 = vadd.f32 1e-05, %v451_v62 }
 0x15b   : > { %v446_v0 = vpop.xlane.xlu1 %445  ;;  %v448_v1 = vpop.xlane.xlu0 %447 }
 0x15c   : > { %1224 = vrsqrt.f32 %v455_v63  ;;  %v452_v2 = vmul.f32 0.03125, %v446_v0  ;;  %v453_v3 = vmul.f32 0.03125, %v448_v1 }
 0x15e   : > { %v456_v4 = vadd.f32 1e-05, %v452_v2  ;;  %v457_v5 = vadd.f32 1e-05, %v453_v3 }
 0x15f   : > { %v450_v6 = vpop.xlane.xlu1 %449 }
 0x160   : > { %1226 = vrsqrt.f32 %v456_v4  ;;  %v454_v7 = vmul.f32 0.03125, %v450_v6 }
 0x161   : > { %1228 = vrsqrt.f32 %v457_v5 }
 0x162   : > { %v458_v8 = vadd.f32 1e-05, %v454_v7 }
 0x164   : > { %1230 = vrsqrt.f32 %v458_v8 }
 0x166   : > { %v1225_v9 = vpop.eup %1224 }
 0x167   : > { %v463_v11 = vmul.f32 %v1225_v9, %v428_v45 }
 0x169   : > { %v474_v13 = vmul.f32 %v1116_v10, %v463_v11 }
 0x16a   : > { %v1227_v14 = vpop.eup %1226 }
 0x16b   : > { %v1229_v15 = vpop.eup %1228  ;;  %v485_v16 = vadd.f32 %v1117_v12, %v474_v13  ;;  %v464_v17 = vmul.f32 %v1227_v14, %v429_v53 }
 0x16c   : > { %v465_v18 = vmul.f32 %v1229_v15, %v430_v46 }
 0x16d   : > { %489 = vst [vmem:[#allocation3] sm:$0xff] %v485_v16  ;;  %v475_v19 = vmul.f32 %v1116_v10, %v464_v17 }
 0x16e   : > { %v1231_v20 = vpop.eup %1230  ;;  %v476_v21 = vmul.f32 %v1116_v10, %v465_v18 }
 0x16f   : > { %v486_v22 = vadd.f32 %v1117_v12, %v475_v19  ;;  %v466_v23 = vmul.f32 %v1231_v20, %v431_v54 }
 0x170   : > { %v487_v24 = vadd.f32 %v1117_v12, %v476_v21 }
 0x171   : > { %490 = vst [vmem:[#allocation3 + $0x8] sm:$0xff] %v486_v22  ;;  %v477_v25 = vmul.f32 %v1116_v10, %v466_v23 }
 0x172   : > { %491 = vst [vmem:[#allocation3 + $0x10] sm:$0xff] %v487_v24 }
 0x173   : > { %v488_v26 = vadd.f32 %v1117_v12, %v477_v25 }
 0x175   : > { %492 = vst [vmem:[#allocation3 + $0x18] sm:$0xff] %v488_v26 }
 0x176 PF: > { %v1232_v27 = vld [vmem:[%s1478_s18 + $0x4] ss:$16 sps:$4 sm:$0xff]   ;;  %v1234_v28 = vld [vmem:[%s1478_s18 + $0xc] ss:$16 sps:$4 sm:$0xff]   ;;  %v1321_v29 = vmov 0   ;;  %v866_v2 = vlaneseq  ;;  %s1172_s12 = sshll.u32 (%p1387_p6), %s1310_s20, 4 }
 0x177   : > { %739 = vmatprep.mubr.bf16.mxu0 %v1321_v29  ;;  %792 = vmatprep.mubr.bf16.mxu1 %v1321_v29  ;;  %v1236_v30 = vld [vmem:[%s1478_s18] ss:$16 sps:$4 sm:$0xff]   ;;  %v1237_v31 = vld [vmem:[%s1478_s18 + $0x8] ss:$16 sps:$4 sm:$0xff]   ;;  %v1238_v32 = vld [vmem:[%s1478_s18 + $0x24] ss:$16 sps:$4 sm:$0xff]   ;;  %s970_s15 = scalar_lea.vmem (%p1387_p6), %s1602_s5, %s1172_s12 }
 0x178   : > { %707 = vmatprep.subr.bf16.mxu0 %v1232_v27  ;;  %760 = vmatprep.subr.bf16.mxu1 %v1234_v28  ;;  %v1240_v33 = vld [vmem:[%s1478_s18 + $0x2c] ss:$16 sps:$4 sm:$0xff]   ;;  %v1242_v34 = vld [vmem:[%s1478_s18 + $0x20] ss:$16 sps:$4 sm:$0xff]   ;;  %v1243_v35 = vld [vmem:[%s1478_s18 + $0x28] ss:$16 sps:$4 sm:$0xff]  }
 0x179   : > { %708 = vmatpush1.bf16.msra.mxu0 %v1236_v30  ;;  %761 = vmatpush1.bf16.msra.mxu1 %v1237_v31  ;;  %v1244_v36 = vld [vmem:[%s1478_s18 + $0x44] ss:$16 sps:$4 sm:$0xff]   ;;  %v1246_v37 = vld [vmem:[%s1478_s18 + $0x4c] ss:$16 sps:$4 sm:$0xff]   ;;  %v1248_v38 = vld [vmem:[%s1478_s18 + $0x40] ss:$16 sps:$4 sm:$0xff]  }
 0x17a   : > { %709 = vmatprep.subr.bf16.mxu0 %v1238_v32  ;;  %762 = vmatprep.subr.bf16.mxu1 %v1240_v33  ;;  %v1249_v39 = vld [vmem:[%s1478_s18 + $0x48] ss:$16 sps:$4 sm:$0xff]   ;;  %v1250_v40 = vld [vmem:[%s1478_s18 + $0x64] ss:$16 sps:$4 sm:$0xff]   ;;  %v1252_v41 = vld [vmem:[%s1478_s18 + $0x6c] ss:$16 sps:$4 sm:$0xff]  }
 0x17b   : > { %v1254_v42 = vld [vmem:[%s1478_s18 + $0x60] ss:$16 sps:$4 sm:$0xff]   ;;  %v1255_v43 = vld [vmem:[%s1478_s18 + $0x68] ss:$16 sps:$4 sm:$0xff]   ;;  %v1256_v44 = vld [vmem:[%s1478_s18 + $0x84] ss:$16 sps:$4 sm:$0xff]  }
 0x17c   : > { %v1258_v45 = vld [vmem:[%s1478_s18 + $0x8c] ss:$16 sps:$4 sm:$0xff]   ;;  %v1260_v46 = vld [vmem:[%s1478_s18 + $0x80] ss:$16 sps:$4 sm:$0xff]   ;;  %v1261_v47 = vld [vmem:[%s1478_s18 + $0x88] ss:$16 sps:$4 sm:$0xff]  }
 0x17d   : > { %710 = vmatpush1.bf16.msra.mxu0 %v1242_v34  ;;  %763 = vmatpush1.bf16.msra.mxu1 %v1243_v35  ;;  %v1262_v48 = vld [vmem:[%s1478_s18 + $0xa4] ss:$16 sps:$4 sm:$0xff]   ;;  %v1264_v49 = vld [vmem:[%s1478_s18 + $0xac] ss:$16 sps:$4 sm:$0xff]   ;;  %v1266_v50 = vld [vmem:[%s1478_s18 + $0xa0] ss:$16 sps:$4 sm:$0xff]  }
 0x17e   : > { %711 = vmatprep.subr.bf16.mxu0 %v1244_v36  ;;  %764 = vmatprep.subr.bf16.mxu1 %v1246_v37  ;;  %v1267_v51 = vld [vmem:[%s1478_s18 + $0xa8] ss:$16 sps:$4 sm:$0xff]   ;;  %v1268_v52 = vld [vmem:[%s1478_s18 + $0xc4] ss:$16 sps:$4 sm:$0xff]   ;;  %v1270_v53 = vld [vmem:[%s1478_s18 + $0xcc] ss:$16 sps:$4 sm:$0xff]  }
 0x17f   : > { %v1272_v54 = vld [vmem:[%s1478_s18 + $0xc0] ss:$16 sps:$4 sm:$0xff]   ;;  %v1273_v55 = vld [vmem:[%s1478_s18 + $0xc8] ss:$16 sps:$4 sm:$0xff]   ;;  %v1274_v56 = vld [vmem:[%s1478_s18 + $0xe4] ss:$16 sps:$4 sm:$0xff]  }
 0x180   : > { %v1276_v57 = vld [vmem:[%s1478_s18 + $0xec] ss:$16 sps:$4 sm:$0xff]   ;;  %v1278_v58 = vld [vmem:[%s1478_s18 + $0xe0] ss:$16 sps:$4 sm:$0xff]   ;;  %v1279_v59 = vld [vmem:[%s1478_s18 + $0xe8] ss:$16 sps:$4 sm:$0xff]  }
 0x181   : > { %712 = vmatpush1.bf16.msra.mxu0 %v1248_v38  ;;  %765 = vmatpush1.bf16.msra.mxu1 %v1249_v39  ;;  %v493_v60 = vld [vmem:[#allocation3] sm:$0xff]  ;;  %v494_v61 = vld [vmem:[#allocation3 + $0x8] sm:$0xff]  ;;  %v495_v63 = vld [vmem:[#allocation3 + $0x10] sm:$0xff]  ;;  %v867_v3 = vshrl.u32 %v866_v2, 7 }
 0x182   : > { %713 = vmatprep.subr.bf16.mxu0 %v1250_v40  ;;  %766 = vmatprep.subr.bf16.mxu1 %v1252_v41  ;;  %v497_v62 = vpack.c.bf16 %v494_v61, %v493_v60  ;;  %v496_v0 = vld [vmem:[#allocation3 + $0x18] sm:$0xff]  ;;  %v864_v6 = vld [vmem:[%s379_s17] sm:$0xf]  ;;  %v501_v10 = vld [vmem:[#allocation2 + $0x10] sm:$0xff] }
 0x183   : > { %v498_v1 = vpack.c.bf16 %v496_v0, %v495_v63  ;;  %v868_v4 = vsub.s32 0, %v867_v3  ;;  %v876_v5 = vsub.s32 2, %v867_v3  ;;  %v872_v7 = vsub.s32 1, %v867_v3  ;;  %v499_v9 = vld [vmem:[#allocation2] sm:$0xff]  ;;  %v500_v13 = vld [vmem:[#allocation2 + $0x8] sm:$0xff]  ;;  %v502_v14 = vld [vmem:[#allocation2 + $0x18] sm:$0xff] }
 0x184   : > { %v880_v8 = vsub.s32 3, %v867_v3  ;;  %v503_v19 = vld [vmem:[#allocation2 + $0x20] sm:$0xff]  ;;  %v505_v20 = vld [vmem:[#allocation2 + $0x30] sm:$0xff]  ;;  %v504_v25 = vld [vmem:[#allocation2 + $0x28] sm:$0xff] }
 0x185   : > { %714 = vmatpush1.bf16.msra.mxu0 %v1254_v42  ;;  %767 = vmatpush1.bf16.msra.mxu1 %v1255_v43  ;;  %v1536_v11 = vrot.slane %v864_v6, %v868_v4  ;;  %v1538_v12 = vrot.slane %v864_v6, %v876_v5  ;;  %v1540_v17 = vrot.slane %v864_v6, %v872_v7  ;;  %v506_v26 = vld [vmem:[#allocation2 + $0x38] sm:$0xff]  ;;  %v512_v61 = vld [vmem:[#allocation2 + $0x68] sm:$0xff] }
 0x186   : > { %715 = vmatprep.subr.bf16.mxu0 %v1256_v44  ;;  %768 = vmatprep.subr.bf16.mxu1 %v1258_v45  ;;  %v1542_v18 = vrot.slane %v864_v6, %v880_v8 }
 0x189   : > { %716 = vmatpush1.bf16.msra.mxu0 %v1260_v46  ;;  %769 = vmatpush1.bf16.msra.mxu1 %v1261_v47  ;;  %v507_v47 = vld [vmem:[#allocation2 + $0x40] sm:$0xff] }
 0x18a   : > { %717 = vmatprep.subr.bf16.mxu0 %v1262_v48  ;;  %770 = vmatprep.subr.bf16.mxu1 %v1264_v49  ;;  %v509_v48 = vld [vmem:[#allocation2 + $0x50] sm:$0xff]  ;;  %v508_v49 = vld [vmem:[#allocation2 + $0x48] sm:$0xff] }
 0x18d   : > { %718 = vmatpush1.bf16.msra.mxu0 %v1266_v50  ;;  %771 = vmatpush1.bf16.msra.mxu1 %v1267_v51  ;;  %v510_v50 = vld [vmem:[#allocation2 + $0x58] sm:$0xff] }
 0x18e   : > { %719 = vmatprep.subr.bf16.mxu0 %v1268_v52  ;;  %772 = vmatprep.subr.bf16.mxu1 %v1270_v53 }
 0x191   : > { %720 = vmatpush1.bf16.msra.mxu0 %v1272_v54  ;;  %773 = vmatpush1.bf16.msra.mxu1 %v1273_v55  ;;  %v511_v55 = vld [vmem:[#allocation2 + $0x60] sm:$0xff] }
 0x192   : > { %721 = vmatprep.subr.bf16.mxu0 %v1274_v56  ;;  %774 = vmatprep.subr.bf16.mxu1 %v1276_v57  ;;  %v513_v56 = vld [vmem:[#allocation2 + $0x70] sm:$0xff] }
 0x195   : > { %722 = vmatpush1.bf16.msra.mxu0 %v1278_v58  ;;  %775 = vmatpush1.bf16.msra.mxu1 %v1279_v59 }
 0x198   : > { %740 = vmatmul.mubr.bf16.vlgmr.msra.gmra.mrb[0].mxu0 %v497_v62  ;;  %793 = vmatmul.mubr.bf16.vlgmr.msra.gmra.mrb[0].mxu1 %v497_v62  ;;  %v514_v62 = vld [vmem:[#allocation2 + $0x78] sm:$0xff] }
 0x199   : > { %749 = vmatprep.mubr.bf16.mxu0 %v1321_v29  ;;  %802 = vmatprep.mubr.bf16.mxu1 %v1321_v29 }
 0x1a0   : > { %750 = vmatmul.mubr.bf16.gmra.mrb[4].mxu0 %v498_v1  ;;  %803 = vmatmul.mubr.bf16.gmra.mrb[4].mxu1 %v498_v1 }
 0x26b   : > { %v741_v15 = vpop.f32.mrb[0].mxu0  ;;  %v794_v16 = vpop.f32.mrb[0].mxu1 }
 0x26c   : > { %v813_v21 = vadd.f32 %v741_v15, %v499_v9  ;;  %v815_v22 = vadd.f32 %v794_v16, %v501_v10  ;;  %v743_v23 = vpop.f32.mrb[1].mxu0  ;;  %v796_v24 = vpop.f32.mrb[1].mxu1 }
 0x26d   : > { %v814_v27 = vadd.f32 %v743_v23, %v500_v13  ;;  %v816_v28 = vadd.f32 %v796_v24, %v502_v14  ;;  %v745_v29 = vpop.f32.mrb[2].mxu0  ;;  %v798_v30 = vpop.f32.mrb[2].mxu1 }
 0x26e   : > { %829 = vst [vmem:[#allocation2] sm:$0xff] %v813_v21  ;;  %v886_v31 = vadd.f32 %v1536_v11, %v813_v21  ;;  %831 = vst [vmem:[#allocation2 + $0x10] sm:$0xff] %v815_v22  ;;  %v888_v32 = vadd.f32 %v1538_v12, %v815_v22  ;;  %v817_v33 = vadd.f32 %v745_v29, %v503_v19  ;;  %v747_v35 = vpop.f32.mrb[3].mxu0  ;;  %v800_v36 = vpop.f32.mrb[3].mxu1 }
 0x26f   : > { %v819_v34 = vadd.f32 %v798_v30, %v505_v20  ;;  %830 = vst [vmem:[#allocation2 + $0x8] sm:$0xff] %v814_v27  ;;  %v887_v37 = vadd.f32 %v1540_v17, %v814_v27  ;;  %832 = vst [vmem:[#allocation2 + $0x18] sm:$0xff] %v816_v28  ;;  %v889_v38 = vadd.f32 %v1542_v18, %v816_v28 }
 0x270   : > { %v818_v39 = vadd.f32 %v747_v35, %v504_v25  ;;  %v820_v40 = vadd.f32 %v800_v36, %v506_v26  ;;  %833 = vst [vmem:[#allocation2 + $0x20] sm:$0xff] %v817_v33  ;;  %v890_v41 = vadd.f32 %v1536_v11, %v817_v33 }
 0x271   : > { %835 = vst [vmem:[#allocation2 + $0x30] sm:$0xff] %v819_v34  ;;  %v892_v42 = vadd.f32 %v1538_v12, %v819_v34  ;;  %v1164_v43 = vpack.c.bf16 %v887_v37, %v886_v31  ;;  %v1165_v44 = vpack.c.bf16 %v889_v38, %v888_v32 }
 0x272   : > { %834 = vst [vmem:[#allocation2 + $0x28] sm:$0xff] %v818_v39  ;;  %v891_v45 = vadd.f32 %v1540_v17, %v818_v39  ;;  %836 = vst [vmem:[#allocation2 + $0x38] sm:$0xff] %v820_v40  ;;  %v893_v46 = vadd.f32 %v1542_v18, %v820_v40 }
 0x273   : > { %950 = vst [vmem:[%s1480_s24] sm:$0xff] %v1164_v43  ;;  %951 = vst [vmem:[%s1480_s24 + $0x8] sm:$0xff] %v1165_v44  ;;  %v751_v53 = vpop.f32.mrb[4].mxu0  ;;  %v804_v54 = vpop.f32.mrb[4].mxu1 }
 0x274   : > { %v1166_v51 = vpack.c.bf16 %v891_v45, %v890_v41  ;;  %v1167_v52 = vpack.c.bf16 %v893_v46, %v892_v42  ;;  %v821_v57 = vadd.f32 %v751_v53, %v507_v47  ;;  %v823_v58 = vadd.f32 %v804_v54, %v509_v48  ;;  %v753_v59 = vpop.f32.mrb[5].mxu0  ;;  %v806_v60 = vpop.f32.mrb[5].mxu1 }
 0x275   : > { %v822_v63 = vadd.f32 %v753_v59, %v508_v49  ;;  %v824_v0 = vadd.f32 %v806_v60, %v510_v50  ;;  %v755_v1 = vpop.f32.mrb[6].mxu0  ;;  %v808_v2 = vpop.f32.mrb[6].mxu1 }
 0x276   : > { %952 = vst [vmem:[%s1480_s24 + $0x10] sm:$0xff] %v1166_v51  ;;  %953 = vst [vmem:[%s1480_s24 + $0x18] sm:$0xff] %v1167_v52  ;;  %v894_v3 = vadd.f32 %v1536_v11, %v821_v57  ;;  %v896_v4 = vadd.f32 %v1538_v12, %v823_v58  ;;  %v825_v5 = vadd.f32 %v755_v1, %v511_v55  ;;  %v757_v7 = vpop.f32.mrb[7].mxu0  ;;  %v810_v8 = vpop.f32.mrb[7].mxu1 }
 0x277   : > { %837 = vst [vmem:[#allocation2 + $0x40] sm:$0xff] %v821_v57  ;;  %839 = vst [vmem:[#allocation2 + $0x50] sm:$0xff] %v823_v58  ;;  %v827_v6 = vadd.f32 %v808_v2, %v513_v56  ;;  %v895_v9 = vadd.f32 %v1540_v17, %v822_v63  ;;  %v897_v10 = vadd.f32 %v1542_v18, %v824_v0 }
 0x278   : > { %838 = vst [vmem:[#allocation2 + $0x48] sm:$0xff] %v822_v63  ;;  %840 = vst [vmem:[#allocation2 + $0x58] sm:$0xff] %v824_v0  ;;  %v826_v13 = vadd.f32 %v757_v7, %v512_v61  ;;  %v828_v14 = vadd.f32 %v810_v8, %v514_v62  ;;  %v898_v15 = vadd.f32 %v1536_v11, %v825_v5  ;;  %964 = sbr.rel (!%p1387_p6) target bundleno = 647 (0x287), region = 79 }
 0x279   : > { %841 = vst [vmem:[#allocation2 + $0x60] sm:$0xff] %v825_v5  ;;  %843 = vst [vmem:[#allocation2 + $0x70] sm:$0xff] %v827_v6  ;;  %v900_v16 = vadd.f32 %v1538_v12, %v827_v6  ;;  %v1168_v19 = vpack.c.bf16 %v895_v9, %v894_v3  ;;  %v1169_v20 = vpack.c.bf16 %v897_v10, %v896_v4 }
 0x27a   : > { %842 = vst [vmem:[#allocation2 + $0x68] sm:$0xff] %v826_v13  ;;  %v899_v21 = vadd.f32 %v1540_v17, %v826_v13  ;;  %844 = vst [vmem:[#allocation2 + $0x78] sm:$0xff] %v828_v14  ;;  %v901_v22 = vadd.f32 %v1542_v18, %v828_v14  ;;  %v983_v11 = vld [vmem:[%s1480_s24] sm:$0xff] (%p1387_p6)  ;;  %v985_v12 = vld [vmem:[%s1480_s24 + $0x8] sm:$0xff] (%p1387_p6) }
 0x27b   : > { %954 = vst [vmem:[%s1480_s24 + $0x20] sm:$0xff] %v1168_v19  ;;  %955 = vst [vmem:[%s1480_s24 + $0x28] sm:$0xff] %v1169_v20 }
 0x27c   : > { %v1170_v23 = vpack.c.bf16 %v899_v21, %v898_v15  ;;  %v1171_v24 = vpack.c.bf16 %v901_v22, %v900_v16  ;;  %984 = vst [vmem:[%s970_s15] sm:$0xff] (%p1387_p6), %v983_v11  ;;  %986 = vst [vmem:[%s970_s15 + $0x8] sm:$0xff] (%p1387_p6), %v985_v12 }
 0x27d   : > { %v987_v17 = vld [vmem:[%s1480_s24 + $0x10] sm:$0xff] (%p1387_p6)  ;;  %v989_v18 = vld [vmem:[%s1480_s24 + $0x18] sm:$0xff] (%p1387_p6) }
 0x27e   : > { %956 = vst [vmem:[%s1480_s24 + $0x30] sm:$0xff] %v1170_v23  ;;  %957 = vst [vmem:[%s1480_s24 + $0x38] sm:$0xff] %v1171_v24 }
 0x27f   : > { %988 = vst [vmem:[%s970_s15 + $0x30] sm:$0xff] %v987_v17  ;;  %990 = vst [vmem:[%s970_s15 + $0x38] sm:$0xff] %v989_v18 }
 0x282   : > { %v991_v25 = vld [vmem:[%s1480_s24 + $0x20] sm:$0xff]  ;;  %v993_v26 = vld [vmem:[%s1480_s24 + $0x28] sm:$0xff] }
 0x283   : > { %992 = vst [vmem:[%s970_s15 + $0x60] sm:$0xff] %v991_v25  ;;  %994 = vst [vmem:[%s970_s15 + $0x68] sm:$0xff] %v993_v26 }
 0x285   : > { %v995_v27 = vld [vmem:[%s1480_s24 + $0x30] sm:$0xff]  ;;  %v997_v28 = vld [vmem:[%s1480_s24 + $0x38] sm:$0xff] }
 0x286   : > { %996 = vst [vmem:[%s970_s15 + $0x90] sm:$0xff] %v995_v27  ;;  %998 = vst [vmem:[%s970_s15 + $0x98] sm:$0xff] %v997_v28 }
 0x287 PF: > { %s15_s22 = sadd.s32 1, %s1318_s22   ;;  %s1604_s18 = smov %s1306_s19 }
 0x288   : > { %p12_p13 = scmp.ge.s32.totalorder %s15_s22, 5   ;;  %s1605_s19 = smov %s1392_s28 }
 0x289   : > { %s1606_s20 = smov %s1314_s21  ;;  %s1607_s21 = smov %s1609_s23 }
 0x28a   :  { %14 = sbr.rel (!%p12_p13) target bundleno = 3 (0x3), region = 139 }

// kernel: _lambda_.29
= control target key start
LH: loop header
LB: loop body
LE: loop exit
PB: predicated region body
PF: predicated region fallthrough
CT: control target
= control target key end

     0   :  { %v51_v7 = vlaneseq  ;;  %s668_s0 = inlined_call_operand.vmem [shape: bf16[32,128], index: 0, kind: input, shape index: {}]   ;;  %s669_s1 = inlined_call_operand.vmem [shape: bf16[128,128], index: 1, kind: input, shape index: {}]   ;;  %s670_s3 = inlined_call_operand.vmem [shape: bf16[128,128], index: 3, kind: input, shape index: {}]   ;;  %s671_s5 = inlined_call_operand.vmem [shape: f32[1,128], index: 5, kind: input, shape index: {}]   ;;  %s672_s6 = inlined_call_operand.vmem [shape: f32[1,128], index: 6, kind: input, shape index: {}]   ;;  %s673_s2 = inlined_call_operand.vmem [shape: f32[1,128], index: 2, kind: input, shape index: {}]   ;;  %s674_s4 = inlined_call_operand.vmem [shape: f32[1,128], index: 4, kind: input, shape index: {}]   ;;  %s675_s7 = inlined_call_operand.vmem [shape: bf16[32,128], index: 7, kind: output, shape index: {}]  }
   0x1   :  { %v413_v0 = vld [vmem:[%s668_s0] sm:$0xff]   ;;  %v430_v1 = vld [vmem:[%s668_s0 + $0x8] sm:$0xff]   ;;  %v494_v30 = vld [vmem:[%s669_s1 + $0x10] sm:$0xff]  }
   0x2   :  { %v562_v2 = vunpack.c.l.bf16 %v413_v0  ;;  %v564_v3 = vunpack.c.l.bf16 %v430_v1  ;;  %v568_v4 = vunpack.c.h.bf16 %v413_v0  ;;  %v570_v5 = vunpack.c.h.bf16 %v430_v1  ;;  %v492_v6 = vld [vmem:[%s669_s1] sm:$0xff]   ;;  %v493_v29 = vld [vmem:[%s669_s1 + $0x8] sm:$0xff]   ;;  %v495_v31 = vld [vmem:[%s669_s1 + $0x18] sm:$0xff]  }
   0x3   :  { %452 = vmatprep.subr.bf16.mxu0 %v492_v6  ;;  %v52_v10 = vand.u32 127, %v51_v7  ;;  %v496_v32 = vld [vmem:[%s669_s1 + $0x20] sm:$0xff]   ;;  %v497_v33 = vld [vmem:[%s669_s1 + $0x28] sm:$0xff]   ;;  %v498_v34 = vld [vmem:[%s669_s1 + $0x30] sm:$0xff]  }
   0x4   :  { %35 = vadd.xlane.f32.xlu0 %v562_v2  ;;  %39 = vadd.xlane.f32.xlu1 %v564_v3  ;;  %v499_v35 = vld [vmem:[%s669_s1 + $0x38] sm:$0xff]   ;;  %v500_v36 = vld [vmem:[%s670_s3] sm:$0xff]   ;;  %v501_v37 = vld [vmem:[%s670_s3 + $0x8] sm:$0xff]  }
   0x5   :  { %453 = vmatpush3.bf16.msra.mxu0 %v492_v6  ;;  %vm53_vm0 = vcmp.lt.s32.totalorder %v52_v10, 32  ;;  %472 = vmatprep.subr.bf16.mxu1 %v500_v36  ;;  %v502_v38 = vld [vmem:[%s670_s3 + $0x10] sm:$0xff]   ;;  %v503_v39 = vld [vmem:[%s670_s3 + $0x18] sm:$0xff]   ;;  %v504_v40 = vld [vmem:[%s670_s3 + $0x20] sm:$0xff]  }
   0x6   :  { %454 = vmatprep.subr.bf16.mxu0 %v493_v29  ;;  %473 = vmatpush3.bf16.msra.mxu1 %v500_v36  ;;  %v505_v41 = vld [vmem:[%s670_s3 + $0x28] sm:$0xff]   ;;  %v384_v56 = vld [vmem:[%s671_s5] ss:$0 sm:$0xff] }
   0x7   :  { %474 = vmatprep.subr.bf16.mxu1 %v501_v37  ;;  %v385_v61 = vld [vmem:[%s672_s6] ss:$0 sm:$0xff] }
   0x8   :  { %37 = vadd.xlane.f32.xlu0 %v568_v4  ;;  %41 = vadd.xlane.f32.xlu1 %v570_v5 }
   0x9   :  { %455 = vmatpush3.bf16.msra.mxu0 %v493_v29 }
   0xa   :  { %456 = vmatprep.subr.bf16.mxu0 %v494_v30  ;;  %475 = vmatpush3.bf16.msra.mxu1 %v501_v37 }
   0xb   :  { %476 = vmatprep.subr.bf16.mxu1 %v502_v38 }
   0xd   :  { %457 = vmatpush3.bf16.msra.mxu0 %v494_v30 }
   0xe   :  { %458 = vmatprep.subr.bf16.mxu0 %v495_v31  ;;  %477 = vmatpush3.bf16.msra.mxu1 %v502_v38 }
   0xf   :  { %478 = vmatprep.subr.bf16.mxu1 %v503_v39 }
  0x11   :  { %459 = vmatpush3.bf16.msra.mxu0 %v495_v31  ;;  %v395_v31 = vld [vmem:[%s674_s4] ss:$0 sm:$0xff] }
  0x12   :  { %460 = vmatprep.subr.bf16.mxu0 %v496_v32  ;;  %479 = vmatpush3.bf16.msra.mxu1 %v503_v39 }
  0x13   :  { %480 = vmatprep.subr.bf16.mxu1 %v504_v40 }
  0x15   :  { %461 = vmatpush3.bf16.msra.mxu0 %v496_v32 }
  0x16   :  { %462 = vmatprep.subr.bf16.mxu0 %v497_v33  ;;  %481 = vmatpush3.bf16.msra.mxu1 %v504_v40 }
  0x17   :  { %482 = vmatprep.subr.bf16.mxu1 %v505_v41 }
  0x19   :  { %463 = vmatpush3.bf16.msra.mxu0 %v497_v33 }
  0x1a   :  { %464 = vmatprep.subr.bf16.mxu0 %v498_v34  ;;  %483 = vmatpush3.bf16.msra.mxu1 %v505_v41 }
  0x1d   :  { %465 = vmatpush3.bf16.msra.mxu0 %v498_v34 }
  0x1e   :  { %466 = vmatprep.subr.bf16.mxu0 %v499_v35 }
  0x21   :  { %467 = vmatpush3.bf16.msra.mxu0 %v499_v35 }
  0x91   :  { %v36_v8 = vpop.xlane.xlu0 %35  ;;  %v40_v9 = vpop.xlane.xlu1 %39 }
  0x92   :  { %v43_v11 = vmul.f32 0.03125, %v36_v8  ;;  %v45_v12 = vmul.f32 0.03125, %v40_v9 }
  0x94   :  { %v578_v13 = vsub.f32 %v562_v2, %v43_v11  ;;  %v581_v14 = vsub.f32 %v564_v3, %v45_v12 }
  0x95   :  { %v38_v15 = vpop.xlane.xlu0 %37  ;;  %v42_v16 = vpop.xlane.xlu1 %41 }
  0x96   :  { %v44_v17 = vmul.f32 0.03125, %v38_v15  ;;  %v46_v18 = vmul.f32 0.03125, %v42_v16  ;;  %v54_v19 = vmul.f32 %v578_v13, %v578_v13  ;;  %v56_v20 = vmul.f32 %v581_v14, %v581_v14  ;;  %v506_v15 = vld [vmem:[%s670_s3 + $0x30] sm:$0xff]   ;;  %v386_v16 = vld [vmem:[%s673_s2] ss:$0 sm:$0xff] }
  0x97   :  { %484 = vmatprep.subr.bf16.mxu1 %v506_v15 }
  0x98   :  { %v588_v21 = vsub.f32 %v568_v4, %v44_v17  ;;  %v591_v22 = vsub.f32 %v570_v5, %v46_v18  ;;  %v58_v23 = vsel %vm53_vm0, %v54_v19, 0.0  ;;  %v60_v24 = vsel %vm53_vm0, %v56_v20, 0.0  ;;  %485 = vmatpush3.bf16.msra.mxu1 %v506_v15 }
  0x99   :  { %62 = vadd.xlane.f32.xlu0 %v58_v23 }
  0x9a   :  { %v55_v25 = vmul.f32 %v588_v21, %v588_v21  ;;  %v57_v26 = vmul.f32 %v591_v22, %v591_v22 }
  0x9c   :  { %v59_v27 = vsel %vm53_vm0, %v55_v25, 0.0  ;;  %v61_v28 = vsel %vm53_vm0, %v57_v26, 0.0 }
  0x9d   :  { %66 = vadd.xlane.f32.xlu0 %v60_v24  ;;  %64 = vadd.xlane.f32.xlu1 %v59_v27 }
  0xa1   :  { %68 = vadd.xlane.f32.xlu1 %v61_v28 }
 0x126   :  { %v63_v42 = vpop.xlane.xlu0 %62 }
 0x127   :  { %v70_v43 = vmul.f32 0.03125, %v63_v42 }
 0x129   :  { %v74_v44 = vadd.f32 1e-05, %v70_v43 }
 0x12a   :  { %v65_v45 = vpop.xlane.xlu1 %64  ;;  %v67_v46 = vpop.xlane.xlu0 %66 }
 0x12b   :  { %508 = vrsqrt.f32 %v74_v44  ;;  %v71_v47 = vmul.f32 0.03125, %v65_v45  ;;  %v72_v48 = vmul.f32 0.03125, %v67_v46 }
 0x12d   :  { %v75_v49 = vadd.f32 1e-05, %v71_v47  ;;  %v76_v50 = vadd.f32 1e-05, %v72_v48 }
 0x12e   :  { %v69_v51 = vpop.xlane.xlu1 %68 }
 0x12f   :  { %510 = vrsqrt.f32 %v75_v49  ;;  %v73_v52 = vmul.f32 0.03125, %v69_v51 }
 0x130   :  { %512 = vrsqrt.f32 %v76_v50 }
 0x131   :  { %v77_v53 = vadd.f32 1e-05, %v73_v52 }
 0x133   :  { %514 = vrsqrt.f32 %v77_v53 }
 0x135   :  { %v509_v54 = vpop.eup %508 }
 0x136   :  { %v82_v55 = vmul.f32 %v509_v54, %v578_v13 }
 0x138   :  { %v93_v60 = vmul.f32 %v384_v56, %v82_v55 }
 0x139   :  { %v511_v57 = vpop.eup %510 }
 0x13a   :  { %v513_v58 = vpop.eup %512  ;;  %v83_v59 = vmul.f32 %v511_v57, %v588_v21  ;;  %v104_v1 = vadd.f32 %v385_v61, %v93_v60 }
 0x13b   :  { %v84_v62 = vmul.f32 %v513_v58, %v581_v14  ;;  %v507_v14 = vld [vmem:[%s670_s3 + $0x38] sm:$0xff]  }
 0x13c   :  { %v94_v63 = vmul.f32 %v384_v56, %v83_v59  ;;  %486 = vmatprep.subr.bf16.mxu1 %v507_v14 }
 0x13d   :  { %v515_v0 = vpop.eup %514  ;;  %v95_v8 = vmul.f32 %v384_v56, %v84_v62  ;;  %487 = vmatpush3.bf16.msra.mxu1 %v507_v14 }
 0x13e   :  { %v105_v6 = vadd.f32 %v385_v61, %v94_v63  ;;  %v85_v7 = vmul.f32 %v515_v0, %v591_v22 }
 0x13f   :  { %v106_v11 = vadd.f32 %v385_v61, %v95_v8 }
 0x140   :  { %v108_v9 = vpack.c.bf16 %v105_v6, %v104_v1  ;;  %v96_v10 = vmul.f32 %v384_v56, %v85_v7 }
 0x142   :  { %468 = vmatprep.mubr.bf16.mxu0 %v108_v9  ;;  %v107_v12 = vadd.f32 %v385_v61, %v96_v10 }
 0x144   :  { %v109_v13 = vpack.c.bf16 %v107_v12, %v106_v11 }
 0x146   :  { %469 = vmatmul.mubr.bf16.vlgmr.msra.gmra.mrb[0].mxu0 %v109_v13 }
 0x219   :  { %v470_v17 = vpop.f32.mrb[0].mxu0 }
 0x21a   :  { %v224_v18 = vadd.f32 %v470_v17, %v386_v16  ;;  %v215_v19 = vpop.f32.mrb[1].mxu0 }
 0x21b   :  { %v216_v20 = vadd.f32 %v386_v16, %v215_v19  ;;  %v471_v21 = vpop.f32.mrb[2].mxu0 }
 0x21c   :  { %v227_v22 = vadd.f32 %v471_v21, %v386_v16  ;;  %v218_v23 = vpop.f32.mrb[3].mxu0  ;;  %v232_v25 = vmax.f32 %v224_v18, 0.0 }
 0x21d   :  { %v219_v24 = vadd.f32 %v386_v16, %v218_v23  ;;  %v230_v27 = vmax.f32 %v216_v20, 0.0 }
 0x21e   :  { %v233_v26 = vmax.f32 %v227_v22, 0.0 }
 0x21f   :  { %v231_v28 = vmax.f32 %v219_v24, 0.0 }
 0x220   :  { %v235_v29 = vpack.c.bf16 %v233_v26, %v232_v25 }
 0x221   :  { %v234_v30 = vpack.c.bf16 %v231_v28, %v230_v27 }
 0x223   :  { %488 = vmatprep.mubr.bf16.mxu1 %v234_v30 }
 0x224   :  { %489 = vmatmul.mubr.bf16.vlgmr.msra.gmra.mrb[0].mxu1 %v235_v29 }
 0x2f7   :  { %v490_v32 = vpop.f32.mrb[0].mxu1 }
 0x2f8   :  { %v350_v33 = vadd.f32 %v490_v32, %v395_v31  ;;  %v341_v34 = vpop.f32.mrb[1].mxu1 }
 0x2f9   :  { %v342_v35 = vadd.f32 %v395_v31, %v341_v34  ;;  %v491_v36 = vpop.f32.mrb[2].mxu1 }
 0x2fa   :  { %v353_v37 = vadd.f32 %v491_v36, %v395_v31  ;;  %v344_v38 = vpop.f32.mrb[3].mxu1  ;;  %v358_v40 = vadd.f32 %v564_v3, %v350_v33 }
 0x2fb   :  { %v345_v39 = vadd.f32 %v395_v31, %v344_v38  ;;  %v356_v42 = vadd.f32 %v562_v2, %v342_v35 }
 0x2fc   :  { %v359_v41 = vadd.f32 %v570_v5, %v353_v37 }
 0x2fd   :  { %v357_v43 = vadd.f32 %v568_v4, %v345_v39 }
 0x2fe   :  { %v428_v44 = vpack.c.bf16 %v359_v41, %v358_v40 }
 0x2ff   :  { %v423_v45 = vpack.c.bf16 %v357_v43, %v356_v42 }
 0x300   :  { %431 = vst [vmem:[%s675_s7 + $0x8] sm:$0xff] %v428_v44  }
 0x301   :  { %424 = vst [vmem:[%s675_s7] sm:$0xff] %v423_v45  }

// kernel: _lambda_.34
= control target key start
LH: loop header
LB: loop body
LE: loop exit
PB: predicated region body
PF: predicated region fallthrough
CT: control target
= control target key end

     0   :  { %s1352_s18 = smov 0   ;;  %s1354_s19 = smov 0   ;;  %s1597_s0 = inlined_call_operand.vmem [shape: bf16[32,128], index: 0, kind: input, shape index: {}]   ;;  %s1598_s1 = inlined_call_operand.vmem [shape: bf16[128,2048], index: 1, kind: input, shape index: {}]   ;;  %s1599_s2 = inlined_call_operand.vmem [shape: f32[1,2048], index: 2, kind: input, shape index: {}]   ;;  %s1600_s3 = inlined_call_operand.vmem [shape: f32[1,128], index: 3, kind: input, shape index: {}]   ;;  %s1601_s4 = inlined_call_operand.vmem [shape: f32[1,128], index: 4, kind: input, shape index: {}]   ;;  %s1602_s5 = inlined_call_operand.vmem [shape: bf16[32,2048], index: 5, kind: output, shape index: {}]  }
   0x1   :  { %s1356_s20 = smov 0   ;;  %s1358_s21 = smov 0  }
   0x2   :  { %s1360_s22 = smov 0  }
   0x3 LB: > { %s30_s23 = sadd.s32 1, %s1314_s21  ;;  %s1103_s24 = sadd.s32 4294967295, %s1318_s22   ;;  %s1318_s22 = sphi %s1360_s22, %s15_s22   ;;  %s1314_s21 = sphi %s1358_s21, %s1607_s21   ;;  %s1310_s20 = sphi %s1356_s20, %s1606_s20   ;;  %s1306_s19 = sphi %s1354_s19, %s1605_s19   ;;  %s1302_s18 = sphi %s1352_s18, %s1604_s18  }
   0x4   : > { %p32_p0 = scmp.ge.s32.totalorder %s30_s23, 4  ;;  %p78_p1 = scmp.ne.s32.totalorder %s1306_s19, %s1302_s18 }
   0x5   : > { %p79_p2 = scmp.eq.s32.totalorder %s1318_s22, 0  ;;  %p178_p4 = scmp.eq.s32.totalorder %s1103_s24, 3 }
   0x6   : > { %s1609_s23 = smov (%p32_p0, %s30_s23), 0  ;;  %s71_s26 = sadd.s32 1, %s1306_s19 }
   0x7   : > { %p80_p3 = por %p79_p2, %p78_p1  ;;  %s67_s25 = ssub.s32 %s1314_s21, %s1609_s23 }
   0x8   : > { %p69_p5 = scmp.eq.s32.totalorder %s67_s25, 0  ;;  %p1387_p6 = por %p178_p4, %p78_p1 }
   0x9   : > { %p1107_p7 = scmp.ge.s32.totalorder %s1318_s22, 4 }
   0xa   : > { %s1392_s28 = scalar_select %p69_p5, %s1306_s19, %s71_s26  }
   0xb   : > { %218 = sbr.rel (%p1107_p7) target bundleno = 38 (0x26), region = 28 }
  0x12   : > { %221 = sbr.rel (!%p80_p3) target bundleno = 38 (0x26), region = 32  ;;  %s223_s29 = sand.u32 (%p80_p3), 1, %s1306_s19  }
  0x13   : > { %s1163_s30 = sshll.u32 (%p80_p3), %s1314_s21, 4  ;;  %s1108_s6 = sshll.u32 (%p80_p3), %s223_s29, 8 }
  0x14   : > { %s1400_s9 = scalar_lea.vmem (%p80_p3), %s1598_s1, %s1163_s30  ;;  %s1405_s10 = scalar_lea.vmem (%p80_p3), [#allocation4], %s1108_s6 }
  0x15   : > { %v244_v0 = vld [vmem:[%s1400_s9] sm:$0xff] (%p80_p3)  ;;  %v246_v1 = vld [vmem:[%s1400_s9 + $0x8] sm:$0xff] (%p80_p3) }
  0x16   : > { %v248_v2 = vld [vmem:[%s1400_s9 + $0x40] sm:$0xff] (%p80_p3)  ;;  %245 = vst [vmem:[%s1405_s10] sm:$0xff] (%p80_p3), %v244_v0  ;;  %247 = vst [vmem:[%s1405_s10 + $0x8] sm:$0xff] (%p80_p3), %v246_v1  ;;  %v250_v3 = vld [vmem:[%s1400_s9 + $0x48] sm:$0xff] (%p80_p3) }
  0x17   : > { %249 = vst [vmem:[%s1405_s10 + $0x10] sm:$0xff] (%p80_p3), %v248_v2  ;;  %v252_v4 = vld [vmem:[%s1400_s9 + $0x80] sm:$0xff] (%p80_p3)  ;;  %v254_v5 = vld [vmem:[%s1400_s9 + $0x88] sm:$0xff] (%p80_p3)  ;;  %251 = vst [vmem:[%s1405_s10 + $0x18] sm:$0xff] (%p80_p3), %v250_v3 }
  0x18   : > { %253 = vst [vmem:[%s1405_s10 + $0x20] sm:$0xff] (%p80_p3), %v252_v4  ;;  %255 = vst [vmem:[%s1405_s10 + $0x28] sm:$0xff] (%p80_p3), %v254_v5  ;;  %v256_v6 = vld [vmem:[%s1400_s9 + $0xc0] sm:$0xff] (%p80_p3)  ;;  %v258_v7 = vld [vmem:[%s1400_s9 + $0xc8] sm:$0xff] (%p80_p3) }
  0x19   : > { %v260_v8 = vld [vmem:[%s1400_s9 + $0x100] sm:$0xff]  ;;  %257 = vst [vmem:[%s1405_s10 + $0x30] sm:$0xff] %v256_v6  ;;  %259 = vst [vmem:[%s1405_s10 + $0x38] sm:$0xff] %v258_v7  ;;  %v262_v9 = vld [vmem:[%s1400_s9 + $0x108] sm:$0xff] }
  0x1a   : > { %261 = vst [vmem:[%s1405_s10 + $0x40] sm:$0xff] %v260_v8  ;;  %v264_v10 = vld [vmem:[%s1400_s9 + $0x140] sm:$0xff]  ;;  %v266_v11 = vld [vmem:[%s1400_s9 + $0x148] sm:$0xff]  ;;  %263 = vst [vmem:[%s1405_s10 + $0x48] sm:$0xff] %v262_v9 }
  0x1b   : > { %265 = vst [vmem:[%s1405_s10 + $0x50] sm:$0xff] %v264_v10  ;;  %267 = vst [vmem:[%s1405_s10 + $0x58] sm:$0xff] %v266_v11  ;;  %v268_v12 = vld [vmem:[%s1400_s9 + $0x180] sm:$0xff]  ;;  %v270_v13 = vld [vmem:[%s1400_s9 + $0x188] sm:$0xff] }
  0x1c   : > { %v272_v14 = vld [vmem:[%s1400_s9 + $0x1c0] sm:$0xff]  ;;  %269 = vst [vmem:[%s1405_s10 + $0x60] sm:$0xff] %v268_v12  ;;  %271 = vst [vmem:[%s1405_s10 + $0x68] sm:$0xff] %v270_v13  ;;  %v274_v15 = vld [vmem:[%s1400_s9 + $0x1c8] sm:$0xff] }
  0x1d   : > { %273 = vst [vmem:[%s1405_s10 + $0x70] sm:$0xff] %v272_v14  ;;  %v276_v16 = vld [vmem:[%s1400_s9 + $0x200] sm:$0xff]  ;;  %v278_v17 = vld [vmem:[%s1400_s9 + $0x208] sm:$0xff]  ;;  %275 = vst [vmem:[%s1405_s10 + $0x78] sm:$0xff] %v274_v15 }
  0x1e   : > { %277 = vst [vmem:[%s1405_s10 + $0x80] sm:$0xff] %v276_v16  ;;  %279 = vst [vmem:[%s1405_s10 + $0x88] sm:$0xff] %v278_v17  ;;  %v280_v18 = vld [vmem:[%s1400_s9 + $0x240] sm:$0xff]  ;;  %v282_v19 = vld [vmem:[%s1400_s9 + $0x248] sm:$0xff] }
  0x1f   : > { %v284_v20 = vld [vmem:[%s1400_s9 + $0x280] sm:$0xff]  ;;  %281 = vst [vmem:[%s1405_s10 + $0x90] sm:$0xff] %v280_v18  ;;  %283 = vst [vmem:[%s1405_s10 + $0x98] sm:$0xff] %v282_v19  ;;  %v286_v21 = vld [vmem:[%s1400_s9 + $0x288] sm:$0xff] }
  0x20   : > { %285 = vst [vmem:[%s1405_s10 + $0xa0] sm:$0xff] %v284_v20  ;;  %v288_v22 = vld [vmem:[%s1400_s9 + $0x2c0] sm:$0xff]  ;;  %v290_v23 = vld [vmem:[%s1400_s9 + $0x2c8] sm:$0xff]  ;;  %287 = vst [vmem:[%s1405_s10 + $0xa8] sm:$0xff] %v286_v21 }
  0x21   : > { %289 = vst [vmem:[%s1405_s10 + $0xb0] sm:$0xff] %v288_v22  ;;  %291 = vst [vmem:[%s1405_s10 + $0xb8] sm:$0xff] %v290_v23  ;;  %v292_v24 = vld [vmem:[%s1400_s9 + $0x300] sm:$0xff]  ;;  %v294_v25 = vld [vmem:[%s1400_s9 + $0x308] sm:$0xff] }
  0x22   : > { %v296_v26 = vld [vmem:[%s1400_s9 + $0x340] sm:$0xff]  ;;  %293 = vst [vmem:[%s1405_s10 + $0xc0] sm:$0xff] %v292_v24  ;;  %295 = vst [vmem:[%s1405_s10 + $0xc8] sm:$0xff] %v294_v25  ;;  %v298_v27 = vld [vmem:[%s1400_s9 + $0x348] sm:$0xff] }
  0x23   : > { %297 = vst [vmem:[%s1405_s10 + $0xd0] sm:$0xff] %v296_v26  ;;  %v300_v28 = vld [vmem:[%s1400_s9 + $0x380] sm:$0xff]  ;;  %v302_v29 = vld [vmem:[%s1400_s9 + $0x388] sm:$0xff]  ;;  %299 = vst [vmem:[%s1405_s10 + $0xd8] sm:$0xff] %v298_v27 }
  0x24   : > { %301 = vst [vmem:[%s1405_s10 + $0xe0] sm:$0xff] %v300_v28  ;;  %303 = vst [vmem:[%s1405_s10 + $0xe8] sm:$0xff] %v302_v29  ;;  %v304_v30 = vld [vmem:[%s1400_s9 + $0x3c0] sm:$0xff]  ;;  %v306_v31 = vld [vmem:[%s1400_s9 + $0x3c8] sm:$0xff] }
  0x25   : > { %305 = vst [vmem:[%s1405_s10 + $0xf0] sm:$0xff] %v304_v30  ;;  %307 = vst [vmem:[%s1405_s10 + $0xf8] sm:$0xff] %v306_v31 }
  0x26 PF: > { %p1111_p8 = scmp.ge.s32.totalorder %s1318_s22, 1  ;;  %p320_p9 = scmp.lt.s32.totalorder %s1318_s22, 5 }
  0x28   : > { %p321_p10 = pnand %p1111_p8, %p320_p9 }
  0x29   : > { %s327_s11 = sand.u32 (!%p321_p10), 1, %s1302_s18   ;;  %s1114_s12 = sshll.u32 (!%p321_p10), %s1310_s20, 2  ;;  %v1320_v32 = vmov (!%p321_p10), 0.0  }
  0x2a   : > { %324 = sbr.rel (%p321_p10) target bundleno = 647 (0x287), region = 59  ;;  %s1112_s13 = sshll.u32 (!%p321_p10), %s327_s11, 8  ;;  %388 = vst [vmem:[#allocation2] sm:$0xff] (!%p321_p10), %v1320_v32  ;;  %389 = vst [vmem:[#allocation2 + $0x8] sm:$0xff] (!%p321_p10), %v1320_v32 }
  0x2b   : > { %s1113_s14 = sshll.u32 (!%p321_p10), %s327_s11, 6  ;;  %390 = vst [vmem:[#allocation2 + $0x10] sm:$0xff] (!%p321_p10), %v1320_v32  ;;  %391 = vst [vmem:[#allocation2 + $0x18] sm:$0xff] (!%p321_p10), %v1320_v32  ;;  %p377_p11 = scmp.lt.s32.totalorder (!%p321_p10), %s1114_s12, 15 }
  0x2c   : > { %392 = vst [vmem:[#allocation2 + $0x20] sm:$0xff] (!%p321_p10), %v1320_v32  ;;  %393 = vst [vmem:[#allocation2 + $0x28] sm:$0xff] (!%p321_p10), %v1320_v32  ;;  %s1478_s18 = scalar_lea.vmem (!%p321_p10), [#allocation4], %s1112_s13  ;;  %s1480_s24 = scalar_lea.vmem (!%p321_p10), [#allocation5], %s1113_s14 }
  0x2d   : > { %394 = vst [vmem:[#allocation2 + $0x30] sm:$0xff] (!%p321_p10), %v1320_v32  ;;  %395 = vst [vmem:[#allocation2 + $0x38] sm:$0xff] (!%p321_p10), %v1320_v32  ;;  %p1115_p12 = scmp.ne.s32.totalorder (!%p321_p10), %s1310_s20, 0 }
  0x2e   : > { %396 = vst [vmem:[#allocation2 + $0x40] sm:$0xff] (!%p321_p10), %v1320_v32  ;;  %397 = vst [vmem:[#allocation2 + $0x48] sm:$0xff] (!%p321_p10), %v1320_v32 }
  0x2f   : > { %398 = vst [vmem:[#allocation2 + $0x50] sm:$0xff] (!%p321_p10), %v1320_v32  ;;  %399 = vst [vmem:[#allocation2 + $0x58] sm:$0xff] (!%p321_p10), %v1320_v32 }
  0x30   : > { %400 = vst [vmem:[#allocation2 + $0x60] sm:$0xff] (!%p321_p10), %v1320_v32  ;;  %401 = vst [vmem:[#allocation2 + $0x68] sm:$0xff] (!%p321_p10), %v1320_v32 }
  0x31   : > { %402 = vst [vmem:[#allocation2 + $0x70] sm:$0xff] %v1320_v32  ;;  %403 = vst [vmem:[#allocation2 + $0x78] sm:$0xff] %v1320_v32  ;;  %s1611_s12 = smov (!%p377_p11, %s1114_s12), 15  ;;  %407 = sbr.rel (%p1115_p12) target bundleno = 374 (0x176), region = 71 }
  0x32   : > { %s379_s17 = scalar_lea.vmem %s1599_s2, %s1611_s12  ;;  %v1174_v33 = vld [vmem:[%s1597_s0] sm:$0xff] (!%p1115_p12)   ;;  %v1181_v34 = vld [vmem:[%s1597_s0 + $0x8] sm:$0xff] (!%p1115_p12)   ;;  %v432_v39 = vlaneseq (!%p1115_p12) }
  0x33   : > { %v1175_v35 = vunpack.c.l.bf16 (!%p1115_p12), %v1174_v33  ;;  %v1179_v36 = vunpack.c.l.bf16 (!%p1115_p12), %v1181_v34  ;;  %v1176_v37 = vunpack.c.h.bf16 (!%p1115_p12), %v1174_v33  ;;  %v1180_v38 = vunpack.c.h.bf16 (!%p1115_p12), %v1181_v34  ;;  %v1116_v10 = vld [vmem:[%s1600_s3] ss:$0 sm:$0xff] (!%p1115_p12) }
  0x34   : > { %v433_v42 = vand.u32 (!%p1115_p12), 127, %v432_v39  ;;  %v1117_v12 = vld [vmem:[%s1601_s4] ss:$0 sm:$0xff] (!%p1115_p12) }
  0x35   : > { %416 = vadd.xlane.f32.xlu0 (!%p1115_p12), %v1175_v35  ;;  %420 = vadd.xlane.f32.xlu1 (!%p1115_p12), %v1179_v36 }
  0x36   : > { %vm434_vm0 = vcmp.lt.s32.totalorder (!%p1115_p12), %v433_v42, 32 }
  0x39   : > { %418 = vadd.xlane.f32.xlu0 %v1176_v37  ;;  %422 = vadd.xlane.f32.xlu1 %v1180_v38 }
  0xc2   : > { %v417_v40 = vpop.xlane.xlu0 %416  ;;  %v421_v41 = vpop.xlane.xlu1 %420 }
  0xc3   : > { %v424_v43 = vmul.f32 0.03125, %v417_v40  ;;  %v426_v44 = vmul.f32 0.03125, %v421_v41 }
  0xc5   : > { %v428_v45 = vsub.f32 %v1175_v35, %v424_v43  ;;  %v430_v46 = vsub.f32 %v1179_v36, %v426_v44 }
  0xc6   : > { %v419_v47 = vpop.xlane.xlu0 %418  ;;  %v423_v48 = vpop.xlane.xlu1 %422 }
  0xc7   : > { %v425_v49 = vmul.f32 0.03125, %v419_v47  ;;  %v427_v50 = vmul.f32 0.03125, %v423_v48  ;;  %v435_v51 = vmul.f32 %v428_v45, %v428_v45  ;;  %v437_v52 = vmul.f32 %v430_v46, %v430_v46 }
  0xc9   : > { %v429_v53 = vsub.f32 %v1176_v37, %v425_v49  ;;  %v431_v54 = vsub.f32 %v1180_v38, %v427_v50  ;;  %v439_v55 = vsel %vm434_vm0, %v435_v51, 0.0  ;;  %v441_v56 = vsel %vm434_vm0, %v437_v52, 0.0 }
  0xca   : > { %443 = vadd.xlane.f32.xlu0 %v439_v55 }
  0xcb   : > { %v436_v57 = vmul.f32 %v429_v53, %v429_v53  ;;  %v438_v58 = vmul.f32 %v431_v54, %v431_v54 }
  0xcd   : > { %v440_v59 = vsel %vm434_vm0, %v436_v57, 0.0  ;;  %v442_v60 = vsel %vm434_vm0, %v438_v58, 0.0 }
  0xce   : > { %447 = vadd.xlane.f32.xlu0 %v441_v56  ;;  %445 = vadd.xlane.f32.xlu1 %v440_v59 }
  0xd2   : > { %449 = vadd.xlane.f32.xlu1 %v442_v60 }
 0x157   : > { %v444_v61 = vpop.xlane.xlu0 %443 }
 0x158   : > { %v451_v62 = vmul.f32 0.03125, %v444_v61 }
 0x15a   : > { %v455_v63 = vadd.f32 1e-05, %v451_v62 }
 0x15b   : > { %v446_v0 = vpop.xlane.xlu1 %445  ;;  %v448_v1 = vpop.xlane.xlu0 %447 }
 0x15c   : > { %1224 = vrsqrt.f32 %v455_v63  ;;  %v452_v2 = vmul.f32 0.03125, %v446_v0  ;;  %v453_v3 = vmul.f32 0.03125, %v448_v1 }
 0x15e   : > { %v456_v4 = vadd.f32 1e-05, %v452_v2  ;;  %v457_v5 = vadd.f32 1e-05, %v453_v3 }
 0x15f   : > { %v450_v6 = vpop.xlane.xlu1 %449 }
 0x160   : > { %1226 = vrsqrt.f32 %v456_v4  ;;  %v454_v7 = vmul.f32 0.03125, %v450_v6 }
 0x161   : > { %1228 = vrsqrt.f32 %v457_v5 }
 0x162   : > { %v458_v8 = vadd.f32 1e-05, %v454_v7 }
 0x164   : > { %1230 = vrsqrt.f32 %v458_v8 }
 0x166   : > { %v1225_v9 = vpop.eup %1224 }
 0x167   : > { %v463_v11 = vmul.f32 %v1225_v9, %v428_v45 }
 0x169   : > { %v474_v13 = vmul.f32 %v1116_v10, %v463_v11 }
 0x16a   : > { %v1227_v14 = vpop.eup %1226 }
 0x16b   : > { %v1229_v15 = vpop.eup %1228  ;;  %v485_v16 = vadd.f32 %v1117_v12, %v474_v13  ;;  %v464_v17 = vmul.f32 %v1227_v14, %v429_v53 }
 0x16c   : > { %v465_v18 = vmul.f32 %v1229_v15, %v430_v46 }
 0x16d   : > { %489 = vst [vmem:[#allocation3] sm:$0xff] %v485_v16  ;;  %v475_v19 = vmul.f32 %v1116_v10, %v464_v17 }
 0x16e   : > { %v1231_v20 = vpop.eup %1230  ;;  %v476_v21 = vmul.f32 %v1116_v10, %v465_v18 }
 0x16f   : > { %v486_v22 = vadd.f32 %v1117_v12, %v475_v19  ;;  %v466_v23 = vmul.f32 %v1231_v20, %v431_v54 }
 0x170   : > { %v487_v24 = vadd.f32 %v1117_v12, %v476_v21 }
 0x171   : > { %490 = vst [vmem:[#allocation3 + $0x8] sm:$0xff] %v486_v22  ;;  %v477_v25 = vmul.f32 %v1116_v10, %v466_v23 }
 0x172   : > { %491 = vst [vmem:[#allocation3 + $0x10] sm:$0xff] %v487_v24 }
 0x173   : > { %v488_v26 = vadd.f32 %v1117_v12, %v477_v25 }
 0x175   : > { %492 = vst [vmem:[#allocation3 + $0x18] sm:$0xff] %v488_v26 }
 0x176 PF: > { %v1232_v27 = vld [vmem:[%s1478_s18 + $0x4] ss:$16 sps:$4 sm:$0xff]   ;;  %v1234_v28 = vld [vmem:[%s1478_s18 + $0xc] ss:$16 sps:$4 sm:$0xff]   ;;  %v1321_v29 = vmov 0   ;;  %v866_v2 = vlaneseq  ;;  %s1172_s12 = sshll.u32 (%p1387_p6), %s1310_s20, 4 }
 0x177   : > { %739 = vmatprep.mubr.bf16.mxu0 %v1321_v29  ;;  %792 = vmatprep.mubr.bf16.mxu1 %v1321_v29  ;;  %v1236_v30 = vld [vmem:[%s1478_s18] ss:$16 sps:$4 sm:$0xff]   ;;  %v1237_v31 = vld [vmem:[%s1478_s18 + $0x8] ss:$16 sps:$4 sm:$0xff]   ;;  %v1238_v32 = vld [vmem:[%s1478_s18 + $0x24] ss:$16 sps:$4 sm:$0xff]   ;;  %s970_s15 = scalar_lea.vmem (%p1387_p6), %s1602_s5, %s1172_s12 }
 0x178   : > { %707 = vmatprep.subr.bf16.mxu0 %v1232_v27  ;;  %760 = vmatprep.subr.bf16.mxu1 %v1234_v28  ;;  %v1240_v33 = vld [vmem:[%s1478_s18 + $0x2c] ss:$16 sps:$4 sm:$0xff]   ;;  %v1242_v34 = vld [vmem:[%s1478_s18 + $0x20] ss:$16 sps:$4 sm:$0xff]   ;;  %v1243_v35 = vld [vmem:[%s1478_s18 + $0x28] ss:$16 sps:$4 sm:$0xff]  }
 0x179   : > { %708 = vmatpush1.bf16.msra.mxu0 %v1236_v30  ;;  %761 = vmatpush1.bf16.msra.mxu1 %v1237_v31  ;;  %v1244_v36 = vld [vmem:[%s1478_s18 + $0x44] ss:$16 sps:$4 sm:$0xff]   ;;  %v1246_v37 = vld [vmem:[%s1478_s18 + $0x4c] ss:$16 sps:$4 sm:$0xff]   ;;  %v1248_v38 = vld [vmem:[%s1478_s18 + $0x40] ss:$16 sps:$4 sm:$0xff]  }
 0x17a   : > { %709 = vmatprep.subr.bf16.mxu0 %v1238_v32  ;;  %762 = vmatprep.subr.bf16.mxu1 %v1240_v33  ;;  %v1249_v39 = vld [vmem:[%s1478_s18 + $0x48] ss:$16 sps:$4 sm:$0xff]   ;;  %v1250_v40 = vld [vmem:[%s1478_s18 + $0x64] ss:$16 sps:$4 sm:$0xff]   ;;  %v1252_v41 = vld [vmem:[%s1478_s18 + $0x6c] ss:$16 sps:$4 sm:$0xff]  }
 0x17b   : > { %v1254_v42 = vld [vmem:[%s1478_s18 + $0x60] ss:$16 sps:$4 sm:$0xff]   ;;  %v1255_v43 = vld [vmem:[%s1478_s18 + $0x68] ss:$16 sps:$4 sm:$0xff]   ;;  %v1256_v44 = vld [vmem:[%s1478_s18 + $0x84] ss:$16 sps:$4 sm:$0xff]  }
 0x17c   : > { %v1258_v45 = vld [vmem:[%s1478_s18 + $0x8c] ss:$16 sps:$4 sm:$0xff]   ;;  %v1260_v46 = vld [vmem:[%s1478_s18 + $0x80] ss:$16 sps:$4 sm:$0xff]   ;;  %v1261_v47 = vld [vmem:[%s1478_s18 + $0x88] ss:$16 sps:$4 sm:$0xff]  }
 0x17d   : > { %710 = vmatpush1.bf16.msra.mxu0 %v1242_v34  ;;  %763 = vmatpush1.bf16.msra.mxu1 %v1243_v35  ;;  %v1262_v48 = vld [vmem:[%s1478_s18 + $0xa4] ss:$16 sps:$4 sm:$0xff]   ;;  %v1264_v49 = vld [vmem:[%s1478_s18 + $0xac] ss:$16 sps:$4 sm:$0xff]   ;;  %v1266_v50 = vld [vmem:[%s1478_s18 + $0xa0] ss:$16 sps:$4 sm:$0xff]  }
 0x17e   : > { %711 = vmatprep.subr.bf16.mxu0 %v1244_v36  ;;  %764 = vmatprep.subr.bf16.mxu1 %v1246_v37  ;;  %v1267_v51 = vld [vmem:[%s1478_s18 + $0xa8] ss:$16 sps:$4 sm:$0xff]   ;;  %v1268_v52 = vld [vmem:[%s1478_s18 + $0xc4] ss:$16 sps:$4 sm:$0xff]   ;;  %v1270_v53 = vld [vmem:[%s1478_s18 + $0xcc] ss:$16 sps:$4 sm:$0xff]  }
 0x17f   : > { %v1272_v54 = vld [vmem:[%s1478_s18 + $0xc0] ss:$16 sps:$4 sm:$0xff]   ;;  %v1273_v55 = vld [vmem:[%s1478_s18 + $0xc8] ss:$16 sps:$4 sm:$0xff]   ;;  %v1274_v56 = vld [vmem:[%s1478_s18 + $0xe4] ss:$16 sps:$4 sm:$0xff]  }
 0x180   : > { %v1276_v57 = vld [vmem:[%s1478_s18 + $0xec] ss:$16 sps:$4 sm:$0xff]   ;;  %v1278_v58 = vld [vmem:[%s1478_s18 + $0xe0] ss:$16 sps:$4 sm:$0xff]   ;;  %v1279_v59 = vld [vmem:[%s1478_s18 + $0xe8] ss:$16 sps:$4 sm:$0xff]  }
 0x181   : > { %712 = vmatpush1.bf16.msra.mxu0 %v1248_v38  ;;  %765 = vmatpush1.bf16.msra.mxu1 %v1249_v39  ;;  %v493_v60 = vld [vmem:[#allocation3] sm:$0xff]  ;;  %v494_v61 = vld [vmem:[#allocation3 + $0x8] sm:$0xff]  ;;  %v495_v63 = vld [vmem:[#allocation3 + $0x10] sm:$0xff]  ;;  %v867_v3 = vshrl.u32 %v866_v2, 7 }
 0x182   : > { %713 = vmatprep.subr.bf16.mxu0 %v1250_v40  ;;  %766 = vmatprep.subr.bf16.mxu1 %v1252_v41  ;;  %v497_v62 = vpack.c.bf16 %v494_v61, %v493_v60  ;;  %v496_v0 = vld [vmem:[#allocation3 + $0x18] sm:$0xff]  ;;  %v864_v6 = vld [vmem:[%s379_s17] sm:$0xf]  ;;  %v501_v10 = vld [vmem:[#allocation2 + $0x10] sm:$0xff] }
 0x183   : > { %v498_v1 = vpack.c.bf16 %v496_v0, %v495_v63  ;;  %v868_v4 = vsub.s32 0, %v867_v3  ;;  %v876_v5 = vsub.s32 2, %v867_v3  ;;  %v872_v7 = vsub.s32 1, %v867_v3  ;;  %v499_v9 = vld [vmem:[#allocation2] sm:$0xff]  ;;  %v500_v13 = vld [vmem:[#allocation2 + $0x8] sm:$0xff]  ;;  %v502_v14 = vld [vmem:[#allocation2 + $0x18] sm:$0xff] }
 0x184   : > { %v880_v8 = vsub.s32 3, %v867_v3  ;;  %v503_v19 = vld [vmem:[#allocation2 + $0x20] sm:$0xff]  ;;  %v505_v20 = vld [vmem:[#allocation2 + $0x30] sm:$0xff]  ;;  %v504_v25 = vld [vmem:[#allocation2 + $0x28] sm:$0xff] }
 0x185   : > { %714 = vmatpush1.bf16.msra.mxu0 %v1254_v42  ;;  %767 = vmatpush1.bf16.msra.mxu1 %v1255_v43  ;;  %v1536_v11 = vrot.slane %v864_v6, %v868_v4  ;;  %v1538_v12 = vrot.slane %v864_v6, %v876_v5  ;;  %v1540_v17 = vrot.slane %v864_v6, %v872_v7  ;;  %v506_v26 = vld [vmem:[#allocation2 + $0x38] sm:$0xff]  ;;  %v512_v61 = vld [vmem:[#allocation2 + $0x68] sm:$0xff] }
 0x186   : > { %715 = vmatprep.subr.bf16.mxu0 %v1256_v44  ;;  %768 = vmatprep.subr.bf16.mxu1 %v1258_v45  ;;  %v1542_v18 = vrot.slane %v864_v6, %v880_v8 }
 0x189   : > { %716 = vmatpush1.bf16.msra.mxu0 %v1260_v46  ;;  %769 = vmatpush1.bf16.msra.mxu1 %v1261_v47  ;;  %v507_v47 = vld [vmem:[#allocation2 + $0x40] sm:$0xff] }
 0x18a   : > { %717 = vmatprep.subr.bf16.mxu0 %v1262_v48  ;;  %770 = vmatprep.subr.bf16.mxu1 %v1264_v49  ;;  %v509_v48 = vld [vmem:[#allocation2 + $0x50] sm:$0xff]  ;;  %v508_v49 = vld [vmem:[#allocation2 + $0x48] sm:$0xff] }
 0x18d   : > { %718 = vmatpush1.bf16.msra.mxu0 %v1266_v50  ;;  %771 = vmatpush1.bf16.msra.mxu1 %v1267_v51  ;;  %v510_v50 = vld [vmem:[#allocation2 + $0x58] sm:$0xff] }
 0x18e   : > { %719 = vmatprep.subr.bf16.mxu0 %v1268_v52  ;;  %772 = vmatprep.subr.bf16.mxu1 %v1270_v53 }
 0x191   : > { %720 = vmatpush1.bf16.msra.mxu0 %v1272_v54  ;;  %773 = vmatpush1.bf16.msra.mxu1 %v1273_v55  ;;  %v511_v55 = vld [vmem:[#allocation2 + $0x60] sm:$0xff] }
 0x192   : > { %721 = vmatprep.subr.bf16.mxu0 %v1274_v56  ;;  %774 = vmatprep.subr.bf16.mxu1 %v1276_v57  ;;  %v513_v56 = vld [vmem:[#allocation2 + $0x70] sm:$0xff] }
 0x195   : > { %722 = vmatpush1.bf16.msra.mxu0 %v1278_v58  ;;  %775 = vmatpush1.bf16.msra.mxu1 %v1279_v59 }
 0x198   : > { %740 = vmatmul.mubr.bf16.vlgmr.msra.gmra.mrb[0].mxu0 %v497_v62  ;;  %793 = vmatmul.mubr.bf16.vlgmr.msra.gmra.mrb[0].mxu1 %v497_v62  ;;  %v514_v62 = vld [vmem:[#allocation2 + $0x78] sm:$0xff] }
 0x199   : > { %749 = vmatprep.mubr.bf16.mxu0 %v1321_v29  ;;  %802 = vmatprep.mubr.bf16.mxu1 %v1321_v29 }
 0x1a0   : > { %750 = vmatmul.mubr.bf16.gmra.mrb[4].mxu0 %v498_v1  ;;  %803 = vmatmul.mubr.bf16.gmra.mrb[4].mxu1 %v498_v1 }
 0x26b   : > { %v741_v15 = vpop.f32.mrb[0].mxu0  ;;  %v794_v16 = vpop.f32.mrb[0].mxu1 }
 0x26c   : > { %v813_v21 = vadd.f32 %v741_v15, %v499_v9  ;;  %v815_v22 = vadd.f32 %v794_v16, %v501_v10  ;;  %v743_v23 = vpop.f32.mrb[1].mxu0  ;;  %v796_v24 = vpop.f32.mrb[1].mxu1 }
 0x26d   : > { %v814_v27 = vadd.f32 %v743_v23, %v500_v13  ;;  %v816_v28 = vadd.f32 %v796_v24, %v502_v14  ;;  %v745_v29 = vpop.f32.mrb[2].mxu0  ;;  %v798_v30 = vpop.f32.mrb[2].mxu1 }
 0x26e   : > { %829 = vst [vmem:[#allocation2] sm:$0xff] %v813_v21  ;;  %v886_v31 = vadd.f32 %v1536_v11, %v813_v21  ;;  %831 = vst [vmem:[#allocation2 + $0x10] sm:$0xff] %v815_v22  ;;  %v888_v32 = vadd.f32 %v1538_v12, %v815_v22  ;;  %v817_v33 = vadd.f32 %v745_v29, %v503_v19  ;;  %v747_v35 = vpop.f32.mrb[3].mxu0  ;;  %v800_v36 = vpop.f32.mrb[3].mxu1 }
 0x26f   : > { %v819_v34 = vadd.f32 %v798_v30, %v505_v20  ;;  %830 = vst [vmem:[#allocation2 + $0x8] sm:$0xff] %v814_v27  ;;  %v887_v37 = vadd.f32 %v1540_v17, %v814_v27  ;;  %832 = vst [vmem:[#allocation2 + $0x18] sm:$0xff] %v816_v28  ;;  %v889_v38 = vadd.f32 %v1542_v18, %v816_v28 }
 0x270   : > { %v818_v39 = vadd.f32 %v747_v35, %v504_v25  ;;  %v820_v40 = vadd.f32 %v800_v36, %v506_v26  ;;  %833 = vst [vmem:[#allocation2 + $0x20] sm:$0xff] %v817_v33  ;;  %v890_v41 = vadd.f32 %v1536_v11, %v817_v33 }
 0x271   : > { %835 = vst [vmem:[#allocation2 + $0x30] sm:$0xff] %v819_v34  ;;  %v892_v42 = vadd.f32 %v1538_v12, %v819_v34  ;;  %v1164_v43 = vpack.c.bf16 %v887_v37, %v886_v31  ;;  %v1165_v44 = vpack.c.bf16 %v889_v38, %v888_v32 }
 0x272   : > { %834 = vst [vmem:[#allocation2 + $0x28] sm:$0xff] %v818_v39  ;;  %v891_v45 = vadd.f32 %v1540_v17, %v818_v39  ;;  %836 = vst [vmem:[#allocation2 + $0x38] sm:$0xff] %v820_v40  ;;  %v893_v46 = vadd.f32 %v1542_v18, %v820_v40 }
 0x273   : > { %950 = vst [vmem:[%s1480_s24] sm:$0xff] %v1164_v43  ;;  %951 = vst [vmem:[%s1480_s24 + $0x8] sm:$0xff] %v1165_v44  ;;  %v751_v53 = vpop.f32.mrb[4].mxu0  ;;  %v804_v54 = vpop.f32.mrb[4].mxu1 }
 0x274   : > { %v1166_v51 = vpack.c.bf16 %v891_v45, %v890_v41  ;;  %v1167_v52 = vpack.c.bf16 %v893_v46, %v892_v42  ;;  %v821_v57 = vadd.f32 %v751_v53, %v507_v47  ;;  %v823_v58 = vadd.f32 %v804_v54, %v509_v48  ;;  %v753_v59 = vpop.f32.mrb[5].mxu0  ;;  %v806_v60 = vpop.f32.mrb[5].mxu1 }
 0x275   : > { %v822_v63 = vadd.f32 %v753_v59, %v508_v49  ;;  %v824_v0 = vadd.f32 %v806_v60, %v510_v50  ;;  %v755_v1 = vpop.f32.mrb[6].mxu0  ;;  %v808_v2 = vpop.f32.mrb[6].mxu1 }
 0x276   : > { %952 = vst [vmem:[%s1480_s24 + $0x10] sm:$0xff] %v1166_v51  ;;  %953 = vst [vmem:[%s1480_s24 + $0x18] sm:$0xff] %v1167_v52  ;;  %v894_v3 = vadd.f32 %v1536_v11, %v821_v57  ;;  %v896_v4 = vadd.f32 %v1538_v12, %v823_v58  ;;  %v825_v5 = vadd.f32 %v755_v1, %v511_v55  ;;  %v757_v7 = vpop.f32.mrb[7].mxu0  ;;  %v810_v8 = vpop.f32.mrb[7].mxu1 }
 0x277   : > { %837 = vst [vmem:[#allocation2 + $0x40] sm:$0xff] %v821_v57  ;;  %839 = vst [vmem:[#allocation2 + $0x50] sm:$0xff] %v823_v58  ;;  %v827_v6 = vadd.f32 %v808_v2, %v513_v56  ;;  %v895_v9 = vadd.f32 %v1540_v17, %v822_v63  ;;  %v897_v10 = vadd.f32 %v1542_v18, %v824_v0 }
 0x278   : > { %838 = vst [vmem:[#allocation2 + $0x48] sm:$0xff] %v822_v63  ;;  %840 = vst [vmem:[#allocation2 + $0x58] sm:$0xff] %v824_v0  ;;  %v826_v13 = vadd.f32 %v757_v7, %v512_v61  ;;  %v828_v14 = vadd.f32 %v810_v8, %v514_v62  ;;  %v898_v15 = vadd.f32 %v1536_v11, %v825_v5  ;;  %964 = sbr.rel (!%p1387_p6) target bundleno = 647 (0x287), region = 79 }
 0x279   : > { %841 = vst [vmem:[#allocation2 + $0x60] sm:$0xff] %v825_v5  ;;  %843 = vst [vmem:[#allocation2 + $0x70] sm:$0xff] %v827_v6  ;;  %v900_v16 = vadd.f32 %v1538_v12, %v827_v6  ;;  %v1168_v19 = vpack.c.bf16 %v895_v9, %v894_v3  ;;  %v1169_v20 = vpack.c.bf16 %v897_v10, %v896_v4 }
 0x27a   : > { %842 = vst [vmem:[#allocation2 + $0x68] sm:$0xff] %v826_v13  ;;  %v899_v21 = vadd.f32 %v1540_v17, %v826_v13  ;;  %844 = vst [vmem:[#allocation2 + $0x78] sm:$0xff] %v828_v14  ;;  %v901_v22 = vadd.f32 %v1542_v18, %v828_v14  ;;  %v983_v11 = vld [vmem:[%s1480_s24] sm:$0xff] (%p1387_p6)  ;;  %v985_v12 = vld [vmem:[%s1480_s24 + $0x8] sm:$0xff] (%p1387_p6) }
 0x27b   : > { %954 = vst [vmem:[%s1480_s24 + $0x20] sm:$0xff] %v1168_v19  ;;  %955 = vst [vmem:[%s1480_s24 + $0x28] sm:$0xff] %v1169_v20 }
 0x27c   : > { %v1170_v23 = vpack.c.bf16 %v899_v21, %v898_v15  ;;  %v1171_v24 = vpack.c.bf16 %v901_v22, %v900_v16  ;;  %984 = vst [vmem:[%s970_s15] sm:$0xff] (%p1387_p6), %v983_v11  ;;  %986 = vst [vmem:[%s970_s15 + $0x8] sm:$0xff] (%p1387_p6), %v985_v12 }
 0x27d   : > { %v987_v17 = vld [vmem:[%s1480_s24 + $0x10] sm:$0xff] (%p1387_p6)  ;;  %v989_v18 = vld [vmem:[%s1480_s24 + $0x18] sm:$0xff] (%p1387_p6) }
 0x27e   : > { %956 = vst [vmem:[%s1480_s24 + $0x30] sm:$0xff] %v1170_v23  ;;  %957 = vst [vmem:[%s1480_s24 + $0x38] sm:$0xff] %v1171_v24 }
 0x27f   : > { %988 = vst [vmem:[%s970_s15 + $0x40] sm:$0xff] %v987_v17  ;;  %990 = vst [vmem:[%s970_s15 + $0x48] sm:$0xff] %v989_v18 }
 0x282   : > { %v991_v25 = vld [vmem:[%s1480_s24 + $0x20] sm:$0xff]  ;;  %v993_v26 = vld [vmem:[%s1480_s24 + $0x28] sm:$0xff] }
 0x283   : > { %992 = vst [vmem:[%s970_s15 + $0x80] sm:$0xff] %v991_v25  ;;  %994 = vst [vmem:[%s970_s15 + $0x88] sm:$0xff] %v993_v26 }
 0x285   : > { %v995_v27 = vld [vmem:[%s1480_s24 + $0x30] sm:$0xff]  ;;  %v997_v28 = vld [vmem:[%s1480_s24 + $0x38] sm:$0xff] }
 0x286   : > { %996 = vst [vmem:[%s970_s15 + $0xc0] sm:$0xff] %v995_v27  ;;  %998 = vst [vmem:[%s970_s15 + $0xc8] sm:$0xff] %v997_v28 }
 0x287 PF: > { %s15_s22 = sadd.s32 1, %s1318_s22   ;;  %s1604_s18 = smov %s1306_s19 }
 0x288   : > { %p12_p13 = scmp.ge.s32.totalorder %s15_s22, 6   ;;  %s1605_s19 = smov %s1392_s28 }
 0x289   : > { %s1606_s20 = smov %s1314_s21  ;;  %s1607_s21 = smov %s1609_s23 }
 0x28a   :  { %14 = sbr.rel (!%p12_p13) target bundleno = 3 (0x3), region = 139 }

// kernel: _lambda_.35
= control target key start
LH: loop header
LB: loop body
LE: loop exit
PB: predicated region body
PF: predicated region fallthrough
CT: control target
= control target key end

     0   :  { %s1194_s18 = smov 0   ;;  %s1196_s19 = smov 0   ;;  %s1400_s0 = inlined_call_operand.vmem [shape: bf16[16,128], index: 0, kind: input, shape index: {}]   ;;  %s1401_s1 = inlined_call_operand.vmem [shape: bf16[128,1536], index: 1, kind: input, shape index: {}]   ;;  %s1402_s2 = inlined_call_operand.vmem [shape: f32[1,1536], index: 2, kind: input, shape index: {}]   ;;  %s1403_s3 = inlined_call_operand.vmem [shape: f32[1,128], index: 3, kind: input, shape index: {}]   ;;  %s1404_s4 = inlined_call_operand.vmem [shape: f32[1,128], index: 4, kind: input, shape index: {}]   ;;  %s1405_s5 = inlined_call_operand.vmem [shape: bf16[16,1536], index: 5, kind: output, shape index: {}]  }
   0x1   :  { %s1198_s20 = smov 0   ;;  %s1200_s21 = smov 0  }
   0x2   :  { %s1202_s22 = smov 0  }
   0x3 LB: > { %s30_s23 = sadd.s32 1, %s1156_s21  ;;  %s962_s24 = sadd.s32 4294967295, %s1160_s22   ;;  %s1160_s22 = sphi %s1202_s22, %s15_s22   ;;  %s1156_s21 = sphi %s1200_s21, %s1410_s21   ;;  %s1152_s20 = sphi %s1198_s20, %s1409_s20   ;;  %s1148_s19 = sphi %s1196_s19, %s1408_s19   ;;  %s1144_s18 = sphi %s1194_s18, %s1407_s18  }
   0x4   : > { %p32_p0 = scmp.ge.s32.totalorder %s30_s23, 3  ;;  %p78_p1 = scmp.ne.s32.totalorder %s1148_s19, %s1144_s18 }
   0x5   : > { %p79_p2 = scmp.eq.s32.totalorder %s1160_s22, 0  ;;  %p178_p4 = scmp.eq.s32.totalorder %s962_s24, 2 }
   0x6   : > { %s1412_s23 = smov (%p32_p0, %s30_s23), 0  ;;  %s71_s26 = sadd.s32 1, %s1148_s19 }
   0x7   : > { %p80_p3 = por %p79_p2, %p78_p1  ;;  %s67_s25 = ssub.s32 %s1156_s21, %s1412_s23 }
   0x8   : > { %p69_p5 = scmp.eq.s32.totalorder %s67_s25, 0  ;;  %p1229_p6 = por %p178_p4, %p78_p1 }
   0x9   : > { %p966_p7 = scmp.ge.s32.totalorder %s1160_s22, 3 }
   0xa   : > { %s1234_s28 = scalar_select %p69_p5, %s1148_s19, %s71_s26  }
   0xb   : > { %218 = sbr.rel (%p966_p7) target bundleno = 38 (0x26), region = 28 }
  0x12   : > { %221 = sbr.rel (!%p80_p3) target bundleno = 38 (0x26), region = 32  ;;  %s223_s29 = sand.u32 (%p80_p3), 1, %s1148_s19  }
  0x13   : > { %s1018_s30 = sshll.u32 (%p80_p3), %s1156_s21, 4  ;;  %s967_s6 = sshll.u32 (%p80_p3), %s223_s29, 8 }
  0x14   : > { %s1242_s9 = scalar_lea.vmem (%p80_p3), %s1401_s1, %s1018_s30  ;;  %s1247_s10 = scalar_lea.vmem (%p80_p3), [#allocation4], %s967_s6 }
  0x15   : > { %v244_v0 = vld [vmem:[%s1242_s9] sm:$0xff] (%p80_p3)  ;;  %v246_v1 = vld [vmem:[%s1242_s9 + $0x8] sm:$0xff] (%p80_p3)  ;;  %v248_v2 = vld [vmem:[%s1242_s9 + $0x30] sm:$0xff] (%p80_p3) }
  0x16   : > { %245 = vst [vmem:[%s1247_s10] sm:$0xff] (%p80_p3), %v244_v0  ;;  %247 = vst [vmem:[%s1247_s10 + $0x8] sm:$0xff] (%p80_p3), %v246_v1  ;;  %v250_v3 = vld [vmem:[%s1242_s9 + $0x38] sm:$0xff] (%p80_p3)  ;;  %v252_v4 = vld [vmem:[%s1242_s9 + $0x60] sm:$0xff] (%p80_p3) }
  0x17   : > { %249 = vst [vmem:[%s1247_s10 + $0x10] sm:$0xff] (%p80_p3), %v248_v2  ;;  %v254_v5 = vld [vmem:[%s1242_s9 + $0x68] sm:$0xff] (%p80_p3)  ;;  %251 = vst [vmem:[%s1247_s10 + $0x18] sm:$0xff] (%p80_p3), %v250_v3  ;;  %v256_v6 = vld [vmem:[%s1242_s9 + $0x90] sm:$0xff] (%p80_p3) }
  0x18   : > { %253 = vst [vmem:[%s1247_s10 + $0x20] sm:$0xff] (%p80_p3), %v252_v4  ;;  %255 = vst [vmem:[%s1247_s10 + $0x28] sm:$0xff] (%p80_p3), %v254_v5  ;;  %v258_v7 = vld [vmem:[%s1242_s9 + $0x98] sm:$0xff] (%p80_p3)  ;;  %v260_v8 = vld [vmem:[%s1242_s9 + $0xc0] sm:$0xff] (%p80_p3) }
  0x19   : > { %257 = vst [vmem:[%s1247_s10 + $0x30] sm:$0xff] %v256_v6  ;;  %259 = vst [vmem:[%s1247_s10 + $0x38] sm:$0xff] %v258_v7  ;;  %v262_v9 = vld [vmem:[%s1242_s9 + $0xc8] sm:$0xff]  ;;  %v264_v10 = vld [vmem:[%s1242_s9 + $0xf0] sm:$0xff] }
  0x1a   : > { %261 = vst [vmem:[%s1247_s10 + $0x40] sm:$0xff] %v260_v8  ;;  %v266_v11 = vld [vmem:[%s1242_s9 + $0xf8] sm:$0xff]  ;;  %263 = vst [vmem:[%s1247_s10 + $0x48] sm:$0xff] %v262_v9  ;;  %v268_v12 = vld [vmem:[%s1242_s9 + $0x120] sm:$0xff] }
  0x1b   : > { %265 = vst [vmem:[%s1247_s10 + $0x50] sm:$0xff] %v264_v10  ;;  %267 = vst [vmem:[%s1247_s10 + $0x58] sm:$0xff] %v266_v11  ;;  %v270_v13 = vld [vmem:[%s1242_s9 + $0x128] sm:$0xff]  ;;  %v272_v14 = vld [vmem:[%s1242_s9 + $0x150] sm:$0xff] }
  0x1c   : > { %269 = vst [vmem:[%s1247_s10 + $0x60] sm:$0xff] %v268_v12  ;;  %271 = vst [vmem:[%s1247_s10 + $0x68] sm:$0xff] %v270_v13  ;;  %v274_v15 = vld [vmem:[%s1242_s9 + $0x158] sm:$0xff]  ;;  %v276_v16 = vld [vmem:[%s1242_s9 + $0x180] sm:$0xff] }
  0x1d   : > { %273 = vst [vmem:[%s1247_s10 + $0x70] sm:$0xff] %v272_v14  ;;  %v278_v17 = vld [vmem:[%s1242_s9 + $0x188] sm:$0xff]  ;;  %275 = vst [vmem:[%s1247_s10 + $0x78] sm:$0xff] %v274_v15  ;;  %v280_v18 = vld [vmem:[%s1242_s9 + $0x1b0] sm:$0xff] }
  0x1e   : > { %277 = vst [vmem:[%s1247_s10 + $0x80] sm:$0xff] %v276_v16  ;;  %279 = vst [vmem:[%s1247_s10 + $0x88] sm:$0xff] %v278_v17  ;;  %v282_v19 = vld [vmem:[%s1242_s9 + $0x1b8] sm:$0xff]  ;;  %v284_v20 = vld [vmem:[%s1242_s9 + $0x1e0] sm:$0xff] }
  0x1f   : > { %281 = vst [vmem:[%s1247_s10 + $0x90] sm:$0xff] %v280_v18  ;;  %283 = vst [vmem:[%s1247_s10 + $0x98] sm:$0xff] %v282_v19  ;;  %v286_v21 = vld [vmem:[%s1242_s9 + $0x1e8] sm:$0xff]  ;;  %v288_v22 = vld [vmem:[%s1242_s9 + $0x210] sm:$0xff] }
  0x20   : > { %285 = vst [vmem:[%s1247_s10 + $0xa0] sm:$0xff] %v284_v20  ;;  %v290_v23 = vld [vmem:[%s1242_s9 + $0x218] sm:$0xff]  ;;  %287 = vst [vmem:[%s1247_s10 + $0xa8] sm:$0xff] %v286_v21  ;;  %v292_v24 = vld [vmem:[%s1242_s9 + $0x240] sm:$0xff] }
  0x21   : > { %289 = vst [vmem:[%s1247_s10 + $0xb0] sm:$0xff] %v288_v22  ;;  %291 = vst [vmem:[%s1247_s10 + $0xb8] sm:$0xff] %v290_v23  ;;  %v294_v25 = vld [vmem:[%s1242_s9 + $0x248] sm:$0xff]  ;;  %v296_v26 = vld [vmem:[%s1242_s9 + $0x270] sm:$0xff] }
  0x22   : > { %293 = vst [vmem:[%s1247_s10 + $0xc0] sm:$0xff] %v292_v24  ;;  %295 = vst [vmem:[%s1247_s10 + $0xc8] sm:$0xff] %v294_v25  ;;  %v298_v27 = vld [vmem:[%s1242_s9 + $0x278] sm:$0xff]  ;;  %v300_v28 = vld [vmem:[%s1242_s9 + $0x2a0] sm:$0xff] }
  0x23   : > { %297 = vst [vmem:[%s1247_s10 + $0xd0] sm:$0xff] %v296_v26  ;;  %v302_v29 = vld [vmem:[%s1242_s9 + $0x2a8] sm:$0xff]  ;;  %299 = vst [vmem:[%s1247_s10 + $0xd8] sm:$0xff] %v298_v27  ;;  %v304_v30 = vld [vmem:[%s1242_s9 + $0x2d0] sm:$0xff] }
  0x24   : > { %301 = vst [vmem:[%s1247_s10 + $0xe0] sm:$0xff] %v300_v28  ;;  %303 = vst [vmem:[%s1247_s10 + $0xe8] sm:$0xff] %v302_v29  ;;  %v306_v31 = vld [vmem:[%s1242_s9 + $0x2d8] sm:$0xff] }
  0x25   : > { %305 = vst [vmem:[%s1247_s10 + $0xf0] sm:$0xff] %v304_v30  ;;  %307 = vst [vmem:[%s1247_s10 + $0xf8] sm:$0xff] %v306_v31 }
  0x26 PF: > { %p970_p8 = scmp.ge.s32.totalorder %s1160_s22, 1  ;;  %p320_p9 = scmp.lt.s32.totalorder %s1160_s22, 4 }
  0x28   : > { %p321_p10 = pnand %p970_p8, %p320_p9 }
  0x29   : > { %s327_s11 = sand.u32 (!%p321_p10), 1, %s1144_s18   ;;  %s973_s12 = sshll.u32 (!%p321_p10), %s1152_s20, 2  ;;  %v1162_v32 = vmov (!%p321_p10), 0.0  }
  0x2a   : > { %324 = sbr.rel (%p321_p10) target bundleno = 635 (0x27b), region = 59  ;;  %s971_s13 = sshll.u32 (!%p321_p10), %s327_s11, 8  ;;  %388 = vst [vmem:[#allocation2] sm:$0xff] (!%p321_p10), %v1162_v32  ;;  %389 = vst [vmem:[#allocation2 + $0x8] sm:$0xff] (!%p321_p10), %v1162_v32 }
  0x2b   : > { %s972_s14 = sshll.u32 (!%p321_p10), %s327_s11, 5  ;;  %390 = vst [vmem:[#allocation2 + $0x10] sm:$0xff] (!%p321_p10), %v1162_v32  ;;  %391 = vst [vmem:[#allocation2 + $0x18] sm:$0xff] (!%p321_p10), %v1162_v32  ;;  %p377_p11 = scmp.lt.s32.totalorder (!%p321_p10), %s973_s12, 11 }
  0x2c   : > { %392 = vst [vmem:[#allocation2 + $0x20] sm:$0xff] (!%p321_p10), %v1162_v32  ;;  %393 = vst [vmem:[#allocation2 + $0x28] sm:$0xff] (!%p321_p10), %v1162_v32  ;;  %s1320_s18 = scalar_lea.vmem (!%p321_p10), [#allocation4], %s971_s13  ;;  %s1322_s24 = scalar_lea.vmem (!%p321_p10), [#allocation5], %s972_s14 }
  0x2d   : > { %394 = vst [vmem:[#allocation2 + $0x30] sm:$0xff] (!%p321_p10), %v1162_v32  ;;  %395 = vst [vmem:[#allocation2 + $0x38] sm:$0xff] (!%p321_p10), %v1162_v32  ;;  %p974_p12 = scmp.ne.s32.totalorder (!%p321_p10), %s1152_s20, 0 }
  0x31   : > { %s1414_s12 = smov (!%p377_p11, %s973_s12), 11  ;;  %399 = sbr.rel (%p974_p12) target bundleno = 370 (0x172), region = 71 }
  0x32   : > { %s379_s17 = scalar_lea.vmem %s1402_s2, %s1414_s12  ;;  %v1025_v33 = vld [vmem:[%s1400_s0] sm:$0xff] (!%p974_p12)   ;;  %v412_v36 = vlaneseq (!%p974_p12) }
  0x33   : > { %v1026_v34 = vunpack.c.l.bf16 (!%p974_p12), %v1025_v33  ;;  %v1027_v35 = vunpack.c.h.bf16 (!%p974_p12), %v1025_v33  ;;  %v975_v55 = vld [vmem:[%s1403_s3] ss:$0 sm:$0xff] (!%p974_p12) }
  0x34   : > { %v413_v38 = vand.u32 (!%p974_p12), 127, %v412_v36  ;;  %v976_v57 = vld [vmem:[%s1404_s4] ss:$0 sm:$0xff] (!%p974_p12) }
  0x35   : > { %404 = vadd.xlane.f32.xlu0 (!%p974_p12), %v1026_v34 }
  0x36   : > { %vm414_vm0 = vcmp.lt.s32.totalorder (!%p974_p12), %v413_v38, 32 }
  0x39   : > { %406 = vadd.xlane.f32.xlu0 %v1027_v35 }
  0xc2   : > { %v405_v37 = vpop.xlane.xlu0 %404 }
  0xc3   : > { %v408_v39 = vmul.f32 0.03125, %v405_v37 }
  0xc5   : > { %v410_v40 = vsub.f32 %v1026_v34, %v408_v39 }
  0xc6   : > { %v407_v41 = vpop.xlane.xlu0 %406 }
  0xc7   : > { %v409_v42 = vmul.f32 0.03125, %v407_v41  ;;  %v415_v43 = vmul.f32 %v410_v40, %v410_v40 }
  0xc9   : > { %v411_v44 = vsub.f32 %v1027_v35, %v409_v42  ;;  %v417_v45 = vsel %vm414_vm0, %v415_v43, 0.0 }
  0xca   : > { %419 = vadd.xlane.f32.xlu1 %v417_v45 }
  0xcb   : > { %v416_v46 = vmul.f32 %v411_v44, %v411_v44 }
  0xcd   : > { %v418_v47 = vsel %vm414_vm0, %v416_v46, 0.0 }
  0xce   : > { %421 = vadd.xlane.f32.xlu1 %v418_v47 }
 0x157   : > { %v420_v48 = vpop.xlane.xlu1 %419 }
 0x158   : > { %v423_v49 = vmul.f32 0.03125, %v420_v48 }
 0x15a   : > { %v425_v50 = vadd.f32 1e-05, %v423_v49 }
 0x15b   : > { %v422_v51 = vpop.xlane.xlu1 %421 }
 0x15c   : > { %1070 = vrsqrt.f32 %v425_v50  ;;  %v424_v52 = vmul.f32 0.03125, %v422_v51 }
 0x15e   : > { %v426_v53 = vadd.f32 1e-05, %v424_v52 }
 0x160   : > { %1072 = vrsqrt.f32 %v426_v53 }
 0x166   : > { %v1071_v54 = vpop.eup %1070 }
 0x167   : > { %v429_v56 = vmul.f32 %v1071_v54, %v410_v40 }
 0x169   : > { %v438_v58 = vmul.f32 %v975_v55, %v429_v56 }
 0x16a   : > { %v1073_v59 = vpop.eup %1072 }
 0x16b   : > { %v447_v60 = vadd.f32 %v976_v57, %v438_v58  ;;  %v430_v61 = vmul.f32 %v1073_v59, %v411_v44 }
 0x16d   : > { %449 = vst [vmem:[#allocation3] sm:$0xff] %v447_v60  ;;  %v439_v62 = vmul.f32 %v975_v55, %v430_v61 }
 0x16f   : > { %v448_v63 = vadd.f32 %v976_v57, %v439_v62 }
 0x171   : > { %450 = vst [vmem:[#allocation3 + $0x8] sm:$0xff] %v448_v63 }
 0x172 PF: > { %v1074_v0 = vld [vmem:[%s1320_s18 + $0x4] ss:$16 sps:$4 sm:$0xff]   ;;  %v1076_v1 = vld [vmem:[%s1320_s18 + $0xc] ss:$16 sps:$4 sm:$0xff]   ;;  %v1163_v2 = vmov 0   ;;  %v769_v36 = vlaneseq  ;;  %s1023_s10 = sshll.u32 (%p1229_p6), %s1152_s20, 4 }
 0x173   : > { %686 = vmatprep.mubr.bf16.mxu0 %v1163_v2  ;;  %729 = vmatprep.mubr.bf16.mxu1 %v1163_v2  ;;  %v1078_v3 = vld [vmem:[%s1320_s18] ss:$16 sps:$4 sm:$0xff]   ;;  %v1079_v4 = vld [vmem:[%s1320_s18 + $0x8] ss:$16 sps:$4 sm:$0xff]   ;;  %v1080_v5 = vld [vmem:[%s1320_s18 + $0x24] ss:$16 sps:$4 sm:$0xff]   ;;  %s837_s13 = scalar_lea.vmem (%p1229_p6), %s1405_s5, %s1023_s10 }
 0x174   : > { %654 = vmatprep.subr.bf16.mxu0 %v1074_v0  ;;  %697 = vmatprep.subr.bf16.mxu1 %v1076_v1  ;;  %v1082_v6 = vld [vmem:[%s1320_s18 + $0x2c] ss:$16 sps:$4 sm:$0xff]   ;;  %v1084_v7 = vld [vmem:[%s1320_s18 + $0x20] ss:$16 sps:$4 sm:$0xff]   ;;  %v1085_v8 = vld [vmem:[%s1320_s18 + $0x28] ss:$16 sps:$4 sm:$0xff]  }
 0x175   : > { %655 = vmatpush1.bf16.msra.mxu0 %v1078_v3  ;;  %698 = vmatpush1.bf16.msra.mxu1 %v1079_v4  ;;  %v1086_v9 = vld [vmem:[%s1320_s18 + $0x44] ss:$16 sps:$4 sm:$0xff]   ;;  %v1088_v10 = vld [vmem:[%s1320_s18 + $0x4c] ss:$16 sps:$4 sm:$0xff]   ;;  %v1090_v11 = vld [vmem:[%s1320_s18 + $0x40] ss:$16 sps:$4 sm:$0xff]  }
 0x176   : > { %656 = vmatprep.subr.bf16.mxu0 %v1080_v5  ;;  %699 = vmatprep.subr.bf16.mxu1 %v1082_v6  ;;  %v1091_v12 = vld [vmem:[%s1320_s18 + $0x48] ss:$16 sps:$4 sm:$0xff]   ;;  %v1092_v13 = vld [vmem:[%s1320_s18 + $0x64] ss:$16 sps:$4 sm:$0xff]   ;;  %v1094_v14 = vld [vmem:[%s1320_s18 + $0x6c] ss:$16 sps:$4 sm:$0xff]  }
 0x177   : > { %v1096_v15 = vld [vmem:[%s1320_s18 + $0x60] ss:$16 sps:$4 sm:$0xff]   ;;  %v1097_v16 = vld [vmem:[%s1320_s18 + $0x68] ss:$16 sps:$4 sm:$0xff]   ;;  %v1098_v17 = vld [vmem:[%s1320_s18 + $0x84] ss:$16 sps:$4 sm:$0xff]  }
 0x178   : > { %v1100_v18 = vld [vmem:[%s1320_s18 + $0x8c] ss:$16 sps:$4 sm:$0xff]   ;;  %v1102_v19 = vld [vmem:[%s1320_s18 + $0x80] ss:$16 sps:$4 sm:$0xff]   ;;  %v1103_v20 = vld [vmem:[%s1320_s18 + $0x88] ss:$16 sps:$4 sm:$0xff]  }
 0x179   : > { %657 = vmatpush1.bf16.msra.mxu0 %v1084_v7  ;;  %700 = vmatpush1.bf16.msra.mxu1 %v1085_v8  ;;  %v1104_v21 = vld [vmem:[%s1320_s18 + $0xa4] ss:$16 sps:$4 sm:$0xff]   ;;  %v1106_v22 = vld [vmem:[%s1320_s18 + $0xac] ss:$16 sps:$4 sm:$0xff]   ;;  %v1108_v23 = vld [vmem:[%s1320_s18 + $0xa0] ss:$16 sps:$4 sm:$0xff]  }
 0x17a   : > { %658 = vmatprep.subr.bf16.mxu0 %v1086_v9  ;;  %701 = vmatprep.subr.bf16.mxu1 %v1088_v10  ;;  %v1109_v24 = vld [vmem:[%s1320_s18 + $0xa8] ss:$16 sps:$4 sm:$0xff]   ;;  %v1110_v25 = vld [vmem:[%s1320_s18 + $0xc4] ss:$16 sps:$4 sm:$0xff]   ;;  %v1112_v26 = vld [vmem:[%s1320_s18 + $0xcc] ss:$16 sps:$4 sm:$0xff]  }
 0x17b   : > { %v1114_v27 = vld [vmem:[%s1320_s18 + $0xc0] ss:$16 sps:$4 sm:$0xff]   ;;  %v1115_v28 = vld [vmem:[%s1320_s18 + $0xc8] ss:$16 sps:$4 sm:$0xff]   ;;  %v1116_v29 = vld [vmem:[%s1320_s18 + $0xe4] ss:$16 sps:$4 sm:$0xff]  }
 0x17c   : > { %v1118_v30 = vld [vmem:[%s1320_s18 + $0xec] ss:$16 sps:$4 sm:$0xff]   ;;  %v1120_v31 = vld [vmem:[%s1320_s18 + $0xe0] ss:$16 sps:$4 sm:$0xff]   ;;  %v1121_v32 = vld [vmem:[%s1320_s18 + $0xe8] ss:$16 sps:$4 sm:$0xff]  }
 0x17d   : > { %659 = vmatpush1.bf16.msra.mxu0 %v1090_v11  ;;  %702 = vmatpush1.bf16.msra.mxu1 %v1091_v12  ;;  %v451_v33 = vld [vmem:[#allocation3] sm:$0xff]  ;;  %v452_v34 = vld [vmem:[#allocation3 + $0x8] sm:$0xff]  ;;  %v770_v37 = vshrl.u32 %v769_v36, 7  ;;  %v456_v44 = vld [vmem:[#allocation2 + $0x10] sm:$0xff] }
 0x17e   : > { %660 = vmatprep.subr.bf16.mxu0 %v1092_v13  ;;  %703 = vmatprep.subr.bf16.mxu1 %v1094_v14  ;;  %v453_v35 = vpack.c.bf16 %v452_v34, %v451_v33  ;;  %v767_v40 = vld [vmem:[%s379_s17] sm:$0xf]  ;;  %v455_v47 = vld [vmem:[#allocation2 + $0x8] sm:$0xff]  ;;  %v457_v48 = vld [vmem:[#allocation2 + $0x18] sm:$0xff] }
 0x17f   : > { %v771_v38 = vsub.s32 0, %v770_v37  ;;  %v779_v39 = vsub.s32 2, %v770_v37  ;;  %v775_v41 = vsub.s32 1, %v770_v37  ;;  %v783_v42 = vsub.s32 3, %v770_v37  ;;  %v454_v43 = vld [vmem:[#allocation2] sm:$0xff]  ;;  %v460_v54 = vld [vmem:[#allocation2 + $0x30] sm:$0xff] }
 0x180   : > { %v458_v53 = vld [vmem:[#allocation2 + $0x20] sm:$0xff]  ;;  %v459_v59 = vld [vmem:[#allocation2 + $0x28] sm:$0xff]  ;;  %v461_v60 = vld [vmem:[#allocation2 + $0x38] sm:$0xff] }
 0x181   : > { %661 = vmatpush1.bf16.msra.mxu0 %v1096_v15  ;;  %704 = vmatpush1.bf16.msra.mxu1 %v1097_v16  ;;  %v772_v45 = vrot.slane %v767_v40, %v771_v38  ;;  %v780_v46 = vrot.slane %v767_v40, %v779_v39  ;;  %v776_v51 = vrot.slane %v767_v40, %v775_v41 }
 0x182   : > { %662 = vmatprep.subr.bf16.mxu0 %v1098_v17  ;;  %705 = vmatprep.subr.bf16.mxu1 %v1100_v18  ;;  %v784_v52 = vrot.slane %v767_v40, %v783_v42 }
 0x185   : > { %663 = vmatpush1.bf16.msra.mxu0 %v1102_v19  ;;  %706 = vmatpush1.bf16.msra.mxu1 %v1103_v20 }
 0x186   : > { %664 = vmatprep.subr.bf16.mxu0 %v1104_v21  ;;  %707 = vmatprep.subr.bf16.mxu1 %v1106_v22 }
 0x189   : > { %665 = vmatpush1.bf16.msra.mxu0 %v1108_v23  ;;  %708 = vmatpush1.bf16.msra.mxu1 %v1109_v24 }
 0x18a   : > { %666 = vmatprep.subr.bf16.mxu0 %v1110_v25  ;;  %709 = vmatprep.subr.bf16.mxu1 %v1112_v26 }
 0x18d   : > { %667 = vmatpush1.bf16.msra.mxu0 %v1114_v27  ;;  %710 = vmatpush1.bf16.msra.mxu1 %v1115_v28 }
 0x18e   : > { %668 = vmatprep.subr.bf16.mxu0 %v1116_v29  ;;  %711 = vmatprep.subr.bf16.mxu1 %v1118_v30 }
 0x191   : > { %669 = vmatpush1.bf16.msra.mxu0 %v1120_v31  ;;  %712 = vmatpush1.bf16.msra.mxu1 %v1121_v32 }
 0x194   : > { %687 = vmatmul.mubr.bf16.vlgmr.msra.gmra.mrb[0].mxu0 %v453_v35  ;;  %730 = vmatmul.mubr.bf16.vlgmr.msra.gmra.mrb[0].mxu1 %v453_v35 }
 0x267   : > { %v688_v49 = vpop.f32.mrb[0].mxu0  ;;  %v731_v50 = vpop.f32.mrb[0].mxu1 }
 0x268   : > { %v740_v55 = vadd.f32 %v688_v49, %v454_v43  ;;  %v742_v56 = vadd.f32 %v731_v50, %v456_v44  ;;  %v690_v57 = vpop.f32.mrb[1].mxu0  ;;  %v733_v58 = vpop.f32.mrb[1].mxu1 }
 0x269   : > { %v741_v61 = vadd.f32 %v690_v57, %v455_v47  ;;  %v743_v62 = vadd.f32 %v733_v58, %v457_v48  ;;  %v692_v63 = vpop.f32.mrb[2].mxu0  ;;  %v735_v0 = vpop.f32.mrb[2].mxu1 }
 0x26a   : > { %748 = vst [vmem:[#allocation2] sm:$0xff] %v740_v55  ;;  %v789_v1 = vadd.f32 %v772_v45, %v740_v55  ;;  %750 = vst [vmem:[#allocation2 + $0x10] sm:$0xff] %v742_v56  ;;  %v791_v2 = vadd.f32 %v780_v46, %v742_v56  ;;  %v744_v3 = vadd.f32 %v692_v63, %v458_v53  ;;  %v694_v5 = vpop.f32.mrb[3].mxu0  ;;  %v737_v6 = vpop.f32.mrb[3].mxu1 }
 0x26b   : > { %v746_v4 = vadd.f32 %v735_v0, %v460_v54  ;;  %749 = vst [vmem:[#allocation2 + $0x8] sm:$0xff] %v741_v61  ;;  %v790_v7 = vadd.f32 %v776_v51, %v741_v61  ;;  %751 = vst [vmem:[#allocation2 + $0x18] sm:$0xff] %v743_v62  ;;  %v792_v8 = vadd.f32 %v784_v52, %v743_v62 }
 0x26c   : > { %v745_v9 = vadd.f32 %v694_v5, %v459_v59  ;;  %v747_v10 = vadd.f32 %v737_v6, %v461_v60  ;;  %752 = vst [vmem:[#allocation2 + $0x20] sm:$0xff] %v744_v3  ;;  %v793_v11 = vadd.f32 %v772_v45, %v744_v3  ;;  %831 = sbr.rel (!%p1229_p6) target bundleno = 635 (0x27b), region = 79 }
 0x26d   : > { %754 = vst [vmem:[#allocation2 + $0x30] sm:$0xff] %v746_v4  ;;  %v795_v12 = vadd.f32 %v780_v46, %v746_v4  ;;  %v1019_v13 = vpack.c.bf16 %v790_v7, %v789_v1  ;;  %v1020_v14 = vpack.c.bf16 %v792_v8, %v791_v2 }
 0x26e   : > { %753 = vst [vmem:[#allocation2 + $0x28] sm:$0xff] %v745_v9  ;;  %v794_v15 = vadd.f32 %v776_v51, %v745_v9  ;;  %755 = vst [vmem:[#allocation2 + $0x38] sm:$0xff] %v747_v10  ;;  %v796_v16 = vadd.f32 %v784_v52, %v747_v10 }
 0x26f   : > { %821 = vst [vmem:[%s1322_s24] sm:$0xff] %v1019_v13  ;;  %822 = vst [vmem:[%s1322_s24 + $0x8] sm:$0xff] %v1020_v14 }
 0x270   : > { %v1021_v17 = vpack.c.bf16 %v794_v15, %v793_v11  ;;  %v1022_v18 = vpack.c.bf16 %v796_v16, %v795_v12 }
 0x272   : > { %823 = vst [vmem:[%s1322_s24 + $0x10] sm:$0xff] %v1021_v17  ;;  %824 = vst [vmem:[%s1322_s24 + $0x18] sm:$0xff] %v1022_v18 }
 0x276   : > { %v850_v19 = vld [vmem:[%s1322_s24] sm:$0xff]  ;;  %v852_v20 = vld [vmem:[%s1322_s24 + $0x8] sm:$0xff] }
 0x277   : > { %851 = vst [vmem:[%s837_s13] sm:$0xff] %v850_v19  ;;  %853 = vst [vmem:[%s837_s13 + $0x8] sm:$0xff] %v852_v20 }
 0x279   : > { %v854_v21 = vld [vmem:[%s1322_s24 + $0x10] sm:$0xff]  ;;  %v856_v22 = vld [vmem:[%s1322_s24 + $0x18] sm:$0xff] }
 0x27a   : > { %855 = vst [vmem:[%s837_s13 + $0x30] sm:$0xff] %v854_v21  ;;  %857 = vst [vmem:[%s837_s13 + $0x38] sm:$0xff] %v856_v22 }
 0x27b PF: > { %s15_s22 = sadd.s32 1, %s1160_s22   ;;  %s1407_s18 = smov %s1148_s19 }
 0x27c   : > { %p12_p13 = scmp.ge.s32.totalorder %s15_s22, 5   ;;  %s1408_s19 = smov %s1234_s28 }
 0x27d   : > { %s1409_s20 = smov %s1156_s21  ;;  %s1410_s21 = smov %s1412_s23 }
 0x27e   :  { %14 = sbr.rel (!%p12_p13) target bundleno = 3 (0x3), region = 139 }

// kernel: _lambda_.36
= control target key start
LH: loop header
LB: loop body
LE: loop exit
PB: predicated region body
PF: predicated region fallthrough
CT: control target
= control target key end

     0   :  { %s651_s12 = smov 0   ;;  %s653_s13 = smov 0   ;;  %s728_s0 = inlined_call_operand.vmem [shape: bf16[2,8,1536], index: 0, kind: input, shape index: {}, may-alias: {0,1,2}]   ;;  %s729_s1 = inlined_call_operand.vmem [shape: bf16[2,8,1536], index: 1, kind: input, shape index: {}, may-alias: {0,1,2}]   ;;  %s730_s2 = inlined_call_operand.vmem [shape: bf16[2,8,1536], index: 2, kind: input, shape index: {}, may-alias: {0,1,2}]   ;;  %s731_s3 = inlined_call_operand.vmem [shape: bf16[2,8,512], index: 3, kind: output, shape index: {}]  }
   0x1   :  { %s655_s14 = smov 0   ;;  %s657_s15 = smov 0  }
   0x2   :  { %s659_s16 = smov 0  }
   0x3 LB: > { %s22_s17 = sadd.s32 1, %s619_s14  ;;  %s25_s18 = sadd.s32 1, %s623_s15  ;;  %s627_s16 = sphi %s659_s16, %s13_s16   ;;  %s623_s15 = sphi %s657_s15, %s735_s15   ;;  %s619_s14 = sphi %s655_s14, %s734_s14   ;;  %s615_s13 = sphi %s653_s13, %s733_s13   ;;  %s611_s12 = sphi %s651_s12, %s732_s12  }
   0x4   : > { %p23_p0 = scmp.ge.s32.totalorder %s22_s17, 4  ;;  %p517_p1 = scmp.ge.s32.totalorder %s627_s16, 1 }
   0x5   : > { %p194_p2 = scmp.lt.s32.totalorder %s627_s16, 9 }
   0x6   : > { %s737_s17 = smov (%p23_p0, %s22_s17), 0  ;;  %s739_s18 = smov (!%p23_p0, %s25_s18), %s623_s15 }
   0x7   : > { %p195_p3 = pnand %p517_p1, %p194_p2  ;;  %p27_p4 = scmp.ge.s32.totalorder %s739_s18, 2 }
   0x8   : > { %p242_p5 = scmp.lt.s32.totalorder (!%p195_p3), %s615_s13, 1  ;;  %s250_s19 = sadd.s32 (!%p195_p3), 4, %s611_s12  ;;  %v629_v0 = vmov (!%p195_p3), 0.0   ;;  %vm630_vm0 = vmmov (!%p195_p3), 0   ;;  %v323_v3 = vlaneseq (!%p195_p3)  ;;  %vm329_vm2 = vcmask (!%p195_p3), 64512  }
   0x9   : > { %s741_s18 = smov (%p27_p4, %s739_s18), 0  ;;  %198 = sbr.rel (%p195_p3) target bundleno = 776 (0x308), region = 32 }
   0xa   : > { %530 = vmatprep.subr.bf16.mxu0 (!%p195_p3), %v629_v0  ;;  %p253_p6 = scmp.lt.s32.totalorder (!%p195_p3), %s250_s19, 11  ;;  %532 = vmatprep.mubr.msk.bf16.mxu0 (!%p195_p3), %vm630_vm0, %v629_v0  ;;  %p244_p7 = scmp.lt.s32.totalorder (!%p195_p3), %s611_s12, 11  ;;  %v324_v4 = vshrl.u32 (!%p195_p3), %v323_v3, 7  ;;  %v326_v5 = vand.u32 (!%p195_p3), 127, %v323_v3  ;;  %vm345_vm3 = vcmask (!%p195_p3), 1043456  }
   0xb   : > { %536 = vmatprep.subr.bf16.mxu1 (!%p195_p3), %v629_v0  ;;  %538 = vmatprep.mubr.msk.bf16.mxu1 (!%p195_p3), %vm630_vm0, %v629_v0  ;;  %s260_s5 = sadd.s32 (!%p195_p3), 8, %s611_s12  ;;  %p272_p9 = scmp.lt.s32.totalorder (!%p195_p3), %s611_s12, 3 }
   0xc   : > { %vm327_vm1 = vcmp.le.s32.totalorder (!%p195_p3), %v326_v5, %v324_v4  ;;  %p263_p8 = scmp.lt.s32.totalorder (!%p195_p3), %s260_s5, 11 }
  0x10   : > { %s743_s13 = smov (!%p242_p5, %s615_s13), 1  ;;  %s745_s19 = smov (!%p253_p6, %s250_s19), 11 }
  0x11   : > { %s688_s20 = smul.u32 12, %s743_s13  ;;  %s747_s5 = smov (!%p263_p8, %s260_s5), 11 }
  0x12   : > { %s245_s21 = scalar_select %p244_p7, %s611_s12, 11 }
  0x13   : > { %s256_s22 = sadd.s32 %s688_s20, %s745_s19  ;;  %s266_s6 = sadd.s32 %s688_s20, %s747_s5 }
  0x14   : > { %s519_s23 = sshll.u32 %s256_s22, 2  ;;  %s247_s24 = sadd.s32 %s688_s20, %s245_s21 }
  0x15   : > { %s258_s27 = scalar_lea.vmem %s729_s1, %s519_s23  ;;  %s518_s28 = sshll.u32 %s247_s24, 2 }
  0x16   : > { %v280_v1 = vld [vmem:[%s258_s27] sm:$0xf]  ;;  %s249_s4 = scalar_lea.vmem %s728_s0, %s518_s28  ;;  %s520_s7 = sshll.u32 %s266_s6, 2 }
  0x17   : > { %531 = vmatpush3.bf16.xpose.msra.mxu0 %v280_v1  ;;  %v279_v2 = vld [vmem:[%s249_s4] sm:$0xf]  ;;  %s268_s10 = scalar_lea.vmem %s730_s2, %s520_s7  ;;  %s749_s12 = smov (!%p272_p9, %s611_s12), 3 }
  0x18   : > { %v281_v18 = vld [vmem:[%s268_s10] sm:$0xf]  ;;  %s521_s11 = sshll.u32 %s743_s13, 2 }
  0x19   : > { %v347_v19 = vsel %vm345_vm3, %v281_v18, 0  ;;  %s275_s19 = sadd.s32 %s521_s11, %s749_s12 }
  0x1a   : > { %537 = vmatpush3.bf16.msra.mxu1 %v347_v19  ;;  %s522_s20 = sshll.u32 %s275_s19, 2 }
  0x1b   : > { %s277_s23 = scalar_lea.vmem %s731_s3, %s522_s20 }
  0x1e   : > { %533 = vmatmul.mubr.bf16.vlgmr.msra.gmra.mrb[0].mxu0 %v279_v2 }
  0xf1   : > { %v316_v6 = vpop.f32.mrb[0].mxu0 }
  0xf2   : > { %v322_v7 = vmul.f32 0.35355338, %v316_v6  ;;  %v534_v8 = vpop.f32.mrb[1].mxu0 }
  0xf3   : > { %v319_v9 = vpop.f32.mrb[2].mxu0 }
  0xf4   : > { %v535_v10 = vpop.f32.mrb[3].mxu0  ;;  %v328_v11 = vsel %vm327_vm1, %v322_v7, -1e+30 }
  0xf5   : > { %v330_v12 = vsel %vm329_vm2, %v328_v11, -inf }
  0xf6   : > { %331 = vmax.xlane.f32.xlu0 %v330_v12 }
 0x183   : > { %v332_v13 = vpop.xlane.xlu0 %331 }
 0x184   : > { %v333_v14 = vsub.f32 %v328_v11, %v332_v13 }
 0x186   : > { %v334_v15 = vmul.f32 1.442695, %v333_v14 }
 0x188   : > { %585 = vpow2.f32 %v334_v15 }
 0x192   : > { %v586_v16 = vpop.eup %585 }
 0x193   : > { %v336_v17 = vsel %vm329_vm2, %v586_v16, 0.0 }
 0x194   : > { %337 = vadd.xlane.f32.xlu0 %v336_v17 }
 0x221   : > { %v338_v20 = vpop.xlane.xlu0 %337 }
 0x222   : > { %587 = vrcp.f32 %v338_v20 }
 0x22c   : > { %v588_v21 = vpop.eup %587 }
 0x22d   : > { %v340_v22 = vmul.f32 %v588_v21, %v586_v16 }
 0x22f   : > { %v341_v23 = vpack.c.bf16 %v340_v22, %v340_v22 }
 0x231   : > { %539 = vmatmul.mubr.msk.bf16.vlgmr.msra.gmra.mrb[0].mxu1 %vm329_vm2, %v341_v23 }
 0x304   : > { %v383_v24 = vpop.f32.mrb[0].mxu1 }
 0x305   : > { %v389_v25 = vpack.c.bf16 %v383_v24, %v383_v24  ;;  %v540_v26 = vpop.f32.mrb[1].mxu1 }
 0x306   : > { %v386_v27 = vpop.f32.mrb[2].mxu1 }
 0x307   : > { %390 = vst [vmem:[%s277_s23] sm:$0xf] %v389_v25  ;;  %v541_v28 = vpop.f32.mrb[3].mxu1 }
 0x308 PF: > { %s13_s16 = sadd.s32 1, %s627_s16   ;;  %s732_s12 = smov %s619_s14 }
 0x309   : > { %p10_p10 = scmp.ge.s32.totalorder %s13_s16, 10   ;;  %s733_s13 = smov %s623_s15 }
 0x30a   : > { %s734_s14 = smov %s737_s17  ;;  %s735_s15 = smov %s741_s18 }
 0x30b   :  { %12 = sbr.rel (!%p10_p10) target bundleno = 3 (0x3), region = 68 }

// kernel: _lambda_.37
= control target key start
LH: loop header
LB: loop body
LE: loop exit
PB: predicated region body
PF: predicated region fallthrough
CT: control target
= control target key end

     0   :  { %s700_s1 = inlined_call_operand.vmem [shape: bf16[512,128], index: 1, kind: input, shape index: {}]   ;;  %s701_s0 = inlined_call_operand.vmem [shape: bf16[16,512], index: 0, kind: input, shape index: {}]   ;;  %s702_s2 = inlined_call_operand.vmem [shape: f32[1,128], index: 2, kind: input, shape index: {}]   ;;  %s703_s3 = inlined_call_operand.vmem [shape: bf16[16,128], index: 3, kind: input, shape index: {}]   ;;  %s704_s4 = inlined_call_operand.vmem [shape: bf16[16,128], index: 4, kind: output, shape index: {}]  }
   0x1   :  { %v520_v0 = vld [vmem:[%s700_s1 + $0x40] sm:$0xff]   ;;  %v524_v4 = vld [vmem:[%s700_s1 + $0x48] sm:$0xff]   ;;  %v528_v8 = vld [vmem:[%s700_s1 + $0x50] sm:$0xff]  }
   0x2   :  { %v521_v1 = vld [vmem:[%s700_s1 + $0xc0] sm:$0xff]   ;;  %476 = vmatprep.subr.bf16.mxu0 %v520_v0  ;;  %v525_v5 = vld [vmem:[%s700_s1 + $0xc8] sm:$0xff]   ;;  %v529_v9 = vld [vmem:[%s700_s1 + $0xd0] sm:$0xff]  }
   0x3   :  { %v522_v2 = vld [vmem:[%s700_s1] sm:$0xff]   ;;  %498 = vmatprep.subr.bf16.mxu1 %v521_v1  ;;  %v526_v6 = vld [vmem:[%s700_s1 + $0x8] sm:$0xff]   ;;  %v530_v10 = vld [vmem:[%s700_s1 + $0x10] sm:$0xff]  }
   0x4   :  { %v523_v3 = vld [vmem:[%s700_s1 + $0x80] sm:$0xff]   ;;  %477 = vmatpush3.bf16.msra.mxu0 %v522_v2  ;;  %v527_v7 = vld [vmem:[%s700_s1 + $0x88] sm:$0xff]   ;;  %v531_v11 = vld [vmem:[%s700_s1 + $0x90] sm:$0xff]  }
   0x5   :  { %499 = vmatpush3.bf16.msra.mxu1 %v523_v3  ;;  %478 = vmatprep.subr.bf16.mxu0 %v524_v4  ;;  %v532_v12 = vld [vmem:[%s700_s1 + $0x58] sm:$0xff]   ;;  %v536_v16 = vld [vmem:[%s700_s1 + $0x60] sm:$0xff]   ;;  %v540_v20 = vld [vmem:[%s700_s1 + $0x68] sm:$0xff]  }
   0x6   :  { %500 = vmatprep.subr.bf16.mxu1 %v525_v5  ;;  %v533_v13 = vld [vmem:[%s700_s1 + $0xd8] sm:$0xff]   ;;  %v537_v17 = vld [vmem:[%s700_s1 + $0xe0] sm:$0xff]   ;;  %v541_v21 = vld [vmem:[%s700_s1 + $0xe8] sm:$0xff]  }
   0x7   :  { %v534_v14 = vld [vmem:[%s700_s1 + $0x18] sm:$0xff]   ;;  %v538_v18 = vld [vmem:[%s700_s1 + $0x20] sm:$0xff]   ;;  %v542_v22 = vld [vmem:[%s700_s1 + $0x28] sm:$0xff]  }
   0x8   :  { %479 = vmatpush3.bf16.msra.mxu0 %v526_v6  ;;  %v535_v15 = vld [vmem:[%s700_s1 + $0x98] sm:$0xff]   ;;  %v539_v19 = vld [vmem:[%s700_s1 + $0xa0] sm:$0xff]   ;;  %v543_v23 = vld [vmem:[%s700_s1 + $0xa8] sm:$0xff]  }
   0x9   :  { %501 = vmatpush3.bf16.msra.mxu1 %v527_v7  ;;  %480 = vmatprep.subr.bf16.mxu0 %v528_v8  ;;  %v544_v24 = vld [vmem:[%s700_s1 + $0x70] sm:$0xff]   ;;  %v548_v28 = vld [vmem:[%s700_s1 + $0x78] sm:$0xff]   ;;  %v462_v45 = vld [vmem:[%s702_s2] ss:$0 sm:$0xff] }
   0xa   :  { %502 = vmatprep.subr.bf16.mxu1 %v529_v9  ;;  %v545_v25 = vld [vmem:[%s700_s1 + $0xf0] sm:$0xff]   ;;  %v549_v29 = vld [vmem:[%s700_s1 + $0xf8] sm:$0xff]   ;;  %v468_v46 = vld [vmem:[%s703_s3] sm:$0xff]  }
   0xb   :  { %v546_v26 = vld [vmem:[%s700_s1 + $0x30] sm:$0xff]   ;;  %v550_v30 = vld [vmem:[%s700_s1 + $0x38] sm:$0xff]   ;;  %v469_v52 = vunpack.c.l.bf16 %v468_v46  ;;  %v470_v54 = vunpack.c.h.bf16 %v468_v46 }
   0xc   :  { %481 = vmatpush3.bf16.msra.mxu0 %v530_v10  ;;  %v547_v27 = vld [vmem:[%s700_s1 + $0xb0] sm:$0xff]   ;;  %v551_v31 = vld [vmem:[%s700_s1 + $0xb8] sm:$0xff]  }
   0xd   :  { %503 = vmatpush3.bf16.msra.mxu1 %v531_v11  ;;  %482 = vmatprep.subr.bf16.mxu0 %v532_v12  ;;  %v552_v32 = vld [vmem:[%s701_s0] ss:$16 sps:$4 sm:$0xff]   ;;  %v554_v33 = vld [vmem:[%s701_s0 + $0x4] ss:$16 sps:$4 sm:$0xff]   ;;  %v555_v34 = vld [vmem:[%s701_s0 + $0x8] ss:$16 sps:$4 sm:$0xff]  }
   0xe   :  { %504 = vmatprep.subr.bf16.mxu1 %v533_v13  ;;  %v557_v35 = vld [vmem:[%s701_s0 + $0xc] ss:$16 sps:$4 sm:$0xff]   ;;  %338 = vmatprep.mubr.bf16.mxu0 %v554_v33 }
   0xf   :  { %379 = vmatprep.mubr.bf16.mxu1 %v557_v35 }
  0x10   :  { %483 = vmatpush3.bf16.msra.mxu0 %v534_v14 }
  0x11   :  { %505 = vmatpush3.bf16.msra.mxu1 %v535_v15  ;;  %484 = vmatprep.subr.bf16.mxu0 %v536_v16 }
  0x12   :  { %506 = vmatprep.subr.bf16.mxu1 %v537_v17 }
  0x14   :  { %485 = vmatpush3.bf16.msra.mxu0 %v538_v18 }
  0x15   :  { %507 = vmatpush3.bf16.msra.mxu1 %v539_v19  ;;  %486 = vmatprep.subr.bf16.mxu0 %v540_v20 }
  0x16   :  { %508 = vmatprep.subr.bf16.mxu1 %v541_v21 }
  0x18   :  { %487 = vmatpush3.bf16.msra.mxu0 %v542_v22 }
  0x19   :  { %509 = vmatpush3.bf16.msra.mxu1 %v543_v23  ;;  %488 = vmatprep.subr.bf16.mxu0 %v544_v24 }
  0x1a   :  { %510 = vmatprep.subr.bf16.mxu1 %v545_v25 }
  0x1c   :  { %489 = vmatpush3.bf16.msra.mxu0 %v546_v26 }
  0x1d   :  { %511 = vmatpush3.bf16.msra.mxu1 %v547_v27  ;;  %490 = vmatprep.subr.bf16.mxu0 %v548_v28 }
  0x1e   :  { %512 = vmatprep.subr.bf16.mxu1 %v549_v29 }
  0x20   :  { %491 = vmatpush3.bf16.msra.mxu0 %v550_v30 }
  0x21   :  { %513 = vmatpush3.bf16.msra.mxu1 %v551_v31 }
  0x23   :  { %339 = vmatmul.mubr.bf16.vlgmr.msra.gmra.mrb[0].mxu0 %v552_v32 }
  0x24   :  { %380 = vmatmul.mubr.bf16.vlgmr.msra.gmra.mrb[0].mxu1 %v555_v34 }
  0xf6   :  { %v492_v36 = vpop.f32.mrb[0].mxu0 }
  0xf7   :  { %v514_v37 = vpop.f32.mrb[0].mxu1  ;;  %v493_v38 = vpop.f32.mrb[1].mxu0 }
  0xf8   :  { %v494_v39 = vadd.f32 %v493_v38, %v492_v36  ;;  %v515_v40 = vpop.f32.mrb[1].mxu1  ;;  %v495_v41 = vpop.f32.mrb[2].mxu0 }
  0xf9   :  { %v516_v42 = vadd.f32 %v515_v40, %v514_v37  ;;  %v517_v43 = vpop.f32.mrb[2].mxu1  ;;  %v496_v44 = vpop.f32.mrb[3].mxu0 }
  0xfa   :  { %v497_v47 = vadd.f32 %v496_v44, %v495_v41  ;;  %v518_v48 = vpop.f32.mrb[3].mxu1 }
  0xfb   :  { %v382_v49 = vadd.f32 %v516_v42, %v494_v39  ;;  %v519_v50 = vadd.f32 %v518_v48, %v517_v43 }
  0xfd   :  { %v404_v51 = vadd.f32 %v462_v45, %v382_v49  ;;  %v385_v53 = vadd.f32 %v519_v50, %v497_v47 }
  0xff   :  { %v405_v55 = vadd.f32 %v462_v45, %v385_v53  ;;  %v410_v56 = vadd.f32 %v469_v52, %v404_v51 }
 0x101   :  { %v411_v57 = vadd.f32 %v470_v54, %v405_v55 }
 0x103   :  { %v474_v58 = vpack.c.bf16 %v411_v57, %v410_v56 }
 0x105   :  { %475 = vst [vmem:[%s704_s4] sm:$0xff] %v474_v58  }

// kernel: _lambda_.39
= control target key start
LH: loop header
LB: loop body
LE: loop exit
PB: predicated region body
PF: predicated region fallthrough
CT: control target
= control target key end

     0   :  { %s802_s12 = smov 0   ;;  %s804_s13 = smov 0   ;;  %s953_s0 = inlined_call_operand.vmem [shape: bf16[2,8,512], index: 0, kind: input, shape index: {}]   ;;  %s954_s1 = inlined_call_operand.vmem [shape: bf16[2,16,2048], index: 1, kind: input, shape index: {}, may-alias: {1,2}]   ;;  %s955_s2 = inlined_call_operand.vmem [shape: bf16[2,16,2048], index: 2, kind: input, shape index: {}, may-alias: {1,2}]   ;;  %s956_s3 = inlined_call_operand.vmem [shape: bf16[2,8,512], index: 3, kind: output, shape index: {}]  }
   0x1   :  { %s806_s14 = smov 0   ;;  %s808_s15 = smov 0  }
   0x2   :  { %s810_s16 = smov 0   ;;  %s812_s17 = smov 0  }
   0x3   :  { %s814_s18 = smov 0   ;;  %s816_s19 = smov 0  }
   0x4   :  { %s818_s20 = smov 0  }
   0x5 LB: > { %s22_s21 = sadd.s32 1, %s770_s18  ;;  %s25_s22 = sadd.s32 1, %s774_s19  ;;  %s778_s20 = sphi %s818_s20, %s13_s20   ;;  %s774_s19 = sphi %s816_s19, %s966_s19   ;;  %s770_s18 = sphi %s814_s18, %s965_s18   ;;  %s766_s17 = sphi %s812_s17, %s964_s17   ;;  %s762_s16 = sphi %s810_s16, %s963_s16   ;;  %s758_s15 = sphi %s808_s15, %s962_s15   ;;  %s754_s14 = sphi %s806_s14, %s961_s14   ;;  %s750_s13 = sphi %s804_s13, %s960_s13   ;;  %s746_s12 = sphi %s802_s12, %s959_s12  }
   0x6   : > { %p23_p0 = scmp.ge.s32.totalorder %s22_s21, 4  ;;  %p69_p1 = scmp.ne.s32.totalorder %s758_s15, %s754_s14 }
   0x7   : > { %p70_p2 = scmp.eq.s32.totalorder %s778_s20, 0  ;;  %s62_s23 = sadd.s32 1, %s758_s15 }
   0x8   : > { %s968_s21 = smov (%p23_p0, %s22_s21), 0  ;;  %s970_s22 = smov (!%p23_p0, %s25_s22), %s774_s19 }
   0x9   : > { %p858_p3 = por %p70_p2, %p69_p1  ;;  %p27_p4 = scmp.ge.s32.totalorder %s970_s22, 2 }
   0xa   : > { %s85_s25 = sadd.s32 4, %s770_s18  ;;  %s58_s26 = ssub.s32 %s770_s18, %s968_s21 }
   0xb   : > { %s86_s27 = sadd.s32 4, %s968_s21  ;;  %s972_s22 = smov (%p27_p4, %s970_s22), 0 }
   0xc   : > { %s88_s28 = ssub.s32 %s85_s25, %s86_s27  ;;  %p99_p5 = scmp.ne.s32.totalorder %s750_s13, %s746_s12 }
   0xd   : > { %s57_s29 = ssub.s32 %s774_s19, %s972_s22  ;;  %s92_s30 = sadd.s32 1, %s750_s13 }
   0xe   : > { %s59_s4 = sor.u32 %s58_s26, %s57_s29  ;;  %s89_s5 = sor.u32 %s88_s28, %s57_s29 }
   0xf   : > { %p60_p6 = scmp.eq.s32.totalorder %s59_s4, 0  ;;  %p90_p7 = scmp.eq.s32.totalorder %s89_s5, 0 }
  0x10   : > { %p875_p8 = por %p99_p5, %p70_p2  ;;  %p591_p9 = scmp.ge.s32.totalorder %s778_s20, 8 }
  0x11   : > { %s880_s7 = scalar_select %p60_p6, %s758_s15, %s62_s23  }
  0x12   : > { %s883_s8 = scalar_select %p90_p7, %s750_s13, %s92_s30  }
  0x13   : > { %153 = sbr.rel (%p591_p9) target bundleno = 42 (0x2a), region = 16 }
  0x1a   : > { %167 = sbr.rel (!%p858_p3) target bundleno = 34 (0x22), region = 24  ;;  %s169_s9 = sand.u32 (%p858_p3), 1, %s758_s15  }
  0x1b   : > { %s593_s10 = sshll.u32 (%p858_p3), %s774_s19, 5  ;;  %s592_s11 = sshll.u32 (%p858_p3), %s169_s9, 3 }
  0x1c   : > { %s173_s25 = sadd.s32 (%p858_p3), %s770_s18, %s593_s10  ;;  %s171_s29 = scalar_lea.vmem (%p858_p3), [#allocation2], %s592_s11 }
  0x1d   : > { %s594_s26 = sshll.u32 (%p858_p3), %s173_s25, 2 }
  0x1e   : > { %s175_s23 = scalar_lea.vmem (%p858_p3), %s954_s1, %s594_s26 }
  0x1f   : > { %v191_v0 = vld [vmem:[%s175_s23] sm:$0xf] (%p858_p3) }
  0x20   : > { %v193_v1 = vld [vmem:[%s175_s23 + $0x40] sm:$0xf] (%p858_p3)  ;;  %192 = vst [vmem:[%s171_s29] sm:$0xf] (%p858_p3), %v191_v0 }
  0x21   : > { %194 = vst [vmem:[%s171_s29 + $0x4] sm:$0xf] %v193_v1 }
  0x22 PF: > { %221 = sbr.rel (!%p875_p8) target bundleno = 42 (0x2a), region = 65  ;;  %s223_s24 = sand.u32 (%p875_p8), 1, %s750_s13  }
  0x23   : > { %s596_s30 = sshll.u32 (%p875_p8), %s774_s19, 5  ;;  %s595_s4 = sshll.u32 (%p875_p8), %s223_s24, 3 }
  0x24   : > { %s501_s5 = sadd.s32 (%p875_p8), %s770_s18, %s596_s30  ;;  %s225_s11 = scalar_lea.vmem (%p875_p8), [#allocation3], %s595_s4 }
  0x25   : > { %s597_s9 = sshll.u32 (%p875_p8), %s501_s5, 2 }
  0x26   : > { %s503_s26 = scalar_lea.vmem (%p875_p8), %s955_s2, %s597_s9 }
  0x27   : > { %v598_v2 = vld [vmem:[%s503_s26 + $0x10] sm:$0xf] (%p875_p8) }
  0x28   : > { %v599_v3 = vld [vmem:[%s503_s26 + $0x50] sm:$0xf] (%p875_p8)  ;;  %247 = vst [vmem:[%s225_s11] sm:$0xf] (%p875_p8), %v598_v2 }
  0x29   : > { %249 = vst [vmem:[%s225_s11 + $0x4] sm:$0xf] %v599_v3 }
  0x2a PF: > { %p600_p10 = scmp.ge.s32.totalorder %s778_s20, 1  ;;  %p275_p11 = scmp.lt.s32.totalorder %s778_s20, 9 }
  0x2c   : > { %p276_p12 = pnand %p600_p10, %p275_p11 }
  0x2d   : > { %s282_s6 = sand.u32 (!%p276_p12), 1, %s754_s14   ;;  %p327_p13 = scmp.lt.s32.totalorder (!%p276_p12), %s766_s17, 1  ;;  %v780_v4 = vmov (!%p276_p12), 0.0   ;;  %vm781_vm0 = vmmov (!%p276_p12), 0   ;;  %vm397_vm1 = vcmask (!%p276_p12), 130048  }
  0x2e   : > { %279 = sbr.rel (%p276_p12) target bundleno = 804 (0x324), region = 106  ;;  %616 = vmatprep.subr.bf16.mxu0 (!%p276_p12), %v780_v4  ;;  %s601_s27 = sshll.u32 (!%p276_p12), %s282_s6, 3  ;;  %618 = vmatprep.mubr.msk.bf16.mxu0 (!%p276_p12), %vm781_vm0, %v780_v4 }
  0x2f   : > { %p329_p0 = scmp.lt.s32.totalorder (!%p276_p12), %s762_s16, 3  ;;  %622 = vmatprep.subr.bf16.mxu1 (!%p276_p12), %v780_v4  ;;  %624 = vmatprep.mubr.msk.bf16.mxu1 (!%p276_p12), %vm781_vm0, %v780_v4  ;;  %s284_s28 = scalar_lea.vmem (!%p276_p12), [#allocation2], %s601_s27 }
  0x30   : > { %v702_v5 = vld [vmem:[%s284_s28] sm:$0xff] (!%p276_p12)  }
  0x31   : > { %617 = vmatpush3.bf16.xpose.msra.mxu0 (!%p276_p12), %v702_v5 }
  0x35   : > { %s974_s17 = smov (!%p327_p13, %s766_s17), 1  ;;  %s976_s16 = smov (!%p329_p0, %s762_s16), 3 }
  0x36   : > { %s603_s23 = sshll.u32 %s974_s17, 2 }
  0x37   : > { %s909_s29 = sadd.s32 %s603_s23, %s976_s16  ;;  %s289_s16 = sand.u32 1, %s746_s12  }
  0x38   : > { %s604_s14 = sshll.u32 %s909_s29, 2  ;;  %s602_s17 = sshll.u32 %s289_s16, 3 }
  0x39   : > { %s334_s4 = scalar_lea.vmem %s953_s0, %s604_s14  ;;  %s291_s5 = scalar_lea.vmem [#allocation3], %s602_s17 }
  0x3a   : > { %v345_v6 = vld [vmem:[%s334_s4] sm:$0xf]  ;;  %v703_v18 = vld [vmem:[%s291_s5] sm:$0xff]   ;;  %s343_s25 = scalar_lea.vmem %s956_s3, %s604_s14 }
  0x3b   : > { %619 = vmatmul.mubr.bf16.vlgmr.msra.gmra.mrb[0].mxu0 %v345_v6  ;;  %623 = vmatpush3.bf16.msra.mxu1 %v703_v18 }
 0x10e   : > { %v390_v7 = vpop.f32.mrb[0].mxu0 }
 0x10f   : > { %v396_v8 = vmul.f32 0.35355338, %v390_v7  ;;  %v620_v9 = vpop.f32.mrb[1].mxu0 }
 0x110   : > { %v393_v10 = vpop.f32.mrb[2].mxu0 }
 0x111   : > { %v621_v11 = vpop.f32.mrb[3].mxu0  ;;  %v398_v12 = vsel %vm397_vm1, %v396_v8, -inf }
 0x112   : > { %399 = vmax.xlane.f32.xlu0 %v398_v12 }
 0x19f   : > { %v400_v13 = vpop.xlane.xlu0 %399 }
 0x1a0   : > { %v401_v14 = vsub.f32 %v396_v8, %v400_v13 }
 0x1a2   : > { %v402_v15 = vmul.f32 1.442695, %v401_v14 }
 0x1a4   : > { %704 = vpow2.f32 %v402_v15 }
 0x1ae   : > { %v705_v16 = vpop.eup %704 }
 0x1af   : > { %v404_v17 = vsel %vm397_vm1, %v705_v16, 0.0 }
 0x1b0   : > { %405 = vadd.xlane.f32.xlu0 %v404_v17 }
 0x23d   : > { %v406_v19 = vpop.xlane.xlu0 %405 }
 0x23e   : > { %706 = vrcp.f32 %v406_v19 }
 0x248   : > { %v707_v20 = vpop.eup %706 }
 0x249   : > { %v408_v21 = vmul.f32 %v707_v20, %v705_v16 }
 0x24b   : > { %v409_v22 = vpack.c.bf16 %v408_v21, %v408_v21 }
 0x24d   : > { %625 = vmatmul.mubr.msk.bf16.vlgmr.msra.gmra.mrb[0].mxu1 %vm397_vm1, %v409_v22 }
 0x320   : > { %v453_v23 = vpop.f32.mrb[0].mxu1 }
 0x321   : > { %v459_v24 = vpack.c.bf16 %v453_v23, %v453_v23  ;;  %v626_v25 = vpop.f32.mrb[1].mxu1 }
 0x322   : > { %v456_v26 = vpop.f32.mrb[2].mxu1 }
 0x323   : > { %460 = vst [vmem:[%s343_s25] sm:$0xf] %v459_v24  ;;  %v627_v27 = vpop.f32.mrb[3].mxu1 }
 0x324 PF: > { %s13_s20 = sadd.s32 1, %s778_s20   ;;  %s959_s12 = smov %s750_s13 }
 0x325   : > { %p10_p1 = scmp.ge.s32.totalorder %s13_s20, 10   ;;  %s960_s13 = smov %s883_s8 }
 0x326   : > { %s961_s14 = smov %s758_s15  ;;  %s962_s15 = smov %s880_s7 }
 0x327   : > { %s963_s16 = smov %s770_s18  ;;  %s964_s17 = smov %s774_s19 }
 0x328   : > { %s965_s18 = smov %s968_s21  ;;  %s966_s19 = smov %s972_s22 }
 0x329   :  { %12 = sbr.rel (!%p10_p1) target bundleno = 5 (0x5), region = 160 }

// kernel: _lambda_.41
= control target key start
LH: loop header
LB: loop body
LE: loop exit
PB: predicated region body
PF: predicated region fallthrough
CT: control target
= control target key end

     0   :  { %v433_v3 = vmov 0.0   ;;  %v39_v5 = vlaneseq  ;;  %vm434_vm1 = vmmov 0   ;;  %s574_s0 = inlined_call_operand.vmem [shape: bf16[16,128], index: 0, kind: input, shape index: {}]   ;;  %s575_s1 = inlined_call_operand.vmem [shape: bf16[128,128], index: 1, kind: input, shape index: {}]   ;;  %s576_s3 = inlined_call_operand.vmem [shape: bf16[128,128], index: 3, kind: input, shape index: {}]   ;;  %s577_s5 = inlined_call_operand.vmem [shape: f32[1,128], index: 5, kind: input, shape index: {}]   ;;  %s578_s6 = inlined_call_operand.vmem [shape: f32[1,128], index: 6, kind: input, shape index: {}]   ;;  %s579_s2 = inlined_call_operand.vmem [shape: f32[1,128], index: 2, kind: input, shape index: {}]   ;;  %s580_s4 = inlined_call_operand.vmem [shape: f32[1,128], index: 4, kind: input, shape index: {}]   ;;  %s581_s7 = inlined_call_operand.vmem [shape: bf16[16,128], index: 7, kind: output, shape index: {}]  }
   0x1   :  { %v345_v0 = vld [vmem:[%s574_s0] sm:$0xff]   ;;  %371 = vmatprep.subr.bf16.mxu0 %v433_v3  ;;  %391 = vmatprep.subr.bf16.mxu1 %v433_v3  ;;  %v414_v17 = vld [vmem:[%s575_s1 + $0x8] sm:$0xff]   ;;  %v415_v18 = vld [vmem:[%s575_s1 + $0x10] sm:$0xff]  }
   0x2   :  { %v478_v1 = vunpack.c.l.bf16 %v345_v0  ;;  %v481_v2 = vunpack.c.h.bf16 %v345_v0  ;;  %v413_v4 = vld [vmem:[%s575_s1] sm:$0xff]   ;;  %v40_v7 = vand.u32 127, %v39_v5  ;;  %v416_v19 = vld [vmem:[%s575_s1 + $0x18] sm:$0xff]   ;;  %387 = vmatprep.mubr.msk.bf16.mxu0 %vm434_vm1, %v433_v3  ;;  %407 = vmatprep.mubr.msk.bf16.mxu1 %vm434_vm1, %v433_v3  ;;  %v418_v21 = vld [vmem:[%s575_s1 + $0x28] sm:$0xff]  }
   0x3   :  { %372 = vmatpush3.bf16.msra.mxu0 %v413_v4  ;;  %v417_v20 = vld [vmem:[%s575_s1 + $0x20] sm:$0xff]   ;;  %v419_v22 = vld [vmem:[%s575_s1 + $0x30] sm:$0xff]   ;;  %v420_v23 = vld [vmem:[%s575_s1 + $0x38] sm:$0xff]  }
   0x4   :  { %31 = vadd.xlane.f32.xlu0 %v478_v1  ;;  %373 = vmatprep.subr.bf16.mxu0 %v433_v3  ;;  %vm41_vm0 = vcmp.lt.s32.totalorder %v40_v7, 32  ;;  %v421_v24 = vld [vmem:[%s576_s3] sm:$0xff]   ;;  %v422_v25 = vld [vmem:[%s576_s3 + $0x8] sm:$0xff]   ;;  %v423_v26 = vld [vmem:[%s576_s3 + $0x10] sm:$0xff]  }
   0x5   :  { %392 = vmatpush3.bf16.msra.mxu1 %v421_v24  ;;  %v424_v27 = vld [vmem:[%s576_s3 + $0x18] sm:$0xff]   ;;  %v425_v28 = vld [vmem:[%s576_s3 + $0x20] sm:$0xff]   ;;  %v426_v29 = vld [vmem:[%s576_s3 + $0x28] sm:$0xff]  }
   0x6   :  { %393 = vmatprep.subr.bf16.mxu1 %v433_v3  ;;  %v320_v38 = vld [vmem:[%s577_s5] ss:$0 sm:$0xff]  ;;  %v427_v47 = vld [vmem:[%s576_s3 + $0x30] sm:$0xff]   ;;  %v428_v48 = vld [vmem:[%s576_s3 + $0x38] sm:$0xff]  }
   0x7   :  { %374 = vmatpush3.bf16.msra.mxu0 %v414_v17  ;;  %v321_v42 = vld [vmem:[%s578_s6] ss:$0 sm:$0xff] }
   0x8   :  { %33 = vadd.xlane.f32.xlu0 %v481_v2  ;;  %375 = vmatprep.subr.bf16.mxu0 %v433_v3  ;;  %v322_v49 = vld [vmem:[%s579_s2] ss:$0 sm:$0xff] }
   0x9   :  { %394 = vmatpush3.bf16.msra.mxu1 %v422_v25  ;;  %v331_v59 = vld [vmem:[%s580_s4] ss:$0 sm:$0xff] }
   0xa   :  { %395 = vmatprep.subr.bf16.mxu1 %v433_v3 }
   0xb   :  { %376 = vmatpush3.bf16.msra.mxu0 %v415_v18 }
   0xc   :  { %377 = vmatprep.subr.bf16.mxu0 %v433_v3 }
   0xd   :  { %396 = vmatpush3.bf16.msra.mxu1 %v423_v26 }
   0xe   :  { %397 = vmatprep.subr.bf16.mxu1 %v433_v3 }
   0xf   :  { %378 = vmatpush3.bf16.msra.mxu0 %v416_v19 }
  0x10   :  { %379 = vmatprep.subr.bf16.mxu0 %v433_v3 }
  0x11   :  { %398 = vmatpush3.bf16.msra.mxu1 %v424_v27 }
  0x12   :  { %399 = vmatprep.subr.bf16.mxu1 %v433_v3 }
  0x13   :  { %380 = vmatpush3.bf16.msra.mxu0 %v417_v20 }
  0x14   :  { %381 = vmatprep.subr.bf16.mxu0 %v433_v3 }
  0x15   :  { %400 = vmatpush3.bf16.msra.mxu1 %v425_v28 }
  0x16   :  { %401 = vmatprep.subr.bf16.mxu1 %v433_v3 }
  0x17   :  { %382 = vmatpush3.bf16.msra.mxu0 %v418_v21 }
  0x18   :  { %383 = vmatprep.subr.bf16.mxu0 %v433_v3 }
  0x19   :  { %402 = vmatpush3.bf16.msra.mxu1 %v426_v29 }
  0x1a   :  { %403 = vmatprep.subr.bf16.mxu1 %v433_v3 }
  0x1b   :  { %384 = vmatpush3.bf16.msra.mxu0 %v419_v22 }
  0x1c   :  { %385 = vmatprep.subr.bf16.mxu0 %v433_v3 }
  0x1d   :  { %404 = vmatpush3.bf16.msra.mxu1 %v427_v47 }
  0x1e   :  { %405 = vmatprep.subr.bf16.mxu1 %v433_v3 }
  0x1f   :  { %386 = vmatpush3.bf16.msra.mxu0 %v420_v23 }
  0x21   :  { %406 = vmatpush3.bf16.msra.mxu1 %v428_v48 }
  0x91   :  { %v32_v6 = vpop.xlane.xlu0 %31 }
  0x92   :  { %v35_v8 = vmul.f32 0.03125, %v32_v6 }
  0x94   :  { %v491_v9 = vsub.f32 %v478_v1, %v35_v8 }
  0x95   :  { %v34_v10 = vpop.xlane.xlu0 %33 }
  0x96   :  { %v36_v11 = vmul.f32 0.03125, %v34_v10  ;;  %v42_v12 = vmul.f32 %v491_v9, %v491_v9 }
  0x98   :  { %v38_v13 = vsub.f32 %v481_v2, %v36_v11  ;;  %v44_v14 = vsel %vm41_vm0, %v42_v12, 0.0 }
  0x99   :  { %46 = vadd.xlane.f32.xlu1 %v44_v14 }
  0x9a   :  { %v43_v15 = vmul.f32 %v38_v13, %v38_v13 }
  0x9c   :  { %v45_v16 = vsel %vm41_vm0, %v43_v15, 0.0 }
  0x9d   :  { %48 = vadd.xlane.f32.xlu1 %v45_v16 }
 0x126   :  { %v47_v30 = vpop.xlane.xlu1 %46 }
 0x127   :  { %v50_v31 = vmul.f32 0.03125, %v47_v30 }
 0x129   :  { %v52_v32 = vadd.f32 1e-05, %v50_v31 }
 0x12a   :  { %v49_v33 = vpop.xlane.xlu1 %48 }
 0x12b   :  { %429 = vrsqrt.f32 %v52_v32  ;;  %v51_v34 = vmul.f32 0.03125, %v49_v33 }
 0x12d   :  { %v53_v35 = vadd.f32 1e-05, %v51_v34 }
 0x12f   :  { %431 = vrsqrt.f32 %v53_v35 }
 0x135   :  { %v430_v36 = vpop.eup %429 }
 0x136   :  { %v56_v37 = vmul.f32 %v430_v36, %v491_v9 }
 0x138   :  { %v65_v41 = vmul.f32 %v320_v38, %v56_v37 }
 0x139   :  { %v432_v39 = vpop.eup %431 }
 0x13a   :  { %v57_v40 = vmul.f32 %v432_v39, %v38_v13  ;;  %v74_v44 = vadd.f32 %v321_v42, %v65_v41 }
 0x13c   :  { %v66_v43 = vmul.f32 %v320_v38, %v57_v40 }
 0x13e   :  { %v75_v45 = vadd.f32 %v321_v42, %v66_v43 }
 0x140   :  { %v76_v46 = vpack.c.bf16 %v75_v45, %v74_v44 }
 0x142   :  { %388 = vmatmul.mubr.bf16.vlgmr.msra.gmra.mrb[0].mxu0 %v76_v46 }
 0x215   :  { %v182_v50 = vpop.f32.mrb[0].mxu0 }
 0x216   :  { %v183_v51 = vadd.f32 %v322_v49, %v182_v50  ;;  %v389_v52 = vpop.f32.mrb[1].mxu0 }
 0x217   :  { %v185_v53 = vpop.f32.mrb[2].mxu0 }
 0x218   :  { %v186_v54 = vadd.f32 %v322_v49, %v185_v53  ;;  %v390_v55 = vpop.f32.mrb[3].mxu0  ;;  %v189_v56 = vmax.f32 %v183_v51, 0.0 }
 0x21a   :  { %v190_v57 = vmax.f32 %v186_v54, 0.0 }
 0x21c   :  { %v191_v58 = vpack.c.bf16 %v190_v57, %v189_v56 }
 0x21e   :  { %408 = vmatmul.mubr.bf16.vlgmr.msra.gmra.mrb[0].mxu1 %v191_v58 }
 0x2f1   :  { %v297_v60 = vpop.f32.mrb[0].mxu1 }
 0x2f2   :  { %v298_v61 = vadd.f32 %v331_v59, %v297_v60  ;;  %v409_v62 = vpop.f32.mrb[1].mxu1 }
 0x2f3   :  { %v300_v63 = vpop.f32.mrb[2].mxu1 }
 0x2f4   :  { %v301_v0 = vadd.f32 %v331_v59, %v300_v63  ;;  %v410_v3 = vpop.f32.mrb[3].mxu1  ;;  %v304_v4 = vadd.f32 %v478_v1, %v298_v61 }
 0x2f6   :  { %v305_v5 = vadd.f32 %v481_v2, %v301_v0 }
 0x2f8   :  { %v351_v6 = vpack.c.bf16 %v305_v5, %v304_v4 }
 0x2fa   :  { %352 = vst [vmem:[%s581_s7] sm:$0xff] %v351_v6  }

// kernel: _lambda_.46
= control target key start
LH: loop header
LB: loop body
LE: loop exit
PB: predicated region body
PF: predicated region fallthrough
CT: control target
= control target key end

     0   :  { %s809_s12 = smov 0   ;;  %s811_s13 = smov 0   ;;  %s960_s0 = inlined_call_operand.vmem [shape: bf16[2,8,512], index: 0, kind: input, shape index: {}]   ;;  %s961_s1 = inlined_call_operand.vmem [shape: bf16[2,16,2048], index: 1, kind: input, shape index: {}, may-alias: {1,2}]   ;;  %s962_s2 = inlined_call_operand.vmem [shape: bf16[2,16,2048], index: 2, kind: input, shape index: {}, may-alias: {1,2}]   ;;  %s963_s3 = inlined_call_operand.vmem [shape: bf16[2,8,512], index: 3, kind: output, shape index: {}]  }
   0x1   :  { %s813_s14 = smov 0   ;;  %s815_s15 = smov 0  }
   0x2   :  { %s817_s16 = smov 0   ;;  %s819_s17 = smov 0  }
   0x3   :  { %s821_s18 = smov 0   ;;  %s823_s19 = smov 0  }
   0x4   :  { %s825_s20 = smov 0  }
   0x5 LB: > { %s22_s21 = sadd.s32 1, %s777_s18  ;;  %s25_s22 = sadd.s32 1, %s781_s19  ;;  %s785_s20 = sphi %s825_s20, %s13_s20   ;;  %s781_s19 = sphi %s823_s19, %s973_s19   ;;  %s777_s18 = sphi %s821_s18, %s972_s18   ;;  %s773_s17 = sphi %s819_s17, %s971_s17   ;;  %s769_s16 = sphi %s817_s16, %s970_s16   ;;  %s765_s15 = sphi %s815_s15, %s969_s15   ;;  %s761_s14 = sphi %s813_s14, %s968_s14   ;;  %s757_s13 = sphi %s811_s13, %s967_s13   ;;  %s753_s12 = sphi %s809_s12, %s966_s12  }
   0x6   : > { %p23_p0 = scmp.ge.s32.totalorder %s22_s21, 4  ;;  %s57_s23 = sadd.s32 8, %s777_s18 }
   0x7   : > { %s64_s24 = sadd.s32 1, %s765_s15  ;;  %p71_p1 = scmp.ne.s32.totalorder %s765_s15, %s761_s14 }
   0x8   : > { %s975_s21 = smov (%p23_p0, %s22_s21), 0  ;;  %s977_s22 = smov (!%p23_p0, %s25_s22), %s781_s19 }
   0x9   : > { %s58_s25 = sadd.s32 8, %s975_s21  ;;  %p72_p2 = scmp.eq.s32.totalorder %s785_s20, 0 }
   0xa   : > { %p27_p3 = scmp.ge.s32.totalorder %s977_s22, 2  ;;  %s60_s26 = ssub.s32 %s57_s23, %s58_s25 }
   0xb   : > { %p867_p4 = por %p72_p2, %p71_p1  ;;  %s87_s28 = sadd.s32 12, %s777_s18 }
   0xc   : > { %s979_s22 = smov (%p27_p3, %s977_s22), 0  ;;  %s88_s29 = sadd.s32 12, %s975_s21 }
   0xd   : > { %s94_s30 = sadd.s32 1, %s757_s13  ;;  %s59_s4 = ssub.s32 %s781_s19, %s979_s22 }
   0xe   : > { %s90_s5 = ssub.s32 %s87_s28, %s88_s29  ;;  %s61_s6 = sor.u32 %s60_s26, %s59_s4 }
   0xf   : > { %s91_s7 = sor.u32 %s90_s5, %s59_s4  ;;  %p62_p5 = scmp.eq.s32.totalorder %s61_s6, 0 }
  0x10   : > { %p92_p6 = scmp.eq.s32.totalorder %s91_s7, 0  ;;  %p101_p7 = scmp.ne.s32.totalorder %s757_s13, %s753_s12 }
  0x11   : > { %s881_s8 = scalar_select %p62_p5, %s765_s15, %s64_s24  }
  0x12   : > { %s884_s9 = scalar_select %p92_p6, %s757_s13, %s94_s30  }
  0x13   : > { %p888_p8 = por %p101_p7, %p72_p2  ;;  %p596_p9 = scmp.ge.s32.totalorder %s785_s20, 8 }
  0x15   : > { %155 = sbr.rel (%p596_p9) target bundleno = 44 (0x2c), region = 16 }
  0x1c   : > { %169 = sbr.rel (!%p867_p4) target bundleno = 36 (0x24), region = 24  ;;  %s171_s11 = sand.u32 (%p867_p4), 1, %s765_s15  }
  0x1d   : > { %s598_s23 = sshll.u32 (%p867_p4), %s781_s19, 5  ;;  %s597_s24 = sshll.u32 (%p867_p4), %s171_s11, 3 }
  0x1e   : > { %s499_s25 = sadd.s32 (%p867_p4), %s777_s18, %s598_s23  ;;  %s173_s4 = scalar_lea.vmem (%p867_p4), [#allocation2], %s597_s24 }
  0x1f   : > { %s599_s26 = sshll.u32 (%p867_p4), %s499_s25, 2 }
  0x20   : > { %s501_s30 = scalar_lea.vmem (%p867_p4), %s961_s1, %s599_s26 }
  0x21   : > { %v600_v0 = vld [vmem:[%s501_s30 + $0x20] sm:$0xf] (%p867_p4) }
  0x22   : > { %v601_v1 = vld [vmem:[%s501_s30 + $0x60] sm:$0xf] (%p867_p4)  ;;  %195 = vst [vmem:[%s173_s4] sm:$0xf] (%p867_p4), %v600_v0 }
  0x23   : > { %197 = vst [vmem:[%s173_s4 + $0x4] sm:$0xf] %v601_v1 }
  0x24 PF: > { %224 = sbr.rel (!%p888_p8) target bundleno = 44 (0x2c), region = 65  ;;  %s226_s27 = sand.u32 (%p888_p8), 1, %s757_s13  }
  0x25   : > { %s603_s5 = sshll.u32 (%p888_p8), %s781_s19, 5  ;;  %s602_s6 = sshll.u32 (%p888_p8), %s226_s27, 3 }
  0x26   : > { %s506_s7 = sadd.s32 (%p888_p8), %s777_s18, %s603_s5  ;;  %s228_s24 = scalar_lea.vmem (%p888_p8), [#allocation3], %s602_s6 }
  0x27   : > { %s604_s11 = sshll.u32 (%p888_p8), %s506_s7, 2 }
  0x28   : > { %s508_s26 = scalar_lea.vmem (%p888_p8), %s962_s2, %s604_s11 }
  0x29   : > { %v605_v2 = vld [vmem:[%s508_s26 + $0x30] sm:$0xf] (%p888_p8) }
  0x2a   : > { %v606_v3 = vld [vmem:[%s508_s26 + $0x70] sm:$0xf] (%p888_p8)  ;;  %250 = vst [vmem:[%s228_s24] sm:$0xf] (%p888_p8), %v605_v2 }
  0x2b   : > { %252 = vst [vmem:[%s228_s24 + $0x4] sm:$0xf] %v606_v3 }
  0x2c PF: > { %p607_p10 = scmp.ge.s32.totalorder %s785_s20, 1  ;;  %p278_p11 = scmp.lt.s32.totalorder %s785_s20, 9 }
  0x2e   : > { %p279_p12 = pnand %p607_p10, %p278_p11 }
  0x2f   : > { %s285_s10 = sand.u32 (!%p279_p12), 1, %s761_s14   ;;  %p330_p13 = scmp.lt.s32.totalorder (!%p279_p12), %s773_s17, 1  ;;  %v787_v4 = vmov (!%p279_p12), 0.0   ;;  %vm788_vm0 = vmmov (!%p279_p12), 0   ;;  %vm401_vm1 = vcmask (!%p279_p12), 130048  }
  0x30   : > { %282 = sbr.rel (%p279_p12) target bundleno = 806 (0x326), region = 106  ;;  %623 = vmatprep.subr.bf16.mxu0 (!%p279_p12), %v787_v4  ;;  %s608_s28 = sshll.u32 (!%p279_p12), %s285_s10, 3  ;;  %625 = vmatprep.mubr.msk.bf16.mxu0 (!%p279_p12), %vm788_vm0, %v787_v4 }
  0x31   : > { %p332_p0 = scmp.lt.s32.totalorder (!%p279_p12), %s769_s16, 3  ;;  %629 = vmatprep.subr.bf16.mxu1 (!%p279_p12), %v787_v4  ;;  %631 = vmatprep.mubr.msk.bf16.mxu1 (!%p279_p12), %vm788_vm0, %v787_v4  ;;  %s287_s29 = scalar_lea.vmem (!%p279_p12), [#allocation2], %s608_s28 }
  0x32   : > { %v709_v5 = vld [vmem:[%s287_s29] sm:$0xff] (!%p279_p12)  }
  0x33   : > { %624 = vmatpush3.bf16.xpose.msra.mxu0 (!%p279_p12), %v709_v5 }
  0x37   : > { %s981_s17 = smov (!%p330_p13, %s773_s17), 1  ;;  %s983_s16 = smov (!%p332_p0, %s769_s16), 3 }
  0x38   : > { %s610_s30 = sshll.u32 %s981_s17, 2 }
  0x39   : > { %s916_s4 = sadd.s32 %s610_s30, %s983_s16  ;;  %s292_s16 = sand.u32 1, %s753_s12  }
  0x3a   : > { %s611_s14 = sshll.u32 %s916_s4, 2  ;;  %s609_s17 = sshll.u32 %s292_s16, 3 }
  0x3b   : > { %s337_s6 = scalar_lea.vmem %s960_s0, %s611_s14  ;;  %s294_s7 = scalar_lea.vmem [#allocation3], %s609_s17 }
  0x3c   : > { %v349_v6 = vld [vmem:[%s337_s6] sm:$0xf]  ;;  %v710_v18 = vld [vmem:[%s294_s7] sm:$0xff]   ;;  %s347_s25 = scalar_lea.vmem %s963_s3, %s611_s14 }
  0x3d   : > { %626 = vmatmul.mubr.bf16.vlgmr.msra.gmra.mrb[0].mxu0 %v349_v6  ;;  %630 = vmatpush3.bf16.msra.mxu1 %v710_v18 }
 0x110   : > { %v394_v7 = vpop.f32.mrb[0].mxu0 }
 0x111   : > { %v400_v8 = vmul.f32 0.35355338, %v394_v7  ;;  %v627_v9 = vpop.f32.mrb[1].mxu0 }
 0x112   : > { %v397_v10 = vpop.f32.mrb[2].mxu0 }
 0x113   : > { %v628_v11 = vpop.f32.mrb[3].mxu0  ;;  %v402_v12 = vsel %vm401_vm1, %v400_v8, -inf }
 0x114   : > { %403 = vmax.xlane.f32.xlu0 %v402_v12 }
 0x1a1   : > { %v404_v13 = vpop.xlane.xlu0 %403 }
 0x1a2   : > { %v405_v14 = vsub.f32 %v400_v8, %v404_v13 }
 0x1a4   : > { %v406_v15 = vmul.f32 1.442695, %v405_v14 }
 0x1a6   : > { %711 = vpow2.f32 %v406_v15 }
 0x1b0   : > { %v712_v16 = vpop.eup %711 }
 0x1b1   : > { %v408_v17 = vsel %vm401_vm1, %v712_v16, 0.0 }
 0x1b2   : > { %409 = vadd.xlane.f32.xlu0 %v408_v17 }
 0x23f   : > { %v410_v19 = vpop.xlane.xlu0 %409 }
 0x240   : > { %713 = vrcp.f32 %v410_v19 }
 0x24a   : > { %v714_v20 = vpop.eup %713 }
 0x24b   : > { %v412_v21 = vmul.f32 %v714_v20, %v712_v16 }
 0x24d   : > { %v413_v22 = vpack.c.bf16 %v412_v21, %v412_v21 }
 0x24f   : > { %632 = vmatmul.mubr.msk.bf16.vlgmr.msra.gmra.mrb[0].mxu1 %vm401_vm1, %v413_v22 }
 0x322   : > { %v457_v23 = vpop.f32.mrb[0].mxu1 }
 0x323   : > { %v463_v24 = vpack.c.bf16 %v457_v23, %v457_v23  ;;  %v633_v25 = vpop.f32.mrb[1].mxu1 }
 0x324   : > { %v460_v26 = vpop.f32.mrb[2].mxu1 }
 0x325   : > { %464 = vst [vmem:[%s347_s25] sm:$0xf] %v463_v24  ;;  %v634_v27 = vpop.f32.mrb[3].mxu1 }
 0x326 PF: > { %s13_s20 = sadd.s32 1, %s785_s20   ;;  %s966_s12 = smov %s757_s13 }
 0x327   : > { %p10_p1 = scmp.ge.s32.totalorder %s13_s20, 10   ;;  %s967_s13 = smov %s884_s9 }
 0x328   : > { %s968_s14 = smov %s765_s15  ;;  %s969_s15 = smov %s881_s8 }
 0x329   : > { %s970_s16 = smov %s777_s18  ;;  %s971_s17 = smov %s781_s19 }
 0x32a   : > { %s972_s18 = smov %s975_s21  ;;  %s973_s19 = smov %s979_s22 }
 0x32b   :  { %12 = sbr.rel (!%p10_p1) target bundleno = 5 (0x5), region = 160 }

// kernel: _lambda_.38
= control target key start
LH: loop header
LB: loop body
LE: loop exit
PB: predicated region body
PF: predicated region fallthrough
CT: control target
= control target key end

     0   :  { %v49_v9 = vlaneseq  ;;  %v565_v41 = vmov 0   ;;  %s728_s0 = inlined_call_operand.vmem [shape: bf16[16,128], index: 0, kind: input, shape index: {}]   ;;  %s729_s1 = inlined_call_operand.vmem [shape: bf16[128,512], index: 1, kind: input, shape index: {}]   ;;  %s730_s3 = inlined_call_operand.vmem [shape: f32[1,128], index: 3, kind: input, shape index: {}]   ;;  %s731_s4 = inlined_call_operand.vmem [shape: f32[1,128], index: 4, kind: input, shape index: {}]   ;;  %s732_s2 = inlined_call_operand.vmem [shape: f32[1,512], index: 2, kind: input, shape index: {}]   ;;  %s733_s5 = inlined_call_operand.vmem [shape: bf16[16,512], index: 5, kind: output, shape index: {}]  }
   0x1   :  { %v509_v0 = vld [vmem:[%s728_s0] sm:$0xff]   ;;  %v515_v4 = vld [vmem:[%s729_s1 + $0xc] ss:$16 sps:$4 sm:$0xff]   ;;  %v518_v6 = vld [vmem:[%s729_s1 + $0x8] ss:$16 sps:$4 sm:$0xff]   ;;  %323 = vmatprep.mubr.bf16.mxu0 %v565_v41  ;;  %366 = vmatprep.mubr.bf16.mxu1 %v565_v41 }
   0x2   :  { %v510_v1 = vunpack.c.l.bf16 %v509_v0  ;;  %v511_v2 = vunpack.c.h.bf16 %v509_v0  ;;  %v513_v3 = vld [vmem:[%s729_s1 + $0x4] ss:$16 sps:$4 sm:$0xff]   ;;  %v517_v5 = vld [vmem:[%s729_s1] ss:$16 sps:$4 sm:$0xff]   ;;  %334 = vmatprep.subr.bf16.mxu1 %v515_v4  ;;  %v521_v8 = vld [vmem:[%s729_s1 + $0x2c] ss:$16 sps:$4 sm:$0xff]  }
   0x3   :  { %291 = vmatprep.subr.bf16.mxu0 %v513_v3  ;;  %v519_v7 = vld [vmem:[%s729_s1 + $0x24] ss:$16 sps:$4 sm:$0xff]   ;;  %335 = vmatpush1.bf16.msra.mxu1 %v518_v6  ;;  %v50_v11 = vand.u32 127, %v49_v9  ;;  %v523_v21 = vld [vmem:[%s729_s1 + $0x20] ss:$16 sps:$4 sm:$0xff]  }
   0x4   :  { %41 = vadd.xlane.f32.xlu0 %v510_v1  ;;  %292 = vmatpush1.bf16.msra.mxu0 %v517_v5  ;;  %v524_v22 = vld [vmem:[%s729_s1 + $0x28] ss:$16 sps:$4 sm:$0xff]   ;;  %v525_v23 = vld [vmem:[%s729_s1 + $0x44] ss:$16 sps:$4 sm:$0xff]   ;;  %v527_v24 = vld [vmem:[%s729_s1 + $0x4c] ss:$16 sps:$4 sm:$0xff]  }
   0x5   :  { %293 = vmatprep.subr.bf16.mxu0 %v519_v7  ;;  %336 = vmatprep.subr.bf16.mxu1 %v521_v8  ;;  %vm51_vm0 = vcmp.lt.s32.totalorder %v50_v11, 32  ;;  %v529_v25 = vld [vmem:[%s729_s1 + $0x40] ss:$16 sps:$4 sm:$0xff]   ;;  %v530_v26 = vld [vmem:[%s729_s1 + $0x48] ss:$16 sps:$4 sm:$0xff]  }
   0x6   :  { %v531_v27 = vld [vmem:[%s729_s1 + $0x64] ss:$16 sps:$4 sm:$0xff]   ;;  %v533_v28 = vld [vmem:[%s729_s1 + $0x6c] ss:$16 sps:$4 sm:$0xff]   ;;  %v535_v29 = vld [vmem:[%s729_s1 + $0x60] ss:$16 sps:$4 sm:$0xff]  }
   0x7   :  { %337 = vmatpush1.bf16.msra.mxu1 %v524_v22  ;;  %v536_v30 = vld [vmem:[%s729_s1 + $0x68] ss:$16 sps:$4 sm:$0xff]   ;;  %v537_v31 = vld [vmem:[%s729_s1 + $0x84] ss:$16 sps:$4 sm:$0xff]   ;;  %v539_v32 = vld [vmem:[%s729_s1 + $0x8c] ss:$16 sps:$4 sm:$0xff]  }
   0x8   :  { %43 = vadd.xlane.f32.xlu0 %v511_v2  ;;  %294 = vmatpush1.bf16.msra.mxu0 %v523_v21  ;;  %v541_v33 = vld [vmem:[%s729_s1 + $0x80] ss:$16 sps:$4 sm:$0xff]   ;;  %v542_v34 = vld [vmem:[%s729_s1 + $0x88] ss:$16 sps:$4 sm:$0xff]   ;;  %v543_v35 = vld [vmem:[%s729_s1 + $0xa4] ss:$16 sps:$4 sm:$0xff]  }
   0x9   :  { %295 = vmatprep.subr.bf16.mxu0 %v525_v23  ;;  %338 = vmatprep.subr.bf16.mxu1 %v527_v24  ;;  %v545_v36 = vld [vmem:[%s729_s1 + $0xac] ss:$16 sps:$4 sm:$0xff]   ;;  %v547_v37 = vld [vmem:[%s729_s1 + $0xa0] ss:$16 sps:$4 sm:$0xff]   ;;  %v548_v38 = vld [vmem:[%s729_s1 + $0xa8] ss:$16 sps:$4 sm:$0xff]  }
   0xa   :  { %v549_v39 = vld [vmem:[%s729_s1 + $0xc4] ss:$16 sps:$4 sm:$0xff]   ;;  %v551_v40 = vld [vmem:[%s729_s1 + $0xcc] ss:$16 sps:$4 sm:$0xff]   ;;  %v553_v42 = vld [vmem:[%s729_s1 + $0xc0] ss:$16 sps:$4 sm:$0xff]  }
   0xb   :  { %339 = vmatpush1.bf16.msra.mxu1 %v530_v26  ;;  %v554_v43 = vld [vmem:[%s729_s1 + $0xc8] ss:$16 sps:$4 sm:$0xff]   ;;  %v555_v44 = vld [vmem:[%s729_s1 + $0xe4] ss:$16 sps:$4 sm:$0xff]   ;;  %v557_v45 = vld [vmem:[%s729_s1 + $0xec] ss:$16 sps:$4 sm:$0xff]  }
   0xc   :  { %296 = vmatpush1.bf16.msra.mxu0 %v529_v25  ;;  %340 = vmatprep.subr.bf16.mxu1 %v533_v28  ;;  %v559_v46 = vld [vmem:[%s729_s1 + $0xe0] ss:$16 sps:$4 sm:$0xff]   ;;  %v560_v47 = vld [vmem:[%s729_s1 + $0xe8] ss:$16 sps:$4 sm:$0xff]  }
   0xd   :  { %297 = vmatprep.subr.bf16.mxu0 %v531_v27  ;;  %v466_v56 = vld [vmem:[%s730_s3] ss:$0 sm:$0xff] }
   0xe   :  { %v467_v60 = vld [vmem:[%s731_s4] ss:$0 sm:$0xff] }
   0xf   :  { %341 = vmatpush1.bf16.msra.mxu1 %v536_v30  ;;  %v404_v4 = vld [vmem:[%s732_s2] sm:$0xf] }
  0x10   :  { %298 = vmatpush1.bf16.msra.mxu0 %v535_v29  ;;  %342 = vmatprep.subr.bf16.mxu1 %v539_v32 }
  0x11   :  { %299 = vmatprep.subr.bf16.mxu0 %v537_v31 }
  0x13   :  { %343 = vmatpush1.bf16.msra.mxu1 %v542_v34 }
  0x14   :  { %300 = vmatpush1.bf16.msra.mxu0 %v541_v33  ;;  %344 = vmatprep.subr.bf16.mxu1 %v545_v36 }
  0x15   :  { %301 = vmatprep.subr.bf16.mxu0 %v543_v35 }
  0x17   :  { %345 = vmatpush1.bf16.msra.mxu1 %v548_v38 }
  0x18   :  { %302 = vmatpush1.bf16.msra.mxu0 %v547_v37  ;;  %346 = vmatprep.subr.bf16.mxu1 %v551_v40 }
  0x19   :  { %303 = vmatprep.subr.bf16.mxu0 %v549_v39 }
  0x1b   :  { %347 = vmatpush1.bf16.msra.mxu1 %v554_v43 }
  0x1c   :  { %304 = vmatpush1.bf16.msra.mxu0 %v553_v42  ;;  %348 = vmatprep.subr.bf16.mxu1 %v557_v45 }
  0x1d   :  { %305 = vmatprep.subr.bf16.mxu0 %v555_v44 }
  0x1f   :  { %349 = vmatpush1.bf16.msra.mxu1 %v560_v47 }
  0x20   :  { %306 = vmatpush1.bf16.msra.mxu0 %v559_v46 }
  0x91   :  { %v42_v10 = vpop.xlane.xlu0 %41 }
  0x92   :  { %v45_v12 = vmul.f32 0.03125, %v42_v10 }
  0x94   :  { %v618_v13 = vsub.f32 %v510_v1, %v45_v12  ;;  %v407_v1 = vshrl.u32 %v49_v9, 7 }
  0x95   :  { %v44_v14 = vpop.xlane.xlu0 %43 }
  0x96   :  { %v46_v15 = vmul.f32 0.03125, %v44_v14  ;;  %v52_v16 = vmul.f32 %v618_v13, %v618_v13  ;;  %v416_v3 = vsub.s32 2, %v407_v1  ;;  %v412_v5 = vsub.s32 1, %v407_v1 }
  0x97   :  { %v420_v6 = vsub.s32 3, %v407_v1 }
  0x98   :  { %v622_v17 = vsub.f32 %v511_v2, %v46_v15  ;;  %v54_v18 = vsel %vm51_vm0, %v52_v16, 0.0  ;;  %v408_v2 = vsub.s32 0, %v407_v1  ;;  %v417_v8 = vrot.slane %v404_v4, %v416_v3 }
  0x99   :  { %56 = vadd.xlane.f32.xlu1 %v54_v18  ;;  %v413_v10 = vrot.slane %v404_v4, %v412_v5  ;;  %v421_v11 = vrot.slane %v404_v4, %v420_v6 }
  0x9a   :  { %v53_v19 = vmul.f32 %v622_v17, %v622_v17  ;;  %v409_v7 = vrot.slane %v404_v4, %v408_v2 }
  0x9c   :  { %v55_v20 = vsel %vm51_vm0, %v53_v19, 0.0 }
  0x9d   :  { %58 = vadd.xlane.f32.xlu1 %v55_v20 }
 0x126   :  { %v57_v48 = vpop.xlane.xlu1 %56 }
 0x127   :  { %v60_v49 = vmul.f32 0.03125, %v57_v48 }
 0x129   :  { %v62_v50 = vadd.f32 1e-05, %v60_v49 }
 0x12a   :  { %v59_v51 = vpop.xlane.xlu1 %58 }
 0x12b   :  { %561 = vrsqrt.f32 %v62_v50  ;;  %v61_v52 = vmul.f32 0.03125, %v59_v51 }
 0x12d   :  { %v63_v53 = vadd.f32 1e-05, %v61_v52 }
 0x12f   :  { %563 = vrsqrt.f32 %v63_v53 }
 0x135   :  { %v562_v54 = vpop.eup %561 }
 0x136   :  { %v66_v55 = vmul.f32 %v562_v54, %v618_v13 }
 0x138   :  { %v75_v59 = vmul.f32 %v466_v56, %v66_v55 }
 0x139   :  { %v564_v57 = vpop.eup %563 }
 0x13a   :  { %v67_v58 = vmul.f32 %v564_v57, %v622_v17  ;;  %v84_v62 = vadd.f32 %v467_v60, %v75_v59 }
 0x13c   :  { %v76_v61 = vmul.f32 %v466_v56, %v67_v58 }
 0x13e   :  { %v85_v63 = vadd.f32 %v467_v60, %v76_v61 }
 0x140   :  { %v90_v0 = vpack.c.bf16 %v85_v63, %v84_v62 }
 0x142   :  { %324 = vmatmul.mubr.bf16.vlgmr.msra.gmra.mrb[0].mxu0 %v90_v0  ;;  %367 = vmatmul.mubr.bf16.vlgmr.msra.gmra.mrb[0].mxu1 %v90_v0 }
 0x215   :  { %v325_v12 = vpop.f32.mrb[0].mxu0  ;;  %v368_v13 = vpop.f32.mrb[0].mxu1 }
 0x216   :  { %v426_v14 = vadd.f32 %v409_v7, %v325_v12  ;;  %v428_v15 = vadd.f32 %v417_v8, %v368_v13  ;;  %v327_v16 = vpop.f32.mrb[1].mxu0  ;;  %v370_v17 = vpop.f32.mrb[1].mxu1 }
 0x217   :  { %v427_v18 = vadd.f32 %v413_v10, %v327_v16  ;;  %v429_v9 = vadd.f32 %v421_v11, %v370_v17  ;;  %v329_v19 = vpop.f32.mrb[2].mxu0  ;;  %v372_v20 = vpop.f32.mrb[2].mxu1 }
 0x218   :  { %v430_v21 = vadd.f32 %v409_v7, %v329_v19  ;;  %v432_v22 = vadd.f32 %v417_v8, %v372_v20  ;;  %v331_v23 = vpop.f32.mrb[3].mxu0  ;;  %v374_v24 = vpop.f32.mrb[3].mxu1 }
 0x219   :  { %v504_v25 = vpack.c.bf16 %v427_v18, %v426_v14  ;;  %v505_v26 = vpack.c.bf16 %v429_v9, %v428_v15  ;;  %v431_v27 = vadd.f32 %v413_v10, %v331_v23  ;;  %v433_v28 = vadd.f32 %v421_v11, %v374_v24 }
 0x21b   :  { %458 = vst [vmem:[%s733_s5] sm:$0xff] %v504_v25  ;;  %459 = vst [vmem:[%s733_s5 + $0x8] sm:$0xff] %v505_v26  ;;  %v506_v29 = vpack.c.bf16 %v431_v27, %v430_v21  ;;  %v507_v30 = vpack.c.bf16 %v433_v28, %v432_v22 }
 0x21d   :  { %460 = vst [vmem:[%s733_s5 + $0x10] sm:$0xff] %v506_v29  ;;  %461 = vst [vmem:[%s733_s5 + $0x18] sm:$0xff] %v507_v30 }

// kernel: _lambda_.49
= control target key start
LH: loop header
LB: loop body
LE: loop exit
PB: predicated region body
PF: predicated region fallthrough
CT: control target
= control target key end

     0   :  { %v414_v3 = vmov 0.0   ;;  %v39_v5 = vlaneseq  ;;  %vm415_vm1 = vmmov 0   ;;  %s548_s0 = inlined_call_operand.vmem [shape: bf16[16,128], index: 0, kind: input, shape index: {}]   ;;  %s549_s1 = inlined_call_operand.vmem [shape: bf16[128,128], index: 1, kind: input, shape index: {}]   ;;  %s550_s3 = inlined_call_operand.vmem [shape: bf16[128,128], index: 3, kind: input, shape index: {}]   ;;  %s551_s5 = inlined_call_operand.vmem [shape: f32[1,128], index: 5, kind: input, shape index: {}]   ;;  %s552_s6 = inlined_call_operand.vmem [shape: f32[1,128], index: 6, kind: input, shape index: {}]   ;;  %s553_s2 = inlined_call_operand.vmem [shape: f32[1,128], index: 2, kind: input, shape index: {}]   ;;  %s554_s4 = inlined_call_operand.vmem [shape: f32[1,128], index: 4, kind: input, shape index: {}]   ;;  %s555_s7 = inlined_call_operand.vmem [shape: f32[16,128], index: 7, kind: output, shape index: {}]  }
   0x1   :  { %v331_v0 = vld [vmem:[%s548_s0] sm:$0xff]   ;;  %352 = vmatprep.subr.bf16.mxu0 %v414_v3  ;;  %372 = vmatprep.subr.bf16.mxu1 %v414_v3  ;;  %v395_v17 = vld [vmem:[%s549_s1 + $0x8] sm:$0xff]   ;;  %v396_v18 = vld [vmem:[%s549_s1 + $0x10] sm:$0xff]  }
   0x2   :  { %v332_v1 = vunpack.c.l.bf16 %v331_v0  ;;  %v333_v2 = vunpack.c.h.bf16 %v331_v0  ;;  %v394_v4 = vld [vmem:[%s549_s1] sm:$0xff]   ;;  %v40_v7 = vand.u32 127, %v39_v5  ;;  %v397_v19 = vld [vmem:[%s549_s1 + $0x18] sm:$0xff]   ;;  %368 = vmatprep.mubr.msk.bf16.mxu0 %vm415_vm1, %v414_v3  ;;  %388 = vmatprep.mubr.msk.bf16.mxu1 %vm415_vm1, %v414_v3  ;;  %v399_v21 = vld [vmem:[%s549_s1 + $0x28] sm:$0xff]  }
   0x3   :  { %353 = vmatpush3.bf16.msra.mxu0 %v394_v4  ;;  %v398_v20 = vld [vmem:[%s549_s1 + $0x20] sm:$0xff]   ;;  %v400_v22 = vld [vmem:[%s549_s1 + $0x30] sm:$0xff]   ;;  %v401_v23 = vld [vmem:[%s549_s1 + $0x38] sm:$0xff]  }
   0x4   :  { %31 = vadd.xlane.f32.xlu0 %v332_v1  ;;  %354 = vmatprep.subr.bf16.mxu0 %v414_v3  ;;  %vm41_vm0 = vcmp.lt.s32.totalorder %v40_v7, 32  ;;  %v402_v24 = vld [vmem:[%s550_s3] sm:$0xff]   ;;  %v403_v25 = vld [vmem:[%s550_s3 + $0x8] sm:$0xff]   ;;  %v404_v26 = vld [vmem:[%s550_s3 + $0x10] sm:$0xff]  }
   0x5   :  { %373 = vmatpush3.bf16.msra.mxu1 %v402_v24  ;;  %v405_v27 = vld [vmem:[%s550_s3 + $0x18] sm:$0xff]   ;;  %v406_v28 = vld [vmem:[%s550_s3 + $0x20] sm:$0xff]   ;;  %v407_v29 = vld [vmem:[%s550_s3 + $0x28] sm:$0xff]  }
   0x6   :  { %374 = vmatprep.subr.bf16.mxu1 %v414_v3  ;;  %v310_v38 = vld [vmem:[%s551_s5] ss:$0 sm:$0xff]  ;;  %v408_v47 = vld [vmem:[%s550_s3 + $0x30] sm:$0xff]   ;;  %v409_v48 = vld [vmem:[%s550_s3 + $0x38] sm:$0xff]  }
   0x7   :  { %355 = vmatpush3.bf16.msra.mxu0 %v395_v17  ;;  %v311_v42 = vld [vmem:[%s552_s6] ss:$0 sm:$0xff] }
   0x8   :  { %33 = vadd.xlane.f32.xlu0 %v333_v2  ;;  %356 = vmatprep.subr.bf16.mxu0 %v414_v3  ;;  %v312_v49 = vld [vmem:[%s553_s2] ss:$0 sm:$0xff] }
   0x9   :  { %375 = vmatpush3.bf16.msra.mxu1 %v403_v25  ;;  %v321_v59 = vld [vmem:[%s554_s4] ss:$0 sm:$0xff] }
   0xa   :  { %376 = vmatprep.subr.bf16.mxu1 %v414_v3 }
   0xb   :  { %357 = vmatpush3.bf16.msra.mxu0 %v396_v18 }
   0xc   :  { %358 = vmatprep.subr.bf16.mxu0 %v414_v3 }
   0xd   :  { %377 = vmatpush3.bf16.msra.mxu1 %v404_v26 }
   0xe   :  { %378 = vmatprep.subr.bf16.mxu1 %v414_v3 }
   0xf   :  { %359 = vmatpush3.bf16.msra.mxu0 %v397_v19 }
  0x10   :  { %360 = vmatprep.subr.bf16.mxu0 %v414_v3 }
  0x11   :  { %379 = vmatpush3.bf16.msra.mxu1 %v405_v27 }
  0x12   :  { %380 = vmatprep.subr.bf16.mxu1 %v414_v3 }
  0x13   :  { %361 = vmatpush3.bf16.msra.mxu0 %v398_v20 }
  0x14   :  { %362 = vmatprep.subr.bf16.mxu0 %v414_v3 }
  0x15   :  { %381 = vmatpush3.bf16.msra.mxu1 %v406_v28 }
  0x16   :  { %382 = vmatprep.subr.bf16.mxu1 %v414_v3 }
  0x17   :  { %363 = vmatpush3.bf16.msra.mxu0 %v399_v21 }
  0x18   :  { %364 = vmatprep.subr.bf16.mxu0 %v414_v3 }
  0x19   :  { %383 = vmatpush3.bf16.msra.mxu1 %v407_v29 }
  0x1a   :  { %384 = vmatprep.subr.bf16.mxu1 %v414_v3 }
  0x1b   :  { %365 = vmatpush3.bf16.msra.mxu0 %v400_v22 }
  0x1c   :  { %366 = vmatprep.subr.bf16.mxu0 %v414_v3 }
  0x1d   :  { %385 = vmatpush3.bf16.msra.mxu1 %v408_v47 }
  0x1e   :  { %386 = vmatprep.subr.bf16.mxu1 %v414_v3 }
  0x1f   :  { %367 = vmatpush3.bf16.msra.mxu0 %v401_v23 }
  0x21   :  { %387 = vmatpush3.bf16.msra.mxu1 %v409_v48 }
  0x91   :  { %v32_v6 = vpop.xlane.xlu0 %31 }
  0x92   :  { %v35_v8 = vmul.f32 0.03125, %v32_v6 }
  0x94   :  { %v465_v9 = vsub.f32 %v332_v1, %v35_v8 }
  0x95   :  { %v34_v10 = vpop.xlane.xlu0 %33 }
  0x96   :  { %v36_v11 = vmul.f32 0.03125, %v34_v10  ;;  %v42_v12 = vmul.f32 %v465_v9, %v465_v9 }
  0x98   :  { %v38_v13 = vsub.f32 %v333_v2, %v36_v11  ;;  %v44_v14 = vsel %vm41_vm0, %v42_v12, 0.0 }
  0x99   :  { %46 = vadd.xlane.f32.xlu1 %v44_v14 }
  0x9a   :  { %v43_v15 = vmul.f32 %v38_v13, %v38_v13 }
  0x9c   :  { %v45_v16 = vsel %vm41_vm0, %v43_v15, 0.0 }
  0x9d   :  { %48 = vadd.xlane.f32.xlu1 %v45_v16 }
 0x126   :  { %v47_v30 = vpop.xlane.xlu1 %46 }
 0x127   :  { %v50_v31 = vmul.f32 0.03125, %v47_v30 }
 0x129   :  { %v52_v32 = vadd.f32 1e-05, %v50_v31 }
 0x12a   :  { %v49_v33 = vpop.xlane.xlu1 %48 }
 0x12b   :  { %410 = vrsqrt.f32 %v52_v32  ;;  %v51_v34 = vmul.f32 0.03125, %v49_v33 }
 0x12d   :  { %v53_v35 = vadd.f32 1e-05, %v51_v34 }
 0x12f   :  { %412 = vrsqrt.f32 %v53_v35 }
 0x135   :  { %v411_v36 = vpop.eup %410 }
 0x136   :  { %v56_v37 = vmul.f32 %v411_v36, %v465_v9 }
 0x138   :  { %v65_v41 = vmul.f32 %v310_v38, %v56_v37 }
 0x139   :  { %v413_v39 = vpop.eup %412 }
 0x13a   :  { %v57_v40 = vmul.f32 %v413_v39, %v38_v13  ;;  %v74_v44 = vadd.f32 %v311_v42, %v65_v41 }
 0x13c   :  { %v66_v43 = vmul.f32 %v310_v38, %v57_v40 }
 0x13e   :  { %v75_v45 = vadd.f32 %v311_v42, %v66_v43 }
 0x140   :  { %v76_v46 = vpack.c.bf16 %v75_v45, %v74_v44 }
 0x142   :  { %369 = vmatmul.mubr.bf16.vlgmr.msra.gmra.mrb[0].mxu0 %v76_v46 }
 0x215   :  { %v182_v50 = vpop.f32.mrb[0].mxu0 }
 0x216   :  { %v183_v51 = vadd.f32 %v312_v49, %v182_v50  ;;  %v370_v52 = vpop.f32.mrb[1].mxu0 }
 0x217   :  { %v185_v53 = vpop.f32.mrb[2].mxu0 }
 0x218   :  { %v186_v54 = vadd.f32 %v312_v49, %v185_v53  ;;  %v371_v55 = vpop.f32.mrb[3].mxu0  ;;  %v189_v56 = vmax.f32 %v183_v51, 0.0 }
 0x21a   :  { %v190_v57 = vmax.f32 %v186_v54, 0.0 }
 0x21c   :  { %v191_v58 = vpack.c.bf16 %v190_v57, %v189_v56 }
 0x21e   :  { %389 = vmatmul.mubr.bf16.vlgmr.msra.gmra.mrb[0].mxu1 %v191_v58 }
 0x2f1   :  { %v297_v60 = vpop.f32.mrb[0].mxu1 }
 0x2f2   :  { %v298_v61 = vadd.f32 %v321_v59, %v297_v60  ;;  %v390_v62 = vpop.f32.mrb[1].mxu1 }
 0x2f3   :  { %v300_v63 = vpop.f32.mrb[2].mxu1 }
 0x2f4   :  { %304 = vst [vmem:[%s555_s7] sm:$0xff] %v298_v61  ;;  %v301_v0 = vadd.f32 %v321_v59, %v300_v63  ;;  %v391_v1 = vpop.f32.mrb[3].mxu1 }
 0x2f6   :  { %305 = vst [vmem:[%s555_s7 + $0x8] sm:$0xff] %v301_v0 }

</bundles_post_ra>
